<compile_context>
chip_gen: v5e
topology: v5e:2x2
jax: 0.10.0
libtpu: 0.0.40
codegen_flags: <defaults>
</compile_context>

<pallas_src>
import jax
import jax.numpy as jnp
from jax import lax
from jax.experimental import pallas as pl
from jax.experimental.pallas import tpu as pltpu


# ----------------------------------------------------------------------------
# Fused kernel: [concat -> conv3x3+BN+ReLU -> conv3x3+BN+ReLU] in one call
# ----------------------------------------------------------------------------
def _im2col3x3(x, H, W):
    """x: (H+2, W+2, C) -> (H*W, 9*C) patch matrix (tap-major, channel-minor)."""
    C = x.shape[-1]
    cols = []
    for dy in range(3):
        for dx in range(3):
            cols.append(x[dy:dy + H, dx:dx + W, :].reshape(H * W, C))
    return jnp.concatenate(cols, axis=-1)


def _up_double_conv_kernel(x2_ref, x1_ref, w1a_ref, w1b_ref, b1_ref,
                           w2_ref, b2_ref, o_ref, mid_ref):
    # x2_ref : (1, H+2, W+2, C2)  bf16   skip connection, 1-px zero halo
    # x1_ref : (1, H+2, W+2, C1)  bf16   upsampled + F.pad'ed x1, 1-px halo
    # w1a_ref: (9*C2, M)          bf16   conv1 weights for the x2 channel slice
    # w1b_ref: (9*C1, M)          bf16   conv1 weights for the x1 channel slice
    # b1_ref : (1, M)             f32    BN-folded bias (conv1)
    # w2_ref : (9*M, Cout)        bf16   conv2 weights (BN folded)
    # b2_ref : (1, Cout)          f32
    # o_ref  : (1, H, W, Cout)    f32
    # mid_ref: (H+2, W+2, M)      bf16   VMEM scratch: mid activation + halo
    H, W = o_ref.shape[1], o_ref.shape[2]
    M = mid_ref.shape[-1]
    Cout = o_ref.shape[-1]

    # ---- conv1 + BN + ReLU (channel concat fused via split weights) ----
    p2 = _im2col3x3(x2_ref[0], H, W)                       # (H*W, 9*C2) bf16
    p1 = _im2col3x3(x1_ref[0], H, W)                       # (H*W, 9*C1) bf16
    acc = jnp.dot(p2, w1a_ref[...], preferred_element_type=jnp.float32)
    acc = acc + jnp.dot(p1, w1b_ref[...], preferred_element_type=jnp.float32)
    mid = jnp.maximum(acc + b1_ref[...], 0.0)              # (H*W, M) f32

    # stash mid activation (bf16) with a zero halo in VMEM - no HBM round trip
    mid_ref[...] = jnp.zeros_like(mid_ref)
    mid_ref[1:H + 1, 1:W + 1, :] = mid.reshape(H, W, M).astype(mid_ref.dtype)

    # ---- conv2 + BN + ReLU ----
    pm = _im2col3x3(mid_ref[...], H, W)                    # (H*W, 9*M) bf16
    acc2 = jnp.dot(pm, w2_ref[...], preferred_element_type=jnp.float32)
    out = jnp.maximum(acc2 + b2_ref[...], 0.0)             # (H*W, Cout) f32
    o_ref[...] = out.reshape(1, H, W, Cout).astype(o_ref.dtype)


def up_double_conv(x2p, x1p, w1a, w1b, b1, w2r, b2):
    """All args NHWC / already halo-padded; weights im2col-reshaped, bf16."""
    N, Hp, Wp, C2 = x2p.shape
    C1 = x1p.shape[-1]
    H, W = Hp - 2, Wp - 2
    M = w1a.shape[-1]
    Cout = w2r.shape[-1]

    return pl.pallas_call(
        _up_double_conv_kernel,
        out_shape=jax.ShapeDtypeStruct((N, H, W, Cout), jnp.float32),
        grid_spec=pltpu.PrefetchScalarGridSpec(
            num_scalar_prefetch=0,
            grid=(N,),
            in_specs=[
                pl.BlockSpec((1, Hp, Wp, C2), lambda n: (n, 0, 0, 0)),
                pl.BlockSpec((1, Hp, Wp, C1), lambda n: (n, 0, 0, 0)),
                pl.BlockSpec((9 * C2, M), lambda n: (0, 0)),
                pl.BlockSpec((9 * C1, M), lambda n: (0, 0)),
                pl.BlockSpec((1, M), lambda n: (0, 0)),
                pl.BlockSpec((9 * M, Cout), lambda n: (0, 0)),
                pl.BlockSpec((1, Cout), lambda n: (0, 0)),
            ],
            out_specs=pl.BlockSpec((1, H, W, Cout), lambda n: (n, 0, 0, 0)),
            scratch_shapes=[pltpu.VMEM((Hp, Wp, M), jnp.bfloat16)],
        ),
        compiler_params=pltpu.CompilerParams(
            dimension_semantics=("parallel",),
            vmem_limit_bytes=64 * 1024 * 1024,
        ),
    )(x2p, x1p, w1a, w1b, b1, w2r, b2)


# ----------------------------------------------------------------------------
# Plain-JAX glue: bilinear x2 upsample (align_corners=True), F.pad-with-halo,
# BN folding, bf16 casting.
# ----------------------------------------------------------------------------
def _upsample_bilinear_x2_align_corners(x):  # x: NHWC
    N, H, W, C = x.shape
    Ho, Wo = 2 * H, 2 * W

    def coords(n_in, n_out):
        if n_out == 1 or n_in == 1:
            z = jnp.zeros((n_out,), jnp.float32)
            zi = jnp.zeros((n_out,), jnp.int32)
            return z, zi, zi
        src = jnp.arange(n_out, dtype=jnp.float32) * (n_in - 1) / (n_out - 1)
        lo = jnp.clip(jnp.floor(src).astype(jnp.int32), 0, n_in - 1)
        hi = jnp.clip(lo + 1, 0, n_in - 1)
        frac = src - lo.astype(jnp.float32)
        return frac, lo, hi

    fy, y0, y1 = coords(H, Ho)
    fx, x0, x1 = coords(W, Wo)

    top = x[:, y0, :, :]
    bot = x[:, y1, :, :]
    rows = top * (1.0 - fy)[None, :, None, None] + bot * fy[None, :, None, None]
    left = rows[:, :, x0, :]
    right = rows[:, :, x1, :]
    return left * (1.0 - fx)[None, None, :, None] + right * fx[None, None, :, None]


def _fold_bn(w_hwio, gamma, beta, mean, var, eps=1e-5):
    scale = gamma / jnp.sqrt(var + eps)                   # (Cout,)
    return w_hwio * scale[None, None, None, :], beta - mean * scale


def _crop_pad_nhwc(x, top, bottom, left, right, halo=0):
    """F.pad semantics (negative pad -> crop), plus `halo` extra zero pad."""
    H, W = x.shape[1], x.shape[2]
    x = x[:, max(-top, 0):H - max(-bottom, 0),
          max(-left, 0):W - max(-right, 0), :]
    return jnp.pad(x, ((0, 0),
                       (max(top, 0) + halo, max(bottom, 0) + halo),
                       (max(left, 0) + halo, max(right, 0) + halo),
                       (0, 0)))


def _prepare(params, x1_nchw, x2_nchw):
    # NCHW -> NHWC
    x1 = jnp.transpose(x1_nchw, (0, 2, 3, 1)).astype(jnp.float32)
    x2 = jnp.transpose(x2_nchw, (0, 2, 3, 1)).astype(jnp.float32)

    # 1) bilinear x2 upsample, align_corners=True
    # TODO(synk): the gather-based upsample still writes one (half-res) HBM
    # intermediate; it is not fused into the conv kernel.
    x1 = _upsample_bilinear_x2_align_corners(x1)

    # 2) F.pad of x1 to x2's spatial size, fused with the conv1 SAME halo;
    #    x2 only gets the 1-pixel halo.
    diffY = x2.shape[1] - x1.shape[1]
    diffX = x2.shape[2] - x1.shape[2]
    x1p = _crop_pad_nhwc(x1, diffY // 2, diffY - diffY // 2,
                         diffX // 2, diffX - diffX // 2, halo=1)
    x2p = _crop_pad_nhwc(x2, 0, 0, 0, 0, halo=1)

    C2 = x2p.shape[-1]
    C1 = x1p.shape[-1]

    # 3) fold BN (inference) into the conv weights, split conv1 weights by
    #    concat source (torch.cat([x2, x1], dim=1) -> x2 channels first) and
    #    reshape to the im2col layout (rows ordered dy, dx, cin).
    w1f, b1 = _fold_bn(params["w1"], *params["bn1"])      # (3,3,C2+C1,M)
    w2f, b2 = _fold_bn(params["w2"], *params["bn2"])      # (3,3,M,Cout)
    M = w1f.shape[-1]
    Cout = w2f.shape[-1]

    w1a = w1f[:, :, :C2, :].reshape(9 * C2, M).astype(jnp.bfloat16)
    w1b = w1f[:, :, C2:, :].reshape(9 * C1, M).astype(jnp.bfloat16)
    w2r = w2f.reshape(9 * M, Cout).astype(jnp.bfloat16)

    return (x2p.astype(jnp.bfloat16), x1p.astype(jnp.bfloat16),
            w1a, w1b, b1.reshape(1, M).astype(jnp.float32),
            w2r, b2.reshape(1, Cout).astype(jnp.float32))


@jax.jit
def up_forward(params, x1_nchw, x2_nchw):
    """Up.forward(x1, x2) with NCHW inputs/outputs (PyTorch convention)."""
    x2p, x1p, w1a, w1b, b1, w2r, b2 = _prepare(params, x1_nchw, x2_nchw)
    y = up_double_conv(x2p, x1p, w1a, w1b, b1, w2r, b2)   # NHWC f32
    return jnp.transpose(y, (0, 3, 1, 2))                 # NCHW


@jax.jit
def up_reference(params, x1_nchw, x2_nchw):
    """Pure-JAX reference using the same bf16-quantized inputs/weights."""
    x2p, x1p, w1a, w1b, b1, w2r, b2 = _prepare(params, x1_nchw, x2_nchw)
    C2, C1 = x2p.shape[-1], x1p.shape[-1]
    M, Cout = b1.shape[-1], b2.shape[-1]
    dn = ("NHWC", "HWIO", "NHWC")

    x = jnp.concatenate([x2p, x1p], axis=-1).astype(jnp.float32)
    w1 = jnp.concatenate([w1a.reshape(3, 3, C2, M),
                          w1b.reshape(3, 3, C1, M)], axis=2).astype(jnp.float32)
    y = lax.conv_general_dilated(x, w1, (1, 1), "VALID", dimension_numbers=dn)
    y = jnp.maximum(y + b1.reshape(1, 1, 1, M), 0.0).astype(jnp.bfloat16)
    y = jnp.pad(y, ((0, 0), (1, 1), (1, 1), (0, 0))).astype(jnp.float32)
    w2 = w2r.reshape(3, 3, M, Cout).astype(jnp.float32)
    z = lax.conv_general_dilated(y, w2, (1, 1), "VALID", dimension_numbers=dn)
    z = jnp.maximum(z + b2.reshape(1, 1, 1, Cout), 0.0)
    return jnp.transpose(z, (0, 3, 1, 2))


def init_up_params(key, in_channels, out_channels):
    """Deterministic synthetic params for Up(in_channels, out_channels, bilinear=True)."""
    c_cat = in_channels + out_channels
    mid = out_channels
    ks = jax.random.split(key, 4)

    def bn(k, c):
        k1, k2, k3, k4 = jax.random.split(k, 4)
        gamma = 1.0 + 0.1 * jax.random.normal(k1, (c,), jnp.float32)
        beta = 0.1 * jax.random.normal(k2, (c,), jnp.float32)
        mean = 0.1 * jax.random.normal(k3, (c,), jnp.float32)
        var = 0.5 + jnp.abs(jax.random.normal(k4, (c,), jnp.float32))
        return gamma, beta, mean, var

    # conv weights in HWIO (3,3,Cin,Cout); PyTorch layout would be (Cout,Cin,3,3).
    w1 = 0.1 * jax.random.normal(ks[0], (3, 3, c_cat, mid), jnp.float32)
    w2 = 0.1 * jax.random.normal(ks[1], (3, 3, mid, out_channels), jnp.float32)
    return {"w1": w1, "bn1": bn(ks[2], mid), "w2": w2, "bn2": bn(ks[3], out_channels)}


if __name__ == "__main__":
    key = jax.random.PRNGKey(0)
    k_p, k_x1, k_x2 = jax.random.split(key, 3)

    in_channels, out_channels = 8, 4
    N, H, W = 2, 8, 8  # x1 spatial; x2 (skip connection) is 2x larger

    params = init_up_params(k_p, in_channels, out_channels)
    x1 = jax.random.normal(k_x1, (N, in_channels, H, W), jnp.float32)           # NCHW
    x2 = jax.random.normal(k_x2, (N, out_channels, 2 * H, 2 * W), jnp.float32)  # NCHW

    out = jax.block_until_ready(up_forward(params, x1, x2))
    ref = jax.block_until_ready(up_reference(params, x1, x2))

    assert out.shape == (N, out_channels, 2 * H, 2 * W), out.shape
    assert bool(jnp.all(jnp.isfinite(out)))
    assert bool(jnp.allclose(out, ref, atol=2e-2, rtol=2e-2)), \
        float(jnp.max(jnp.abs(out - ref)))
    print("KERNEL_OK")
</pallas_src>

<mosaic_0001>
module attributes {stable_mosaic.version = 11 : i64} {
  func.func @_up_double_conv_kernel(%arg0: i32, %arg1: memref<1x18x18x4xbf16, #tpu.memory_space<vmem>>, %arg2: memref<1x18x18x8xbf16, #tpu.memory_space<vmem>>, %arg3: memref<36x4xbf16, #tpu.memory_space<vmem>>, %arg4: memref<72x4xbf16, #tpu.memory_space<vmem>>, %arg5: memref<1x4xf32, #tpu.memory_space<vmem>>, %arg6: memref<36x4xbf16, #tpu.memory_space<vmem>>, %arg7: memref<1x4xf32, #tpu.memory_space<vmem>>, %arg8: memref<1x16x16x4xf32, #tpu.memory_space<vmem>>, %arg9: memref<18x18x4xbf16, #tpu.memory_space<vmem>>) attributes {dimension_semantics = [#tpu.dimension_semantics<parallel>], iteration_bounds = array<i64: 2>, scalar_prefetch = 0 : i64, scratch_operands = 1 : i64, tpu.core_type = #tpu.core_type<tc>, window_params = [{transform_indices = @transform_0, window_bounds = array<i64: 1, 18, 18, 4>}, {transform_indices = @transform_1, window_bounds = array<i64: 1, 18, 18, 8>}, {pipeline_mode = #tpu.pipeline_mode<synchronous>, transform_indices = @transform_2, window_bounds = array<i64: 36, 4>}, {pipeline_mode = #tpu.pipeline_mode<synchronous>, transform_indices = @transform_3, window_bounds = array<i64: 72, 4>}, {pipeline_mode = #tpu.pipeline_mode<synchronous>, transform_indices = @transform_4, window_bounds = array<i64: 1, 4>}, {pipeline_mode = #tpu.pipeline_mode<synchronous>, transform_indices = @transform_5, window_bounds = array<i64: 36, 4>}, {pipeline_mode = #tpu.pipeline_mode<synchronous>, transform_indices = @transform_6, window_bounds = array<i64: 1, 4>}, {transform_indices = @transform_7, window_bounds = array<i64: 1, 16, 16, 4>}]} {
    %c0 = arith.constant 0 : index
    %c0_0 = arith.constant 0 : index
    %c0_1 = arith.constant 0 : index
    %c0_2 = arith.constant 0 : index
    %0 = vector.load %arg1[%c0, %c0_0, %c0_1, %c0_2] : memref<1x18x18x4xbf16, #tpu.memory_space<vmem>>, vector<1x18x18x4xbf16>
    %1 = vector.shape_cast %0 : vector<1x18x18x4xbf16> to vector<18x18x4xbf16>
    %2 = vector.extract_strided_slice %1 {offsets = [0, 0, 0], sizes = [16, 16, 4], strides = [1, 1, 1]} : vector<18x18x4xbf16> to vector<16x16x4xbf16>
    %3 = vector.shape_cast %2 : vector<16x16x4xbf16> to vector<256x4xbf16>
    %4 = vector.extract_strided_slice %1 {offsets = [0, 1, 0], sizes = [16, 16, 4], strides = [1, 1, 1]} : vector<18x18x4xbf16> to vector<16x16x4xbf16>
    %5 = vector.shape_cast %4 : vector<16x16x4xbf16> to vector<256x4xbf16>
    %6 = vector.extract_strided_slice %1 {offsets = [0, 2, 0], sizes = [16, 16, 4], strides = [1, 1, 1]} : vector<18x18x4xbf16> to vector<16x16x4xbf16>
    %7 = vector.shape_cast %6 : vector<16x16x4xbf16> to vector<256x4xbf16>
    %8 = vector.extract_strided_slice %1 {offsets = [1, 0, 0], sizes = [16, 16, 4], strides = [1, 1, 1]} : vector<18x18x4xbf16> to vector<16x16x4xbf16>
    %9 = vector.shape_cast %8 : vector<16x16x4xbf16> to vector<256x4xbf16>
    %10 = vector.extract_strided_slice %1 {offsets = [1, 1, 0], sizes = [16, 16, 4], strides = [1, 1, 1]} : vector<18x18x4xbf16> to vector<16x16x4xbf16>
    %11 = vector.shape_cast %10 : vector<16x16x4xbf16> to vector<256x4xbf16>
    %12 = vector.extract_strided_slice %1 {offsets = [1, 2, 0], sizes = [16, 16, 4], strides = [1, 1, 1]} : vector<18x18x4xbf16> to vector<16x16x4xbf16>
    %13 = vector.shape_cast %12 : vector<16x16x4xbf16> to vector<256x4xbf16>
    %14 = vector.extract_strided_slice %1 {offsets = [2, 0, 0], sizes = [16, 16, 4], strides = [1, 1, 1]} : vector<18x18x4xbf16> to vector<16x16x4xbf16>
    %15 = vector.shape_cast %14 : vector<16x16x4xbf16> to vector<256x4xbf16>
    %16 = vector.extract_strided_slice %1 {offsets = [2, 1, 0], sizes = [16, 16, 4], strides = [1, 1, 1]} : vector<18x18x4xbf16> to vector<16x16x4xbf16>
    %17 = vector.shape_cast %16 : vector<16x16x4xbf16> to vector<256x4xbf16>
    %18 = vector.extract_strided_slice %1 {offsets = [2, 2, 0], sizes = [16, 16, 4], strides = [1, 1, 1]} : vector<18x18x4xbf16> to vector<16x16x4xbf16>
    %19 = vector.shape_cast %18 : vector<16x16x4xbf16> to vector<256x4xbf16>
    %20 = tpu.concatenate %3, %5, %7, %9, %11, %13, %15, %17, %19 in 1 : vector<256x4xbf16>, vector<256x4xbf16>, vector<256x4xbf16>, vector<256x4xbf16>, vector<256x4xbf16>, vector<256x4xbf16>, vector<256x4xbf16>, vector<256x4xbf16>, vector<256x4xbf16> -> vector<256x36xbf16>
    %c0_3 = arith.constant 0 : index
    %c0_4 = arith.constant 0 : index
    %c0_5 = arith.constant 0 : index
    %c0_6 = arith.constant 0 : index
    %21 = vector.load %arg2[%c0_3, %c0_4, %c0_5, %c0_6] : memref<1x18x18x8xbf16, #tpu.memory_space<vmem>>, vector<1x18x18x8xbf16>
    %22 = vector.shape_cast %21 : vector<1x18x18x8xbf16> to vector<18x18x8xbf16>
    %23 = vector.extract_strided_slice %22 {offsets = [0, 0, 0], sizes = [16, 16, 8], strides = [1, 1, 1]} : vector<18x18x8xbf16> to vector<16x16x8xbf16>
    %24 = vector.shape_cast %23 : vector<16x16x8xbf16> to vector<256x8xbf16>
    %25 = vector.extract_strided_slice %22 {offsets = [0, 1, 0], sizes = [16, 16, 8], strides = [1, 1, 1]} : vector<18x18x8xbf16> to vector<16x16x8xbf16>
    %26 = vector.shape_cast %25 : vector<16x16x8xbf16> to vector<256x8xbf16>
    %27 = vector.extract_strided_slice %22 {offsets = [0, 2, 0], sizes = [16, 16, 8], strides = [1, 1, 1]} : vector<18x18x8xbf16> to vector<16x16x8xbf16>
    %28 = vector.shape_cast %27 : vector<16x16x8xbf16> to vector<256x8xbf16>
    %29 = vector.extract_strided_slice %22 {offsets = [1, 0, 0], sizes = [16, 16, 8], strides = [1, 1, 1]} : vector<18x18x8xbf16> to vector<16x16x8xbf16>
    %30 = vector.shape_cast %29 : vector<16x16x8xbf16> to vector<256x8xbf16>
    %31 = vector.extract_strided_slice %22 {offsets = [1, 1, 0], sizes = [16, 16, 8], strides = [1, 1, 1]} : vector<18x18x8xbf16> to vector<16x16x8xbf16>
    %32 = vector.shape_cast %31 : vector<16x16x8xbf16> to vector<256x8xbf16>
    %33 = vector.extract_strided_slice %22 {offsets = [1, 2, 0], sizes = [16, 16, 8], strides = [1, 1, 1]} : vector<18x18x8xbf16> to vector<16x16x8xbf16>
    %34 = vector.shape_cast %33 : vector<16x16x8xbf16> to vector<256x8xbf16>
    %35 = vector.extract_strided_slice %22 {offsets = [2, 0, 0], sizes = [16, 16, 8], strides = [1, 1, 1]} : vector<18x18x8xbf16> to vector<16x16x8xbf16>
    %36 = vector.shape_cast %35 : vector<16x16x8xbf16> to vector<256x8xbf16>
    %37 = vector.extract_strided_slice %22 {offsets = [2, 1, 0], sizes = [16, 16, 8], strides = [1, 1, 1]} : vector<18x18x8xbf16> to vector<16x16x8xbf16>
    %38 = vector.shape_cast %37 : vector<16x16x8xbf16> to vector<256x8xbf16>
    %39 = vector.extract_strided_slice %22 {offsets = [2, 2, 0], sizes = [16, 16, 8], strides = [1, 1, 1]} : vector<18x18x8xbf16> to vector<16x16x8xbf16>
    %40 = vector.shape_cast %39 : vector<16x16x8xbf16> to vector<256x8xbf16>
    %41 = tpu.concatenate %24, %26, %28, %30, %32, %34, %36, %38, %40 in 1 : vector<256x8xbf16>, vector<256x8xbf16>, vector<256x8xbf16>, vector<256x8xbf16>, vector<256x8xbf16>, vector<256x8xbf16>, vector<256x8xbf16>, vector<256x8xbf16>, vector<256x8xbf16> -> vector<256x72xbf16>
    %c0_7 = arith.constant 0 : index
    %c0_8 = arith.constant 0 : index
    %42 = vector.load %arg3[%c0_7, %c0_8] : memref<36x4xbf16, #tpu.memory_space<vmem>>, vector<36x4xbf16>
    %cst = arith.constant dense<0.000000e+00> : vector<256x4xf32>
    %43 = tpu.matmul %20, %42, %cst {dimension_numbers = #tpu.dot_dimension_numbers<[1], [0], [0], [1], [0, 0, 1, 1], [], []>} : vector<256x36xbf16>, vector<36x4xbf16>, vector<256x4xf32> -> vector<256x4xf32>
    %c0_9 = arith.constant 0 : index
    %c0_10 = arith.constant 0 : index
    %44 = vector.load %arg4[%c0_9, %c0_10] : memref<72x4xbf16, #tpu.memory_space<vmem>>, vector<72x4xbf16>
    %cst_11 = arith.constant dense<0.000000e+00> : vector<256x4xf32>
    %45 = tpu.matmul %41, %44, %cst_11 {dimension_numbers = #tpu.dot_dimension_numbers<[1], [0], [0], [1], [0, 0, 1, 1], [], []>} : vector<256x72xbf16>, vector<72x4xbf16>, vector<256x4xf32> -> vector<256x4xf32>
    %46 = arith.addf %43, %45 : vector<256x4xf32>
    %c0_12 = arith.constant 0 : index
    %c0_13 = arith.constant 0 : index
    %47 = vector.load %arg5[%c0_12, %c0_13] : memref<1x4xf32, #tpu.memory_space<vmem>>, vector<1x4xf32>
    %48 = vector.broadcast %47 : vector<1x4xf32> to vector<256x4xf32>
    %49 = arith.addf %46, %48 : vector<256x4xf32>
    %cst_14 = arith.constant 0.000000e+00 : f32
    %50 = vector.broadcast %cst_14 : f32 to vector<256x4xf32>
    %51 = arith.maximumf %49, %50 : vector<256x4xf32>
    %cst_15 = arith.constant 0.000000e+00 : bf16
    %52 = vector.broadcast %cst_15 : bf16 to vector<18x18x4xbf16>
    %c0_16 = arith.constant 0 : index
    %c0_17 = arith.constant 0 : index
    %c0_18 = arith.constant 0 : index
    %53 = vector.load %arg9[%c0_16, %c0_17, %c0_18] : memref<18x18x4xbf16, #tpu.memory_space<vmem>>, vector<18x18x4xbf16>
    tpu.vector_store %arg9[%c0_16, %c0_17, %c0_18], %52 {strides = array<i32>} : memref<18x18x4xbf16, #tpu.memory_space<vmem>>, vector<18x18x4xbf16>,
    %54 = vector.shape_cast %51 : vector<256x4xf32> to vector<16x16x4xf32>
    %55 = arith.truncf %54 : vector<16x16x4xf32> to vector<16x16x4xbf16>
    %c1 = arith.constant 1 : index
    %c1_19 = arith.constant 1 : index
    %c0_20 = arith.constant 0 : index
    %56 = vector.load %arg9[%c1, %c1_19, %c0_20] : memref<18x18x4xbf16, #tpu.memory_space<vmem>>, vector<16x16x4xbf16>
    tpu.vector_store %arg9[%c1, %c1_19, %c0_20], %55 {strides = array<i32>} : memref<18x18x4xbf16, #tpu.memory_space<vmem>>, vector<16x16x4xbf16>,
    %c0_21 = arith.constant 0 : index
    %c0_22 = arith.constant 0 : index
    %c0_23 = arith.constant 0 : index
    %57 = vector.load %arg9[%c0_21, %c0_22, %c0_23] : memref<18x18x4xbf16, #tpu.memory_space<vmem>>, vector<18x18x4xbf16>
    %58 = vector.extract_strided_slice %57 {offsets = [0, 0, 0], sizes = [16, 16, 4], strides = [1, 1, 1]} : vector<18x18x4xbf16> to vector<16x16x4xbf16>
    %59 = vector.shape_cast %58 : vector<16x16x4xbf16> to vector<256x4xbf16>
    %60 = vector.extract_strided_slice %57 {offsets = [0, 1, 0], sizes = [16, 16, 4], strides = [1, 1, 1]} : vector<18x18x4xbf16> to vector<16x16x4xbf16>
    %61 = vector.shape_cast %60 : vector<16x16x4xbf16> to vector<256x4xbf16>
    %62 = vector.extract_strided_slice %57 {offsets = [0, 2, 0], sizes = [16, 16, 4], strides = [1, 1, 1]} : vector<18x18x4xbf16> to vector<16x16x4xbf16>
    %63 = vector.shape_cast %62 : vector<16x16x4xbf16> to vector<256x4xbf16>
    %64 = vector.extract_strided_slice %57 {offsets = [1, 0, 0], sizes = [16, 16, 4], strides = [1, 1, 1]} : vector<18x18x4xbf16> to vector<16x16x4xbf16>
    %65 = vector.shape_cast %64 : vector<16x16x4xbf16> to vector<256x4xbf16>
    %66 = vector.extract_strided_slice %57 {offsets = [1, 1, 0], sizes = [16, 16, 4], strides = [1, 1, 1]} : vector<18x18x4xbf16> to vector<16x16x4xbf16>
    %67 = vector.shape_cast %66 : vector<16x16x4xbf16> to vector<256x4xbf16>
    %68 = vector.extract_strided_slice %57 {offsets = [1, 2, 0], sizes = [16, 16, 4], strides = [1, 1, 1]} : vector<18x18x4xbf16> to vector<16x16x4xbf16>
    %69 = vector.shape_cast %68 : vector<16x16x4xbf16> to vector<256x4xbf16>
    %70 = vector.extract_strided_slice %57 {offsets = [2, 0, 0], sizes = [16, 16, 4], strides = [1, 1, 1]} : vector<18x18x4xbf16> to vector<16x16x4xbf16>
    %71 = vector.shape_cast %70 : vector<16x16x4xbf16> to vector<256x4xbf16>
    %72 = vector.extract_strided_slice %57 {offsets = [2, 1, 0], sizes = [16, 16, 4], strides = [1, 1, 1]} : vector<18x18x4xbf16> to vector<16x16x4xbf16>
    %73 = vector.shape_cast %72 : vector<16x16x4xbf16> to vector<256x4xbf16>
    %74 = vector.extract_strided_slice %57 {offsets = [2, 2, 0], sizes = [16, 16, 4], strides = [1, 1, 1]} : vector<18x18x4xbf16> to vector<16x16x4xbf16>
    %75 = vector.shape_cast %74 : vector<16x16x4xbf16> to vector<256x4xbf16>
    %76 = tpu.concatenate %59, %61, %63, %65, %67, %69, %71, %73, %75 in 1 : vector<256x4xbf16>, vector<256x4xbf16>, vector<256x4xbf16>, vector<256x4xbf16>, vector<256x4xbf16>, vector<256x4xbf16>, vector<256x4xbf16>, vector<256x4xbf16>, vector<256x4xbf16> -> vector<256x36xbf16>
    %c0_24 = arith.constant 0 : index
    %c0_25 = arith.constant 0 : index
    %77 = vector.load %arg6[%c0_24, %c0_25] : memref<36x4xbf16, #tpu.memory_space<vmem>>, vector<36x4xbf16>
    %cst_26 = arith.constant dense<0.000000e+00> : vector<256x4xf32>
    %78 = tpu.matmul %76, %77, %cst_26 {dimension_numbers = #tpu.dot_dimension_numbers<[1], [0], [0], [1], [0, 0, 1, 1], [], []>} : vector<256x36xbf16>, vector<36x4xbf16>, vector<256x4xf32> -> vector<256x4xf32>
    %c0_27 = arith.constant 0 : index
    %c0_28 = arith.constant 0 : index
    %79 = vector.load %arg7[%c0_27, %c0_28] : memref<1x4xf32, #tpu.memory_space<vmem>>, vector<1x4xf32>
    %80 = vector.broadcast %79 : vector<1x4xf32> to vector<256x4xf32>
    %81 = arith.addf %78, %80 : vector<256x4xf32>
    %cst_29 = arith.constant 0.000000e+00 : f32
    %82 = vector.broadcast %cst_29 : f32 to vector<256x4xf32>
    %83 = arith.maximumf %81, %82 : vector<256x4xf32>
    %84 = vector.shape_cast %83 : vector<256x4xf32> to vector<1x16x16x4xf32>
    %c0_30 = arith.constant 0 : index
    %c0_31 = arith.constant 0 : index
    %c0_32 = arith.constant 0 : index
    %c0_33 = arith.constant 0 : index
    %85 = vector.load %arg8[%c0_30, %c0_31, %c0_32, %c0_33] : memref<1x16x16x4xf32, #tpu.memory_space<vmem>>, vector<1x16x16x4xf32>
    tpu.vector_store %arg8[%c0_30, %c0_31, %c0_32, %c0_33], %84 {strides = array<i32>} : memref<1x16x16x4xf32, #tpu.memory_space<vmem>>, vector<1x16x16x4xf32>,
    return
  }
  func.func @transform_0(%arg0: i32) -> (i32, i32, i32, i32) {
    %c0_i32 = arith.constant 0 : i32
    %c0_i32_0 = arith.constant 0 : i32
    %c0_i32_1 = arith.constant 0 : i32
    %c0_i32_2 = arith.constant 0 : i32
    return %arg0, %c0_i32, %c0_i32_0, %c0_i32_1 : i32, i32, i32, i32
  }
  func.func @transform_1(%arg0: i32) -> (i32, i32, i32, i32) {
    %c0_i32 = arith.constant 0 : i32
    %c0_i32_0 = arith.constant 0 : i32
    %c0_i32_1 = arith.constant 0 : i32
    %c0_i32_2 = arith.constant 0 : i32
    return %arg0, %c0_i32, %c0_i32_0, %c0_i32_1 : i32, i32, i32, i32
  }
  func.func @transform_2(%arg0: i32) -> (i32, i32) {
    %c0_i32 = arith.constant 0 : i32
    %c0_i32_0 = arith.constant 0 : i32
    %c0_i32_1 = arith.constant 0 : i32
    return %c0_i32, %c0_i32_0 : i32, i32
  }
  func.func @transform_3(%arg0: i32) -> (i32, i32) {
    %c0_i32 = arith.constant 0 : i32
    %c0_i32_0 = arith.constant 0 : i32
    %c0_i32_1 = arith.constant 0 : i32
    return %c0_i32, %c0_i32_0 : i32, i32
  }
  func.func @transform_4(%arg0: i32) -> (i32, i32) {
    %c0_i32 = arith.constant 0 : i32
    %c0_i32_0 = arith.constant 0 : i32
    %c0_i32_1 = arith.constant 0 : i32
    return %c0_i32, %c0_i32_0 : i32, i32
  }
  func.func @transform_5(%arg0: i32) -> (i32, i32) {
    %c0_i32 = arith.constant 0 : i32
    %c0_i32_0 = arith.constant 0 : i32
    %c0_i32_1 = arith.constant 0 : i32
    return %c0_i32, %c0_i32_0 : i32, i32
  }
  func.func @transform_6(%arg0: i32) -> (i32, i32) {
    %c0_i32 = arith.constant 0 : i32
    %c0_i32_0 = arith.constant 0 : i32
    %c0_i32_1 = arith.constant 0 : i32
    return %c0_i32, %c0_i32_0 : i32, i32
  }
  func.func @transform_7(%arg0: i32) -> (i32, i32, i32, i32) {
    %c0_i32 = arith.constant 0 : i32
    %c0_i32_0 = arith.constant 0 : i32
    %c0_i32_1 = arith.constant 0 : i32
    %c0_i32_2 = arith.constant 0 : i32
    return %arg0, %c0_i32, %c0_i32_0, %c0_i32_1 : i32, i32, i32, i32
  }
}

</mosaic_0001>

<bundles_post_ra>
// kernel: up_forward.1
= control target key start
LH: loop header
LB: loop body
LE: loop exit
PB: predicated region body
PF: predicated region fallthrough
CT: control target
= control target key end

     0   :  { %s6121_s24 = smov 0   ;;  %s10193_s0 = inlined_call_operand.vmem [shape: bf16[2,18,18,4], index: 0, kind: input, shape index: {}]   ;;  %s10194_s1 = inlined_call_operand.vmem [shape: bf16[2,18,18,8], index: 1, kind: input, shape index: {}]   ;;  %s10195_s2 = inlined_call_operand.vmem [shape: bf16[36,4], index: 2, kind: input, shape index: {}]   ;;  %s10196_s3 = inlined_call_operand.vmem [shape: bf16[72,4], index: 3, kind: input, shape index: {}]   ;;  %s10197_s4 = inlined_call_operand.vmem [shape: f32[1,4], index: 4, kind: input, shape index: {}]   ;;  %s10198_s5 = inlined_call_operand.vmem [shape: bf16[36,4], index: 5, kind: input, shape index: {}]   ;;  %s10199_s6 = inlined_call_operand.vmem [shape: f32[1,4], index: 6, kind: input, shape index: {}]   ;;  %s10200_s7 = inlined_call_operand.vmem [shape: f32[2,16,16,4], index: 7, kind: output, shape index: {}]  }
   0x1 LB: > { %s5570_s25 = sadd.s32 4294967295, %s6066_s24   ;;  %p5574_p0 = scmp.ge.s32.totalorder %s6066_s24, 1  ;;  %s6066_s24 = sphi %s6121_s24, %s17_s24  }
   0x2   : > { %p247_p1 = scmp.lt.s32.totalorder %s6066_s24, 3 }
   0x4   : > { %p248_p2 = pnand %p5574_p0, %p247_p1 }
   0x6   : > { %251 = sbr.rel (%p248_p2) target bundleno = 1457 (0x5b1), region = 48 }
   0xb   : > { %p284_p3 = scmp.lt.s32.totalorder %s5570_s25, 1  ;;  %vm354_vm0 = vsmask.f32 3328  ;;  %vm355_vm1 = vsmask.f32 7440  ;;  %s6068_s30 = smov 4  }
   0xc   : > { %vm6175_vm2 = vmor %vm354_vm0, %vm355_vm1  ;;  %vm789_vm3 = vcmask 1042432   ;;  %vm790_vm4 = vcmask 1046532   ;;  %s6069_s8 = smov 8   ;;  %s6070_s9 = smov 12   ;;  %vm10280_vm6 = vcmask 31744   ;;  %vm1439_vm7 = vcmask 64512  }
   0xd   : > { %s10790_s25 = smov (!%p284_p3, %s5570_s25), 1  ;;  %vm6462_vm5 = vmor %vm789_vm3, %vm790_vm4  ;;  %s6071_s10 = smov 16   ;;  %vm10279_vm8 = vcmask 97280   ;;  %vm1505_vm9 = vcmask 130048   ;;  %vm10278_vm10 = vcmask 162816   ;;  %vm1571_vm11 = vcmask 195584  }
   0xe   : > { %s6005_s26 = smul.u32 216, %s10790_s25  ;;  %s6072_s11 = smov 20   ;;  %vm10277_vm12 = vcmask 228352   ;;  %vm10275_vm13 = vcmask 1041408   ;;  %vm1637_vm14 = vcmask 261120   ;;  %vm10276_vm15 = vcmask 293888  }
   0xf   : > { %s6073_s12 = smov 24   ;;  %s6074_s13 = smov 28   ;;  %vm3104_vm0 = vcmask 1043456   ;;  %vm2898_vm1 = vcmask 326656   ;;  %vm2931_vm3 = vcmask 392192   ;;  %vm10281_vm4 = vcmask 457728  }
  0x10   : > { %s6137_s29 = scalar_lea.vmem %s10193_s0, %s6005_s26  ;;  %s6075_s14 = smov 32  }
  0x11   : > { %v6140_v0 = vld [vmem:[%s6137_s29 + $0x30] sm:$0xf]  ;;  %v6143_v1 = vld [vmem:[%s6137_s29 + $0x34] sm:$0xf]  ;;  %v6146_v2 = vld [vmem:[%s6137_s29 + $0x38] sm:$0x1]  ;;  %s7065_s17 = scalar_lea.vmem %s10194_s1, %s6005_s26 }
  0x12   : > { %v454_v3 = vshrl.u32 %v6140_v0, 16  ;;  %v457_v4 = vshll.u32 %v6140_v0, 16  ;;  %v463_v5 = vshll.u32 %v6143_v1, 16  ;;  %v467_v6 = vshrl.u32 %v6143_v1, 16  ;;  %v6153_v7 = vld [vmem:[%s6137_s29 + $0x18] sm:$0xf] }
  0x13   : > { %v473_v8 = vshll.u32 %v6146_v2, 16  ;;  %v6157_v9 = vld [vmem:[%s6137_s29 + $0x1c] sm:$0xf]  ;;  %v6160_v10 = vld [vmem:[%s6137_s29 + $0x20] sm:$0x1]  ;;  %v406_v11 = vshrl.u32 %v6153_v7, 16 }
  0x14   : > { %v456_v12 = vrot.slane %v454_v3, 4  ;;  %v459_v13 = vrot.slane %v457_v4, 5  ;;  %v465_v14 = vrot.slane %v463_v5, 5  ;;  %v469_v15 = vrot.slane %v467_v6, 4  ;;  %v6164_v16 = vld [vmem:[%s6137_s29] sm:$0xf] }
  0x15   : > { %v475_v17 = vrot.slane %v473_v8, 5  ;;  %v408_v18 = vrot.slane %v406_v11, 4  ;;  %v409_v19 = vshll.u32 %v6153_v7, 16  ;;  %v415_v20 = vshll.u32 %v6157_v9, 16  ;;  %v6171_v25 = vld [vmem:[%s6137_s29 + $0x4] sm:$0xf] }
  0x16   : > { %v460_v21 = vor.u32 %v459_v13, %v456_v12  ;;  %v470_v22 = vor.u32 %v469_v15, %v465_v14  ;;  %v419_v23 = vshrl.u32 %v6157_v9, 16  ;;  %v425_v24 = vshll.u32 %v6160_v10, 16  ;;  %v6182_v36 = vld [vmem:[%s6137_s29 + $0x8] sm:$0x1]  ;;  %v6191_v44 = vld [vmem:[%s6137_s29 + $0x3c] sm:$0xf] }
  0x17   : > { %v411_v27 = vrot.slane %v409_v19, 5  ;;  %v417_v28 = vrot.slane %v415_v20, 5  ;;  %v358_v29 = vshrl.u32 %v6164_v16, 16  ;;  %v361_v30 = vshll.u32 %v6164_v16, 16  ;;  %v6199_v56 = vld [vmem:[%s6137_s29 + $0x40] sm:$0xf] }
  0x18   : > { %v461_v31 = vrot.slane %v460_v21, 4  ;;  %v471_v32 = vrot.slane %v470_v22, 4  ;;  %v421_v33 = vrot.slane %v419_v23, 4  ;;  %v427_v34 = vrot.slane %v425_v24, 5  ;;  %v6205_v62 = vld [vmem:[%s6137_s29 + $0x44] sm:$0x1] }
  0x19   : > { %v412_v35 = vor.u32 %v411_v27, %v408_v18  ;;  %v360_v37 = vrot.slane %v358_v29, 4  ;;  %v363_v38 = vrot.slane %v361_v30, 5  ;;  %v367_v39 = vshll.u32 %v6171_v25, 16  ;;  %v6208_v63 = vld [vmem:[%s6137_s29 + $0x24] sm:$0xf]  ;;  %s6076_s26 = smov 40  }
  0x1a   : > { %v466_v40 = vsel %vm6175_vm2, %v461_v31, %v465_v14  ;;  %v476_v41 = vsel %vm6175_vm2, %v471_v32, %v475_v17  ;;  %v422_v42 = vor.u32 %v421_v33, %v417_v28  ;;  %v371_v43 = vshrl.u32 %v6171_v25, 16  ;;  %v6218_v14 = vld [vmem:[%s6137_s29 + $0x28] sm:$0xf]  ;;  %v6224_v19 = vld [vmem:[%s6137_s29 + $0x2c] sm:$0x1]  ;;  %s6077_s27 = smov 64  }
  0x1b   : > { %v1028_v45 = vunpack.c.l.b16 %v466_v40  ;;  %v1029_v46 = vunpack.c.l.b16 %v476_v41  ;;  %v413_v47 = vrot.slane %v412_v35, 4  ;;  %v364_v48 = vor.u32 %v363_v38, %v360_v37  ;;  %v6231_v27 = vld [vmem:[%s6137_s29 + $0xc] sm:$0xf]  ;;  %v6239_v40 = vld [vmem:[%s6137_s29 + $0x10] sm:$0xf]  ;;  %s6078_s28 = smov 56  }
  0x1c   : > { %v423_v49 = vrot.slane %v422_v42, 4  ;;  %v369_v50 = vrot.slane %v367_v39, 5  ;;  %v373_v51 = vrot.slane %v371_v43, 4  ;;  %v377_v52 = vshll.u32 %v6182_v36, 16  ;;  %s6079_s15 = smov 48  }
  0x1d   : > { %v6194_v53 = vpack.c.b16 %v1029_v46, %v1028_v45  ;;  %v418_v54 = vsel %vm6175_vm2, %v413_v47, %v417_v28  ;;  %v365_v55 = vrot.slane %v364_v48, 4  ;;  %v478_v57 = vshrl.u32 %v6191_v44, 16  ;;  %v6243_v47 = vld [vmem:[%s6137_s29 + $0x14] sm:$0x1] }
  0x1e   : > { %v428_v58 = vsel %vm6175_vm2, %v423_v49, %v427_v34  ;;  %v1024_v59 = vunpack.c.l.b16 %v418_v54  ;;  %v374_v60 = vor.u32 %v373_v51, %v369_v50  ;;  %v379_v61 = vrot.slane %v377_v52, 5  ;;  %v6250_v52 = vld [vmem:[%s6137_s29 + $0x60] sm:$0xf] }
  0x1f   : > { %10285 = vst [vmem:[#allocation3_spill] sm:$0xff] %v6194_v53  ;;  %1076 = vrot.lane.b32.xlu2 %v6194_v53, %s6068_s30  ;;  %v1025_v3 = vunpack.c.l.b16 %v428_v58  ;;  %v370_v4 = vsel %vm6175_vm2, %v365_v55, %v369_v50  ;;  %v480_v5 = vrot.slane %v478_v57, 4  ;;  %v481_v6 = vshll.u32 %v6191_v44, 16 }
  0x20   : > { %v375_v8 = vrot.slane %v374_v60, 4  ;;  %v1020_v11 = vunpack.c.l.b16 %v370_v4  ;;  %v487_v12 = vshll.u32 %v6199_v56, 16  ;;  %v491_v13 = vshrl.u32 %v6199_v56, 16 }
  0x21   : > { %v6220_v15 = vpack.c.b16 %v1025_v3, %v1024_v59  ;;  %v483_v17 = vrot.slane %v481_v6, 5  ;;  %v497_v18 = vshll.u32 %v6205_v62, 16  ;;  %v430_v20 = vshrl.u32 %v6208_v63, 16 }
  0x22   : > { %v380_v21 = vsel %vm6175_vm2, %v375_v8, %v379_v61  ;;  %v489_v22 = vrot.slane %v487_v12, 5  ;;  %v493_v23 = vrot.slane %v491_v13, 4  ;;  %v433_v24 = vshll.u32 %v6208_v63, 16  ;;  %v6260_v8 = vld [vmem:[%s6137_s29 + $0x64] sm:$0xf] }
  0x23   : > { %10286 = vst [vmem:[#allocation4_spill] sm:$0xff] %v6220_v15  ;;  %1072 = vrot.lane.b32.xlu1 %v6220_v15, %s6068_s30  ;;  %v1021_v28 = vunpack.c.l.b16 %v380_v21  ;;  %v484_v29 = vor.u32 %v483_v17, %v480_v5  ;;  %v499_v30 = vrot.slane %v497_v18, 5  ;;  %v432_v31 = vrot.slane %v430_v20, 4  ;;  %v6266_v20 = vld [vmem:[%s6137_s29 + $0x68] sm:$0x1] }
  0x24   : > { %v494_v32 = vor.u32 %v493_v23, %v489_v22  ;;  %v435_v33 = vrot.slane %v433_v24, 5  ;;  %v439_v34 = vshll.u32 %v6218_v14, 16  ;;  %v443_v35 = vshrl.u32 %v6218_v14, 16  ;;  %v6269_v21 = vld [vmem:[%s6137_s29 + $0x54] sm:$0xf] }
  0x25   : > { %v1052_v37 = vpack.c.b16 %v1021_v28, %v1020_v11  ;;  %v485_v38 = vrot.slane %v484_v29, 4  ;;  %v449_v39 = vshll.u32 %v6224_v19, 16  ;;  %v382_v41 = vshrl.u32 %v6231_v27, 16 }
  0x26   : > { %v495_v42 = vrot.slane %v494_v32, 4  ;;  %v436_v43 = vor.u32 %v435_v33, %v432_v31  ;;  %v441_v45 = vrot.slane %v439_v34, 5  ;;  %v445_v46 = vrot.slane %v443_v35, 4 }
  0x27   : > { %1068 = vrot.lane.b32.xlu0 %v1052_v37, %s6068_s30  ;;  %v490_v48 = vsel %vm6175_vm2, %v485_v38, %v489_v22  ;;  %v451_v49 = vrot.slane %v449_v39, 5  ;;  %v384_v50 = vrot.slane %v382_v41, 4  ;;  %v385_v51 = vshll.u32 %v6231_v27, 16  ;;  %v6280_v37 = vld [vmem:[%s6137_s29 + $0x58] sm:$0xf] }
  0x28   : > { %v500_v54 = vsel %vm6175_vm2, %v495_v42, %v499_v30  ;;  %v1030_v55 = vunpack.c.l.b16 %v490_v48  ;;  %v437_v57 = vrot.slane %v436_v43, 4  ;;  %v446_v58 = vor.u32 %v445_v46, %v441_v45 }
  0x29   : > { %v1031_v59 = vunpack.c.l.b16 %v500_v54  ;;  %v387_v60 = vrot.slane %v385_v51, 5  ;;  %v391_v61 = vshll.u32 %v6239_v40, 16  ;;  %v395_v3 = vshrl.u32 %v6239_v40, 16 }
  0x2a   : > { %v442_v4 = vsel %vm6175_vm2, %v437_v57, %v441_v45  ;;  %v447_v5 = vrot.slane %v446_v58, 4  ;;  %v401_v6 = vshll.u32 %v6243_v47, 16  ;;  %v550_v11 = vshrl.u32 %v6250_v52, 16  ;;  %v6288_v45 = vld [vmem:[%s6137_s29 + $0x5c] sm:$0x1] }
  0x2b   : > { %v6263_v12 = vpack.c.b16 %v1031_v59, %v1030_v55  ;;  %v1026_v13 = vunpack.c.l.b16 %v442_v4  ;;  %v388_v17 = vor.u32 %v387_v60, %v384_v50  ;;  %v393_v18 = vrot.slane %v391_v61, 5  ;;  %v6295_v58 = vld [vmem:[%s6137_s29 + $0x48] sm:$0xf] }
  0x2c   : > { %v452_v22 = vsel %vm6175_vm2, %v447_v5, %v451_v49  ;;  %v397_v23 = vrot.slane %v395_v3, 4  ;;  %v403_v24 = vrot.slane %v401_v6, 5  ;;  %v552_v28 = vrot.slane %v550_v11, 4 }
  0x2d   : > { %10287 = vst [vmem:[#allocation5_spill] sm:$0xff] %v6263_v12  ;;  %1078 = vrot.lane.b32.xlu2 %v6263_v12, %s6068_s30  ;;  %v1027_v29 = vunpack.c.l.b16 %v452_v22  ;;  %v389_v30 = vrot.slane %v388_v17, 4  ;;  %v553_v31 = vshll.u32 %v6250_v52, 16  ;;  %v559_v32 = vshll.u32 %v6260_v8, 16  ;;  %v6302_v22 = vld [vmem:[%s6137_s29 + $0x4c] sm:$0xf] }
  0x2e   : > { %v398_v33 = vor.u32 %v397_v23, %v393_v18  ;;  %v563_v34 = vshrl.u32 %v6260_v8, 16  ;;  %v569_v35 = vshll.u32 %v6266_v20, 16  ;;  %v526_v38 = vshrl.u32 %v6269_v21, 16 }
  0x2f   : > { %v6283_v39 = vpack.c.b16 %v1027_v29, %v1026_v13  ;;  %v394_v41 = vsel %vm6175_vm2, %v389_v30, %v393_v18  ;;  %v555_v42 = vrot.slane %v553_v31, 5  ;;  %v561_v43 = vrot.slane %v559_v32, 5  ;;  %v6310_v30 = vld [vmem:[%s6137_s29 + $0x50] sm:$0x1]  ;;  %v6314_v32 = vld [vmem:[%s6137_s29 + $0x84] sm:$0xf] }
  0x30   : > { %v399_v46 = vrot.slane %v398_v33, 4  ;;  %v1022_v48 = vunpack.c.l.b16 %v394_v41  ;;  %v565_v49 = vrot.slane %v563_v34, 4  ;;  %v571_v50 = vrot.slane %v569_v35, 5 }
  0x31   : > { %10288 = vst [vmem:[#allocation6_spill] sm:$0xff] %v6283_v39  ;;  %1074 = vrot.lane.b32.xlu1 %v6283_v39, %s6068_s30  ;;  %v556_v51 = vor.u32 %v555_v42, %v552_v28  ;;  %v528_v54 = vrot.slane %v526_v38, 4  ;;  %v529_v55 = vshll.u32 %v6269_v21, 16  ;;  %v535_v57 = vshll.u32 %v6280_v37, 16  ;;  %v6422_v39 = vld [vmem:[%s6137_s29 + $0xa4] sm:$0x1] }
  0x32   : > { %v404_v59 = vsel %vm6175_vm2, %v399_v46, %v403_v24  ;;  %v566_v60 = vor.u32 %v565_v49, %v561_v43  ;;  %v539_v61 = vshrl.u32 %v6280_v37, 16  ;;  %v545_v3 = vshll.u32 %v6288_v45, 16 }
  0x33   : > { %v1023_v4 = vunpack.c.l.b16 %v404_v59  ;;  %v557_v5 = vrot.slane %v556_v51, 4  ;;  %v531_v6 = vrot.slane %v529_v55, 5  ;;  %v537_v11 = vrot.slane %v535_v57, 5 }
  0x34   : > { %v567_v13 = vrot.slane %v566_v60, 4  ;;  %v541_v17 = vrot.slane %v539_v61, 4  ;;  %v547_v18 = vrot.slane %v545_v3, 5  ;;  %v502_v23 = vshrl.u32 %v6295_v58, 16  ;;  %v6329_v60 = vld [vmem:[%s6137_s29 + $0x88] sm:$0xf] }
  0x35   : > { %v6305_v28 = vpack.c.b16 %v1023_v4, %v1022_v48  ;;  %v562_v24 = vsel %vm6175_vm2, %v557_v5, %v561_v43  ;;  %v532_v29 = vor.u32 %v531_v6, %v528_v54  ;;  %v505_v31 = vshll.u32 %v6295_v58, 16  ;;  %v6332_v61 = vld [vmem:[%s6137_s29 + $0x8c] sm:$0x1] }
  0x36   : > { %v572_v33 = vsel %vm6175_vm2, %v567_v13, %v571_v50  ;;  %v1036_v34 = vunpack.c.l.b16 %v562_v24  ;;  %v542_v35 = vor.u32 %v541_v17, %v537_v11  ;;  %v504_v38 = vrot.slane %v502_v23, 4  ;;  %10291 = vst [vmem:[#allocation9_spill] sm:$0xff] %v6332_v61  ;;  %v6337_v13 = vld [vmem:[%s6137_s29 + $0x78] sm:$0xf] }
  0x37   : > { %10289 = vst [vmem:[#allocation7_spill] sm:$0xff] %v6305_v28  ;;  %1070 = vrot.lane.b32.xlu0 %v6305_v28, %s6068_s30  ;;  %v1037_v41 = vunpack.c.l.b16 %v572_v33  ;;  %v533_v42 = vrot.slane %v532_v29, 4  ;;  %v507_v43 = vrot.slane %v505_v31, 5  ;;  %v511_v46 = vshll.u32 %v6302_v22, 16  ;;  %v6403_v28 = vld [vmem:[%s6137_s29 + $0x9c] sm:$0xf] }
  0x38   : > { %v543_v48 = vrot.slane %v542_v35, 4  ;;  %v515_v49 = vshrl.u32 %v6302_v22, 16  ;;  %v521_v51 = vshll.u32 %v6310_v30, 16  ;;  %v622_v50 = vshrl.u32 %v6314_v32, 16 }
  0x39   : > { %v6324_v54 = vpack.c.b16 %v1037_v41, %v1036_v34  ;;  %v538_v55 = vsel %vm6175_vm2, %v533_v42, %v537_v11  ;;  %v508_v57 = vor.u32 %v507_v43, %v504_v38  ;;  %v513_v59 = vrot.slane %v511_v46, 5  ;;  %v6350_v41 = vld [vmem:[%s6137_s29 + $0x7c] sm:$0xf] }
  0x3a   : > { %v548_v3 = vsel %vm6175_vm2, %v543_v48, %v547_v18  ;;  %v1034_v4 = vunpack.c.l.b16 %v538_v55  ;;  %v517_v5 = vrot.slane %v515_v49, 4  ;;  %v523_v6 = vrot.slane %v521_v51, 5  ;;  %v6354_v51 = vld [vmem:[%s6137_s29 + $0x80] sm:$0x1] }
  0x3b   : > { %10290 = vst [vmem:[#allocation8_spill] sm:$0xff] %v6324_v54  ;;  %1084 = vrot.lane.b32.xlu2 %v6324_v54, %s6068_s30  ;;  %v1035_v17 = vunpack.c.l.b16 %v548_v3  ;;  %v509_v11 = vrot.slane %v508_v57, 4  ;;  %v624_v23 = vrot.slane %v622_v50, 4  ;;  %v625_v24 = vshll.u32 %v6314_v32, 16  ;;  %v6360_v3 = vld [vmem:[%s6137_s29 + $0x6c] sm:$0xf] }
  0x3c   : > { %v518_v29 = vor.u32 %v517_v5, %v513_v59  ;;  %v631_v31 = vshll.u32 %v6329_v60, 16  ;;  %v635_v18 = vshrl.u32 %v6329_v60, 16  ;;  %v641_v33 = vshll.u32 %v6332_v61, 16  ;;  %v6376_v54 = vld [vmem:[%s6137_s29 + $0x74] sm:$0x1] }
  0x3d   : > { %v6345_v34 = vpack.c.b16 %v1035_v17, %v1034_v4  ;;  %v514_v35 = vsel %vm6175_vm2, %v509_v11, %v513_v59  ;;  %v627_v38 = vrot.slane %v625_v24, 5  ;;  %v598_v42 = vshrl.u32 %v6337_v13, 16 }
  0x3e   : > { %v519_v43 = vrot.slane %v518_v29, 4  ;;  %v1032_v46 = vunpack.c.l.b16 %v514_v35  ;;  %v633_v48 = vrot.slane %v631_v31, 5  ;;  %v637_v49 = vrot.slane %v635_v18, 4 }
  0x3f   : > { %10292 = vst [vmem:[#allocation10_spill] sm:$0xff] %v6345_v34  ;;  %1082 = vrot.lane.b32.xlu1 %v6345_v34, %s6068_s30  ;;  %v628_v50 = vor.u32 %v627_v38, %v624_v23  ;;  %v643_v55 = vrot.slane %v641_v33, 5  ;;  %v600_v57 = vrot.slane %v598_v42, 4  ;;  %v601_v59 = vshll.u32 %v6337_v13, 16  ;;  %v6368_v38 = vld [vmem:[%s6137_s29 + $0x70] sm:$0xf] }
  0x40   : > { %v524_v4 = vsel %vm6175_vm2, %v519_v43, %v523_v6  ;;  %v638_v5 = vor.u32 %v637_v49, %v633_v48  ;;  %v607_v17 = vshll.u32 %v6350_v41, 16  ;;  %v611_v11 = vshrl.u32 %v6350_v41, 16 }
  0x41   : > { %v1033_v24 = vunpack.c.l.b16 %v524_v4  ;;  %v629_v29 = vrot.slane %v628_v50, 4  ;;  %v603_v23 = vrot.slane %v601_v59, 5  ;;  %v617_v31 = vshll.u32 %v6354_v51, 16  ;;  %v6379_v50 = vld [vmem:[%s6137_s29 + $0xa8] sm:$0xf] }
  0x42   : > { %v639_v18 = vrot.slane %v638_v5, 4  ;;  %v609_v33 = vrot.slane %v607_v17, 5  ;;  %v613_v35 = vrot.slane %v611_v11, 4  ;;  %v574_v42 = vshrl.u32 %v6360_v3, 16  ;;  %10294 = vst [vmem:[#allocation12_spill] sm:$0xff] %v6379_v50 }
  0x43   : > { %v6371_v6 = vpack.c.b16 %v1033_v24, %v1032_v46  ;;  %v634_v43 = vsel %vm6175_vm2, %v629_v29, %v633_v48  ;;  %v604_v49 = vor.u32 %v603_v23, %v600_v57  ;;  %v619_v34 = vrot.slane %v617_v31, 5 }
  0x44   : > { %v644_v59 = vsel %vm6175_vm2, %v639_v18, %v643_v55  ;;  %v1042_v4 = vunpack.c.l.b16 %v634_v43  ;;  %v614_v5 = vor.u32 %v613_v35, %v609_v33  ;;  %v576_v17 = vrot.slane %v574_v42, 4  ;;  %v6395_v43 = vld [vmem:[%s6137_s29 + $0xac] sm:$0xf] }
  0x45   : > { %10293 = vst [vmem:[#allocation11_spill] sm:$0xff] %v6371_v6  ;;  %1080 = vrot.lane.b32.xlu0 %v6371_v6, %s6068_s30  ;;  %v1043_v46 = vunpack.c.l.b16 %v644_v59  ;;  %v605_v11 = vrot.slane %v604_v49, 4  ;;  %v577_v48 = vshll.u32 %v6360_v3, 16  ;;  %v583_v57 = vshll.u32 %v6368_v38, 16  ;;  %v6398_v49 = vld [vmem:[%s6137_s29 + $0xb0] sm:$0x1] }
  0x46   : > { %v615_v24 = vrot.slane %v614_v5, 4  ;;  %v587_v29 = vshrl.u32 %v6368_v38, 16  ;;  %v593_v55 = vshll.u32 %v6376_v54, 16  ;;  %v694_v23 = vshrl.u32 %v6379_v50, 16  ;;  %10296 = vst [vmem:[#allocation14_spill] sm:$0xff] %v6395_v43 }
  0x47   : > { %v6390_v31 = vpack.c.b16 %v1043_v46, %v1042_v4  ;;  %v610_v18 = vsel %vm6175_vm2, %v605_v11, %v609_v33  ;;  %v579_v35 = vrot.slane %v577_v48, 5  ;;  %v585_v42 = vrot.slane %v583_v57, 5  ;;  %10297 = vst [vmem:[#allocation15_spill] sm:$0xff] %v6398_v49  ;;  %v6414_v6 = vld [vmem:[%s6137_s29 + $0xa0] sm:$0xf] }
  0x48   : > { %v620_v59 = vsel %vm6175_vm2, %v615_v24, %v619_v34  ;;  %v1040_v5 = vunpack.c.l.b16 %v610_v18  ;;  %v589_v53 = vrot.slane %v587_v29, 4  ;;  %v595_v12 = vrot.slane %v593_v55, 5 }
  0x49   : > { %10295 = vst [vmem:[#allocation13_spill] sm:$0xff] %v6390_v31  ;;  %1090 = vrot.lane.b32.xlu2 %v6390_v31, %s6068_s30  ;;  %v1041_v4 = vunpack.c.l.b16 %v620_v59  ;;  %v580_v33 = vor.u32 %v579_v35, %v576_v17  ;;  %v696_v46 = vrot.slane %v694_v23, 4  ;;  %v697_v11 = vshll.u32 %v6379_v50, 16 }
  0x4a   : > { %v590_v48 = vor.u32 %v589_v53, %v585_v42  ;;  %v703_v57 = vshll.u32 %v6395_v43, 16  ;;  %v707_v34 = vshrl.u32 %v6395_v43, 16  ;;  %v713_v24 = vshll.u32 %v6398_v49, 16 }
  0x4b   : > { %v6411_v29 = vpack.c.b16 %v1041_v4, %v1040_v5  ;;  %v581_v55 = vrot.slane %v580_v33, 4  ;;  %v699_v18 = vrot.slane %v697_v11, 5  ;;  %v670_v17 = vshrl.u32 %v6403_v28, 16  ;;  %v6426_v33 = vld [vmem:[%s6137_s29 + $0x90] sm:$0xf] }
  0x4c   : > { %v591_v23 = vrot.slane %v590_v48, 4  ;;  %v705_v35 = vrot.slane %v703_v57, 5  ;;  %v709_v59 = vrot.slane %v707_v34, 4  ;;  %v715_v53 = vrot.slane %v713_v24, 5 }
  0x4d   : > { %10298 = vst [vmem:[#allocation16_spill] sm:$0xff] %v6411_v29  ;;  %1088 = vrot.lane.b32.xlu1 %v6411_v29, %s6068_s30  ;;  %v586_v31 = vsel %vm6175_vm2, %v581_v55, %v585_v42  ;;  %v700_v15 = vor.u32 %v699_v18, %v696_v46  ;;  %v672_v5 = vrot.slane %v670_v17, 4  ;;  %v673_v4 = vshll.u32 %v6403_v28, 16 }
  0x4e   : > { %v596_v11 = vsel %vm6175_vm2, %v591_v23, %v595_v12  ;;  %v1038_v48 = vunpack.c.l.b16 %v586_v31  ;;  %v710_v57 = vor.u32 %v709_v59, %v705_v35  ;;  %v679_v34 = vshll.u32 %v6414_v6, 16  ;;  %v6439_v59 = vld [vmem:[%s6137_s29 + $0x94] sm:$0xf] }
  0x4f   : > { %v1039_v24 = vunpack.c.l.b16 %v596_v11  ;;  %v701_v29 = vrot.slane %v700_v15, 4  ;;  %v675_v42 = vrot.slane %v673_v4, 5  ;;  %v683_v46 = vshrl.u32 %v6414_v6, 16  ;;  %v6442_v11 = vld [vmem:[%s6137_s29 + $0x98] sm:$0x1] }
  0x50   : > { %v711_v55 = vrot.slane %v710_v57, 4  ;;  %v681_v18 = vrot.slane %v679_v34, 5  ;;  %v689_v17 = vshll.u32 %v6422_v39, 16  ;;  %v646_v49 = vshrl.u32 %v6426_v33, 16 }
  0x51   : > { %v6434_v43 = vpack.c.b16 %v1039_v24, %v1038_v48  ;;  %v706_v12 = vsel %vm6175_vm2, %v701_v29, %v705_v35  ;;  %v676_v31 = vor.u32 %v675_v42, %v672_v5  ;;  %v685_v23 = vrot.slane %v683_v46, 4 }
  0x52   : > { %v716_v15 = vsel %vm6175_vm2, %v711_v55, %v715_v53  ;;  %v1048_v4 = vunpack.c.l.b16 %v706_v12  ;;  %v691_v57 = vrot.slane %v689_v17, 5  ;;  %v648_v34 = vrot.slane %v646_v49, 4 }
  0x53   : > { %10299 = vst [vmem:[#allocation17_spill] sm:$0xff] %v6434_v43  ;;  %1086 = vrot.lane.b32.xlu0 %v6434_v43, %s6068_s30  ;;  %v1049_v48 = vunpack.c.l.b16 %v716_v15  ;;  %v677_v24 = vrot.slane %v676_v31, 4  ;;  %v686_v50 = vor.u32 %v685_v23, %v681_v18  ;;  %v649_v29 = vshll.u32 %v6426_v33, 16 }
  0x54   : > { %v655_v35 = vshll.u32 %v6439_v59, 16  ;;  %v659_v5 = vshrl.u32 %v6439_v59, 16  ;;  %v665_v42 = vshll.u32 %v6442_v11, 16 }
  0x55   : > { %v6452_v46 = vpack.c.b16 %v1049_v48, %v1048_v4  ;;  %v682_v49 = vsel %vm6175_vm2, %v677_v24, %v681_v18  ;;  %v687_v53 = vrot.slane %v686_v50, 4  ;;  %v651_v55 = vrot.slane %v649_v29, 5 }
  0x56   : > { %v1046_v17 = vunpack.c.l.b16 %v682_v49  ;;  %v657_v12 = vrot.slane %v655_v35, 5  ;;  %v661_v31 = vrot.slane %v659_v5, 4  ;;  %v667_v23 = vrot.slane %v665_v42, 5 }
  0x57   : > { %1096 = vrot.lane.b32.xlu2 %v6452_v46, %s6068_s30  ;;  %v692_v15 = vsel %vm6175_vm2, %v687_v53, %v691_v57  ;;  %v652_v43 = vor.u32 %v651_v55, %v648_v34  ;;  %v5580_v4 = vrot.slane %v6231_v27, 9  ;;  %v801_v18 = vrot.slane %v6239_v40, 5  ;;  %v6476_v53 = vld [vmem:[%s6137_s29 + $0xb4] sm:$0xf] }
  0x58   : > { %v1047_v48 = vunpack.c.l.b16 %v692_v15  ;;  %v662_v61 = vor.u32 %v661_v31, %v657_v12  ;;  %v804_v24 = vrot.slane %v6243_v47, 5  ;;  %v5579_v57 = vrot.slane %v6164_v16, 9  ;;  %v6492_v31 = vld [vmem:[%s6137_s29 + $0xbc] sm:$0x1] }
  0x59   : > { %v653_v29 = vrot.slane %v652_v43, 4  ;;  %v794_v34 = vrot.slane %v6171_v25, 5  ;;  %v797_v35 = vrot.slane %v6182_v36, 5  ;;  %v802_v42 = vsel %vm6462_vm5, %v5580_v4, %v801_v18  ;;  %v6483_v43 = vld [vmem:[%s6137_s29 + $0xb8] sm:$0xf] }
  0x5a   : > { %v6471_v27 = vpack.c.b16 %v1047_v48, %v1046_v17  ;;  %v663_v5 = vrot.slane %v662_v61, 4  ;;  %v803_v49 = vrot.slane %v801_v18, 4  ;;  %v1102_v47 = vunpack.c.l.b16 %v802_v42 }
  0x5b   : > { %v658_v40 = vsel %vm6175_vm2, %v653_v29, %v657_v12  ;;  %v795_v16 = vsel %vm6462_vm5, %v5579_v57, %v794_v34  ;;  %v796_v25 = vrot.slane %v794_v34, 4  ;;  %v718_v48 = vshrl.u32 %v6476_v53, 16 }
  0x5c   : > { %1094 = vrot.lane.b32.xlu1 %v6471_v27, %s6068_s30  ;;  %v668_v36 = vsel %vm6175_vm2, %v663_v5, %v667_v23  ;;  %v1044_v61 = vunpack.c.l.b16 %v658_v40  ;;  %v805_v55 = vsel %vm6462_vm5, %v803_v49, %v804_v24  ;;  %v1100_v17 = vunpack.c.l.b16 %v795_v16 }
  0x5d   : > { %v1045_v12 = vunpack.c.l.b16 %v668_v36  ;;  %v1103_v15 = vunpack.c.l.b16 %v805_v55  ;;  %v798_v4 = vsel %vm6462_vm5, %v796_v25, %v797_v35  ;;  %v721_v29 = vshll.u32 %v6476_v53, 16 }
  0x5e   : > { %v1101_v18 = vunpack.c.l.b16 %v798_v4  ;;  %v727_v57 = vshll.u32 %v6483_v43, 16  ;;  %v731_v23 = vshrl.u32 %v6483_v43, 16  ;;  %v720_v5 = vrot.slane %v718_v48, 4 }
  0x5f   : > { %v6500_v34 = vpack.c.b16 %v1045_v12, %v1044_v61  ;;  %v6502_v24 = vpack.c.b16 %v1103_v15, %v1102_v47  ;;  %v737_v42 = vshll.u32 %v6492_v31, 16  ;;  %v723_v40 = vrot.slane %v721_v29, 5 }
  0x60   : > { %v1132_v49 = vpack.c.b16 %v1101_v18, %v1100_v17  ;;  %v729_v16 = vrot.slane %v727_v57, 5  ;;  %v733_v35 = vrot.slane %v731_v23, 4  ;;  %v5583_v36 = vrot.slane %v6140_v0, 9 }
  0x61   : > { %1092 = vrot.lane.b32.xlu0 %v6500_v34, %s6068_s30  ;;  %1150 = vrot.lane.b32.xlu2 %v6502_v24, %s6069_s8  ;;  %v739_v25 = vrot.slane %v737_v42, 5  ;;  %v822_v47 = vrot.slane %v6143_v1, 5  ;;  %v825_v61 = vrot.slane %v6146_v2, 5  ;;  %v724_v55 = vor.u32 %v723_v40, %v720_v5 }
  0x62   : > { %v734_v12 = vor.u32 %v733_v35, %v729_v16  ;;  %v5582_v17 = vrot.slane %v6208_v63, 9  ;;  %v815_v15 = vrot.slane %v6218_v14, 5  ;;  %v818_v18 = vrot.slane %v6224_v19, 5 }
  0x63   : > { %v823_v4 = vsel %vm6462_vm5, %v5583_v36, %v822_v47  ;;  %v824_v48 = vrot.slane %v822_v47, 4  ;;  %v5581_v29 = vrot.slane %v6153_v7, 9  ;;  %v725_v0 = vrot.slane %v724_v55, 4 }
  0x64   : > { %1148 = vrot.lane.b32.xlu1 %v1132_v49, %s6069_s8  ;;  %v735_v1 = vrot.slane %v734_v12, 4  ;;  %v1108_v57 = vunpack.c.l.b16 %v823_v4  ;;  %v816_v2 = vsel %vm6462_vm5, %v5582_v17, %v815_v15  ;;  %v817_v14 = vrot.slane %v815_v15, 4 }
  0x65   : > { %v826_v63 = vsel %vm6462_vm5, %v824_v48, %v825_v61  ;;  %v1106_v23 = vunpack.c.l.b16 %v816_v2  ;;  %v808_v5 = vrot.slane %v6157_v9, 5  ;;  %v730_v19 = vsel %vm6175_vm2, %v725_v0, %v729_v16 }
  0x66   : > { %v740_v7 = vsel %vm6175_vm2, %v735_v1, %v739_v25  ;;  %v1109_v42 = vunpack.c.l.b16 %v826_v63  ;;  %v811_v49 = vrot.slane %v6160_v10, 5  ;;  %v1050_v40 = vunpack.c.l.b16 %v730_v19 }
  0x67   : > { %v1051_v35 = vunpack.c.l.b16 %v740_v7  ;;  %v819_v36 = vsel %vm6462_vm5, %v817_v14, %v818_v18  ;;  %v809_v47 = vsel %vm6462_vm5, %v5581_v29, %v808_v5  ;;  %v810_v55 = vrot.slane %v808_v5, 4 }
  0x68   : > { %v6533_v61 = vpack.c.b16 %v1109_v42, %v1108_v57  ;;  %v1107_v9 = vunpack.c.l.b16 %v819_v36  ;;  %v1104_v12 = vunpack.c.l.b16 %v809_v47  ;;  %v5586_v25 = vrot.slane %v6269_v21, 9 }
  0x69   : > { %v6535_v16 = vpack.c.b16 %v1051_v35, %v1050_v40  ;;  %v843_v17 = vrot.slane %v6280_v37, 5  ;;  %v846_v10 = vrot.slane %v6288_v45, 5  ;;  %v812_v4 = vsel %vm6462_vm5, %v810_v55, %v811_v49 }
  0x6a   : > { %1156 = vrot.lane.b32.xlu2 %v6533_v61, %s6069_s8  ;;  %v6542_v15 = vpack.c.b16 %v1107_v9, %v1106_v23  ;;  %v5585_v48 = vrot.slane %v6295_v58, 9  ;;  %v836_v18 = vrot.slane %v6302_v22, 5  ;;  %v1105_v21 = vunpack.c.l.b16 %v812_v4 }
  0x6b   : > { %1098 = vrot.lane.b32.xlu0 %v6535_v16, %s6068_s30  ;;  %v844_v37 = vsel %vm6462_vm5, %v5586_v25, %v843_v17  ;;  %v845_v45 = vrot.slane %v843_v17, 4  ;;  %v839_v29 = vrot.slane %v6310_v30, 5  ;;  %v5584_v22 = vrot.slane %v6191_v44, 9 }
  0x6c   : > { %1154 = vrot.lane.b32.xlu1 %v6542_v15, %s6069_s8  ;;  %v1114_v0 = vunpack.c.l.b16 %v844_v37  ;;  %v837_v1 = vsel %vm6462_vm5, %v5585_v48, %v836_v18  ;;  %v838_v58 = vrot.slane %v836_v18, 4  ;;  %v6558_v57 = vpack.c.b16 %v1105_v21, %v1104_v12 }
  0x6d   : > { %v847_v2 = vsel %vm6462_vm5, %v845_v45, %v846_v10  ;;  %v1112_v63 = vunpack.c.l.b16 %v837_v1  ;;  %v829_v14 = vrot.slane %v6199_v56, 5  ;;  %v832_v5 = vrot.slane %v6205_v62, 5 }
  0x6e   : > { %v1115_v23 = vunpack.c.l.b16 %v847_v2  ;;  %v840_v30 = vsel %vm6462_vm5, %v838_v58, %v839_v29  ;;  %v5589_v19 = vrot.slane %v6337_v13, 9  ;;  %v864_v49 = vrot.slane %v6350_v41, 5 }
  0x6f   : > { %v1113_v7 = vunpack.c.l.b16 %v840_v30  ;;  %v830_v44 = vsel %vm6462_vm5, %v5584_v22, %v829_v14  ;;  %v831_v42 = vrot.slane %v829_v14, 4  ;;  %v867_v35 = vrot.slane %v6354_v51, 5 }
  0x70   : > { %v6570_v40 = vpack.c.b16 %v1115_v23, %v1114_v0  ;;  %v5588_v56 = vrot.slane %v6360_v3, 9  ;;  %v865_v13 = vsel %vm6462_vm5, %v5589_v19, %v864_v49  ;;  %v866_v47 = vrot.slane %v864_v49, 4 }
  0x71   : > { %v6574_v36 = vpack.c.b16 %v1113_v7, %v1112_v63  ;;  %v833_v62 = vsel %vm6462_vm5, %v831_v42, %v832_v5  ;;  %v1110_v9 = vunpack.c.l.b16 %v830_v44  ;;  %v1120_v41 = vunpack.c.l.b16 %v865_v13  ;;  %v10302_v7 = vld [vmem:[#allocation9_spill] sm:$0xff] }
  0x72   : > { %1162 = vrot.lane.b32.xlu2 %v6570_v40, %s6069_s8  ;;  %v857_v55 = vrot.slane %v6368_v38, 5  ;;  %v860_v51 = vrot.slane %v6376_v54, 5  ;;  %v1111_v3 = vunpack.c.l.b16 %v833_v62  ;;  %v868_v12 = vsel %vm6462_vm5, %v866_v47, %v867_v35 }
  0x73   : > { %1152 = vrot.lane.b32.xlu0 %v6558_v57, %s6069_s8  ;;  %v5587_v25 = vrot.slane %v6250_v52, 9  ;;  %v850_v17 = vrot.slane %v6260_v8, 5  ;;  %v1121_v10 = vunpack.c.l.b16 %v868_v12  ;;  %v853_v54 = vrot.slane %v6266_v20, 5  ;;  %v10304_v12 = vld [vmem:[#allocation14_spill] sm:$0xff] }
  0x74   : > { %1160 = vrot.lane.b32.xlu1 %v6574_v36, %s6069_s8  ;;  %v858_v38 = vsel %vm6462_vm5, %v5588_v56, %v857_v55  ;;  %v859_v4 = vrot.slane %v857_v55, 4  ;;  %v5592_v21 = vrot.slane %v6403_v28, 9  ;;  %v885_v45 = vrot.slane %v6414_v6, 5  ;;  %v10303_v55 = vld [vmem:[#allocation12_spill] sm:$0xff] }
  0x75   : > { %v1118_v48 = vunpack.c.l.b16 %v858_v38  ;;  %v852_v18 = vrot.slane %v850_v17, 4  ;;  %v6596_v37 = vpack.c.b16 %v1121_v10, %v1120_v41  ;;  %v851_v8 = vsel %vm6462_vm5, %v5587_v25, %v850_v17  ;;  %v10305_v10 = vld [vmem:[#allocation15_spill] sm:$0xff] }
  0x76   : > { %v861_v52 = vsel %vm6462_vm5, %v859_v4, %v860_v51  ;;  %v6603_v29 = vpack.c.b16 %v1111_v3, %v1110_v9  ;;  %v888_v1 = vrot.slane %v6422_v39, 5  ;;  %v5591_v20 = vrot.slane %v6426_v33, 9 }
  0x77   : > { %v1119_v0 = vunpack.c.l.b16 %v861_v52  ;;  %v854_v28 = vsel %vm6462_vm5, %v852_v18, %v853_v54  ;;  %v886_v58 = vsel %vm6462_vm5, %v5592_v21, %v885_v45  ;;  %v887_v22 = vrot.slane %v885_v45, 4 }
  0x78   : > { %v878_v2 = vrot.slane %v6439_v59, 5  ;;  %v1116_v14 = vunpack.c.l.b16 %v851_v8  ;;  %v881_v6 = vrot.slane %v6442_v11, 5  ;;  %v5590_v23 = vrot.slane %v6314_v32, 9 }
  0x79   : > { %v6612_v63 = vpack.c.b16 %v1119_v0, %v1118_v48  ;;  %v889_v39 = vsel %vm6462_vm5, %v887_v22, %v888_v1  ;;  %v1126_v33 = vunpack.c.l.b16 %v886_v58  ;;  %v1117_v59 = vunpack.c.l.b16 %v854_v28  ;;  %v5933_v1 = vld [vmem:[%s6137_s29 + $0xc] sm:$0xff]  ;;  %v6667_v58 = vpop.permute.xlu2 %1076 }
  0x7a   : > { %1168 = vrot.lane.b32.xlu2 %v6596_v37, %s6069_s8  ;;  %v879_v30 = vsel %vm6462_vm5, %v5591_v20, %v878_v2  ;;  %v880_v5 = vrot.slane %v878_v2, 4  ;;  %v1127_v19 = vunpack.c.l.b16 %v889_v39  ;;  %v871_v11 = vrot.slane %v6329_v60, 5  ;;  %10306 = vst [vmem:[#allocation9_spill] sm:$0xff] %v6667_v58  ;;  %v6675_v22 = vld [vmem:[%s6137_s29 + $0x30] sm:$0xff]  ;;  %v6678_v2 = vld [vmem:[%s6137_s29 + $0x24] sm:$0xff] }
  0x7b   : > { %1158 = vrot.lane.b32.xlu0 %v6603_v29, %s6069_s8  ;;  %v874_v32 = vrot.slane %v10302_v7, 5  ;;  %v1124_v42 = vunpack.c.l.b16 %v879_v30  ;;  %v5594_v49 = vrot.slane %v6476_v53, 9  ;;  %v899_v35 = vrot.slane %v6483_v43, 5  ;;  %v6695_v39 = vld [vmem:[%s6137_s29 + $0x48] sm:$0xff]  ;;  %v6706_v30 = vld [vmem:[%s6137_s29 + $0x78] sm:$0xff]  ;;  %v6726_v7 = vld [vmem:[%s6137_s29 + $0x60] sm:$0xff] }
  0x7c   : > { %1166 = vrot.lane.b32.xlu1 %v6612_v63, %s6069_s8  ;;  %v882_v44 = vsel %vm6462_vm5, %v880_v5, %v881_v6  ;;  %v872_v62 = vsel %vm6462_vm5, %v5590_v23, %v871_v11  ;;  %v873_v13 = vrot.slane %v871_v11, 4  ;;  %v902_v60 = vrot.slane %v6492_v31, 5  ;;  %v6689_v6 = vld [vmem:[%s6137_s29 + $0x54] sm:$0xff]  ;;  %v6709_v5 = vld [vmem:[%s6137_s29 + $0x3c] sm:$0xff] }
  0x7d   : > { %v1125_v56 = vunpack.c.l.b16 %v882_v44  ;;  %v6635_v47 = vpack.c.b16 %v1127_v19, %v1126_v33  ;;  %v1122_v9 = vunpack.c.l.b16 %v872_v62  ;;  %v901_v41 = vrot.slane %v899_v35, 4  ;;  %v6692_v23 = vld [vmem:[%s6137_s29 + $0x18] sm:$0xff]  ;;  %v6731_v44 = vld [vmem:[%s6137_s29 + $0x90] sm:$0xff] }
  0x7e   : > { %v5593_v51 = vrot.slane %v10303_v55, 9  ;;  %v6638_v3 = vpack.c.b16 %v1117_v59, %v1116_v14  ;;  %v875_v53 = vsel %vm6462_vm5, %v873_v13, %v874_v32  ;;  %v892_v43 = vrot.slane %v10304_v12, 5  ;;  %v6712_v59 = vld [vmem:[%s6137_s29 + $0x6c] sm:$0xff]  ;;  %v6721_v19 = vld [vmem:[%s6137_s29 + $0x9c] sm:$0xff] }
  0x7f   : > { %v6643_v25 = vpack.c.b16 %v1125_v56, %v1124_v42  ;;  %v1123_v17 = vunpack.c.l.b16 %v875_v53  ;;  %v895_v38 = vrot.slane %v10305_v10, 5  ;;  %v900_v31 = vsel %vm6462_vm5, %v5594_v49, %v899_v35  ;;  %v6742_v49 = vld [vmem:[%s6137_s29 + $0xc0] sm:$0xff]  ;;  %v6748_v56 = vld [vmem:[%s6137_s29 + $0xb4] sm:$0xff]  ;;  %v10321_v10 = vld [vmem:[#allocation5_spill] sm:$0xff] }
  0x80   : > { %v903_v4 = vsel %vm6462_vm5, %v901_v41, %v902_v60  ;;  %v893_v54 = vsel %vm6462_vm5, %v5593_v51, %v892_v43  ;;  %v894_v48 = vrot.slane %v892_v43, 4  ;;  %v1130_v8 = vunpack.c.l.b16 %v900_v31  ;;  %v6745_v35 = vld [vmem:[%s6137_s29 + $0x84] sm:$0xff]  ;;  %v10314_v41 = vld [vmem:[#allocation6_spill] sm:$0xff]  ;;  %v10319_v43 = vld [vmem:[#allocation11_spill] sm:$0xff] }
  0x81   : > { %v6654_v18 = vpack.c.b16 %v1123_v17, %v1122_v9  ;;  %v1128_v21 = vunpack.c.l.b16 %v893_v54  ;;  %v1131_v45 = vunpack.c.l.b16 %v903_v4  ;;  %v6763_v9 = vld [vmem:[%s6137_s29 + $0xa8] sm:$0xff]  ;;  %v10317_v53 = vld [vmem:[#allocation4_spill] sm:$0xff]  ;;  %v10320_v17 = vld [vmem:[#allocation7_spill] sm:$0xff] }
  0x82   : > { %1174 = vrot.lane.b32.xlu2 %v6635_v47, %s6069_s8  ;;  %v896_v52 = vsel %vm6462_vm5, %v894_v48, %v895_v38  ;;  %v10325_v54 = vld [vmem:[#allocation17_spill] sm:$0xff]  ;;  %v10326_v48 = vld [vmem:[#allocation3_spill] sm:$0xff] }
  0x83   : > { %1164 = vrot.lane.b32.xlu0 %v6638_v3, %s6069_s8  ;;  %v1129_v0 = vunpack.c.l.b16 %v896_v52  ;;  %v6665_v28 = vpack.c.b16 %v1131_v45, %v1130_v8  ;;  %v6798_v8 = vld [vmem:[%s6137_s29 + $0xc0] sm:$0xf]  ;;  %v6801_v45 = vld [vmem:[%s6137_s29 + $0xc4] sm:$0xf] }
  0x84   : > { %1172 = vrot.lane.b32.xlu1 %v6643_v25, %s6069_s8 }
  0x85   : > { %v6663_v20 = vpack.c.b16 %v1129_v0, %v1128_v21  ;;  %v10327_v21 = vld [vmem:[#allocation8_spill] sm:$0xff] }
  0x87   : > { %v6684_v14 = vpop.permute.xlu2 %1078 }
  0x88   : > { %10307 = vst [vmem:[#allocation12_spill] sm:$0xff] %v6684_v14 }
  0x8a   : > { %1183 = vrot.lane.b32.xlu2 %v5933_v1, %s6070_s9  ;;  %v905_v1 = vshrl.u32 %v6798_v8, 16 }
  0x8b   : > { %1170 = vrot.lane.b32.xlu0 %v6654_v18, %s6069_s8 }
  0x8c   : > { %1178 = vrot.lane.b32.xlu1 %v6665_v28, %s6069_s8 }
  0x92   : > { %1189 = vrot.lane.b32.xlu2 %v6675_v22, %s6070_s9 }
  0x93   : > { %1176 = vrot.lane.b32.xlu0 %v6663_v20, %s6069_s8 }
  0x94   : > { %1187 = vrot.lane.b32.xlu1 %v6678_v2, %s6070_s9 }
  0x95   : > { %v6703_v33 = vpop.permute.xlu2 %1084  ;;  %v6723_v11 = vpop.permute.xlu1 %1072 }
  0x96   : > { %10308 = vst [vmem:[#allocation14_spill] sm:$0xff] %v6703_v33  ;;  %v10332_v33 = vld [vmem:[#allocation13_spill] sm:$0xff] }
  0x97   : > { %10309 = vst [vmem:[#allocation15_spill] sm:$0xff] %v6723_v11 }
  0x99   : > { %v6737_v42 = vpop.permute.xlu0 %1068 }
  0x9a   : > { %1195 = vrot.lane.b32.xlu2 %v6689_v6, %s6070_s9 }
  0x9b   : > { %1185 = vrot.lane.b32.xlu0 %v6692_v23, %s6070_s9 }
  0x9c   : > { %1193 = vrot.lane.b32.xlu1 %v6695_v39, %s6070_s9 }
  0xa2   : > { %1201 = vrot.lane.b32.xlu2 %v6706_v30, %s6070_s9 }
  0xa3   : > { %1191 = vrot.lane.b32.xlu0 %v6709_v5, %s6070_s9  ;;  %v6728_v32 = vpop.permute.xlu2 %1090  ;;  %v6750_v62 = vpop.permute.xlu1 %1074 }
  0xa4   : > { %1199 = vrot.lane.b32.xlu1 %v6712_v59, %s6070_s9  ;;  %10310 = vst [vmem:[#allocation18_spill] sm:$0xff] %v6728_v32  ;;  %v918_v32 = vshrl.u32 %v6801_v45, 16 }
  0xa5   : > { %10311 = vst [vmem:[#allocation19_spill] sm:$0xff] %v6750_v62 }
  0xa6   : > { %v920_v14 = vrot.slane %v918_v32, 4 }
  0xa9   : > { %v6760_v60 = vpop.permute.xlu0 %1070 }
  0xaa   : > { %1207 = vrot.lane.b32.xlu2 %v6721_v19, %s6070_s9  ;;  %10313 = vst [vmem:[#allocation21_spill] sm:$0xff] %v6760_v60 }
  0xab   : > { %1197 = vrot.lane.b32.xlu0 %v6726_v7, %s6070_s9 }
  0xac   : > { %1205 = vrot.lane.b32.xlu1 %v6731_v44, %s6070_s9 }
  0xb1   : > { %v6752_v13 = vpop.permute.xlu2 %1096  ;;  %v6767_v55 = vpop.permute.xlu1 %1082 }
  0xb2   : > { %10312 = vst [vmem:[#allocation20_spill] sm:$0xff] %v6752_v13  ;;  %1213 = vrot.lane.b32.xlu2 %v6742_v49, %s6070_s9  ;;  %v914_v13 = vshll.u32 %v6801_v45, 16 }
  0xb3   : > { %1203 = vrot.lane.b32.xlu0 %v6745_v35, %s6070_s9  ;;  %10315 = vst [vmem:[#allocation6_spill] sm:$0xff] %v6767_v55 }
  0xb4   : > { %1211 = vrot.lane.b32.xlu1 %v6748_v56, %s6070_s9 }
  0xb7   : > { %v6775_v12 = vpop.permute.xlu0 %1080 }
  0xb8   : > { %10318 = vst [vmem:[#allocation4_spill] sm:$0xff] %v6775_v12  ;;  %v916_v12 = vrot.slane %v914_v13, 5 }
  0xba   : > { %1222 = vrot.lane.b32.xlu2 %v10314_v41, %s6071_s10  ;;  %v921_v11 = vor.u32 %v920_v14, %v916_v12 }
  0xbb   : > { %1209 = vrot.lane.b32.xlu0 %v6763_v9, %s6070_s9  ;;  %v6771_v51 = vpop.permute.xlu2 %1150 }
  0xbc   : > { %10316 = vst [vmem:[#allocation22_spill] sm:$0xff] %v6771_v51  ;;  %1220 = vrot.lane.b32.xlu1 %v10317_v53, %s6071_s10  ;;  %v922_v13 = vrot.slane %v921_v11, 4 }
  0xbf   : > { %v6783_v38 = vpop.permute.xlu1 %1088 }
  0xc0   : > { %10322 = vst [vmem:[#allocation11_spill] sm:$0xff] %v6783_v38  ;;  %v10330_v38 = vld [vmem:[#allocation10_spill] sm:$0xff] }
  0xc2   : > { %1228 = vrot.lane.b32.xlu2 %v10319_v43, %s6071_s10 }
  0xc3   : > { %1218 = vrot.lane.b32.xlu0 %v10320_v17, %s6071_s10  ;;  %v908_v17 = vshll.u32 %v6798_v8, 16 }
  0xc4   : > { %1226 = vrot.lane.b32.xlu1 %v10321_v10, %s6071_s10  ;;  %v6785_v31 = vpop.permute.xlu2 %1156 }
  0xc5   : > { %10323 = vst [vmem:[#allocation7_spill] sm:$0xff] %v6785_v31  ;;  %v6787_v4 = vpop.permute.xlu0 %1086  ;;  %v910_v55 = vrot.slane %v908_v17, 5  ;;  %v350_v31 = vld [vmem:[%s6137_s29 + $0xc8] sm:$0x1] }
  0xc6   : > { %10324 = vst [vmem:[#allocation5_spill] sm:$0xff] %v6787_v4  ;;  %v924_v51 = vshll.u32 %v350_v31, 16 }
  0xc8   : > { %v926_v32 = vrot.slane %v924_v51, 5 }
  0xca   : > { %1234 = vrot.lane.b32.xlu2 %v10325_v54, %s6071_s10 }
  0xcb   : > { %1224 = vrot.lane.b32.xlu0 %v10326_v48, %s6071_s10 }
  0xcc   : > { %1232 = vrot.lane.b32.xlu1 %v10327_v21, %s6071_s10  ;;  %v6795_v52 = vpop.permute.xlu2 %1162 }
  0xcd   : > { %10328 = vst [vmem:[#allocation17_spill] sm:$0xff] %v6795_v52  ;;  %v907_v52 = vrot.slane %v905_v1, 4 }
  0xce   : > { %v6803_v0 = vpop.permute.xlu1 %1094 }
  0xcf   : > { %10329 = vst [vmem:[#allocation3_spill] sm:$0xff] %v6803_v0  ;;  %v911_v62 = vor.u32 %v910_v55, %v907_v52  ;;  %v927_v55 = vsel %vm6175_vm2, %v922_v13, %v926_v32 }
  0xd0   : > { %v1216_v11 = vunpack.c.l.b16 %v927_v55 }
  0xd1   : > { %v912_v1 = vrot.slane %v911_v62, 4 }
  0xd2   : > { %1240 = vrot.lane.b32.xlu2 %v6500_v34, %s6071_s10 }
  0xd3   : > { %1230 = vrot.lane.b32.xlu0 %v10330_v38, %s6071_s10  ;;  %v6813_v4 = vpop.permute.xlu0 %1092  ;;  %v917_v14 = vsel %vm6175_vm2, %v912_v1, %v916_v12 }
  0xd4   : > { %10331 = vst [vmem:[#allocation8_spill] sm:$0xff] %v6813_v4  ;;  %1238 = vrot.lane.b32.xlu1 %v10332_v33, %s6071_s10  ;;  %v6817_v0 = vpop.permute.xlu2 %1168  ;;  %v10334_v4 = vld [vmem:[#allocation16_spill] sm:$0xff]  ;;  %v1215_v62 = vunpack.c.l.b16 %v917_v14 }
  0xd5   : > { %10333 = vst [vmem:[#allocation10_spill] sm:$0xff] %v6817_v0 }
  0xd6   : > { %v6820_v58 = vpop.permute.xlu1 %1148  ;;  %v6850_v1 = vpack.c.b16 %v1216_v11, %v1215_v62  ;;  %v933_v11 = vrot.slane %v6801_v45, 5 }
  0xda   : > { %1246 = vrot.lane.b32.xlu2 %v6535_v16, %s6071_s10 }
  0xdb   : > { %1236 = vrot.lane.b32.xlu0 %v10334_v4, %s6071_s10 }
  0xdc   : > { %1244 = vrot.lane.b32.xlu1 %v6452_v46, %s6071_s10  ;;  %v6828_v0 = vpop.permute.xlu2 %1174 }
  0xdd   : > { %10335 = vst [vmem:[#allocation13_spill] sm:$0xff] %v6828_v0  ;;  %v6830_v17 = vpop.permute.xlu0 %1098 }
  0xde   : > { %10336 = vst [vmem:[#allocation16_spill] sm:$0xff] %v6830_v17  ;;  %v6832_v60 = vpop.permute.xlu1 %1154 }
  0xdf   : > { %10337 = vst [vmem:[#allocation23_spill] sm:$0xff] %v6832_v60  ;;  %v7249_v60 = vld [vmem:[%s7065_s17 + $0x30] sm:$0xf] }
  0xe2   : > { %1255 = vrot.lane.b32.xlu2 %v6558_v57, %s6072_s11 }
  0xe3   : > { %1242 = vrot.lane.b32.xlu0 %v6471_v27, %s6071_s10 }
  0xe4   : > { %1253 = vrot.lane.b32.xlu1 %v6502_v24, %s6072_s11  ;;  %v6844_v51 = vpop.permute.xlu2 %1183 }
  0xe5   : > { %v6846_v52 = vpop.permute.xlu0 %1152 }
  0xe6   : > { %10338 = vst [vmem:[#allocation24_spill] sm:$0xff] %v6846_v52  ;;  %v6848_v12 = vpop.permute.xlu1 %1160  ;;  %v7252_v52 = vld [vmem:[%s7065_s17 + $0x34] sm:$0xf] }
  0xe7   : > { %10339 = vst [vmem:[#allocation25_spill] sm:$0xff] %v6848_v12 }
  0xea   : > { %1261 = vrot.lane.b32.xlu2 %v6603_v29, %s6072_s11 }
  0xeb   : > { %1248 = vrot.lane.b32.xlu0 %v6850_v1, %s6071_s10 }
  0xec   : > { %1259 = vrot.lane.b32.xlu1 %v6533_v61, %s6072_s11  ;;  %v6858_v13 = vpop.permute.xlu2 %1189 }
  0xed   : > { %10340 = vst [vmem:[#allocation26_spill] sm:$0xff] %v6858_v13  ;;  %v6860_v24 = vpop.permute.xlu0 %1158 }
  0xee   : > { %10341 = vst [vmem:[#allocation27_spill] sm:$0xff] %v6860_v24  ;;  %v6862_v32 = vpop.permute.xlu1 %1166 }
  0xef   : > { %10342 = vst [vmem:[#allocation28_spill] sm:$0xff] %v6862_v32  ;;  %v5595_v32 = vrot.slane %v6798_v8, 9 }
  0xf1   : > { %v934_v45 = vsel %vm6462_vm5, %v5595_v32, %v933_v11 }
  0xf2   : > { %1267 = vrot.lane.b32.xlu2 %v6638_v3, %s6072_s11 }
  0xf3   : > { %1257 = vrot.lane.b32.xlu0 %v6542_v15, %s6072_s11 }
  0xf4   : > { %1265 = vrot.lane.b32.xlu1 %v6570_v40, %s6072_s11  ;;  %v6870_v14 = vpop.permute.xlu2 %1195 }
  0xf5   : > { %10343 = vst [vmem:[#allocation29_spill] sm:$0xff] %v6870_v14  ;;  %v6872_v55 = vpop.permute.xlu0 %1164  ;;  %v936_v14 = vrot.slane %v350_v31, 5  ;;  %v1250_v31 = vunpack.c.l.b16 %v934_v45 }
  0xf6   : > { %10344 = vst [vmem:[#allocation30_spill] sm:$0xff] %v6872_v55  ;;  %v6874_v62 = vpop.permute.xlu1 %1172  ;;  %v935_v55 = vrot.slane %v933_v11, 4 }
  0xf7   : > { %10345 = vst [vmem:[#allocation31_spill] sm:$0xff] %v6874_v62 }
  0xf8   : > { %v937_v12 = vsel %vm6462_vm5, %v935_v55, %v936_v14 }
  0xfa   : > { %1273 = vrot.lane.b32.xlu2 %v6654_v18, %s6072_s11 }
  0xfb   : > { %1263 = vrot.lane.b32.xlu0 %v6574_v36, %s6072_s11 }
  0xfc   : > { %1271 = vrot.lane.b32.xlu1 %v6596_v37, %s6072_s11  ;;  %v6883_v17 = vpop.permute.xlu2 %1201 }
  0xfd   : > { %10346 = vst [vmem:[#allocation32_spill] sm:$0xff] %v6883_v17  ;;  %v6885_v0 = vpop.permute.xlu0 %1170 }
  0xfe   : > { %10347 = vst [vmem:[#allocation33_spill] sm:$0xff] %v6885_v0  ;;  %v6888_v62 = vpop.permute.xlu1 %1178  ;;  %v1251_v0 = vunpack.c.l.b16 %v937_v12 }
  0xff   : > { %10348 = vst [vmem:[#allocation34_spill] sm:$0xff] %v6888_v62 }
 0x100   : > { %v6906_v32 = vpack.c.b16 %v1251_v0, %v1250_v31  ;;  %v5949_v31 = vld [vmem:[%s6137_s29 + $0xcc] sm:$0xff] }
 0x102   : > { %1279 = vrot.lane.b32.xlu2 %v6663_v20, %s6072_s11 }
 0x103   : > { %1269 = vrot.lane.b32.xlu0 %v6612_v63, %s6072_s11 }
 0x104   : > { %1277 = vrot.lane.b32.xlu1 %v6635_v47, %s6072_s11  ;;  %v6900_v8 = vpop.permute.xlu2 %1207 }
 0x105   : > { %10349 = vst [vmem:[#allocation35_spill] sm:$0xff] %v6900_v8  ;;  %v6902_v62 = vpop.permute.xlu0 %1176 }
 0x106   : > { %10350 = vst [vmem:[#allocation36_spill] sm:$0xff] %v6902_v62  ;;  %v6904_v17 = vpop.permute.xlu1 %1187 }
 0x107   : > { %10351 = vst [vmem:[#allocation37_spill] sm:$0xff] %v6904_v17 }
 0x10a   : > { %1288 = vrot.lane.b32.xlu2 %v6692_v23, %s6073_s12 }
 0x10b   : > { %1275 = vrot.lane.b32.xlu0 %v6643_v25, %s6072_s11 }
 0x10c   : > { %1283 = vrot.lane.b32.xlu1 %v6906_v32, %s6072_s11  ;;  %v6914_v14 = vpop.permute.xlu2 %1213 }
 0x10d   : > { %10352 = vst [vmem:[#allocation38_spill] sm:$0xff] %v6914_v14  ;;  %v6916_v55 = vpop.permute.xlu0 %1185  ;;  %v7018_v14 = vld [vmem:[%s6137_s29 + $0xd0] sm:$0xf] }
 0x10e   : > { %10353 = vst [vmem:[#allocation39_spill] sm:$0xff] %v6916_v55  ;;  %v6918_v12 = vpop.permute.xlu1 %1193  ;;  %v952_v62 = vshrl.u32 %v7018_v14, 16 }
 0x10f   : > { %10354 = vst [vmem:[#allocation40_spill] sm:$0xff] %v6918_v12 }
 0x112   : > { %1294 = vrot.lane.b32.xlu2 %v6709_v5, %s6073_s12 }
 0x113   : > { %1281 = vrot.lane.b32.xlu0 %v6665_v28, %s6072_s11 }
 0x114   : > { %1292 = vrot.lane.b32.xlu1 %v6675_v22, %s6073_s12  ;;  %v6926_v23 = vpop.permute.xlu2 %1222 }
 0x115   : > { %10355 = vst [vmem:[#allocation41_spill] sm:$0xff] %v6926_v23  ;;  %v6928_v0 = vpop.permute.xlu0 %1191 }
 0x116   : > { %10356 = vst [vmem:[#allocation42_spill] sm:$0xff] %v6928_v0  ;;  %v6930_v11 = vpop.permute.xlu1 %1199 }
 0x117   : > { %10357 = vst [vmem:[#allocation43_spill] sm:$0xff] %v6930_v11 }
 0x11a   : > { %1300 = vrot.lane.b32.xlu2 %v6726_v7, %s6073_s12 }
 0x11b   : > { %1290 = vrot.lane.b32.xlu0 %v6678_v2, %s6073_s12 }
 0x11c   : > { %1298 = vrot.lane.b32.xlu1 %v6689_v6, %s6073_s12  ;;  %v6938_v5 = vpop.permute.xlu2 %1228 }
 0x11d   : > { %10358 = vst [vmem:[#allocation44_spill] sm:$0xff] %v6938_v5  ;;  %v6940_v45 = vpop.permute.xlu0 %1197 }
 0x11e   : > { %10359 = vst [vmem:[#allocation45_spill] sm:$0xff] %v6940_v45  ;;  %v6942_v22 = vpop.permute.xlu1 %1205 }
 0x11f   : > { %10360 = vst [vmem:[#allocation46_spill] sm:$0xff] %v6942_v22 }
 0x122   : > { %1306 = vrot.lane.b32.xlu2 %v6745_v35, %s6073_s12 }
 0x123   : > { %1296 = vrot.lane.b32.xlu0 %v6695_v39, %s6073_s12 }
 0x124   : > { %1304 = vrot.lane.b32.xlu1 %v6706_v30, %s6073_s12  ;;  %v6950_v2 = vpop.permute.xlu2 %1234 }
 0x125   : > { %10361 = vst [vmem:[#allocation47_spill] sm:$0xff] %v6950_v2  ;;  %v6952_v7 = vpop.permute.xlu0 %1203 }
 0x126   : > { %10362 = vst [vmem:[#allocation48_spill] sm:$0xff] %v6952_v7  ;;  %v6954_v6 = vpop.permute.xlu1 %1211 }
 0x127   : > { %10363 = vst [vmem:[#allocation49_spill] sm:$0xff] %v6954_v6 }
 0x12a   : > { %1312 = vrot.lane.b32.xlu2 %v6763_v9, %s6073_s12 }
 0x12b   : > { %1302 = vrot.lane.b32.xlu0 %v6712_v59, %s6073_s12 }
 0x12c   : > { %1310 = vrot.lane.b32.xlu1 %v6721_v19, %s6073_s12  ;;  %v6962_v35 = vpop.permute.xlu2 %1240 }
 0x12d   : > { %10364 = vst [vmem:[#allocation50_spill] sm:$0xff] %v6962_v35  ;;  %v6964_v39 = vpop.permute.xlu0 %1209  ;;  %v954_v35 = vrot.slane %v952_v62, 4 }
 0x12e   : > { %10365 = vst [vmem:[#allocation51_spill] sm:$0xff] %v6964_v39  ;;  %v6966_v30 = vpop.permute.xlu1 %1220 }
 0x12f   : > { %10366 = vst [vmem:[#allocation52_spill] sm:$0xff] %v6966_v30 }
 0x132   : > { %1318 = vrot.lane.b32.xlu2 %v5949_v31, %s6073_s12 }
 0x133   : > { %1308 = vrot.lane.b32.xlu0 %v6731_v44, %s6073_s12 }
 0x134   : > { %1316 = vrot.lane.b32.xlu1 %v6742_v49, %s6073_s12  ;;  %v6974_v9 = vpop.permute.xlu2 %1246 }
 0x135   : > { %10367 = vst [vmem:[#allocation53_spill] sm:$0xff] %v6974_v9  ;;  %v6976_v59 = vpop.permute.xlu0 %1218 }
 0x136   : > { %v6978_v19 = vpop.permute.xlu1 %1226 }
 0x137   : > { %10368 = vst [vmem:[#allocation54_spill] sm:$0xff] %v6978_v19 }
 0x13a   : > { %1327 = vrot.lane.b32.xlu2 %v10326_v48, %s6074_s13 }
 0x13b   : > { %1314 = vrot.lane.b32.xlu0 %v6748_v56, %s6073_s12 }
 0x13c   : > { %1325 = vrot.lane.b32.xlu1 %v10314_v41, %s6074_s13  ;;  %v6986_v44 = vpop.permute.xlu2 %1255 }
 0x13d   : > { %10369 = vst [vmem:[#allocation55_spill] sm:$0xff] %v6986_v44  ;;  %v6988_v49 = vpop.permute.xlu0 %1224 }
 0x13e   : > { %10370 = vst [vmem:[#allocation56_spill] sm:$0xff] %v6988_v49  ;;  %v6990_v31 = vpop.permute.xlu1 %1232 }
 0x13f   : > { %10371 = vst [vmem:[#allocation57_spill] sm:$0xff] %v6990_v31  ;;  %v7117_v31 = vld [vmem:[%s7065_s17 + $0x1c] sm:$0xf] }
 0x140   : > { %v1786_v5 = vshrl.u32 %v7117_v31, 16 }
 0x142   : > { %1333 = vrot.lane.b32.xlu2 %v10330_v38, %s6074_s13 }
 0x143   : > { %1323 = vrot.lane.b32.xlu0 %v10317_v53, %s6074_s13 }
 0x144   : > { %1331 = vrot.lane.b32.xlu1 %v10319_v43, %s6074_s13  ;;  %v6998_v56 = vpop.permute.xlu2 %1261  ;;  %v7015_v43 = vld [vmem:[%s6137_s29 + $0xcc] sm:$0xf] }
 0x145   : > { %10372 = vst [vmem:[#allocation58_spill] sm:$0xff] %v6998_v56  ;;  %v7000_v48 = vpop.permute.xlu0 %1230  ;;  %v939_v6 = vshrl.u32 %v7015_v43, 16  ;;  %v7150_v56 = vld [vmem:[%s7065_s17 + $0x10] sm:$0xf] }
 0x146   : > { %10373 = vst [vmem:[#allocation59_spill] sm:$0xff] %v7000_v48  ;;  %v7002_v41 = vpop.permute.xlu1 %1238 }
 0x147   : > { %10374 = vst [vmem:[#allocation60_spill] sm:$0xff] %v7002_v41  ;;  %v7037_v41 = vld [vmem:[%s6137_s29 + $0xd4] sm:$0x1] }
 0x148   : > { %v970_v48 = vrot.slane %v7037_v41, 5 }
 0x14a   : > { %1339 = vrot.lane.b32.xlu2 %v10334_v4, %s6074_s13  ;;  %v942_v4 = vshll.u32 %v7015_v43, 16 }
 0x14b   : > { %1329 = vrot.lane.b32.xlu0 %v10321_v10, %s6074_s13  ;;  %v948_v10 = vshll.u32 %v7018_v14, 16 }
 0x14c   : > { %1337 = vrot.lane.b32.xlu1 %v10325_v54, %s6074_s13  ;;  %v7010_v38 = vpop.permute.xlu2 %1267  ;;  %v944_v39 = vrot.slane %v942_v4, 5 }
 0x14d   : > { %10375 = vst [vmem:[#allocation61_spill] sm:$0xff] %v7010_v38  ;;  %v7012_v53 = vpop.permute.xlu0 %1236  ;;  %v950_v8 = vrot.slane %v948_v10, 5 }
 0x14e   : > { %10376 = vst [vmem:[#allocation62_spill] sm:$0xff] %v7012_v53  ;;  %v7020_v9 = vpop.permute.xlu1 %1244 }
 0x14f   : > { %10377 = vst [vmem:[#allocation63_spill] sm:$0xff] %v7020_v9  ;;  %v941_v9 = vrot.slane %v939_v6, 4 }
 0x151   : > { %v945_v53 = vor.u32 %v944_v39, %v941_v9 }
 0x152   : > { %1345 = vrot.lane.b32.xlu2 %v6471_v27, %s6074_s13  ;;  %v955_v27 = vor.u32 %v954_v35, %v950_v8 }
 0x153   : > { %1335 = vrot.lane.b32.xlu0 %v10327_v21, %s6074_s13  ;;  %v958_v21 = vshll.u32 %v7037_v41, 16  ;;  %v946_v62 = vrot.slane %v945_v53, 4  ;;  %v7079_v53 = vld [vmem:[%s7065_s17 + $0x4] sm:$0xf] }
 0x154   : > { %1343 = vrot.lane.b32.xlu1 %v6500_v34, %s6074_s13  ;;  %v7032_v54 = vpop.permute.xlu2 %1273  ;;  %v956_v6 = vrot.slane %v955_v27, 4 }
 0x155   : > { %10378 = vst [vmem:[#allocation64_spill] sm:$0xff] %v7032_v54  ;;  %v7034_v22 = vpop.permute.xlu0 %1242  ;;  %v960_v4 = vrot.slane %v958_v21, 5  ;;  %v951_v35 = vsel %vm6175_vm2, %v946_v62, %v950_v8 }
 0x156   : > { %10379 = vst [vmem:[#allocation65_spill] sm:$0xff] %v7034_v22  ;;  %v7039_v7 = vpop.permute.xlu1 %1253  ;;  %v7100_v22 = vld [vmem:[%s7065_s17 + $0x24] sm:$0xf] }
 0x157   : > { %v1797_v54 = vshrl.u32 %v7100_v22, 16  ;;  %v1800_v2 = vshll.u32 %v7100_v22, 16 }
 0x15a   : > { %1351 = vrot.lane.b32.xlu2 %v6850_v1, %s6074_s13  ;;  %v961_v1 = vsel %vm6175_vm2, %v956_v6, %v960_v4  ;;  %v1738_v6 = vshrl.u32 %v7079_v53, 16 }
 0x15b   : > { %1341 = vrot.lane.b32.xlu0 %v10332_v33, %s6074_s13  ;;  %v1321_v33 = vunpack.c.l.b16 %v961_v1 }
 0x15c   : > { %1349 = vrot.lane.b32.xlu1 %v6535_v16, %s6074_s13  ;;  %v7048_v34 = vpop.permute.xlu2 %1279  ;;  %v1320_v16 = vunpack.c.l.b16 %v951_v35 }
 0x15d   : > { %10380 = vst [vmem:[#allocation66_spill] sm:$0xff] %v7048_v34  ;;  %v7050_v10 = vpop.permute.xlu0 %1248 }
 0x15e   : > { %10381 = vst [vmem:[#allocation67_spill] sm:$0xff] %v7050_v10  ;;  %v7052_v39 = vpop.permute.xlu1 %1259  ;;  %v1322_v62 = vpack.c.b16 %v1321_v33, %v1320_v16  ;;  %v1740_v10 = vrot.slane %v1738_v6, 4  ;;  %v7095_v33 = vld [vmem:[%s7065_s17 + $0x8] sm:$0x1]  ;;  %v967_v6 = vrot.slane %v7018_v14, 5 }
 0x15f   : > { %10382 = vst [vmem:[#allocation68_spill] sm:$0xff] %v7052_v39 }
 0x162   : > { %1360 = vrot.lane.b32.xlu2 %v6542_v15, %s6075_s14  ;;  %v7076_v15 = vld [vmem:[%s7065_s17] sm:$0xf] }
 0x163   : > { %1347 = vrot.lane.b32.xlu0 %v6452_v46, %s6074_s13  ;;  %v1725_v21 = vshrl.u32 %v7076_v15, 16  ;;  %v1728_v46 = vshll.u32 %v7076_v15, 16 }
 0x164   : > { %1358 = vrot.lane.b32.xlu1 %v6558_v57, %s6075_s14  ;;  %v7071_v8 = vpop.permute.xlu2 %1288  ;;  %v1734_v57 = vshll.u32 %v7079_v53, 16 }
 0x165   : > { %v7073_v9 = vpop.permute.xlu0 %1257  ;;  %v1727_v4 = vrot.slane %v1725_v21, 4  ;;  %v1730_v35 = vrot.slane %v1728_v46, 5  ;;  %v7105_v46 = vld [vmem:[%s7065_s17 + $0x28] sm:$0xf] }
 0x166   : > { %10383 = vst [vmem:[#allocation69_spill] sm:$0xff] %v7073_v9  ;;  %v7081_v27 = vpop.permute.xlu1 %1265  ;;  %v1736_v1 = vrot.slane %v1734_v57, 5  ;;  %v1744_v57 = vshll.u32 %v7095_v33, 16  ;;  %v1806_v11 = vshll.u32 %v7105_v46, 16  ;;  %v1810_v38 = vshrl.u32 %v7105_v46, 16 }
 0x167   : > { %10384 = vst [vmem:[#allocation70_spill] sm:$0xff] %v7081_v27  ;;  %v1731_v21 = vor.u32 %v1730_v35, %v1727_v4  ;;  %v5596_v4 = vrot.slane %v7015_v43, 9  ;;  %v969_v27 = vrot.slane %v967_v6, 4  ;;  %v1799_v43 = vrot.slane %v1797_v54, 4  ;;  %v7147_v54 = vld [vmem:[%s7065_s17 + $0x2c] sm:$0x1] }
 0x168   : > { %v1746_v45 = vrot.slane %v1744_v57, 5  ;;  %v7138_v57 = vld [vmem:[%s7065_s17 + $0xc] sm:$0xf] }
 0x16a   : > { %1366 = vrot.lane.b32.xlu2 %v6574_v36, %s6075_s14 }
 0x16b   : > { %1353 = vrot.lane.b32.xlu0 %v1322_v62, %s6074_s13  ;;  %v1741_v62 = vor.u32 %v1740_v10, %v1736_v1  ;;  %v1732_v10 = vrot.slane %v1731_v21, 4  ;;  %v1802_v21 = vrot.slane %v1800_v2, 5  ;;  %v968_v2 = vsel %vm6462_vm5, %v5596_v4, %v967_v6 }
 0x16c   : > { %1364 = vrot.lane.b32.xlu1 %v6603_v29, %s6075_s14  ;;  %v7092_v16 = vpop.permute.xlu2 %1294  ;;  %v7110_v29 = vld [vmem:[%s7065_s17 + $0x18] sm:$0xf]  ;;  %v1749_v6 = vshrl.u32 %v7138_v57, 16  ;;  %v1752_v4 = vshll.u32 %v7138_v57, 16 }
 0x16d   : > { %10385 = vst [vmem:[#allocation71_spill] sm:$0xff] %v7092_v16  ;;  %v7097_v34 = vpop.permute.xlu0 %1263  ;;  %v1773_v14 = vshrl.u32 %v7110_v29, 16  ;;  %v1776_v35 = vshll.u32 %v7110_v29, 16 }
 0x16e   : > { %10386 = vst [vmem:[#allocation72_spill] sm:$0xff] %v7097_v34  ;;  %v7102_v36 = vpop.permute.xlu1 %1271  ;;  %v1782_v34 = vshll.u32 %v7117_v31, 16 }
 0x16f   : > { %10387 = vst [vmem:[#allocation73_spill] sm:$0xff] %v7102_v36  ;;  %v1742_v36 = vrot.slane %v1741_v62, 4  ;;  %v1812_v62 = vrot.slane %v1810_v38, 4  ;;  %v1778_v24 = vrot.slane %v1776_v35, 5  ;;  %v971_v38 = vsel %vm6462_vm5, %v969_v27, %v970_v48 }
 0x172   : > { %1372 = vrot.lane.b32.xlu2 %v6612_v63, %s6075_s14 }
 0x173   : > { %1362 = vrot.lane.b32.xlu0 %v6533_v61, %s6075_s14  ;;  %v7135_v61 = vrot.slane %v1806_v11, 5  ;;  %v1747_v11 = vsel %vm6175_vm2, %v1742_v36, %v1746_v45  ;;  %v1816_v45 = vshll.u32 %v7147_v54, 16  ;;  %v1758_v36 = vshll.u32 %v7150_v56, 16 }
 0x174   : > { %1370 = vrot.lane.b32.xlu1 %v6638_v3, %s6075_s14  ;;  %v7129_v63 = vpop.permute.xlu2 %1300  ;;  %v1737_v3 = vsel %vm6175_vm2, %v1732_v10, %v1736_v1  ;;  %v1803_v1 = vor.u32 %v1802_v21, %v1799_v43  ;;  %v7159_v10 = vld [vmem:[%s7065_s17 + $0x20] sm:$0x1]  ;;  %v7170_v48 = vunpack.c.l.b16 %v1747_v11  ;;  %v7173_v43 = vld [vmem:[%s7065_s17 + $0x48] sm:$0xf]  ;;  %v1754_v11 = vrot.slane %v1752_v4, 5 }
 0x175   : > { %10388 = vst [vmem:[#allocation74_spill] sm:$0xff] %v7129_v63  ;;  %v7133_v12 = vpop.permute.xlu0 %1269  ;;  %v1775_v63 = vrot.slane %v1773_v14, 4  ;;  %v7163_v14 = vunpack.c.l.b16 %v1737_v3  ;;  %v1813_v35 = vor.u32 %v1812_v62, %v7135_v61  ;;  %v1792_v62 = vshll.u32 %v7159_v10, 16 }
 0x176   : > { %10389 = vst [vmem:[#allocation75_spill] sm:$0xff] %v7133_v12  ;;  %v7140_v41 = vpop.permute.xlu1 %1277  ;;  %v1788_v12 = vrot.slane %v1786_v5, 4  ;;  %v1355_v5 = vunpack.c.l.b16 %v968_v2  ;;  %v1804_v3 = vrot.slane %v1803_v1, 4  ;;  %v1751_v2 = vrot.slane %v1749_v6, 4 }
 0x177   : > { %10390 = vst [vmem:[#allocation76_spill] sm:$0xff] %v7140_v41  ;;  %v7156_v41 = vrot.slane %v1782_v34, 5  ;;  %v1356_v34 = vunpack.c.l.b16 %v971_v38  ;;  %v1779_v27 = vor.u32 %v1778_v24, %v1775_v63  ;;  %v1762_v24 = vshrl.u32 %v7150_v56, 16 }
 0x178   : > { %v1814_v38 = vrot.slane %v1813_v35, 4  ;;  %v7186_v19 = vrot.slane %v1758_v36, 5  ;;  %v1869_v0 = vshrl.u32 %v7173_v43, 16  ;;  %v2416_v1 = vpack.c.b16 %v7170_v48, %v7163_v14 }
 0x179   : > { %v1789_v21 = vor.u32 %v1788_v12, %v7156_v41  ;;  %v7189_v12 = vld [vmem:[%s7065_s17 + $0x4c] sm:$0xf]  ;;  %v7196_v6 = vpack.c.b16 %v1356_v34, %v1355_v5  ;;  %v1780_v4 = vrot.slane %v1779_v27, 4  ;;  %v1764_v35 = vrot.slane %v1762_v24, 4  ;;  %v7211_v5 = vld [vmem:[%s7065_s17 + $0x3c] sm:$0xf] }
 0x17a   : > { %1378 = vrot.lane.b32.xlu2 %v6643_v25, %s6075_s14  ;;  %v1794_v36 = vrot.slane %v1792_v62, 5  ;;  %v1871_v16 = vrot.slane %v1869_v0, 4  ;;  %v1872_v39 = vshll.u32 %v7173_v43, 16  ;;  %v1755_v49 = vor.u32 %v1754_v11, %v1751_v2  ;;  %v7218_v62 = vld [vmem:[%s7065_s17 + $0x40] sm:$0xf] }
 0x17b   : > { %1368 = vrot.lane.b32.xlu0 %v6570_v40, %s6075_s14  ;;  %v1818_v40 = vrot.slane %v1816_v45, 5  ;;  %v1790_v45 = vrot.slane %v1789_v21, 4  ;;  %v1878_v14 = vshll.u32 %v7189_v12, 16  ;;  %v1882_v48 = vshrl.u32 %v7189_v12, 16 }
 0x17c   : > { %1376 = vrot.lane.b32.xlu1 %v6654_v18, %s6075_s14  ;;  %v7181_v25 = vpop.permute.xlu2 %1306  ;;  %v1765_v27 = vor.u32 %v1764_v35, %v7186_v19  ;;  %v1874_v21 = vrot.slane %v1872_v39, 5  ;;  %v1854_v35 = vshll.u32 %v7218_v62, 16 }
 0x17d   : > { %10391 = vst [vmem:[#allocation77_spill] sm:$0xff] %v7181_v25  ;;  %v7184_v63 = vpop.permute.xlu0 %1275  ;;  %v7199_v25 = vld [vmem:[%s7065_s17 + $0x14] sm:$0x1]  ;;  %v1819_v34 = vsel %vm6175_vm2, %v1814_v38, %v1818_v40  ;;  %v1884_v2 = vrot.slane %v1882_v48, 4  ;;  %v1795_v39 = vsel %vm6175_vm2, %v1790_v45, %v1794_v36  ;;  %v1845_v38 = vshrl.u32 %v7211_v5, 16 }
 0x17e   : > { %10392 = vst [vmem:[#allocation78_spill] sm:$0xff] %v7184_v63  ;;  %v7192_v18 = vpop.permute.xlu1 %1283  ;;  %v7202_v63 = vld [vmem:[%s7065_s17 + $0x50] sm:$0x1]  ;;  %v1768_v0 = vshll.u32 %v7199_v25, 16  ;;  %v1875_v24 = vor.u32 %v1874_v21, %v1871_v16  ;;  %v1756_v40 = vrot.slane %v1755_v49, 4  ;;  %v1766_v16 = vrot.slane %v1765_v27, 4 }
 0x17f   : > { %10393 = vst [vmem:[#allocation79_spill] sm:$0xff] %v7192_v18  ;;  %v1809_v18 = vsel %vm6175_vm2, %v1804_v3, %v7135_v61  ;;  %v1785_v61 = vsel %vm6175_vm2, %v1780_v4, %v7156_v41  ;;  %v7225_v3 = vrot.slane %v1878_v14, 5  ;;  %v1888_v11 = vshll.u32 %v7202_v63, 16  ;;  %v7244_v48 = vld [vmem:[%s7065_s17 + $0x44] sm:$0x1] }
 0x180   : > { %v1770_v45 = vrot.slane %v1768_v0, 5  ;;  %v1876_v36 = vrot.slane %v1875_v24, 4  ;;  %v1847_v21 = vrot.slane %v1845_v38, 4  ;;  %v2390_v9 = vunpack.c.l.b16 %v1809_v18 }
 0x181   : > { %v1885_v4 = vor.u32 %v1884_v2, %v7225_v3  ;;  %v1890_v13 = vrot.slane %v1888_v11, 5  ;;  %v1856_v2 = vrot.slane %v1854_v35, 5  ;;  %v2391_v23 = vunpack.c.l.b16 %v1819_v34 }
 0x182   : > { %1384 = vrot.lane.b32.xlu2 %v6665_v28, %s6075_s14  ;;  %v1848_v28 = vshll.u32 %v7211_v5, 16  ;;  %v2388_v17 = vunpack.c.l.b16 %v1785_v61  ;;  %v2389_v27 = vunpack.c.l.b16 %v1795_v39  ;;  %v1761_v0 = vsel %vm6175_vm2, %v1756_v40, %v7186_v19  ;;  %v7264_v61 = vld [vmem:[%s7065_s17 + $0x38] sm:$0x1] }
 0x183   : > { %1374 = vrot.lane.b32.xlu0 %v6596_v37, %s6075_s14  ;;  %v1858_v37 = vshrl.u32 %v7218_v62, 16  ;;  %v1864_v38 = vshll.u32 %v7244_v48, 16  ;;  %v1771_v11 = vsel %vm6175_vm2, %v1766_v16, %v1770_v45  ;;  %v1881_v18 = vsel %vm6175_vm2, %v1876_v36, %v7225_v3  ;;  %v7281_v45 = vld [vmem:[%s7065_s17 + $0x6c] sm:$0xf] }
 0x184   : > { %1382 = vrot.lane.b32.xlu1 %v6663_v20, %s6075_s14  ;;  %v7236_v41 = vpop.permute.xlu2 %1312  ;;  %v1850_v49 = vrot.slane %v1848_v28, 5  ;;  %v1821_v28 = vshrl.u32 %v7249_v60, 16  ;;  %v1824_v40 = vshll.u32 %v7249_v60, 16  ;;  %v1840_v16 = vshll.u32 %v7264_v61, 16  ;;  %10398 = vst [vmem:[#allocation84_spill] sm:$0xff] %v7281_v45 }
 0x185   : > { %10394 = vst [vmem:[#allocation80_spill] sm:$0xff] %v7236_v41  ;;  %v7241_v14 = vpop.permute.xlu0 %1281  ;;  %v1886_v41 = vrot.slane %v1885_v4, 4  ;;  %v1830_v4 = vshll.u32 %v7252_v52, 16  ;;  %v1866_v35 = vrot.slane %v1864_v38, 5  ;;  %v7290_v38 = vld [vmem:[%s7065_s17 + $0x70] sm:$0xf] }
 0x186   : > { %10395 = vst [vmem:[#allocation81_spill] sm:$0xff] %v7241_v14  ;;  %v7246_v20 = vpop.permute.xlu1 %1292  ;;  %v1860_v14 = vrot.slane %v1858_v37, 4  ;;  %v1851_v24 = vor.u32 %v1850_v49, %v1847_v21  ;;  %v1823_v37 = vrot.slane %v1821_v28, 4  ;;  %v7287_v21 = vpack.c.b16 %v2389_v27, %v2388_v17 }
 0x187   : > { %10396 = vst [vmem:[#allocation82_spill] sm:$0xff] %v7246_v20  ;;  %v1891_v19 = vsel %vm6175_vm2, %v1886_v41, %v1890_v13  ;;  %v1826_v13 = vrot.slane %v1824_v40, 5  ;;  %v1832_v41 = vrot.slane %v1830_v4, 5  ;;  %v2386_v49 = vunpack.c.l.b16 %v1761_v0 }
 0x188   : > { %v1861_v34 = vor.u32 %v1860_v14, %v1856_v2  ;;  %v1852_v39 = vrot.slane %v1851_v24, 4  ;;  %v1834_v14 = vshrl.u32 %v7252_v52, 16  ;;  %10401 = vst [vmem:[#allocation87_spill] sm:$0xff] %v7287_v21  ;;  %v2396_v28 = vunpack.c.l.b16 %v1881_v18 }
 0x189   : > { %10402 = vst [vmem:[#allocation88_spill] sm:$0xff] %v7290_v38  ;;  %v2397_v40 = vunpack.c.l.b16 %v1891_v19  ;;  %v1827_v4 = vor.u32 %v1826_v13, %v1823_v37  ;;  %v1842_v0 = vrot.slane %v1840_v16, 5  ;;  %v1950_v18 = vshll.u32 %v7290_v38, 16 }
 0x18a   : > { %2432 = vrot.lane.b32.xlu2 %v2416_v1, %s6069_s8  ;;  %v1862_v3 = vrot.slane %v1861_v34, 4  ;;  %v1836_v24 = vrot.slane %v1834_v14, 4  ;;  %v2387_v34 = vunpack.c.l.b16 %v1771_v11  ;;  %v1857_v20 = vsel %vm6175_vm2, %v1852_v39, %v1856_v2  ;;  %v7307_v2 = vld [vmem:[%s7065_s17 + $0x60] sm:$0xf] }
 0x18b   : > { %1380 = vrot.lane.b32.xlu0 %v6635_v47, %s6075_s14  ;;  %v7285_v47 = vpack.c.b16 %v2391_v23, %v2390_v9  ;;  %v1941_v9 = vshrl.u32 %v7281_v45, 16  ;;  %v1828_v27 = vrot.slane %v1827_v4, 4  ;;  %v1944_v11 = vshll.u32 %v7281_v45, 16  ;;  %v7493_v45 = vld [vmem:[%s7065_s17 + $0xac] sm:$0xf] }
 0x18c   : > { %1388 = vrot.lane.b32.xlu1 %v7196_v6, %s6075_s14  ;;  %v7277_v1 = vpop.permute.xlu2 %1318  ;;  %v1867_v17 = vsel %vm6175_vm2, %v1862_v3, %v1866_v35  ;;  %v1837_v23 = vor.u32 %v1836_v24, %v1832_v41  ;;  %v1954_v14 = vshrl.u32 %v7290_v38, 16  ;;  %v2394_v39 = vunpack.c.l.b16 %v1857_v20  ;;  %v7312_v24 = vld [vmem:[%s7065_s17 + $0x64] sm:$0xf]  ;;  %v7462_v38 = vld [vmem:[%s7065_s17 + $0xb4] sm:$0xf]  ;;  %10431 = vst [vmem:[#allocation117_spill] sm:$0xff] %v7493_v45 }
 0x18d   : > { %10397 = vst [vmem:[#allocation83_spill] sm:$0xff] %v7277_v1  ;;  %v7283_v36 = vpop.permute.xlu0 %1290  ;;  %v7295_v1 = vld [vmem:[%s7065_s17 + $0x74] sm:$0x1]  ;;  %v1943_v37 = vrot.slane %v1941_v9, 4  ;;  %v2395_v3 = vunpack.c.l.b16 %v1867_v17  ;;  %v1946_v35 = vrot.slane %v1944_v11, 5  ;;  %v1952_v16 = vrot.slane %v1950_v18, 5 }
 0x18e   : > { %10399 = vst [vmem:[#allocation85_spill] sm:$0xff] %v7283_v36  ;;  %v7292_v6 = vpop.permute.xlu1 %1298  ;;  %v1838_v19 = vrot.slane %v1837_v23, 4  ;;  %v1960_v13 = vshll.u32 %v7295_v1, 16  ;;  %v7316_v4 = vpack.c.b16 %v2387_v34, %v2386_v49  ;;  %v1833_v23 = vsel %vm6175_vm2, %v1828_v27, %v1832_v41  ;;  %v7331_v41 = vld [vmem:[%s7065_s17 + $0x68] sm:$0x1] }
 0x18f   : > { %10400 = vst [vmem:[#allocation86_spill] sm:$0xff] %v7285_v47  ;;  %v1956_v9 = vrot.slane %v1954_v14, 4  ;;  %v1947_v17 = vor.u32 %v1946_v35, %v1943_v37  ;;  %v1917_v11 = vshrl.u32 %v7307_v2, 16  ;;  %v1926_v27 = vshll.u32 %v7312_v24, 16  ;;  %v7342_v35 = vld [vmem:[%s7065_s17 + $0x54] sm:$0xf] }
 0x190   : > { %10403 = vst [vmem:[#allocation89_spill] sm:$0xff] %v7292_v6  ;;  %v1843_v20 = vsel %vm6175_vm2, %v1838_v19, %v1842_v0  ;;  %v1962_v18 = vrot.slane %v1960_v13, 5  ;;  %v1930_v14 = vshrl.u32 %v7312_v24, 16  ;;  %v7339_v0 = vpack.c.b16 %v2395_v3, %v2394_v39 }
 0x191   : > { %10404 = vst [vmem:[#allocation90_spill] sm:$0xff] %v7316_v4  ;;  %v1957_v34 = vor.u32 %v1956_v9, %v1952_v16  ;;  %v1948_v19 = vrot.slane %v1947_v17, 4  ;;  %v1919_v37 = vrot.slane %v1917_v11, 4  ;;  %v2392_v9 = vunpack.c.l.b16 %v1833_v23  ;;  %v7353_v17 = vld [vmem:[%s7065_s17 + $0x5c] sm:$0x1] }
 0x192   : > { %2438 = vrot.lane.b32.xlu2 %v7285_v47, %s6069_s8  ;;  %v7337_v47 = vpack.c.b16 %v2397_v40, %v2396_v28  ;;  %10409 = vst [vmem:[#allocation95_spill] sm:$0xff] %v7339_v0  ;;  %v2393_v36 = vunpack.c.l.b16 %v1843_v20  ;;  %v1932_v30 = vrot.slane %v1930_v14, 4  ;;  %v7348_v28 = vld [vmem:[%s7065_s17 + $0x58] sm:$0xf]  ;;  %v1893_v23 = vshrl.u32 %v7342_v35, 16 }
 0x193   : > { %1386 = vrot.lane.b32.xlu0 %v6906_v32, %s6075_s14  ;;  %v1920_v32 = vshll.u32 %v7307_v2, 16  ;;  %v1958_v13 = vrot.slane %v1957_v34, 4  ;;  %v1953_v44 = vsel %vm6175_vm2, %v1948_v19, %v1952_v16  ;;  %v1912_v14 = vshll.u32 %v7353_v17, 16  ;;  %10425 = vst [vmem:[#allocation111_spill] sm:$0xff] %v7462_v38 }
 0x194   : > { %2436 = vrot.lane.b32.xlu1 %v7287_v21, %s6069_s8  ;;  %v7322_v6 = vpop.permute.xlu2 %1327  ;;  %10408 = vst [vmem:[#allocation94_spill] sm:$0xff] %v7337_v47  ;;  %v2402_v39 = vunpack.c.l.b16 %v1953_v44  ;;  %v1902_v44 = vshll.u32 %v7348_v28, 16 }
 0x195   : > { %10405 = vst [vmem:[#allocation91_spill] sm:$0xff] %v7322_v6  ;;  %v7328_v49 = vpop.permute.xlu0 %1296  ;;  %v1928_v6 = vrot.slane %v1926_v27, 5  ;;  %v1963_v40 = vsel %vm6175_vm2, %v1958_v13, %v1962_v18  ;;  %v1895_v18 = vrot.slane %v1893_v23, 4 }
 0x196   : > { %10406 = vst [vmem:[#allocation92_spill] sm:$0xff] %v7328_v49  ;;  %v7335_v21 = vpop.permute.xlu1 %1304  ;;  %v1922_v49 = vrot.slane %v1920_v32, 5  ;;  %v2403_v20 = vunpack.c.l.b16 %v1963_v40  ;;  %v1896_v32 = vshll.u32 %v7342_v35, 16  ;;  %v1904_v13 = vrot.slane %v1902_v44, 5  ;;  %v7387_v44 = vld [vmem:[%s7065_s17 + $0x98] sm:$0x1] }
 0x197   : > { %10407 = vst [vmem:[#allocation93_spill] sm:$0xff] %v7335_v21  ;;  %v1936_v21 = vshll.u32 %v7331_v41, 16  ;;  %v1933_v11 = vor.u32 %v1932_v30, %v1928_v6 }
 0x198   : > { %v1923_v3 = vor.u32 %v1922_v49, %v1919_v37  ;;  %v1906_v49 = vshrl.u32 %v7348_v28, 16 }
 0x199   : > { %v1938_v16 = vrot.slane %v1936_v21, 5  ;;  %v1934_v30 = vrot.slane %v1933_v11, 4  ;;  %v1898_v21 = vrot.slane %v1896_v32, 5 }
 0x19a   : > { %2444 = vrot.lane.b32.xlu2 %v7337_v47, %s6069_s8  ;;  %v1924_v34 = vrot.slane %v1923_v3, 4  ;;  %v1908_v40 = vrot.slane %v1906_v49, 4  ;;  %v7373_v3 = vld [vmem:[%s7065_s17 + $0x90] sm:$0xf]  ;;  %v7382_v47 = vld [vmem:[%s7065_s17 + $0x94] sm:$0xf] }
 0x19b   : > { %2434 = vrot.lane.b32.xlu0 %v7316_v4, %s6069_s8  ;;  %10412 = vst [vmem:[#allocation98_spill] sm:$0xff] %v7373_v3  ;;  %v1939_v11 = vsel %vm6175_vm2, %v1934_v30, %v1938_v16  ;;  %v5932_v49 = vld [vmem:[%s6137_s29] sm:$0xff] }
 0x19c   : > { %2442 = vrot.lane.b32.xlu1 %v7339_v0, %s6069_s8  ;;  %v7365_v27 = vpop.permute.xlu2 %1333  ;;  %v1929_v37 = vsel %vm6175_vm2, %v1924_v34, %v1928_v6  ;;  %v7377_v0 = vpack.c.b16 %v2403_v20, %v2402_v39  ;;  %10415 = vst [vmem:[#allocation101_spill] sm:$0xff] %v7382_v47  ;;  %v2401_v4 = vunpack.c.l.b16 %v1939_v11  ;;  %v1909_v6 = vor.u32 %v1908_v40, %v1904_v13 }
 0x19d   : > { %10410 = vst [vmem:[#allocation96_spill] sm:$0xff] %v7365_v27  ;;  %v7368_v19 = vpop.permute.xlu0 %1302  ;;  %v2400_v32 = vunpack.c.l.b16 %v1929_v37  ;;  %v1899_v27 = vor.u32 %v1898_v21, %v1895_v18  ;;  %v1914_v34 = vrot.slane %v1912_v14, 5  ;;  %v2013_v39 = vshrl.u32 %v7373_v3, 16  ;;  %v7402_v37 = vld [vmem:[%s7065_s17 + $0x84] sm:$0xf] }
 0x19e   : > { %10411 = vst [vmem:[#allocation97_spill] sm:$0xff] %v7368_v19  ;;  %v7375_v23 = vpop.permute.xlu1 %1310  ;;  %v7384_v19 = vpack.c.b16 %v2393_v36, %v2392_v9  ;;  %v2016_v20 = vshll.u32 %v7373_v3, 16  ;;  %v1910_v18 = vrot.slane %v1909_v6, 4  ;;  %v2022_v36 = vshll.u32 %v7382_v47, 16  ;;  %v7409_v6 = vld [vmem:[%s7065_s17 + $0x88] sm:$0xf] }
 0x19f   : > { %10413 = vst [vmem:[#allocation99_spill] sm:$0xff] %v7375_v23  ;;  %v1900_v23 = vrot.slane %v1899_v27, 4  ;;  %v7392_v16 = vpack.c.b16 %v2401_v4, %v2400_v32  ;;  %v2026_v9 = vshrl.u32 %v7382_v47, 16  ;;  %v2015_v21 = vrot.slane %v2013_v39, 4 }
 0x1a0   : > { %10414 = vst [vmem:[#allocation100_spill] sm:$0xff] %v7377_v0  ;;  %v2018_v27 = vrot.slane %v2016_v20, 5  ;;  %v2032_v14 = vshll.u32 %v7387_v44, 16  ;;  %v1915_v4 = vsel %vm6175_vm2, %v1910_v18, %v1914_v34  ;;  %v2024_v11 = vrot.slane %v2022_v36, 5  ;;  %v7420_v18 = vld [vmem:[%s7065_s17 + $0x8c] sm:$0x1] }
 0x1a1   : > { %10416 = vst [vmem:[#allocation102_spill] sm:$0xff] %v7384_v19  ;;  %v1905_v30 = vsel %vm6175_vm2, %v1900_v23, %v1904_v13  ;;  %v2028_v32 = vrot.slane %v2026_v9, 4  ;;  %v1393_v13 = vsel %vm10280_vm6, %v5932_v49, %v6737_v42  ;;  %v2399_v23 = vunpack.c.l.b16 %v1915_v4 }
 0x1a2   : > { %10417 = vst [vmem:[#allocation103_spill] sm:$0xff] %v7392_v16  ;;  %2450 = vrot.lane.b32.xlu2 %v7377_v0, %s6069_s8  ;;  %v2398_v40 = vunpack.c.l.b16 %v1905_v30  ;;  %v2019_v20 = vor.u32 %v2018_v27, %v2015_v21  ;;  %v2034_v34 = vrot.slane %v2032_v14, 5  ;;  %v1989_v36 = vshrl.u32 %v7402_v37, 16 }
 0x1a3   : > { %2440 = vrot.lane.b32.xlu0 %v7384_v19, %s6069_s8  ;;  %v2029_v19 = vor.u32 %v2028_v32, %v2024_v11  ;;  %v1992_v9 = vshll.u32 %v7402_v37, 16  ;;  %v1998_v30 = vshll.u32 %v7409_v6, 16  ;;  %v7430_v32 = vld [vmem:[%s7065_s17 + $0x78] sm:$0xf]  ;;  %v2008_v55 = vshll.u32 %v7420_v18, 16 }
 0x1a4   : > { %2448 = vrot.lane.b32.xlu1 %v7392_v16, %s6069_s8  ;;  %v7415_v39 = vpop.permute.xlu2 %1339  ;;  %v2020_v49 = vrot.slane %v2019_v20, 4  ;;  %v7427_v21 = vpack.c.b16 %v2399_v23, %v2398_v40  ;;  %v1991_v4 = vrot.slane %v1989_v36, 4  ;;  %v2002_v16 = vshrl.u32 %v7409_v6, 16  ;;  %v7444_v36 = vld [vmem:[%s7065_s17 + $0x80] sm:$0x1] }
 0x1a5   : > { %10418 = vst [vmem:[#allocation104_spill] sm:$0xff] %v7415_v39  ;;  %v7417_v0 = vpop.permute.xlu0 %1308  ;;  %v2030_v27 = vrot.slane %v2029_v19, 4  ;;  %v1994_v14 = vrot.slane %v1992_v9, 5  ;;  %v2000_v39 = vrot.slane %v1998_v30, 5  ;;  %v1441_v20 = vsel %vm1439_vm7, %v1393_v13, %v6820_v58 }
 0x1a6   : > { %10419 = vst [vmem:[#allocation105_spill] sm:$0xff] %v7417_v0  ;;  %v7424_v42 = vpop.permute.xlu1 %1316  ;;  %v2025_v0 = vsel %vm6175_vm2, %v2020_v49, %v2024_v11  ;;  %v2004_v47 = vrot.slane %v2002_v16, 4  ;;  %v2010_v11 = vrot.slane %v2008_v55, 5  ;;  %v1965_v49 = vshrl.u32 %v7430_v32, 16 }
 0x1a7   : > { %10420 = vst [vmem:[#allocation106_spill] sm:$0xff] %v7424_v42  ;;  %v7437_v42 = vld [vmem:[%s7065_s17 + $0x7c] sm:$0xf]  ;;  %v2035_v19 = vsel %vm6175_vm2, %v2030_v27, %v2034_v34  ;;  %v2408_v40 = vunpack.c.l.b16 %v2025_v0  ;;  %v1995_v23 = vor.u32 %v1994_v14, %v1991_v4  ;;  %v1968_v3 = vshll.u32 %v7430_v32, 16 }
 0x1a8   : > { %10421 = vst [vmem:[#allocation107_spill] sm:$0xff] %v7427_v21  ;;  %v2409_v9 = vunpack.c.l.b16 %v2035_v19  ;;  %v1974_v58 = vshll.u32 %v7437_v42, 16  ;;  %v1978_v13 = vshrl.u32 %v7437_v42, 16  ;;  %v2005_v34 = vor.u32 %v2004_v47, %v2000_v39 }
 0x1a9   : > { %v1996_v30 = vrot.slane %v1995_v23, 4  ;;  %v1967_v27 = vrot.slane %v1965_v49, 4  ;;  %v1984_v55 = vshll.u32 %v7444_v36, 16  ;;  %v1970_v19 = vrot.slane %v1968_v3, 5  ;;  %v7471_v49 = vld [vmem:[%s7065_s17 + $0xb8] sm:$0xf] }
 0x1aa   : > { %v7452_v0 = vpack.c.b16 %v2409_v9, %v2408_v40  ;;  %v1976_v23 = vrot.slane %v1974_v58, 5  ;;  %v1474_v40 = vsel %vm10279_vm8, %v1441_v20, %v6844_v51  ;;  %v2006_v47 = vrot.slane %v2005_v34, 4  ;;  %10427 = vst [vmem:[#allocation113_spill] sm:$0xff] %v7471_v49 }
 0x1ab   : > { %2446 = vrot.lane.b32.xlu0 %v7427_v21, %s6069_s8  ;;  %v2001_v14 = vsel %vm6175_vm2, %v1996_v30, %v2000_v39  ;;  %v1980_v21 = vrot.slane %v1978_v13, 4  ;;  %v1986_v39 = vrot.slane %v1984_v55, 5  ;;  %v7474_v30 = vld [vmem:[%s7065_s17 + $0xbc] sm:$0x1]  ;;  %v2085_v20 = vshrl.u32 %v7462_v38, 16 }
 0x1ac   : > { %10422 = vst [vmem:[#allocation108_spill] sm:$0xff] %v7452_v0  ;;  %v7455_v16 = vpop.permute.xlu2 %1345  ;;  %2456 = vrot.lane.b32.xlu2 %v7452_v0, %s6069_s8  ;;  %v2011_v51 = vsel %vm6175_vm2, %v2006_v47, %v2010_v11  ;;  %v2088_v58 = vshll.u32 %v7462_v38, 16  ;;  %v2104_v55 = vshll.u32 %v7474_v30, 16 }
 0x1ad   : > { %10423 = vst [vmem:[#allocation109_spill] sm:$0xff] %v7455_v16  ;;  %v7457_v4 = vpop.permute.xlu0 %1314  ;;  %v1971_v16 = vor.u32 %v1970_v19, %v1967_v27  ;;  %v1981_v3 = vor.u32 %v1980_v21, %v1976_v23  ;;  %v2407_v13 = vunpack.c.l.b16 %v2011_v51  ;;  %v2087_v27 = vrot.slane %v2085_v20, 4 }
 0x1ae   : > { %10424 = vst [vmem:[#allocation110_spill] sm:$0xff] %v7457_v4  ;;  %v7468_v9 = vpop.permute.xlu1 %1325  ;;  %v2406_v4 = vunpack.c.l.b16 %v2001_v14  ;;  %v2094_v14 = vshll.u32 %v7471_v49, 16  ;;  %v2090_v19 = vrot.slane %v2088_v58, 5  ;;  %v2098_v21 = vshrl.u32 %v7471_v49, 16 }
 0x1af   : > { %10426 = vst [vmem:[#allocation112_spill] sm:$0xff] %v7468_v9  ;;  %v1972_v34 = vrot.slane %v1971_v16, 4  ;;  %v1982_v0 = vrot.slane %v1981_v3, 4  ;;  %v7484_v9 = vld [vmem:[%s7065_s17 + $0xa8] sm:$0xf] }
 0x1b0   : > { %10428 = vst [vmem:[#allocation114_spill] sm:$0xff] %v7474_v30  ;;  %v7486_v11 = vpack.c.b16 %v2407_v13, %v2406_v4  ;;  %v2096_v3 = vrot.slane %v2094_v14, 5  ;;  %v2091_v20 = vor.u32 %v2090_v19, %v2087_v27  ;;  %v2100_v58 = vrot.slane %v2098_v21, 4 }
 0x1b1   : > { %10429 = vst [vmem:[#allocation115_spill] sm:$0xff] %v7484_v9  ;;  %v1977_v47 = vsel %vm6175_vm2, %v1972_v34, %v1976_v23  ;;  %v1987_v16 = vsel %vm6175_vm2, %v1982_v0, %v1986_v39  ;;  %v1507_v30 = vsel %vm1505_vm9, %v1474_v40, %v6976_v59  ;;  %v7504_v0 = vld [vmem:[%s7065_s17 + $0xb0] sm:$0x1]  ;;  %v2061_v23 = vshrl.u32 %v7484_v9, 16 }
 0x1b2   : > { %10430 = vst [vmem:[#allocation116_spill] sm:$0xff] %v7486_v11  ;;  %v2404_v51 = vunpack.c.l.b16 %v1977_v47  ;;  %v2405_v38 = vunpack.c.l.b16 %v1987_v16  ;;  %2454 = vrot.lane.b32.xlu1 %v7486_v11, %s6069_s8  ;;  %v2064_v39 = vshll.u32 %v7484_v9, 16  ;;  %v2092_v34 = vrot.slane %v2091_v20, 4  ;;  %v7515_v16 = vld [vmem:[%s7065_s17 + $0x9c] sm:$0xf] }
 0x1b3   : > { %10433 = vst [vmem:[#allocation119_spill] sm:$0xff] %v7504_v0  ;;  %v2101_v14 = vor.u32 %v2100_v58, %v2096_v3  ;;  %v2106_v27 = vrot.slane %v2104_v55, 5  ;;  %v2063_v40 = vrot.slane %v2061_v23, 4  ;;  %v2070_v21 = vshll.u32 %v7493_v45, 16  ;;  %v7525_v20 = vld [vmem:[%s7065_s17 + $0xa0] sm:$0xf] }
 0x1b4   : > { %v7495_v49 = vpop.permute.xlu2 %1351  ;;  %v7508_v13 = vpack.c.b16 %v2405_v38, %v2404_v51  ;;  %v2066_v19 = vrot.slane %v2064_v39, 5  ;;  %v2074_v47 = vshrl.u32 %v7493_v45, 16  ;;  %v2097_v38 = vsel %vm6175_vm2, %v2092_v34, %v2096_v3  ;;  %10436 = vst [vmem:[#allocation122_spill] sm:$0xff] %v7525_v20 }
 0x1b5   : > { %10432 = vst [vmem:[#allocation118_spill] sm:$0xff] %v7495_v49  ;;  %v7501_v4 = vpop.permute.xlu0 %1323  ;;  %v1540_v49 = vsel %vm10278_vm10, %v1507_v30, %v7039_v7  ;;  %v2102_v55 = vrot.slane %v2101_v14, 4  ;;  %v2080_v51 = vshll.u32 %v7504_v0, 16  ;;  %v2414_v58 = vunpack.c.l.b16 %v2097_v38 }
 0x1b6   : > { %10434 = vst [vmem:[#allocation120_spill] sm:$0xff] %v7508_v13  ;;  %v7510_v59 = vpop.permute.xlu1 %1331  ;;  %2452 = vrot.lane.b32.xlu0 %v7508_v13, %s6069_s8  ;;  %v2067_v23 = vor.u32 %v2066_v19, %v2063_v40  ;;  %v2072_v39 = vrot.slane %v2070_v21, 5  ;;  %v2076_v11 = vrot.slane %v2074_v47, 4  ;;  %v2037_v13 = vshrl.u32 %v7515_v16, 16 }
 0x1b7   : > { %10435 = vst [vmem:[#allocation121_spill] sm:$0xff] %v7510_v59  ;;  %v7528_v59 = vld [vmem:[%s7065_s17 + $0xa4] sm:$0x1]  ;;  %v2107_v7 = vsel %vm6175_vm2, %v2102_v55, %v2106_v27  ;;  %v2082_v30 = vrot.slane %v2080_v51, 5  ;;  %v2040_v45 = vshll.u32 %v7515_v16, 16  ;;  %v2046_v9 = vshll.u32 %v7525_v20, 16 }
 0x1b8   : > { %v2415_v3 = vunpack.c.l.b16 %v2107_v7  ;;  %v2068_v34 = vrot.slane %v2067_v23, 4  ;;  %v2077_v14 = vor.u32 %v2076_v11, %v2072_v39  ;;  %v2039_v0 = vrot.slane %v2037_v13, 4 }
 0x1b9   : > { %v2042_v38 = vrot.slane %v2040_v45, 5  ;;  %v2050_v40 = vshrl.u32 %v7525_v20, 16  ;;  %v2056_v19 = vshll.u32 %v7528_v59, 16  ;;  %v2048_v51 = vrot.slane %v2046_v9, 5 }
 0x1ba   : > { %v7539_v47 = vpack.c.b16 %v2415_v3, %v2414_v58  ;;  %v2073_v27 = vsel %vm6175_vm2, %v2068_v34, %v2072_v39  ;;  %v2078_v55 = vrot.slane %v2077_v14, 4  ;;  %v7547_v11 = vsel %vm1571_vm11, %v1540_v49, %v7071_v8 }
 0x1bb   : > { %v2412_v45 = vunpack.c.l.b16 %v2073_v27  ;;  %v2043_v13 = vor.u32 %v2042_v38, %v2039_v0  ;;  %v2052_v23 = vrot.slane %v2050_v40, 4  ;;  %v2196_v3 = vrot.slane %v7244_v48, 5 }
 0x1bc   : > { %v7537_v21 = vpop.permute.xlu2 %1360  ;;  %2462 = vrot.lane.b32.xlu2 %v7539_v47, %s6069_s8  ;;  %v2083_v9 = vsel %vm6175_vm2, %v2078_v55, %v2082_v30  ;;  %v2058_v34 = vrot.slane %v2056_v19, 5  ;;  %v5671_v0 = vrot.slane %v7110_v29, 9  ;;  %v2172_v14 = vrot.slane %v7117_v31, 5 }
 0x1bd   : > { %10437 = vst [vmem:[#allocation123_spill] sm:$0xff] %v7537_v21  ;;  %v7543_v7 = vpop.permute.xlu0 %1329  ;;  %v2413_v39 = vunpack.c.l.b16 %v2083_v9  ;;  %v2044_v8 = vrot.slane %v2043_v13, 4  ;;  %v2053_v49 = vor.u32 %v2052_v23, %v2048_v51  ;;  %v2175_v38 = vrot.slane %v7159_v10, 5 }
 0x1be   : > { %v7549_v20 = vpop.permute.xlu1 %1337  ;;  %v5670_v40 = vrot.slane %v7138_v57, 9  ;;  %v2165_v30 = vrot.slane %v7150_v56, 5  ;;  %v2173_v19 = vsel %vm6462_vm5, %v5671_v0, %v2172_v14  ;;  %v2174_v13 = vrot.slane %v2172_v14, 4 }
 0x1bf   : > { %v7562_v27 = vpack.c.b16 %v2413_v39, %v2412_v45  ;;  %v2049_v58 = vsel %vm6175_vm2, %v2044_v8, %v2048_v51  ;;  %v2054_v21 = vrot.slane %v2053_v49, 4  ;;  %v2168_v29 = vrot.slane %v7199_v25, 5 }
 0x1c0   : > { %v2410_v55 = vunpack.c.l.b16 %v2049_v58  ;;  %v2468_v57 = vunpack.c.l.b16 %v2173_v19  ;;  %v2166_v10 = vsel %vm6462_vm5, %v5670_v40, %v2165_v30  ;;  %v2167_v51 = vrot.slane %v2165_v30, 4 }
 0x1c1   : > { %2460 = vrot.lane.b32.xlu1 %v7562_v27, %s6069_s8  ;;  %v2059_v31 = vsel %vm6175_vm2, %v2054_v21, %v2058_v34  ;;  %v2176_v23 = vsel %vm6462_vm5, %v2174_v13, %v2175_v38  ;;  %v2466_v58 = vunpack.c.l.b16 %v2166_v10  ;;  %v5669_v25 = vrot.slane %v7076_v15, 9 }
 0x1c2   : > { %v2411_v56 = vunpack.c.l.b16 %v2059_v31  ;;  %v2469_v39 = vunpack.c.l.b16 %v2176_v23  ;;  %v2169_v21 = vsel %vm6462_vm5, %v2167_v51, %v2168_v29  ;;  %v2158_v8 = vrot.slane %v7079_v53, 5 }
 0x1c3   : > { %v2161_v49 = vrot.slane %v7095_v33, 5  ;;  %v2189_v0 = vrot.slane %v7264_v61, 5  ;;  %v2224_v14 = vrot.slane %v7295_v1, 5  ;;  %v2467_v40 = vunpack.c.l.b16 %v2169_v21 }
 0x1c4   : > { %v7576_v45 = vpop.permute.xlu2 %1366  ;;  %v7591_v38 = vpack.c.b16 %v2411_v56, %v2410_v55  ;;  %v7593_v15 = vpack.c.b16 %v2469_v39, %v2468_v57  ;;  %v2159_v30 = vsel %vm6462_vm5, %v5669_v25, %v2158_v8  ;;  %v2160_v19 = vrot.slane %v2158_v8, 4 }
 0x1c5   : > { %v7581_v9 = vpop.permute.xlu0 %1335  ;;  %v5674_v13 = vrot.slane %v7211_v5, 9  ;;  %v7600_v53 = vpack.c.b16 %v2467_v40, %v2466_v58  ;;  %v2464_v33 = vunpack.c.l.b16 %v2159_v30  ;;  %v2193_v61 = vrot.slane %v7218_v62, 5 }
 0x1c6   : > { %v7587_v34 = vpop.permute.xlu1 %1343  ;;  %2458 = vrot.lane.b32.xlu0 %v7591_v38, %s6069_s8  ;;  %v5673_v55 = vrot.slane %v7249_v60, 9  ;;  %2516 = vrot.lane.b32.xlu2 %v7593_v15, %s6071_s10  ;;  %v2162_v29 = vsel %vm6462_vm5, %v2160_v19, %v2161_v49  ;;  %v2186_v31 = vrot.slane %v7252_v52, 5  ;;  %v5672_v5 = vrot.slane %v7100_v22, 9 }
 0x1c7   : > { %v2179_v57 = vrot.slane %v7105_v46, 5  ;;  %v2217_v10 = vrot.slane %v7331_v41, 5  ;;  %v2465_v51 = vunpack.c.l.b16 %v2162_v29  ;;  %v2194_v62 = vsel %vm6462_vm5, %v5674_v13, %v2193_v61 }
 0x1c8   : > { %v2195_v56 = vrot.slane %v2193_v61, 4  ;;  %v2474_v60 = vunpack.c.l.b16 %v2194_v62  ;;  %v2187_v23 = vsel %vm6462_vm5, %v5673_v55, %v2186_v31  ;;  %v2188_v58 = vrot.slane %v2186_v31, 4  ;;  %v3034_v31 = vld [vmem:[%s10195_s2 + $0x10] sm:$0x3] }
 0x1c9   : > { %2514 = vrot.lane.b32.xlu1 %v7600_v53, %s6071_s10  ;;  %v2180_v52 = vsel %vm6462_vm5, %v5672_v5, %v2179_v57  ;;  %v2496_v46 = vpack.c.b16 %v2465_v51, %v2464_v33  ;;  %v2472_v25 = vunpack.c.l.b16 %v2187_v23  ;;  %v2181_v39 = vrot.slane %v2179_v57, 4 }
 0x1ca   : > { %v2197_v41 = vsel %vm6462_vm5, %v2195_v56, %v2196_v3  ;;  %v2210_v8 = vrot.slane %v7353_v17, 5  ;;  %v2190_v40 = vsel %vm6462_vm5, %v2188_v58, %v2189_v0  ;;  %v2470_v30 = vunpack.c.l.b16 %v2180_v52 }
 0x1cb   : > { %v2475_v49 = vunpack.c.l.b16 %v2197_v41  ;;  %v2473_v13 = vunpack.c.l.b16 %v2190_v40  ;;  %v10439_v33 = vrot.slane %v7147_v54, 5  ;;  %v5677_v3 = vrot.slane %v7307_v2, 9 }
 0x1cc   : > { %v7620_v22 = vpop.permute.xlu2 %1372  ;;  %v2214_v61 = vrot.slane %v7312_v24, 5  ;;  %v5676_v29 = vrot.slane %v7342_v35, 9  ;;  %v2207_v0 = vrot.slane %v7348_v28, 5  ;;  %v5675_v5 = vrot.slane %v7173_v43, 9 }
 0x1cd   : > { %v7626_v21 = vpop.permute.xlu0 %1341  ;;  %v2183_v48 = vsel %vm6462_vm5, %v2181_v39, %v10439_v33  ;;  %v7639_v55 = vpack.c.b16 %v2475_v49, %v2474_v60  ;;  %v7647_v54 = vpack.c.b16 %v2473_v13, %v2472_v25  ;;  %v2245_v57 = vrot.slane %v7387_v44, 5 }
 0x1ce   : > { %v7631_v19 = vpop.permute.xlu1 %1349  ;;  %v2471_v17 = vunpack.c.l.b16 %v2183_v48  ;;  %2512 = vrot.lane.b32.xlu0 %v2496_v46, %s6071_s10  ;;  %v2215_v2 = vsel %vm6462_vm5, %v5677_v3, %v2214_v61  ;;  %v2216_v24 = vrot.slane %v2214_v61, 4  ;;  %v2208_v28 = vsel %vm6462_vm5, %v5676_v29, %v2207_v0 }
 0x1cf   : > { %10438 = vst [vmem:[#allocation124_spill] sm:$0xff] %v7631_v19  ;;  %2522 = vrot.lane.b32.xlu2 %v7639_v55, %s6071_s10  ;;  %v2480_v35 = vunpack.c.l.b16 %v2215_v2  ;;  %v2209_v51 = vrot.slane %v2207_v0, 4  ;;  %v2200_v60 = vrot.slane %v7189_v12, 5  ;;  %v3206_v23 = vunpack.c.l.b16 %v3034_v31  ;;  %v10441_v31 = vld [vmem:[#allocation84_spill] sm:$0xff]  ;;  %v7918_v19 = vld [vmem:[%s7065_s17 + $0xa8] sm:$0xff] }
 0x1d0   : > { %v7657_v62 = vpack.c.b16 %v2471_v17, %v2470_v30  ;;  %v2218_v56 = vsel %vm6462_vm5, %v2216_v24, %v2217_v10  ;;  %v2478_v52 = vunpack.c.l.b16 %v2208_v28  ;;  %v2238_v12 = vrot.slane %v7420_v18, 5  ;;  %v10442_v24 = vld [vmem:[#allocation88_spill] sm:$0xff] }
 0x1d1   : > { %2520 = vrot.lane.b32.xlu1 %v7647_v54, %s6071_s10  ;;  %v2481_v43 = vunpack.c.l.b16 %v2218_v56  ;;  %v2211_v58 = vsel %vm6462_vm5, %v2209_v51, %v2210_v8  ;;  %v2201_v25 = vsel %vm6462_vm5, %v5675_v5, %v2200_v60  ;;  %v2202_v39 = vrot.slane %v2200_v60, 4  ;;  %v10443_v51 = vld [vmem:[#allocation119_spill] sm:$0xff] }
 0x1d2   : > { %v2479_v41 = vunpack.c.l.b16 %v2211_v58  ;;  %v3209_v10 = vpack.c.b16 %v3206_v23, %v3206_v23  ;;  %v2231_v40 = vrot.slane %v7444_v36, 5  ;;  %v5680_v8 = vrot.slane %v7402_v37, 9  ;;  %v7691_v37 = vld [vmem:[%s10195_s2 + $0x8] sm:$0xff] }
 0x1d3   : > { %v7674_v30 = vpack.c.b16 %v2481_v43, %v2480_v35  ;;  %v10440_v33 = vrot.slane %v7202_v63, 5  ;;  %v2476_v3 = vunpack.c.l.b16 %v2201_v25  ;;  %v2235_v17 = vrot.slane %v7409_v6, 5 }
 0x1d4   : > { %v7666_v46 = vpop.permute.xlu2 %1378  ;;  %v7682_v61 = vsel %vm10275_vm13, %v3209_v10, 0  ;;  %v7685_v29 = vpack.c.b16 %v2479_v41, %v2478_v52  ;;  %v5679_v63 = vrot.slane %v7430_v32, 9  ;;  %v2228_v36 = vrot.slane %v7437_v42, 5  ;;  %v7720_v52 = vld [vmem:[%s10195_s2] sm:$0xff]  ;;  %v10445_v10 = vld [vmem:[#allocation115_spill] sm:$0xff] }
 0x1d5   : > { %v7670_v49 = vpop.permute.xlu0 %1347  ;;  %v2204_v48 = vsel %vm6462_vm5, %v2202_v39, %v10440_v33  ;;  %3254 = vmatpush.bf16.msra.mxu1 %v7682_v61  ;;  %v2236_v6 = vsel %vm6462_vm5, %v5680_v8, %v2235_v17  ;;  %v2237_v0 = vrot.slane %v2235_v17, 4  ;;  %v5678_v2 = vrot.slane %v10441_v31, 9 }
 0x1d6   : > { %v1359_v13 = vpop.permute.xlu1 %1358  ;;  %v2477_v18 = vunpack.c.l.b16 %v2204_v48  ;;  %2518 = vrot.lane.b32.xlu0 %v7657_v62, %s6071_s10  ;;  %v2221_v5 = vrot.slane %v10442_v24, 5  ;;  %v1606_v35 = vsel %vm10277_vm12, %v7547_v11, %v7501_v4  ;;  %v2486_v32 = vunpack.c.l.b16 %v2236_v6  ;;  %v10447_v48 = vld [vmem:[#allocation117_spill] sm:$0xff] }
 0x1d7   : > { %2528 = vrot.lane.b32.xlu2 %v7674_v30, %s6071_s10  ;;  %v2229_v42 = vsel %vm6462_vm5, %v5679_v63, %v2228_v36  ;;  %v2230_v28 = vrot.slane %v2228_v36, 4  ;;  %v2259_v56 = vrot.slane %v10443_v51, 5  ;;  %v2252_v60 = vrot.slane %v7528_v59, 5  ;;  %v10449_v36 = vld [vmem:[#allocation122_spill] sm:$0xff] }
 0x1d8   : > { %v2239_v23 = vsel %vm6462_vm5, %v2237_v0, %v2238_v12  ;;  %v2223_v43 = vrot.slane %v2221_v5, 4  ;;  %v2484_v58 = vunpack.c.l.b16 %v2229_v42  ;;  %v7722_v59 = vpack.c.b16 %v2477_v18, %v2476_v3  ;;  %v10450_v0 = vld [vmem:[#allocation98_spill] sm:$0xff] }
 0x1d9   : > { %2526 = vrot.lane.b32.xlu1 %v7685_v29, %s6071_s10  ;;  %3255 = vmatpush.bf16.msra.mxu1 %v7691_v37  ;;  %v2487_v4 = vunpack.c.l.b16 %v2239_v23  ;;  %v2232_v11 = vsel %vm6462_vm5, %v2230_v28, %v2231_v40  ;;  %v2222_v25 = vsel %vm6462_vm5, %v5678_v2, %v2221_v5  ;;  %v5683_v12 = vrot.slane %v10445_v10, 9 }
 0x1da   : > { %v2485_v41 = vunpack.c.l.b16 %v2232_v11  ;;  %v2225_v40 = vsel %vm6462_vm5, %v2223_v43, %v2224_v14  ;;  %v1639_v33 = vsel %vm1637_vm14, %v1606_v35, %v1359_v13  ;;  %v2256_v3 = vrot.slane %v10447_v48, 5  ;;  %v10452_v13 = vld [vmem:[#allocation101_spill] sm:$0xff] }
 0x1db   : > { %v7729_v8 = vpack.c.b16 %v2487_v4, %v2486_v32  ;;  %v5682_v63 = vrot.slane %v7515_v16, 9  ;;  %v2249_v6 = vrot.slane %v10449_v36, 5  ;;  %v5681_v31 = vrot.slane %v10450_v0, 9 }
 0x1dc   : > { %v7737_v17 = vpop.permute.xlu2 %1384  ;;  %v7744_v2 = vpack.c.b16 %v2485_v41, %v2484_v58  ;;  %v2257_v1 = vsel %vm6462_vm5, %v5683_v12, %v2256_v3  ;;  %v2258_v14 = vrot.slane %v2256_v3, 4  ;;  %v2242_v24 = vrot.slane %v10452_v13, 5 }
 0x1dd   : > { %v7726_v39 = vpop.permute.xlu0 %1353  ;;  %10446 = vst [vmem:[#allocation88_spill] sm:$0xff] %v7729_v8  ;;  %3256 = vmatpush.bf16.msra.mxu1 %v7720_v52  ;;  %v2482_v5 = vunpack.c.l.b16 %v2222_v25  ;;  %v2483_v35 = vunpack.c.l.b16 %v2225_v40  ;;  %v2250_v16 = vsel %vm6462_vm5, %v5682_v63, %v2249_v6  ;;  %v2251_v32 = vrot.slane %v2249_v6, 4  ;;  %v10457_v6 = vld [vmem:[#allocation111_spill] sm:$0xff] }
 0x1de   : > { %10444 = vst [vmem:[#allocation84_spill] sm:$0xff] %v7726_v39  ;;  %v7739_v18 = vpop.permute.xlu1 %1364  ;;  %2524 = vrot.lane.b32.xlu0 %v7722_v59, %s6071_s10  ;;  %v2260_v42 = vsel %vm6462_vm5, %v2258_v14, %v2259_v56  ;;  %v2492_v28 = vunpack.c.l.b16 %v2257_v1  ;;  %v2243_v51 = vsel %vm6462_vm5, %v5681_v31, %v2242_v24  ;;  %v2244_v23 = vrot.slane %v2242_v24, 4  ;;  %v6029_v1 = vld [vmem:[%s6137_s29 + $0xc] sm:$0xff] }
 0x1df   : > { %10448 = vst [vmem:[#allocation119_spill] sm:$0xff] %v7737_v17  ;;  %2534 = vrot.lane.b32.xlu2 %v7729_v8, %s6071_s10  ;;  %v2493_v43 = vunpack.c.l.b16 %v2260_v42  ;;  %v2253_v4 = vsel %vm6462_vm5, %v2251_v32, %v2252_v60  ;;  %v2488_v11 = vunpack.c.l.b16 %v2243_v51  ;;  %v2490_v58 = vunpack.c.l.b16 %v2250_v16  ;;  %v10458_v14 = vld [vmem:[#allocation21_spill] sm:$0xff]  ;;  %v10459_v24 = vld [vmem:[#allocation22_spill] sm:$0xff]  ;;  %v10461_v42 = vld [vmem:[#allocation52_spill] sm:$0xff] }
 0x1e0   : > { %10451 = vst [vmem:[#allocation115_spill] sm:$0xff] %v7744_v2  ;;  %5799 = vmatmul.msk.bf16.vlgmr.msra.gmra.mxu1 %vm10276_vm15, %v1639_v33  ;;  %v2491_v41 = vunpack.c.l.b16 %v2253_v4  ;;  %v2246_v56 = vsel %vm6462_vm5, %v2244_v23, %v2245_v57  ;;  %v7769_v25 = vpack.c.b16 %v2483_v35, %v2482_v5  ;;  %v10453_v33 = vld [vmem:[#allocation113_spill] sm:$0xff]  ;;  %v10456_v57 = vld [vmem:[#allocation114_spill] sm:$0xff]  ;;  %v5684_v0 = vrot.slane %v10457_v6, 9  ;;  %v10460_v35 = vld [vmem:[#allocation39_spill] sm:$0xff] }
 0x1e1   : > { %2532 = vrot.lane.b32.xlu1 %v7744_v2, %s6071_s10  ;;  %v2489_v10 = vunpack.c.l.b16 %v2246_v56  ;;  %v7771_v40 = vpack.c.b16 %v2493_v43, %v2492_v28  ;;  %v2263_v60 = vrot.slane %v10453_v33, 5  ;;  %v2266_v36 = vrot.slane %v10456_v57, 5  ;;  %v7802_v51 = vld [vmem:[%s7065_s17 + $0x18] sm:$0xff]  ;;  %v7813_v56 = vld [vmem:[%s7065_s17 + $0xc] sm:$0xff]  ;;  %v10464_v33 = vld [vmem:[#allocation112_spill] sm:$0xff]  ;;  %10485 = vst [vmem:[#allocation52_spill] sm:$0xff] %v7918_v19 }
 0x1e2   : > { %v7778_v63 = vpack.c.b16 %v2491_v41, %v2490_v58  ;;  %v1396_v13 = vsel %vm10280_vm6, %v6029_v1, %v10458_v14  ;;  %v10462_v4 = vld [vmem:[#allocation55_spill] sm:$0xff]  ;;  %v10463_v58 = vld [vmem:[#allocation85_spill] sm:$0xff]  ;;  %v10500_v8 = vld [vmem:[#allocation58_spill] sm:$0xff]  ;;  %vm10282_vm13 = vcmask 588800  }
 0x1e3   : > { %v7776_v3 = vpack.c.b16 %v2489_v10, %v2488_v11  ;;  %v2265_v31 = vrot.slane %v2263_v60, 4  ;;  %v1443_v5 = vsel %vm1439_vm7, %v1396_v13, %v10459_v24  ;;  %v2264_v23 = vsel %vm6462_vm5, %v5684_v0, %v2263_v60  ;;  %v10465_v6 = vld [vmem:[#allocation123_spill] sm:$0xff]  ;;  %v7838_v24 = vld [vmem:[%s7065_s17 + $0x30] sm:$0xff]  ;;  %v10516_v2 = vld [vmem:[#allocation72_spill] sm:$0xff] }
 0x1e4   : > { %10455 = vst [vmem:[#allocation122_spill] sm:$0xff] %v7778_v63  ;;  %v7780_v44 = vpop.permute.xlu2 %2432  ;;  %v1476_v16 = vsel %vm10279_vm8, %v1443_v5, %v10460_v35  ;;  %v2494_v60 = vunpack.c.l.b16 %v2264_v23  ;;  %v7835_v13 = vld [vmem:[%s7065_s17 + $0x3c] sm:$0xff]  ;;  %v7913_v39 = vld [vmem:[%s7065_s17 + $0x6c] sm:$0xff] }
 0x1e5   : > { %v1363_v12 = vpop.permute.xlu0 %1362  ;;  %10454 = vst [vmem:[#allocation117_spill] sm:$0xff] %v7776_v3  ;;  %v1509_v28 = vsel %vm1505_vm9, %v1476_v16, %v10461_v42  ;;  %v2267_v43 = vsel %vm6462_vm5, %v2265_v31, %v2266_v36  ;;  %v6030_v35 = vld [vmem:[%s6137_s29 + $0x18] sm:$0xff] }
 0x1e6   : > { %v7774_v48 = vpop.permute.xlu1 %1370  ;;  %2530 = vrot.lane.b32.xlu0 %v7769_v25, %s6071_s10  ;;  %v1542_v11 = vsel %vm10278_vm10, %v1509_v28, %v10462_v4  ;;  %v2495_v36 = vunpack.c.l.b16 %v2267_v43  ;;  %v10467_v16 = vld [vmem:[#allocation15_spill] sm:$0xff]  ;;  %v10468_v28 = vld [vmem:[#allocation24_spill] sm:$0xff]  ;;  %v10470_v4 = vld [vmem:[#allocation37_spill] sm:$0xff] }
 0x1e7   : > { %2540 = vrot.lane.b32.xlu2 %v7771_v40, %s6071_s10  ;;  %v1575_v41 = vsel %vm1571_vm11, %v1542_v11, %v10463_v58  ;;  %v1399_v42 = vsel %vm10280_vm6, %v6030_v35, %v10467_v16  ;;  %v7858_v58 = vld [vmem:[%s7065_s17 + $0x24] sm:$0xff]  ;;  %v7872_v16 = vld [vmem:[%s7065_s17 + $0x54] sm:$0xff] }
 0x1e8   : > { %v1608_v57 = vsel %vm10277_vm12, %v1575_v41, %v10464_v33  ;;  %v7830_v1 = vpack.c.b16 %v2495_v36, %v2494_v60  ;;  %v1445_v23 = vsel %vm1439_vm7, %v1399_v42, %v10468_v28  ;;  %v10471_v41 = vld [vmem:[#allocation41_spill] sm:$0xff]  ;;  %10474 = vst [vmem:[#allocation113_spill] sm:$0xff] %v7872_v16  ;;  %v10475_v42 = vld [vmem:[#allocation91_spill] sm:$0xff] }
 0x1e9   : > { %2538 = vrot.lane.b32.xlu1 %v7778_v63, %s6071_s10  ;;  %v1641_v0 = vsel %vm1637_vm14, %v1608_v57, %v10465_v6  ;;  %v1478_v11 = vsel %vm10279_vm8, %v1445_v23, %v10470_v4  ;;  %v7863_v57 = vld [vmem:[%s7065_s17 + $0x60] sm:$0xff]  ;;  %v10472_v60 = vld [vmem:[#allocation69_spill] sm:$0xff] }
 0x1ea   : > { %v1511_v33 = vsel %vm1505_vm9, %v1478_v11, %v10471_v41  ;;  %v7887_v11 = vld [vmem:[%s7065_s17 + $0x48] sm:$0xff] }
 0x1eb   : > { %v1544_v36 = vsel %vm10278_vm10, %v1511_v33, %v10472_v60  ;;  %10477 = vst [vmem:[#allocation111_spill] sm:$0xff] %v7887_v11  ;;  %v7890_v41 = vld [vmem:[%s7065_s17 + $0x84] sm:$0xff]  ;;  %v7895_v60 = vld [vmem:[%s7065_s17 + $0x78] sm:$0xff] }
 0x1ec   : > { %v7825_v31 = vpop.permute.xlu2 %2438  ;;  %10478 = vst [vmem:[#allocation21_spill] sm:$0xff] %v7890_v41 }
 0x1ed   : > { %v7797_v32 = vpop.permute.xlu0 %1368  ;;  %10466 = vst [vmem:[#allocation98_spill] sm:$0xff] %v7825_v31 }
 0x1ee   : > { %v7815_v10 = vpop.permute.xlu1 %1376  ;;  %2536 = vrot.lane.b32.xlu0 %v7776_v3, %s6071_s10  ;;  %v7968_v3 = vld [vmem:[%s7065_s17 + $0xb4] sm:$0xff] }
 0x1ef   : > { %2549 = vrot.lane.b32.xlu2 %v7802_v51, %s6073_s12 }
 0x1f0   : > { %5800 = vmatmul.msk.bf16.gmra.mxu1 %vm10276_vm15, %v1641_v0  ;;  %v10473_v0 = vld [vmem:[#allocation82_spill] sm:$0xff] }
 0x1f1   : > { %2547 = vrot.lane.b32.xlu1 %v7813_v56, %s6073_s12  ;;  %v1577_v35 = vsel %vm1571_vm11, %v1544_v36, %v10473_v0  ;;  %v6031_v36 = vld [vmem:[%s6137_s29 + $0x24] sm:$0xff]  ;;  %v10481_v0 = vld [vmem:[#allocation19_spill] sm:$0xff] }
 0x1f2   : > { %v1610_v28 = vsel %vm10277_vm12, %v1577_v35, %v10475_v42  ;;  %v1402_v35 = vsel %vm10280_vm6, %v6031_v36, %v10481_v0  ;;  %v10482_v42 = vld [vmem:[#allocation23_spill] sm:$0xff]  ;;  %v10487_v36 = vld [vmem:[#allocation68_spill] sm:$0xff] }
 0x1f3   : > { %v1643_v23 = vsel %vm1637_vm14, %v1610_v28, %v1363_v12  ;;  %v1447_v28 = vsel %vm1439_vm7, %v1402_v35, %v10482_v42  ;;  %v10488_v35 = vld [vmem:[#allocation71_spill] sm:$0xff] }
 0x1f4   : > { %v7853_v43 = vpop.permute.xlu2 %2444 }
 0x1f5   : > { %v7832_v14 = vpop.permute.xlu0 %1374  ;;  %10469 = vst [vmem:[#allocation101_spill] sm:$0xff] %v7853_v43  ;;  %v7927_v43 = vld [vmem:[%s7065_s17 + $0x9c] sm:$0xff] }
 0x1f6   : > { %2542 = vrot.lane.b32.xlu0 %v7830_v1, %s6071_s10  ;;  %v7844_v5 = vpop.permute.xlu1 %1382  ;;  %10489 = vst [vmem:[#allocation85_spill] sm:$0xff] %v7927_v43 }
 0x1f7   : > { %2555 = vrot.lane.b32.xlu2 %v7835_v13, %s6073_s12 }
 0x1f9   : > { %2553 = vrot.lane.b32.xlu1 %v7838_v24, %s6073_s12 }
 0x1fc   : > { %v7892_v33 = vpop.permute.xlu2 %2450 }
 0x1fd   : > { %v7867_v6 = vpop.permute.xlu0 %1380  ;;  %10479 = vst [vmem:[#allocation22_spill] sm:$0xff] %v7892_v33 }
 0x1fe   : > { %2551 = vrot.lane.b32.xlu0 %v7858_v58, %s6073_s12  ;;  %v7884_v4 = vpop.permute.xlu1 %1388 }
 0x1ff   : > { %2561 = vrot.lane.b32.xlu2 %v7863_v57, %s6073_s12  ;;  %10476 = vst [vmem:[#allocation114_spill] sm:$0xff] %v7884_v4 }
 0x200   : > { %5801 = vmatmul.msk.bf16.gmra.mxu1 %vm10276_vm15, %v1643_v23  ;;  %v10483_v23 = vld [vmem:[#allocation26_spill] sm:$0xff] }
 0x201   : > { %2559 = vrot.lane.b32.xlu1 %v7872_v16, %s6073_s12  ;;  %v1480_v4 = vsel %vm10279_vm8, %v1447_v28, %v10483_v23 }
 0x205   : > { %v7899_v12 = vpop.permute.xlu0 %1386 }
 0x206   : > { %2557 = vrot.lane.b32.xlu0 %v7887_v11, %s6073_s12  ;;  %10480 = vst [vmem:[#allocation39_spill] sm:$0xff] %v7899_v12  ;;  %v10484_v12 = vld [vmem:[#allocation56_spill] sm:$0xff]  ;;  %v7920_v33 = vpop.permute.xlu1 %2436  ;;  %v7929_v28 = vpop.permute.xlu2 %2456 }
 0x207   : > { %2567 = vrot.lane.b32.xlu2 %v7890_v41, %s6073_s12  ;;  %v1513_v17 = vsel %vm1505_vm9, %v1480_v4, %v10484_v12  ;;  %10486 = vst [vmem:[#allocation55_spill] sm:$0xff] %v7920_v33  ;;  %v7945_v12 = vld [vmem:[%s7065_s17 + $0x90] sm:$0xff] }
 0x208   : > { %v1546_v0 = vsel %vm10278_vm10, %v1513_v17, %v10487_v36  ;;  %10490 = vst [vmem:[#allocation112_spill] sm:$0xff] %v7929_v28 }
 0x209   : > { %2565 = vrot.lane.b32.xlu1 %v7895_v60, %s6073_s12  ;;  %v1579_v42 = vsel %vm1571_vm11, %v1546_v0, %v10488_v35  ;;  %10491 = vst [vmem:[#allocation123_spill] sm:$0xff] %v7945_v12  ;;  %v10493_v0 = vld [vmem:[#allocation90_spill] sm:$0xff] }
 0x20a   : > { %v1612_v23 = vsel %vm10277_vm12, %v1579_v42, %v7543_v7  ;;  %v7948_v7 = vld [vmem:[%s7065_s17 + $0xc0] sm:$0xff]  ;;  %v6032_v35 = vld [vmem:[%s6137_s29 + $0x30] sm:$0xff]  ;;  %v10495_v42 = vld [vmem:[#allocation9_spill] sm:$0xff] }
 0x20b   : > { %v1645_v17 = vsel %vm1637_vm14, %v1612_v23, %v7739_v18  ;;  %v1405_v23 = vsel %vm10280_vm6, %v6032_v35, %v10495_v42  ;;  %v10501_v42 = vld [vmem:[#allocation92_spill] sm:$0xff] }
 0x20d   : > { %v7939_v4 = vpop.permute.xlu0 %2434 }
 0x20e   : > { %2563 = vrot.lane.b32.xlu0 %v7913_v39, %s6073_s12  ;;  %v7950_v36 = vpop.permute.xlu1 %2442 }
 0x20f   : > { %2573 = vrot.lane.b32.xlu2 %v7918_v19, %s6073_s12  ;;  %10492 = vst [vmem:[#allocation15_spill] sm:$0xff] %v7950_v36 }
 0x210   : > { %5802 = vmatmul.msk.bf16.gmra.mxu1 %vm10276_vm15, %v1645_v17  ;;  %v10496_v17 = vld [vmem:[#allocation7_spill] sm:$0xff] }
 0x211   : > { %2571 = vrot.lane.b32.xlu1 %v7927_v43, %s6073_s12  ;;  %v1449_v28 = vsel %vm1439_vm7, %v1405_v23, %v10496_v17  ;;  %v10497_v43 = vld [vmem:[#allocation42_spill] sm:$0xff]  ;;  %v10502_v17 = vld [vmem:[#allocation121_spill] sm:$0xff] }
 0x212   : > { %v1482_v36 = vsel %vm10279_vm8, %v1449_v28, %v10497_v43  ;;  %v10503_v43 = vld [vmem:[#allocation102_spill] sm:$0xff] }
 0x216   : > { %2569 = vrot.lane.b32.xlu0 %v7945_v12, %s6073_s12  ;;  %v7956_v18 = vpop.permute.xlu2 %2462  ;;  %v7970_v12 = vpop.permute.xlu0 %2440 }
 0x217   : > { %2582 = vrot.lane.b32.xlu2 %v10493_v0, %s6075_s14  ;;  %10494 = vst [vmem:[#allocation24_spill] sm:$0xff] %v7956_v18  ;;  %v10499_v0 = vld [vmem:[#allocation54_spill] sm:$0xff]  ;;  %v7984_v28 = vpop.permute.xlu1 %2448 }
 0x218   : > { %10498 = vst [vmem:[#allocation37_spill] sm:$0xff] %v7970_v12  ;;  %v1515_v18 = vsel %vm1505_vm9, %v1482_v36, %v10499_v0  ;;  %v10514_v12 = vld [vmem:[#allocation40_spill] sm:$0xff] }
 0x219   : > { %2577 = vrot.lane.b32.xlu1 %v7948_v7, %s6073_s12  ;;  %v1548_v35 = vsel %vm10278_vm10, %v1515_v18, %v10500_v8  ;;  %10504 = vst [vmem:[#allocation41_spill] sm:$0xff] %v7984_v28  ;;  %v10505_v8 = vld [vmem:[#allocation86_spill] sm:$0xff] }
 0x21a   : > { %v1581_v23 = vsel %vm1571_vm11, %v1548_v35, %v10501_v42  ;;  %v10508_v35 = vld [vmem:[#allocation87_spill] sm:$0xff] }
 0x21b   : > { %v1614_v31 = vsel %vm10277_vm12, %v1581_v23, %v10502_v17  ;;  %v6033_v42 = vld [vmem:[%s6137_s29 + $0x3c] sm:$0xff] }
 0x21c   : > { %v1647_v36 = vsel %vm1637_vm14, %v1614_v31, %v7576_v45  ;;  %v10509_v23 = vld [vmem:[#allocation12_spill] sm:$0xff]  ;;  %v10510_v31 = vld [vmem:[#allocation27_spill] sm:$0xff] }
 0x21d   : > { %v1408_v45 = vsel %vm10280_vm6, %v6033_v42, %v10509_v23  ;;  %v10517_v42 = vld [vmem:[#allocation89_spill] sm:$0xff] }
 0x21e   : > { %2575 = vrot.lane.b32.xlu0 %v7968_v3, %s6073_s12  ;;  %v7993_v0 = vpop.permute.xlu0 %2446  ;;  %v1451_v17 = vsel %vm1439_vm7, %v1408_v45, %v10510_v31  ;;  %v10518_v45 = vld [vmem:[#allocation96_spill] sm:$0xff] }
 0x21f   : > { %2588 = vrot.lane.b32.xlu2 %v10503_v43, %s6075_s14  ;;  %10507 = vst [vmem:[#allocation82_spill] sm:$0xff] %v7993_v0  ;;  %v1484_v41 = vsel %vm10279_vm8, %v1451_v17, %v10514_v12  ;;  %v6034_v12 = vld [vmem:[%s6137_s29 + $0x48] sm:$0xff] }
 0x220   : > { %5803 = vmatmul.msk.bf16.gmra.mxu1 %vm10276_vm15, %v1647_v36  ;;  %v7991_v18 = vpop.permute.xlu2 %2516  ;;  %v10511_v36 = vld [vmem:[#allocation94_spill] sm:$0xff] }
 0x221   : > { %2586 = vrot.lane.b32.xlu1 %v10505_v8, %s6075_s14  ;;  %10506 = vst [vmem:[#allocation69_spill] sm:$0xff] %v7991_v18  ;;  %v10515_v18 = vld [vmem:[#allocation44_spill] sm:$0xff] }
 0x224   : > { %v8008_v0 = vpop.permute.xlu1 %2454 }
 0x225   : > { %10513 = vst [vmem:[#allocation19_spill] sm:$0xff] %v8008_v0 }
 0x226   : > { %2584 = vrot.lane.b32.xlu0 %v10508_v35, %s6075_s14 }
 0x227   : > { %2617 = vrot.lane.b32.xlu2 %v7600_v53, %s6076_s26  ;;  %v1517_v53 = vsel %vm1505_vm9, %v1484_v41, %v10515_v18  ;;  %v10523_v18 = vld [vmem:[#allocation4_spill] sm:$0xff] }
 0x228   : > { %v1550_v33 = vsel %vm10278_vm10, %v1517_v53, %v10516_v2  ;;  %v8022_v0 = vpop.permute.xlu0 %2452  ;;  %v10525_v53 = vld [vmem:[#allocation25_spill] sm:$0xff] }
 0x229   : > { %2592 = vrot.lane.b32.xlu1 %v10511_v36, %s6075_s14  ;;  %v8006_v28 = vpop.permute.xlu2 %2522  ;;  %v1583_v23 = vsel %vm1571_vm11, %v1550_v33, %v10517_v42  ;;  %10520 = vst [vmem:[#allocation23_spill] sm:$0xff] %v8022_v0  ;;  %v10526_v42 = vld [vmem:[#allocation103_spill] sm:$0xff] }
 0x22a   : > { %10512 = vst [vmem:[#allocation91_spill] sm:$0xff] %v8006_v28  ;;  %v1616_v31 = vsel %vm10277_vm12, %v1583_v23, %v10518_v45  ;;  %v10519_v28 = vld [vmem:[#allocation95_spill] sm:$0xff]  ;;  %v10528_v45 = vld [vmem:[#allocation29_spill] sm:$0xff] }
 0x22b   : > { %v1649_v41 = vsel %vm1637_vm14, %v1616_v31, %v7797_v32  ;;  %v1411_v32 = vsel %vm10280_vm6, %v6034_v12, %v10523_v18  ;;  %v10530_v12 = vld [vmem:[#allocation70_spill] sm:$0xff] }
 0x22e   : > { %2590 = vrot.lane.b32.xlu0 %v10519_v28, %s6075_s14 }
 0x22f   : > { %2722 = vrot.lane.b32.xlu2 %v7593_v15, %s6077_s27 }
 0x230   : > { %5804 = vmatmul.msk.bf16.gmra.mxu1 %vm10276_vm15, %v1649_v41  ;;  %v10529_v41 = vld [vmem:[#allocation59_spill] sm:$0xff] }
 0x231   : > { %2687 = vrot.lane.b32.xlu1 %v10508_v35, %s6078_s28  ;;  %v8031_v2 = vpop.permute.xlu2 %2528  ;;  %v1453_v35 = vsel %vm1439_vm7, %v1411_v32, %v10525_v53 }
 0x232   : > { %10521 = vst [vmem:[#allocation26_spill] sm:$0xff] %v8031_v2  ;;  %v1486_v31 = vsel %vm10279_vm8, %v1453_v35, %v10528_v45  ;;  %v10531_v2 = vld [vmem:[#allocation74_spill] sm:$0xff] }
 0x233   : > { %v8033_v33 = vpop.permute.xlu1 %2460 }
 0x234   : > { %10522 = vst [vmem:[#allocation56_spill] sm:$0xff] %v8033_v33 }
 0x236   : > { %2652 = vrot.lane.b32.xlu0 %v7802_v51, %s6079_s15 }
 0x237   : > { %2619 = vrot.lane.b32.xlu2 %v7593_v15, %s6076_s26  ;;  %v1519_v15 = vsel %vm1505_vm9, %v1486_v31, %v10529_v41  ;;  %v10534_v41 = vld [vmem:[#allocation6_spill] sm:$0xff] }
 0x238   : > { %v8042_v17 = vpop.permute.xlu0 %2458  ;;  %v1552_v18 = vsel %vm10278_vm10, %v1519_v15, %v10530_v12  ;;  %v10535_v12 = vld [vmem:[#allocation17_spill] sm:$0xff] }
 0x239   : > { %10524 = vst [vmem:[#allocation68_spill] sm:$0xff] %v8042_v17  ;;  %2596 = vrot.lane.b32.xlu1 %v10526_v42, %s6075_s14  ;;  %v8048_v23 = vpop.permute.xlu2 %2534  ;;  %v1585_v32 = vsel %vm1571_vm11, %v1552_v18, %v10531_v2  ;;  %v10540_v17 = vld [vmem:[#allocation97_spill] sm:$0xff] }
 0x23a   : > { %10527 = vst [vmem:[#allocation71_spill] sm:$0xff] %v8048_v23  ;;  %v1618_v53 = vsel %vm10277_vm12, %v1585_v32, %v7581_v9  ;;  %v10532_v23 = vld [vmem:[#allocation107_spill] sm:$0xff]  ;;  %v10536_v32 = vld [vmem:[#allocation45_spill] sm:$0xff] }
 0x23b   : > { %v8054_v0 = vpop.permute.xlu1 %2514  ;;  %v1651_v35 = vsel %vm1637_vm14, %v1618_v53, %v7774_v48  ;;  %v6035_v9 = vld [vmem:[%s6137_s29 + $0x54] sm:$0xff] }
 0x23c   : > { %v1414_v48 = vsel %vm10280_vm6, %v6035_v9, %v10534_v41  ;;  %v10539_v9 = vld [vmem:[#allocation61_spill] sm:$0xff] }
 0x23d   : > { %v1455_v18 = vsel %vm1439_vm7, %v1414_v48, %v10535_v12  ;;  %v10541_v12 = vld [vmem:[#allocation100_spill] sm:$0xff] }
 0x23e   : > { %2594 = vrot.lane.b32.xlu0 %v10532_v23, %s6075_s14  ;;  %v1488_v53 = vsel %vm10279_vm8, %v1455_v18, %v10536_v32  ;;  %v10542_v18 = vld [vmem:[#allocation120_spill] sm:$0xff] }
 0x23f   : > { %2724 = vrot.lane.b32.xlu2 %v7657_v62, %s6077_s27 }
 0x240   : > { %v8068_v45 = vpop.permute.xlu0 %2512  ;;  %5805 = vmatmul.msk.bf16.gmra.mxu1 %vm10276_vm15, %v1651_v35  ;;  %v10537_v35 = vld [vmem:[#allocation57_spill] sm:$0xff] }
 0x241   : > { %2689 = vrot.lane.b32.xlu1 %v10505_v8, %s6078_s28  ;;  %v8073_v2 = vpop.permute.xlu2 %2540 }
 0x242   : > { %10533 = vst [vmem:[#allocation90_spill] sm:$0xff] %v8073_v2  ;;  %v1521_v2 = vsel %vm1505_vm9, %v1488_v53, %v10537_v35  ;;  %v10545_v35 = vld [vmem:[#allocation14_spill] sm:$0xff] }
 0x243   : > { %v8075_v31 = vpop.permute.xlu1 %2520  ;;  %v1554_v41 = vsel %vm10278_vm10, %v1521_v2, %v10539_v9 }
 0x244   : > { %v1587_v48 = vsel %vm1571_vm11, %v1554_v41, %v10540_v17  ;;  %v10547_v41 = vld [vmem:[#allocation30_spill] sm:$0xff] }
 0x246   : > { %2654 = vrot.lane.b32.xlu0 %v7858_v58, %s6079_s15 }
 0x247   : > { %2656 = vrot.lane.b32.xlu2 %v7838_v24, %s6079_s15 }
 0x248   : > { %v8084_v15 = vpop.permute.xlu0 %2518 }
 0x249   : > { %2621 = vrot.lane.b32.xlu1 %v7657_v62, %s6076_s26  ;;  %v8090_v8 = vpop.permute.xlu2 %2549  ;;  %v1620_v62 = vsel %vm10277_vm12, %v1587_v48, %v7549_v20  ;;  %v6036_v20 = vld [vmem:[%s6137_s29 + $0x60] sm:$0xff] }
 0x24a   : > { %v1653_v32 = vsel %vm1637_vm14, %v1620_v62, %v7620_v22  ;;  %v1417_v22 = vsel %vm10280_vm6, %v6036_v20, %v10545_v35  ;;  %v10552_v20 = vld [vmem:[#allocation75_spill] sm:$0xff] }
 0x24b   : > { %v8096_v33 = vpop.permute.xlu1 %2526  ;;  %v1457_v48 = vsel %vm1439_vm7, %v1417_v22, %v10547_v41  ;;  %v10554_v41 = vld [vmem:[#allocation104_spill] sm:$0xff] }
 0x24c   : > { %10538 = vst [vmem:[#allocation9_spill] sm:$0xff] %v8096_v33 }
 0x24e   : > { %2598 = vrot.lane.b32.xlu0 %v10541_v12, %s6075_s14 }
 0x24f   : > { %2600 = vrot.lane.b32.xlu2 %v10542_v18, %s6075_s14 }
 0x250   : > { %v8110_v53 = vpop.permute.xlu0 %2524  ;;  %5806 = vmatmul.msk.bf16.gmra.mxu1 %vm10276_vm15, %v1653_v32  ;;  %v10549_v32 = vld [vmem:[#allocation43_spill] sm:$0xff] }
 0x251   : > { %10543 = vst [vmem:[#allocation7_spill] sm:$0xff] %v8110_v53  ;;  %2726 = vrot.lane.b32.xlu1 %v7647_v54, %s6077_s27  ;;  %v8115_v17 = vpop.permute.xlu2 %2555 }
 0x253   : > { %v8117_v2 = vpop.permute.xlu1 %2532 }
 0x254   : > { %10544 = vst [vmem:[#allocation42_spill] sm:$0xff] %v8117_v2  ;;  %v10550_v2 = vld [vmem:[#allocation47_spill] sm:$0xff] }
 0x256   : > { %2691 = vrot.lane.b32.xlu0 %v10503_v43, %s6078_s28  ;;  %v1490_v43 = vsel %vm10279_vm8, %v1457_v48, %v10549_v32  ;;  %v10555_v48 = vld [vmem:[#allocation108_spill] sm:$0xff] }
 0x257   : > { %2693 = vrot.lane.b32.xlu2 %v10519_v28, %s6078_s28  ;;  %v1523_v28 = vsel %vm1505_vm9, %v1490_v43, %v10550_v2  ;;  %v10557_v43 = vld [vmem:[#allocation116_spill] sm:$0xff] }
 0x258   : > { %v8126_v9 = vpop.permute.xlu0 %2530  ;;  %v1556_v35 = vsel %vm10278_vm10, %v1523_v28, %v10552_v20  ;;  %v10559_v20 = vld [vmem:[#allocation5_spill] sm:$0xff] }
 0x259   : > { %10546 = vst [vmem:[#allocation54_spill] sm:$0xff] %v8126_v9  ;;  %2658 = vrot.lane.b32.xlu1 %v7835_v13, %s6079_s15  ;;  %v8132_v62 = vpop.permute.xlu2 %2561  ;;  %v10553_v9 = vld [vmem:[#allocation93_spill] sm:$0xff] }
 0x25a   : > { %10548 = vst [vmem:[#allocation58_spill] sm:$0xff] %v8132_v62  ;;  %v1589_v22 = vsel %vm1571_vm11, %v1556_v35, %v10553_v9  ;;  %v10561_v35 = vld [vmem:[#allocation28_spill] sm:$0xff]  ;;  %v10564_v62 = vld [vmem:[#allocation62_spill] sm:$0xff] }
 0x25b   : > { %v8138_v33 = vpop.permute.xlu1 %2538  ;;  %v1622_v53 = vsel %vm10277_vm12, %v1589_v22, %v10554_v41 }
 0x25c   : > { %10551 = vst [vmem:[#allocation92_spill] sm:$0xff] %v8138_v33  ;;  %v1655_v2 = vsel %vm1637_vm14, %v1622_v53, %v7832_v14 }
 0x25e   : > { %2623 = vrot.lane.b32.xlu0 %v7647_v54, %s6076_s26  ;;  %v6037_v54 = vld [vmem:[%s6137_s29 + $0x6c] sm:$0xff] }
 0x25f   : > { %2604 = vrot.lane.b32.xlu2 %v10555_v48, %s6075_s14  ;;  %v1420_v14 = vsel %vm10280_vm6, %v6037_v54, %v10559_v20  ;;  %v10565_v54 = vld [vmem:[#allocation73_spill] sm:$0xff] }
 0x260   : > { %v8152_v32 = vpop.permute.xlu0 %2536  ;;  %5807 = vmatmul.msk.bf16.gmra.mxu1 %vm10276_vm15, %v1655_v2  ;;  %v1459_v22 = vsel %vm1439_vm7, %v1420_v14, %v10561_v35  ;;  %v10563_v2 = vld [vmem:[#allocation32_spill] sm:$0xff] }
 0x261   : > { %10556 = vst [vmem:[#allocation121_spill] sm:$0xff] %v8152_v32  ;;  %2602 = vrot.lane.b32.xlu1 %v10557_v43, %s6075_s14  ;;  %v8157_v9 = vpop.permute.xlu2 %2567 }
 0x262   : > { %10558 = vst [vmem:[#allocation102_spill] sm:$0xff] %v8157_v9  ;;  %v1492_v9 = vsel %vm10279_vm8, %v1459_v22, %v10563_v2 }
 0x263   : > { %v8159_v28 = vpop.permute.xlu1 %2547 }
 0x266   : > { %2728 = vrot.lane.b32.xlu0 %v7639_v55, %s6077_s27 }
 0x267   : > { %2695 = vrot.lane.b32.xlu2 %v10511_v36, %s6078_s28  ;;  %v1525_v36 = vsel %vm1505_vm9, %v1492_v9, %v10564_v62 }
 0x268   : > { %v8168_v53 = vpop.permute.xlu0 %2542  ;;  %v1558_v20 = vsel %vm10278_vm10, %v1525_v36, %v10565_v54  ;;  %v10569_v36 = vld [vmem:[#allocation10_spill] sm:$0xff] }
 0x269   : > { %10560 = vst [vmem:[#allocation86_spill] sm:$0xff] %v8168_v53  ;;  %2660 = vrot.lane.b32.xlu1 %v7887_v11, %s6079_s15  ;;  %v8174_v41 = vpop.permute.xlu2 %2573  ;;  %v10566_v53 = vld [vmem:[#allocation77_spill] sm:$0xff] }
 0x26a   : > { %10562 = vst [vmem:[#allocation87_spill] sm:$0xff] %v8174_v41  ;;  %v1591_v14 = vsel %vm1571_vm11, %v1558_v20, %v10566_v53  ;;  %v10571_v41 = vld [vmem:[#allocation60_spill] sm:$0xff] }
 0x26b   : > { %v8180_v33 = vpop.permute.xlu1 %2553  ;;  %v1624_v35 = vsel %vm10277_vm12, %v1591_v14, %v7626_v21  ;;  %v6038_v21 = vld [vmem:[%s6137_s29 + $0x78] sm:$0xff]  ;;  %v10570_v14 = vld [vmem:[#allocation48_spill] sm:$0xff] }
 0x26c   : > { %v1657_v62 = vsel %vm1637_vm14, %v1624_v35, %v7815_v10 }
 0x26e   : > { %2625 = vrot.lane.b32.xlu0 %v7639_v55, %s6076_s26  ;;  %v10568_v55 = vld [vmem:[#allocation11_spill] sm:$0xff] }
 0x26f   : > { %2627 = vrot.lane.b32.xlu2 %v7722_v59, %s6076_s26  ;;  %v1423_v10 = vsel %vm10280_vm6, %v6038_v21, %v10568_v55 }
 0x270   : > { %v8194_v9 = vpop.permute.xlu0 %2551  ;;  %5808 = vmatmul.msk.bf16.gmra.mxu1 %vm10276_vm15, %v1657_v62  ;;  %v1461_v54 = vsel %vm1439_vm7, %v1423_v10, %v10569_v36  ;;  %v10573_v10 = vld [vmem:[#allocation64_spill] sm:$0xff] }
 0x271   : > { %2606 = vrot.lane.b32.xlu1 %v7591_v38, %s6075_s14  ;;  %v8199_v53 = vpop.permute.xlu2 %2582  ;;  %v1494_v35 = vsel %vm10279_vm8, %v1461_v54, %v10570_v14  ;;  %v6039_v14 = vld [vmem:[%s6137_s29 + $0x84] sm:$0xff] }
 0x272   : > { %v1527_v21 = vsel %vm1505_vm9, %v1494_v35, %v10571_v41  ;;  %v10577_v35 = vld [vmem:[#allocation18_spill] sm:$0xff] }
 0x273   : > { %v8201_v22 = vpop.permute.xlu1 %2559  ;;  %v1560_v36 = vsel %vm10278_vm10, %v1527_v21, %v10573_v10  ;;  %v10579_v10 = vld [vmem:[#allocation33_spill] sm:$0xff] }
 0x274   : > { %10567 = vst [vmem:[#allocation12_spill] sm:$0xff] %v8201_v22  ;;  %v10574_v22 = vld [vmem:[#allocation105_spill] sm:$0xff] }
 0x275   : > { %v1593_v11 = vsel %vm1571_vm11, %v1560_v36, %v10574_v22 }
 0x276   : > { %2730 = vrot.lane.b32.xlu0 %v7722_v59, %s6077_s27  ;;  %v3043_v59 = vld [vmem:[%s10196_s3 + $0x20] sm:$0xf]  ;;  %v1626_v32 = vsel %vm10277_vm12, %v1593_v11, %v7587_v34 }
 0x277   : > { %2732 = vrot.lane.b32.xlu2 %v7685_v29, %s6077_s27  ;;  %v3061_v62 = vunpack.c.l.b16 %v3043_v59  ;;  %v1659_v41 = vsel %vm1637_vm14, %v1626_v32, %v7666_v46  ;;  %v5973_v59 = vld [vmem:[%s10196_s3 + $0x18] sm:$0xff]  ;;  %v5972_v46 = vld [vmem:[%s10196_s3 + $0x10] sm:$0xff]  ;;  %v5971_v32 = vld [vmem:[%s10196_s3 + $0x8] sm:$0xff] }
 0x278   : > { %v8210_v2 = vpop.permute.xlu0 %2557 }
 0x279   : > { %2697 = vrot.lane.b32.xlu1 %v10532_v23, %s6078_s28  ;;  %v8216_v20 = vpop.permute.xlu2 %2588  ;;  %v3066_v23 = vpack.c.b16 %v3061_v62, %v3061_v62  ;;  %v1426_v62 = vsel %vm10280_vm6, %v6039_v14, %v10577_v35  ;;  %v10583_v14 = vld [vmem:[#allocation78_spill] sm:$0xff]  ;;  %v10584_v35 = vld [vmem:[#allocation99_spill] sm:$0xff] }
 0x27a   : > { %v1463_v36 = vsel %vm1439_vm7, %v1426_v62, %v10579_v10  ;;  %v10585_v10 = vld [vmem:[#allocation109_spill] sm:$0xff] }
 0x27b   : > { %v8225_v55 = vpop.permute.xlu1 %2565  ;;  %v3106_v54 = vsel %vm3104_vm0, %v3066_v23, 0  ;;  %vm2997_vm0 = vcmask 523264  }
 0x27c   : > { %10572 = vst [vmem:[#allocation27_spill] sm:$0xff] %v8225_v55  ;;  %3111 = vmatpush.bf16.msra.mxu0 %v3106_v54  ;;  %5994 = vmatpush.bf16.msra.mxu3 %v3106_v54 }
 0x27e   : > { %2662 = vrot.lane.b32.xlu0 %v7872_v16, %s6079_s15  ;;  %v10593_v16 = vld [vmem:[#allocation80_spill] sm:$0xff] }
 0x27f   : > { %2711 = vrot.lane.b32.xlu2 %v7562_v27, %s6078_s28 }
 0x280   : > { %v8242_v22 = vpop.permute.xlu0 %2563  ;;  %5809 = vmatmul.msk.bf16.gmra.mxu1 %vm10276_vm15, %v1659_v41  ;;  %3112 = vmatpush.bf16.msra.mxu0 %v5973_v59  ;;  %v10581_v41 = vld [vmem:[#allocation50_spill] sm:$0xff] }
 0x281   : > { %10575 = vst [vmem:[#allocation94_spill] sm:$0xff] %v8242_v22  ;;  %2676 = vrot.lane.b32.xlu1 %v7918_v19, %s6079_s15  ;;  %v8247_v34 = vpop.permute.xlu2 %2617  ;;  %5995 = vmatpush.bf16.msra.mxu3 %v5973_v59 }
 0x283   : > { %v8249_v11 = vpop.permute.xlu1 %2571 }
 0x284   : > { %10576 = vst [vmem:[#allocation40_spill] sm:$0xff] %v8249_v11  ;;  %3113 = vmatpush.bf16.msra.mxu0 %v5972_v46 }
 0x285   : > { %5996 = vmatpush.bf16.msra.mxu3 %v5972_v46  ;;  %v5970_v46 = vld [vmem:[%s10196_s3] sm:$0xff] }
 0x286   : > { %2641 = vrot.lane.b32.xlu0 %v7778_v63, %s6076_s26 }
 0x287   : > { %2664 = vrot.lane.b32.xlu2 %v7863_v57, %s6079_s15  ;;  %v10580_v57 = vld [vmem:[#allocation46_spill] sm:$0xff] }
 0x288   : > { %v8264_v21 = vpop.permute.xlu0 %2569  ;;  %v1496_v54 = vsel %vm10279_vm8, %v1463_v36, %v10580_v57  ;;  %3114 = vmatpush.bf16.msra.mxu0 %v5971_v32 }
 0x289   : > { %10578 = vst [vmem:[#allocation44_spill] sm:$0xff] %v8264_v21  ;;  %2629 = vrot.lane.b32.xlu1 %v7685_v29, %s6076_s26  ;;  %v8270_v23 = vpop.permute.xlu2 %2722  ;;  %v1529_v59 = vsel %vm1505_vm9, %v1496_v54, %v10581_v41  ;;  %5997 = vmatpush.bf16.msra.mxu3 %v5971_v32  ;;  %v8301_v41 = vld [vmem:[%s7065_s17 + $0xc0] sm:$0xf] }
 0x28a   : > { %v1562_v29 = vsel %vm10278_vm10, %v1529_v59, %v10583_v14  ;;  %v8304_v59 = vld [vmem:[%s7065_s17 + $0xc4] sm:$0xf]  ;;  %v2269_v14 = vshrl.u32 %v8301_v41, 16 }
 0x28b   : > { %v8276_v55 = vpop.permute.xlu1 %2577  ;;  %v1595_v62 = vsel %vm1571_vm11, %v1562_v29, %v10584_v35  ;;  %v2272_v29 = vshll.u32 %v8301_v41, 16  ;;  %v2282_v35 = vshrl.u32 %v8304_v59, 16 }
 0x28c   : > { %10582 = vst [vmem:[#allocation72_spill] sm:$0xff] %v8276_v55  ;;  %v1628_v36 = vsel %vm10277_vm12, %v1595_v62, %v10585_v10  ;;  %3115 = vmatpush.bf16.msra.mxu0 %v5970_v46  ;;  %v6040_v62 = vld [vmem:[%s6137_s29 + $0x90] sm:$0xff] }
 0x28d   : > { %v1661_v57 = vsel %vm1637_vm14, %v1628_v36, %v7867_v6  ;;  %5998 = vmatpush.bf16.msra.mxu3 %v5970_v46  ;;  %v8309_v6 = vpop.f32.mrf.mxu1  ;;  %v2278_v46 = vshll.u32 %v8304_v59, 16  ;;  %v2274_v21 = vrot.slane %v2272_v29, 5  ;;  %v2284_v22 = vrot.slane %v2282_v35, 4  ;;  %v10592_v35 = vld [vmem:[#allocation76_spill] sm:$0xff] }
 0x28e   : > { %2746 = vrot.lane.b32.xlu0 %v7771_v40, %s6077_s27  ;;  %10587 = vst [vmem:[#allocation96_spill] sm:$0xff] %v8309_v6  ;;  %v10589_v6 = vld [vmem:[#allocation31_spill] sm:$0xff] }
 0x28f   : > { %2608 = vrot.lane.b32.xlu2 %v7562_v27, %s6075_s14  ;;  %v2280_v55 = vrot.slane %v2278_v46, 5 }
 0x290   : > { %v8293_v54 = vpop.permute.xlu0 %2575  ;;  %5810 = vmatmul.msk.bf16.gmra.mxu1 %vm10276_vm15, %v1661_v57  ;;  %v2271_v57 = vrot.slane %v2269_v14, 4  ;;  %v10591_v14 = vld [vmem:[#allocation65_spill] sm:$0xff] }
 0x291   : > { %10586 = vst [vmem:[#allocation89_spill] sm:$0xff] %v8293_v54  ;;  %2734 = vrot.lane.b32.xlu1 %v7674_v30, %s6077_s27  ;;  %v8298_v32 = vpop.permute.xlu2 %2619  ;;  %5999 = vmatpush.bf16.msrb.mxu3 %v7682_v61  ;;  %v10588_v61 = vld [vmem:[#allocation8_spill] sm:$0xff] }
 0x292   : > { %v1429_v10 = vsel %vm10280_vm6, %v6040_v62, %v10588_v61  ;;  %v10590_v62 = vld [vmem:[#allocation35_spill] sm:$0xff]  ;;  %vm3495_vm6 = vsmask.f32 4368 }
 0x293   : > { %v8307_v27 = vpop.permute.xlu1 %2586  ;;  %v1465_v54 = vsel %vm1439_vm7, %v1429_v10, %v10589_v6  ;;  %v2275_v10 = vor.u32 %v2274_v21, %v2271_v57 }
 0x294   : > { %v1498_v61 = vsel %vm10279_vm8, %v1465_v54, %v10590_v62 }
 0x295   : > { %6000 = vmatpush.bf16.msrb.mxu3 %v7691_v37  ;;  %v1531_v29 = vsel %vm1505_vm9, %v1498_v61, %v10591_v14  ;;  %v8348_v63 = vpop.f32.mrf.mxu1 }
 0x296   : > { %2699 = vrot.lane.b32.xlu0 %v10526_v42, %s6078_s28  ;;  %v8332_v42 = vld [vmem:[%s7065_s17 + $0xc8] sm:$0x1]  ;;  %v1564_v6 = vsel %vm10278_vm10, %v1531_v29, %v10592_v35  ;;  %vm3819_vm10 = vsmask.f32 7938 }
 0x297   : > { %2713 = vrot.lane.b32.xlu2 %v7539_v47, %s6078_s28  ;;  %v2288_v19 = vshll.u32 %v8332_v42, 16  ;;  %v1597_v11 = vsel %vm1571_vm11, %v1564_v6, %v10593_v16  ;;  %v2276_v16 = vrot.slane %v2275_v10, 4  ;;  %v2297_v10 = vrot.slane %v8304_v59, 5 }
 0x298   : > { %v8323_v36 = vpop.permute.xlu0 %2584  ;;  %v5685_v59 = vrot.slane %v8301_v41, 9 }
 0x299   : > { %2678 = vrot.lane.b32.xlu1 %v7968_v3, %s6079_s15  ;;  %v8329_v37 = vpop.permute.xlu2 %2724  ;;  %6001 = vmatpush.bf16.msrb.mxu3 %v7720_v52  ;;  %v2285_v3 = vor.u32 %v2284_v22, %v2280_v55  ;;  %v1630_v52 = vsel %vm10277_vm12, %v1597_v11, %v7670_v49  ;;  %v5950_v22 = vld [vmem:[%s7065_s17] sm:$0xff]  ;;  %v2290_v62 = vrot.slane %v2288_v19, 5  ;;  %vm3409_vm12 = vcmask 24576  }
 0x29a   : > { %v1663_v54 = vsel %vm1637_vm14, %v1630_v52, %v7844_v5  ;;  %v2756_v5 = vsel %vm1439_vm7, %v5950_v22, %v7780_v44 }
 0x29b   : > { %v8339_v46 = vpop.permute.xlu1 %2592  ;;  %v2286_v57 = vrot.slane %v2285_v3, 4  ;;  %v2803_v61 = vsel %vm1505_vm9, %v2756_v5, %v8068_v45  ;;  %v8398_v3 = vld [vmem:[%s7065_s17 + $0xd0] sm:$0xf] }
 0x29c   : > { %v2835_v19 = vsel %vm1571_vm11, %v2803_v61, %v8159_v28 }
 0x29d   : > { %v2291_v11 = vsel %vm6175_vm2, %v2286_v57, %v2290_v62  ;;  %v8380_v45 = vpop.f32.mrf.mxu1  ;;  %v2299_v57 = vrot.slane %v2297_v10, 4  ;;  %v2300_v62 = vrot.slane %v8332_v42, 5 }
 0x29e   : > { %2643 = vrot.lane.b32.xlu0 %v7771_v40, %s6076_s26 }
 0x29f   : > { %2666 = vrot.lane.b32.xlu2 %v7913_v39, %s6079_s15  ;;  %v2281_v39 = vsel %vm6175_vm2, %v2276_v16, %v2280_v55  ;;  %v2580_v55 = vunpack.c.l.b16 %v2291_v11  ;;  %v2316_v16 = vshrl.u32 %v8398_v3, 16 }
 0x2a0   : > { %v8357_v21 = vpop.permute.xlu0 %2590  ;;  %5811 = vmatmul.msk.bf16.gmra.mxu1 %vm10276_vm15, %v1663_v54  ;;  %v2579_v44 = vunpack.c.l.b16 %v2281_v39  ;;  %vm3406_vm15 = vcmask 27648  }
 0x2a1   : > { %2631 = vrot.lane.b32.xlu1 %v7674_v30, %s6076_s26  ;;  %v8362_v49 = vpop.permute.xlu2 %2656  ;;  %v2867_v30 = vsel %vm1637_vm14, %v2835_v19, %v8199_v53  ;;  %v2318_v61 = vrot.slane %v2316_v16, 4  ;;  %v8416_v19 = vld [vmem:[%s7065_s17 + $0xd4] sm:$0x1]  ;;  %vm8760_vm8 = vmand %vm3406_vm15, %vm3819_vm10  ;;  %vm3494_vm10 = vsmask.f32 256 }
 0x2a2   : > { %v2900_v28 = vsel %vm2898_vm1, %v2867_v30, %v8247_v34  ;;  %v2581_v6 = vpack.c.b16 %v2580_v55, %v2579_v44  ;;  %v8395_v34 = vld [vmem:[%s7065_s17 + $0xcc] sm:$0xf]  ;;  %v2298_v44 = vsel %vm6462_vm5, %v5685_v59, %v2297_v10  ;;  %v2301_v55 = vsel %vm6462_vm5, %v2299_v57, %v2300_v62 }
 0x2a3   : > { %v2688_v40 = vpop.permute.xlu1 %2687  ;;  %v2303_v54 = vshrl.u32 %v8395_v34, 16  ;;  %v2306_v22 = vshll.u32 %v8395_v34, 16 }
 0x2a5   : > { %v2305_v5 = vrot.slane %v2303_v54, 4  ;;  %v2308_v39 = vrot.slane %v2306_v22, 5  ;;  %v8421_v30 = vpop.f32.mrf.mxu1 }
 0x2a6   : > { %2748 = vrot.lane.b32.xlu0 %v7830_v1, %s6077_s27 }
 0x2a7   : > { %2610 = vrot.lane.b32.xlu2 %v7539_v47, %s6075_s14 }
 0x2a8   : > { %v2653_v14 = vpop.permute.xlu0 %2652 }
 0x2a9   : > { %v2933_v29 = vsel %vm2931_vm3, %v2900_v28, %v2653_v14  ;;  %2736 = vrot.lane.b32.xlu1 %v7769_v25, %s6077_s27  ;;  %v8400_v52 = vpop.permute.xlu2 %2600  ;;  %v2309_v28 = vor.u32 %v2308_v39, %v2305_v5 }
 0x2aa   : > { %v2966_v53 = vsel %vm10281_vm4, %v2933_v29, %v2688_v40  ;;  %v2322_v29 = vshll.u32 %v8416_v19, 16 }
 0x2ab   : > { %v2999_v47 = vsel %vm2997_vm0, %v2966_v53, %v8270_v23  ;;  %v8390_v35 = vpop.permute.xlu1 %2596  ;;  %v2312_v23 = vshll.u32 %v8398_v3, 16  ;;  %v2310_v10 = vrot.slane %v2309_v28, 4  ;;  %v5967_v28 = vld [vmem:[%s7065_s17 + $0xcc] sm:$0xff] }
 0x2ac   : > { %5775 = vmatmul.msk.bf16.vlgmr.msra.gmra.mxu0 %vm10282_vm13, %v2999_v47  ;;  %v2324_v22 = vrot.slane %v2322_v29, 5  ;;  %v5686_v29 = vrot.slane %v8395_v34, 9 }
 0x2ad   : > { %v2314_v11 = vrot.slane %v2312_v23, 5 }
 0x2ae   : > { %2701 = vrot.lane.b32.xlu0 %v10541_v12, %s6078_s28  ;;  %v2759_v12 = vsel %vm1439_vm7, %v7813_v56, %v7939_v4  ;;  %v2614_v4 = vunpack.c.l.b16 %v2298_v44 }
 0x2af   : > { %2715 = vrot.lane.b32.xlu2 %v2581_v6, %s6078_s28  ;;  %v2805_v41 = vsel %vm1505_vm9, %v2759_v12, %v8054_v0  ;;  %v2319_v14 = vor.u32 %v2318_v61, %v2314_v11  ;;  %v2615_v0 = vunpack.c.l.b16 %v2301_v55  ;;  %v10596_v12 = vld [vmem:[#allocation69_spill] sm:$0xff]  ;;  %v2331_v55 = vrot.slane %v8398_v3, 5 }
 0x2b0   : > { %v8411_v40 = vpop.permute.xlu0 %2594 }
 0x2b1   : > { %2680 = vrot.lane.b32.xlu1 %v7948_v7, %s6079_s15  ;;  %v2837_v7 = vsel %vm1571_vm11, %v2805_v41, %v8090_v8  ;;  %v8436_v53 = vpop.permute.xlu2 %2693  ;;  %v2320_v54 = vrot.slane %v2319_v14, 4 }
 0x2b2   : > { %v2869_v56 = vsel %vm1637_vm14, %v2837_v7, %v8323_v36  ;;  %v2616_v36 = vpack.c.b16 %v2615_v0, %v2614_v4 }
 0x2b3   : > { %v2690_v42 = vpop.permute.xlu1 %2689  ;;  %v2902_v8 = vsel %vm2898_vm1, %v2869_v56, %v8298_v32  ;;  %v2315_v32 = vsel %vm6175_vm2, %v2310_v10, %v2314_v11  ;;  %v2325_v57 = vsel %vm6175_vm2, %v2320_v54, %v2324_v22  ;;  %v10595_v11 = vld [vmem:[#allocation115_spill] sm:$0xff]  ;;  %v2334_v56 = vrot.slane %v8416_v19, 5  ;;  %v10597_v10 = vld [vmem:[#allocation21_spill] sm:$0xff]  ;;  %v10598_v54 = vld [vmem:[#allocation98_spill] sm:$0xff] }
 0x2b4   : > { %v2685_v62 = vunpack.c.l.b16 %v2325_v57  ;;  %v2765_v22 = vsel %vm1439_vm7, %v7858_v58, %v10598_v54  ;;  %v10606_v54 = vld [vmem:[#allocation112_spill] sm:$0xff] }
 0x2b6   : > { %2645 = vrot.lane.b32.xlu0 %v7830_v1, %s6076_s26 }
 0x2b7   : > { %2668 = vrot.lane.b32.xlu2 %v7895_v60, %s6079_s15  ;;  %v8448_v60 = vpop.f32.mrf.mxu1 }
 0x2b8   : > { %v2655_v47 = vpop.permute.xlu0 %2654 }
 0x2b9   : > { %v2935_v23 = vsel %vm2931_vm3, %v2902_v8, %v2655_v47  ;;  %2633 = vrot.lane.b32.xlu1 %v7769_v25, %s6076_s26  ;;  %v2684_v25 = vunpack.c.l.b16 %v2315_v32  ;;  %v8462_v61 = vpop.permute.xlu2 %2604 }
 0x2ba   : > { %v2968_v1 = vsel %vm10281_vm4, %v2935_v23, %v2690_v42 }
 0x2bb   : > { %v3001_v16 = vsel %vm2997_vm0, %v2968_v1, %v8329_v37  ;;  %v2622_v59 = vpop.permute.xlu1 %2621  ;;  %v10594_v37 = vld [vmem:[#allocation55_spill] sm:$0xff]  ;;  %v2686_v44 = vpack.c.b16 %v2685_v62, %v2684_v25 }
 0x2bc   : > { %5776 = vmatmul.msk.bf16.gmra.mxu0 %vm10282_vm13, %v3001_v16  ;;  %v2762_v39 = vsel %vm1439_vm7, %v7802_v51, %v10594_v37  ;;  %v2809_v16 = vsel %vm1505_vm9, %v2765_v22, %v8084_v15  ;;  %v10599_v15 = vld [vmem:[#allocation88_spill] sm:$0xff]  ;;  %v10607_v22 = vld [vmem:[#allocation122_spill] sm:$0xff] }
 0x2bd   : > { %v2807_v41 = vsel %vm1505_vm9, %v2762_v39, %v10596_v12 }
 0x2be   : > { %2750 = vrot.lane.b32.xlu0 %v2616_v36, %s6077_s27  ;;  %v2839_v42 = vsel %vm1571_vm11, %v2807_v41, %v8194_v9  ;;  %v2333_v9 = vrot.slane %v2331_v55, 4  ;;  %v10600_v41 = vld [vmem:[#allocation117_spill] sm:$0xff] }
 0x2bf   : > { %2612 = vrot.lane.b32.xlu2 %v2581_v6, %s6075_s14  ;;  %v2871_v7 = vsel %vm1637_vm14, %v2839_v42, %v8307_v27  ;;  %v8475_v14 = vpop.f32.mrf.mxu1  ;;  %v10601_v42 = vld [vmem:[#allocation37_spill] sm:$0xff] }
 0x2c0   : > { %v8457_v5 = vpop.permute.xlu0 %2598  ;;  %v2904_v51 = vsel %vm2898_vm1, %v2871_v7, %v2622_v59  ;;  %v2335_v34 = vsel %vm6462_vm5, %v2333_v9, %v2334_v56 }
 0x2c1   : > { %2738 = vrot.lane.b32.xlu1 %v10595_v11, %s6077_s27  ;;  %v2937_v3 = vsel %vm2931_vm3, %v2904_v51, %v8362_v49  ;;  %v2696_v8 = vpop.permute.xlu2 %2695  ;;  %v2720_v19 = vunpack.c.l.b16 %v2335_v34 }
 0x2c3   : > { %v2727_v6 = vpop.permute.xlu1 %2726 }
 0x2c6   : > { %2703 = vrot.lane.b32.xlu0 %v10542_v18, %s6078_s28  ;;  %v2332_v18 = vsel %vm6462_vm5, %v5686_v29, %v2331_v55 }
 0x2c7   : > { %2717 = vrot.lane.b32.xlu2 %v2686_v44, %s6078_s28  ;;  %v2719_v49 = vunpack.c.l.b16 %v2332_v18  ;;  %v8498_v23 = vpop.f32.mrf.mxu1 }
 0x2c8   : > { %v2692_v4 = vpop.permute.xlu0 %2691 }
 0x2c9   : > { %v2970_v27 = vsel %vm10281_vm4, %v2937_v3, %v2692_v4  ;;  %2682 = vrot.lane.b32.xlu1 %v5967_v28, %s6079_s15  ;;  %v2721_v59 = vpack.c.b16 %v2720_v19, %v2719_v49  ;;  %v2628_v25 = vpop.permute.xlu2 %2627  ;;  %v10604_v4 = vld [vmem:[#allocation15_spill] sm:$0xff] }
 0x2ca   : > { %v3003_v0 = vsel %vm2997_vm0, %v2970_v27, %v2727_v6  ;;  %v2768_v6 = vsel %vm1439_vm7, %v7838_v24, %v10601_v42  ;;  %v10602_v24 = vld [vmem:[#allocation123_spill] sm:$0xff] }
 0x2cb   : > { %v2659_v47 = vpop.permute.xlu1 %2658  ;;  %v10611_v42 = vld [vmem:[#allocation111_spill] sm:$0xff] }
 0x2cc   : > { %5777 = vmatmul.msk.bf16.gmra.mxu0 %vm10282_vm13, %v3003_v0  ;;  %v10605_v0 = vld [vmem:[#allocation91_spill] sm:$0xff] }
 0x2ce   : > { %2647 = vrot.lane.b32.xlu0 %v2616_v36, %s6076_s26  ;;  %v2841_v36 = vsel %vm1571_vm11, %v2809_v16, %v8180_v33 }
 0x2cf   : > { %2670 = vrot.lane.b32.xlu2 %v10597_v10, %s6079_s15  ;;  %v2873_v32 = vsel %vm1637_vm14, %v2841_v36, %v8216_v20  ;;  %v8517_v33 = vpop.f32.mrf.mxu1 }
 0x2d0   : > { %v2624_v1 = vpop.permute.xlu0 %2623 }
 0x2d1   : > { %2635 = vrot.lane.b32.xlu1 %v10595_v11, %s6076_s26  ;;  %v2906_v58 = vsel %vm2898_vm1, %v2873_v32, %v2624_v1  ;;  %v2733_v12 = vpop.permute.xlu2 %2732  ;;  %v10608_v1 = vld [vmem:[#allocation121_spill] sm:$0xff] }
 0x2d2   : > { %v2939_v62 = vsel %vm2931_vm3, %v2906_v58, %v2659_v47 }
 0x2d3   : > { %v8508_v57 = vpop.permute.xlu1 %2602  ;;  %v2972_v20 = vsel %vm10281_vm4, %v2939_v62, %v8436_v53  ;;  %v2811_v53 = vsel %vm1505_vm9, %v2768_v6, %v8075_v31 }
 0x2d4   : > { %v2843_v55 = vsel %vm1571_vm11, %v2811_v53, %v8115_v17  ;;  %v10603_v17 = vld [vmem:[#allocation85_spill] sm:$0xff]  ;;  %v10612_v53 = vld [vmem:[#allocation7_spill] sm:$0xff] }
 0x2d6   : > { %2752 = vrot.lane.b32.xlu0 %v2721_v59, %s6077_s27 }
 0x2d7   : > { %2637 = vrot.lane.b32.xlu2 %v10599_v15, %s6076_s26  ;;  %v8538_v51 = vpop.f32.mrf.mxu1 }
 0x2d8   : > { %v2729_v37 = vpop.permute.xlu0 %2728 }
 0x2d9   : > { %2740 = vrot.lane.b32.xlu1 %v10599_v15, %s6077_s27  ;;  %v3005_v39 = vsel %vm2997_vm0, %v2972_v20, %v2729_v37 }
 0x2db   : > { %v2661_v11 = vpop.permute.xlu1 %2660 }
 0x2dc   : > { %5778 = vmatmul.msk.bf16.gmra.mxu0 %vm10282_vm13, %v3005_v39 }
 0x2de   : > { %2705 = vrot.lane.b32.xlu0 %v10557_v43, %s6078_s28  ;;  %v2875_v43 = vsel %vm1637_vm14, %v2843_v55, %v8357_v21 }
 0x2df   : > { %2742 = vrot.lane.b32.xlu2 %v10600_v41, %s6077_s27  ;;  %v8551_v3 = vpop.f32.mrf.mxu1 }
 0x2e0   : > { %v2626_v44 = vpop.permute.xlu0 %2625 }
 0x2e1   : > { %2707 = vrot.lane.b32.xlu1 %v10555_v48, %s6078_s28  ;;  %v2908_v28 = vsel %vm2898_vm1, %v2875_v43, %v2626_v44  ;;  %v2712_v48 = vpop.permute.xlu2 %2711 }
 0x2e2   : > { %v2941_v29 = vsel %vm2931_vm3, %v2908_v28, %v2661_v11 }
 0x2e3   : > { %v2607_v7 = vpop.permute.xlu1 %2606  ;;  %v2974_v21 = vsel %vm10281_vm4, %v2941_v29, %v2696_v8 }
 0x2e6   : > { %2672 = vrot.lane.b32.xlu0 %v10602_v24, %s6079_s15 }
 0x2e7   : > { %2709 = vrot.lane.b32.xlu2 %v7591_v38, %s6078_s28  ;;  %v2771_v38 = vsel %vm1439_vm7, %v7835_v13, %v10604_v4  ;;  %v2792_v13 = vsel %vm1439_vm7, %v10602_v24, %v10606_v54 }
 0x2e8   : > { %v2731_v31 = vpop.permute.xlu0 %2730  ;;  %v2813_v47 = vsel %vm1505_vm9, %v2771_v38, %v10605_v0  ;;  %v2827_v16 = vsel %vm1505_vm9, %v2792_v13, %v10608_v1 }
 0x2e9   : > { %2674 = vrot.lane.b32.xlu1 %v10603_v17, %s6079_s15  ;;  %v3007_v9 = vsel %vm2997_vm0, %v2974_v21, %v2731_v31  ;;  %v2845_v8 = vsel %vm1571_vm11, %v2813_v47, %v8210_v2  ;;  %v2665_v34 = vpop.permute.xlu2 %2664  ;;  %v10609_v2 = vld [vmem:[#allocation40_spill] sm:$0xff] }
 0x2ea   : > { %v2877_v18 = vsel %vm1637_vm14, %v2845_v8, %v8339_v46  ;;  %v2859_v36 = vsel %vm1571_vm11, %v2827_v16, %v10609_v2  ;;  %v8575_v46 = vpop.f32.mrf.mxu1  ;;  %v6080_v8 = vmov 0   ;;  %v10617_v2 = vld [vmem:[#allocation82_spill] sm:$0xff] }
 0x2eb   : > { %v2698_v56 = vpop.permute.xlu1 %2697  ;;  %v2910_v19 = vsel %vm2898_vm1, %v2877_v18, %v2628_v25  ;;  %v2891_v58 = vsel %vm1637_vm14, %v2859_v36, %v2607_v7  ;;  %3411 = vst.msk [vmem:[#allocation2 + $0xc] sm:$0xf] %vm3406_vm15, %v6080_v8  ;;  %v10616_v18 = vld [vmem:[#allocation87_spill] sm:$0xff]  ;;  %v10618_v36 = vld [vmem:[#allocation113_spill] sm:$0xff] }
 0x2ec   : > { %5779 = vmatmul.msk.bf16.gmra.mxu0 %vm10282_vm13, %v3007_v9  ;;  %3407 = vst.msk [vmem:[#allocation2] sm:$0xf] %vm3406_vm15, %v6080_v8 }
 0x2ed   : > { %3408 = vst.msk [vmem:[#allocation2 + $0x4] sm:$0xf] %vm3406_vm15, %v6080_v8 }
 0x2ee   : > { %2639 = vrot.lane.b32.xlu0 %v10600_v41, %s6076_s26  ;;  %v10610_v41 = vld [vmem:[#allocation101_spill] sm:$0xff]  ;;  %3412 = vst.msk [vmem:[#allocation2 + $0x10] sm:$0xf] %vm3406_vm15, %v6080_v8 }
 0x2ef   : > { %v2774_v6 = vsel %vm1439_vm7, %v10611_v42, %v10610_v41  ;;  %3414 = vst.msk [vmem:[#allocation2 + $0x18] sm:$0xf] %vm3406_vm15, %v6080_v8 }
 0x2f0   : > { %v2663_v27 = vpop.permute.xlu0 %2662  ;;  %v2815_v55 = vsel %vm1505_vm9, %v2774_v6, %v10612_v53  ;;  %3415 = vst.msk [vmem:[#allocation2 + $0x1c] sm:$0xf] %vm3406_vm15, %v6080_v8 }
 0x2f1   : > { %v2943_v10 = vsel %vm2931_vm3, %v2910_v19, %v2663_v27  ;;  %v2609_v37 = vpop.permute.xlu2 %2608  ;;  %v10614_v27 = vld [vmem:[#allocation68_spill] sm:$0xff]  ;;  %3417 = vst.msk [vmem:[#allocation2 + $0x24] sm:$0xf] %vm3406_vm15, %v6080_v8 }
 0x2f2   : > { %v2976_v32 = vsel %vm10281_vm4, %v2943_v10, %v2698_v56  ;;  %v8590_v43 = vpop.f32.mrf.mxu1  ;;  %v2795_v0 = vsel %vm1439_vm7, %v10603_v17, %v10614_v27  ;;  %3418 = vst.msk [vmem:[#allocation2 + $0x28] sm:$0xf] %vm3406_vm15, %v6080_v8 }
 0x2f3   : > { %v2677_v49 = vpop.permute.xlu1 %2676  ;;  %v3009_v62 = vsel %vm2997_vm0, %v2976_v32, %v2733_v12  ;;  %v10613_v12 = vld [vmem:[#allocation12_spill] sm:$0xff]  ;;  %3420 = vst.msk [vmem:[#allocation2 + $0x30] sm:$0xf] %vm3406_vm15, %v6080_v8 }
 0x2f4   : > { %v2847_v7 = vsel %vm1571_vm11, %v2815_v55, %v10613_v12  ;;  %3421 = vst.msk [vmem:[#allocation2 + $0x34] sm:$0xf] %vm3406_vm15, %v6080_v8  ;;  %v10621_v12 = vld [vmem:[#allocation56_spill] sm:$0xff] }
 0x2f5   : > { %v2879_v24 = vsel %vm1637_vm14, %v2847_v7, %v8411_v40  ;;  %v10615_v40 = vld [vmem:[#allocation92_spill] sm:$0xff]  ;;  %3423 = vst.msk [vmem:[#allocation2 + $0x3c] sm:$0xf] %vm3406_vm15, %v6080_v8 }
 0x2f6   : > { %2744 = vrot.lane.b32.xlu0 %v10607_v22, %s6077_s27  ;;  %v2829_v47 = vsel %vm1505_vm9, %v2795_v0, %v10615_v40  ;;  %3424 = vst.msk [vmem:[#allocation2 + $0x40] sm:$0xf] %vm3406_vm15, %v6080_v8  ;;  %v10622_v7 = vld [vmem:[#allocation52_spill] sm:$0xff]  ;;  %s5931_s27 = sshll.u32 %s10790_s25, 8 }
 0x2f7   : > { %3426 = vst.msk [vmem:[#allocation2 + $0x48] sm:$0xf] %vm3406_vm15, %v6080_v8  ;;  %v10625_v40 = vld [vmem:[#allocation96_spill] sm:$0xff]  ;;  %s9901_s28 = scalar_lea.vmem %s10200_s7, %s5931_s27 }
 0x2f8   : > { %v2642_v59 = vpop.permute.xlu0 %2641  ;;  %3427 = vst.msk [vmem:[#allocation2 + $0x4c] sm:$0xf] %vm3406_vm15, %v6080_v8 }
 0x2f9   : > { %v2924_v25 = vsel %vm2898_vm1, %v2891_v58, %v2642_v59  ;;  %v2714_v31 = vpop.permute.xlu2 %2713  ;;  %v2777_v59 = vsel %vm1439_vm7, %v10618_v36, %v10617_v2  ;;  %v10619_v58 = vld [vmem:[#allocation9_spill] sm:$0xff]  ;;  %3429 = vst.msk [vmem:[#allocation2 + $0x54] sm:$0xf] %vm3406_vm15, %v6080_v8 }
 0x2fa   : > { %v2957_v20 = vsel %vm2931_vm3, %v2924_v25, %v2677_v49  ;;  %v8601_v38 = vpop.f32.mrf.mxu1  ;;  %v2817_v25 = vsel %vm1505_vm9, %v2777_v59, %v10619_v58  ;;  %3430 = vst.msk [vmem:[#allocation2 + $0x58] sm:$0xf] %vm3406_vm15, %v6080_v8 }
 0x2fb   : > { %v2630_v15 = vpop.permute.xlu1 %2629  ;;  %v2990_v11 = vsel %vm10281_vm4, %v2957_v20, %v2712_v48  ;;  %3432 = vst.msk [vmem:[#allocation2 + $0x60] sm:$0xf] %vm3406_vm15, %v6080_v8 }
 0x2fc   : > { %5780 = vmatmul.msk.bf16.gmra.mxu0 %vm10282_vm13, %v3009_v62  ;;  %v2912_v29 = vsel %vm2898_vm1, %v2879_v24, %v2630_v15  ;;  %v10620_v62 = vld [vmem:[#allocation58_spill] sm:$0xff]  ;;  %3433 = vst.msk [vmem:[#allocation2 + $0x64] sm:$0xf] %vm3406_vm15, %v6080_v8 }
 0x2fd   : > { %v2945_v48 = vsel %vm2931_vm3, %v2912_v29, %v2665_v34  ;;  %v2861_v34 = vsel %vm1571_vm11, %v2829_v47, %v10616_v18  ;;  %v2849_v15 = vsel %vm1571_vm11, %v2817_v25, %v10620_v62  ;;  %3435 = vst.msk [vmem:[#allocation2 + $0x6c] sm:$0xf] %vm3406_vm15, %v6080_v8  ;;  %v10623_v24 = vld [vmem:[#allocation90_spill] sm:$0xff]  ;;  %v8708_v18 = vld [vmem:[#allocation2] sm:$0xf] }
 0x2fe   : > { %v2893_v19 = vsel %vm1637_vm14, %v2861_v34, %v2609_v37  ;;  %3436 = vst.msk [vmem:[#allocation2 + $0x70] sm:$0xf] %vm3406_vm15, %v6080_v8  ;;  %v6041_v62 = vld [vmem:[%s7065_s17 + $0x60] sm:$0xff] }
 0x2ff   : > { %3438 = vst.msk [vmem:[#allocation2 + $0x78] sm:$0xf] %vm3406_vm15, %v6080_v8 }
 0x300   : > { %v2747_v39 = vpop.permute.xlu0 %2746  ;;  %3439 = vst.msk [vmem:[#allocation2 + $0x7c] sm:$0xf] %vm3406_vm15, %v6080_v8 }
 0x301   : > { %v3023_v44 = vsel %vm2997_vm0, %v2990_v11, %v2747_v39  ;;  %v2667_v10 = vpop.permute.xlu2 %2666  ;;  %v2881_v39 = vsel %vm1637_vm14, %v2849_v15, %v8390_v35  ;;  %3441 = vst.msk [vmem:[#allocation2 + $0x84] sm:$0xf] %vm3406_vm15, %v6080_v8  ;;  %v10626_v15 = vld [vmem:[#allocation41_spill] sm:$0xff] }
 0x302   : > { %5787 = vmatmul.msk.bf16.vlgmr.msra.gmra.mxu3 %vm10282_vm13, %v3023_v44  ;;  %v8628_v22 = vpop.f32.mrf.mxu1  ;;  %3442 = vst.msk [vmem:[#allocation2 + $0x88] sm:$0xf] %vm3406_vm15, %v6080_v8 }
 0x303   : > { %v2735_v28 = vpop.permute.xlu1 %2734  ;;  %3444 = vst.msk [vmem:[#allocation2 + $0x90] sm:$0xf] %vm3406_vm15, %v6080_v8 }
 0x304   : > { %3445 = vst.msk [vmem:[#allocation2 + $0x94] sm:$0xf] %vm3406_vm15, %v6080_v8 }
 0x305   : > { %3447 = vst.msk [vmem:[#allocation2 + $0x9c] sm:$0xf] %vm3406_vm15, %v6080_v8 }
 0x306   : > { %3448 = vst.msk [vmem:[#allocation2 + $0xa0] sm:$0xf] %vm3406_vm15, %v6080_v8 }
 0x307   : > { %3450 = vst.msk [vmem:[#allocation2 + $0xa8] sm:$0xf] %vm3406_vm15, %v6080_v8 }
 0x308   : > { %v2700_v21 = vpop.permute.xlu0 %2699  ;;  %3451 = vst.msk [vmem:[#allocation2 + $0xac] sm:$0xf] %vm3406_vm15, %v6080_v8 }
 0x309   : > { %v2978_v9 = vsel %vm10281_vm4, %v2945_v48, %v2700_v21  ;;  %v2611_v37 = vpop.permute.xlu2 %2610  ;;  %3453 = vst.msk [vmem:[#allocation2 + $0xb4] sm:$0xf] %vm3406_vm15, %v6080_v8 }
 0x30a   : > { %v3011_v56 = vsel %vm2997_vm0, %v2978_v9, %v2735_v28  ;;  %v8663_v41 = vpop.f32.mrf.mxu1  ;;  %v2798_v28 = vsel %vm1439_vm7, %v10622_v7, %v10621_v12  ;;  %v8695_v9 = vld [vmem:[%s10197_s4] ss:$0 sm:$0xff]  ;;  %3454 = vst.msk [vmem:[#allocation2 + $0xb8] sm:$0xf] %vm3406_vm15, %v6080_v8 }
 0x30b   : > { %v2679_v4 = vpop.permute.xlu1 %2678  ;;  %v2831_v29 = vsel %vm1505_vm9, %v2798_v28, %v10623_v24  ;;  %3456 = vst.msk [vmem:[#allocation2 + $0xc0] sm:$0xf] %vm3406_vm15, %v6080_v8 }
 0x30c   : > { %5781 = vmatmul.msk.bf16.gmra.mxu0 %vm10282_vm13, %v3011_v56  ;;  %3457 = vst.msk [vmem:[#allocation2 + $0xc4] sm:$0xf] %vm3406_vm15, %v6080_v8 }
 0x30d   : > { %3459 = vst.msk [vmem:[#allocation2 + $0xcc] sm:$0xf] %vm3406_vm15, %v6080_v8 }
 0x30e   : > { %3460 = vst.msk [vmem:[#allocation2 + $0xd0] sm:$0xf] %vm3406_vm15, %v6080_v8 }
 0x30f   : > { %3413 = vst.msk [vmem:[#allocation2 + $0x14] sm:$0x1] %vm3409_vm12, %v6080_v8 }
 0x310   : > { %v2644_v49 = vpop.permute.xlu0 %2643  ;;  %3410 = vst.msk [vmem:[#allocation2 + $0x8] sm:$0x1] %vm3409_vm12, %v6080_v8 }
 0x311   : > { %v2926_v17 = vsel %vm2898_vm1, %v2893_v19, %v2644_v49  ;;  %v2716_v55 = vpop.permute.xlu2 %2715  ;;  %v3990_v49 = vshrl.u32 %v8708_v18, 16  ;;  %v3993_v19 = vshll.u32 %v8708_v18, 16  ;;  %3416 = vst.msk [vmem:[#allocation2 + $0x20] sm:$0x1] %vm3409_vm12, %v6080_v8 }
 0x312   : > { %v2959_v13 = vsel %vm2931_vm3, %v2926_v17, %v2679_v4  ;;  %v8702_v27 = vpop.f32.mrf.mxu1  ;;  %v8717_v17 = vld [vmem:[#allocation2 + $0x4] sm:$0xf]  ;;  %3419 = vst.msk [vmem:[#allocation2 + $0x2c] sm:$0x1] %vm3409_vm12, %v6080_v8 }
 0x313   : > { %v2632_v54 = vpop.permute.xlu1 %2631  ;;  %v2992_v16 = vsel %vm10281_vm4, %v2959_v13, %v2714_v31  ;;  %v10624_v31 = vld [vmem:[#allocation89_spill] sm:$0xff]  ;;  %v3995_v2 = vrot.slane %v3993_v19, 5  ;;  %v3999_v36 = vshll.u32 %v8717_v17, 16  ;;  %v4003_v59 = vshrl.u32 %v8717_v17, 16  ;;  %3422 = vst.msk [vmem:[#allocation2 + $0x38] sm:$0x1] %vm3409_vm12, %v6080_v8 }
 0x314   : > { %v2914_v11 = vsel %vm2898_vm1, %v2881_v39, %v2632_v54  ;;  %v2863_v48 = vsel %vm1571_vm11, %v2831_v29, %v10624_v31  ;;  %v4423_v19 = vrot.slane %v8717_v17, 5  ;;  %3425 = vst.msk [vmem:[#allocation2 + $0x44] sm:$0x1] %vm3409_vm12, %v6080_v8 }
 0x315   : > { %v2947_v42 = vsel %vm2931_vm3, %v2914_v11, %v2667_v10  ;;  %v2895_v56 = vsel %vm1637_vm14, %v2863_v48, %v2611_v37  ;;  %v2780_v37 = vsel %vm1439_vm7, %v6041_v62, %v10626_v15  ;;  %v10627_v11 = vld [vmem:[#allocation26_spill] sm:$0xff]  ;;  %v8747_v7 = vrot.slane %v3999_v36, 5  ;;  %3428 = vst.msk [vmem:[#allocation2 + $0x50] sm:$0x1] %vm3409_vm12, %v6080_v8 }
 0x316   : > { %v4005_v28 = vrot.slane %v4003_v59, 4  ;;  %3431 = vst.msk [vmem:[#allocation2 + $0x5c] sm:$0x1] %vm3409_vm12, %v6080_v8 }
 0x317   : > { %3434 = vst.msk [vmem:[#allocation2 + $0x68] sm:$0x1] %vm3409_vm12, %v6080_v8 }
 0x318   : > { %v2749_v1 = vpop.permute.xlu0 %2748  ;;  %3437 = vst.msk [vmem:[#allocation2 + $0x74] sm:$0x1] %vm3409_vm12, %v6080_v8 }
 0x319   : > { %v3025_v32 = vsel %vm2997_vm0, %v2992_v16, %v2749_v1  ;;  %v2669_v1 = vpop.permute.xlu2 %2668  ;;  %v3992_v16 = vrot.slane %v3990_v49, 4  ;;  %v5815_v49 = vrot.slane %v8708_v18, 9  ;;  %3440 = vst.msk [vmem:[#allocation2 + $0x80] sm:$0x1] %vm3409_vm12, %v6080_v8 }
 0x31a   : > { %5788 = vmatmul.msk.bf16.gmra.mxu3 %vm10282_vm13, %v3025_v32  ;;  %v8751_v29 = vpop.f32.mrf.mxu1  ;;  %3443 = vst.msk [vmem:[#allocation2 + $0x8c] sm:$0x1] %vm3409_vm12, %v6080_v8 }
 0x31b   : > { %v2737_v20 = vpop.permute.xlu1 %2736  ;;  %v3996_v12 = vor.u32 %v3995_v2, %v3992_v16  ;;  %v6042_v16 = vld [vmem:[%s7065_s17 + $0xb4] sm:$0xff]  ;;  %v10631_v2 = vld [vmem:[#allocation24_spill] sm:$0xff]  ;;  %3446 = vst.msk [vmem:[#allocation2 + $0x98] sm:$0x1] %vm3409_vm12, %v6080_v8 }
 0x31c   : > { %v2801_v36 = vsel %vm1439_vm7, %v6042_v16, %v10631_v2  ;;  %3449 = vst.msk [vmem:[#allocation2 + $0xa4] sm:$0x1] %vm3409_vm12, %v6080_v8 }
 0x31d   : > { %3452 = vst.msk [vmem:[#allocation2 + $0xb0] sm:$0x1] %vm3409_vm12, %v6080_v8 }
 0x31e   : > { %3455 = vst.msk [vmem:[#allocation2 + $0xbc] sm:$0x1] %vm3409_vm12, %v6080_v8 }
 0x31f   : > { %3458 = vst.msk [vmem:[#allocation2 + $0xc8] sm:$0x1] %vm3409_vm12, %v6080_v8 }
 0x320   : > { %v2702_v6 = vpop.permute.xlu0 %2701  ;;  %3461 = vst.msk [vmem:[#allocation2 + $0xd4] sm:$0x1] %vm3409_vm12, %v6080_v8 }
 0x321   : > { %v2980_v35 = vsel %vm10281_vm4, %v2947_v42, %v2702_v6  ;;  %v2819_v42 = vsel %vm1505_vm9, %v2780_v37, %v10627_v11  ;;  %v2613_v59 = vpop.permute.xlu2 %2612  ;;  %v3937_v37 = vld [vmem:[#allocation2 + $0x8] sm:$0x1]  ;;  %v4424_v11 = vsel %vm6462_vm5, %v5815_v49, %v4423_v19 }
 0x322   : > { %v3013_v44 = vsel %vm2997_vm0, %v2980_v35, %v2737_v20  ;;  %v4729_v49 = vunpack.c.l.b16 %v4424_v11 }
 0x323   : > { %5782 = vmatmul.msk.bf16.gmra.mxu0 %vm10282_vm13, %v3013_v44  ;;  %v2681_v53 = vpop.permute.xlu1 %2680  ;;  %v10628_v44 = vld [vmem:[#allocation94_spill] sm:$0xff] }
 0x328   : > { %v2646_v21 = vpop.permute.xlu0 %2645 }
 0x329   : > { %v3117_v4 = vpop.f32.mrf.mxu0  ;;  %v2928_v0 = vsel %vm2898_vm1, %v2895_v56, %v2646_v21  ;;  %v3821_v56 = vld [vmem:[#allocation2 + $0xc] sm:$0xf] }
 0x32a   : > { %v3259_v47 = vadd.f32 %v10625_v40, %v3117_v4  ;;  %v2961_v54 = vsel %vm2931_vm3, %v2928_v0, %v2681_v53  ;;  %v2851_v53 = vsel %vm1571_vm11, %v2819_v42, %v10628_v44  ;;  %v3997_v40 = vrot.slane %v3996_v12, 4 }
 0x32b   : > { %v2634_v34 = vpop.permute.xlu1 %2633  ;;  %v2994_v25 = vsel %vm10281_vm4, %v2961_v54, %v2716_v55  ;;  %v2883_v24 = vsel %vm1637_vm14, %v2851_v53, %v8457_v5  ;;  %v4425_v42 = vrot.slane %v4423_v19, 4  ;;  %v4009_v53 = vshll.u32 %v3937_v37, 16 }
 0x32c   : > { %v3342_v10 = vadd.f32 %v8695_v9, %v3259_v47  ;;  %v2916_v5 = vsel %vm2898_vm1, %v2883_v24, %v2634_v34  ;;  %v4006_v47 = vor.u32 %v4005_v28, %v8747_v7  ;;  %v3827_v24 = vld [vmem:[#allocation2 + $0x14] sm:$0x1] }
 0x32d   : > { %v2949_v54 = vsel %vm2931_vm3, %v2916_v5, %v2669_v1 }
 0x32e   : > { %v3374_v13 = vmax.f32 %v3342_v10, 0.0 }
 0x330   : > { %v3462_v32 = vpack.c.bf16 %v3374_v13, %v3374_v13  ;;  %v2751_v58 = vpop.permute.xlu0 %2750 }
 0x331   : > { %v3119_v20 = vpop.f32.mrf.mxu0  ;;  %v3027_v39 = vsel %vm2997_vm0, %v2994_v25, %v2751_v58 }
 0x332   : > { %v3498_v6 = vshrl.u32 %v3462_v32, 16  ;;  %v3261_v35 = vadd.f32 %v8348_v63, %v3119_v20  ;;  %5789 = vmatmul.msk.bf16.gmra.mxu3 %vm10282_vm13, %v3027_v39  ;;  %v3501_v63 = vshll.u32 %v3462_v32, 16  ;;  %v10632_v32 = vld [vmem:[#allocation86_spill] sm:$0xff]  ;;  %v4002_v20 = vsel %vm6175_vm2, %v3997_v40, %v8747_v7 }
 0x333   : > { %v2739_v55 = vpop.permute.xlu1 %2738  ;;  %v2833_v58 = vsel %vm1505_vm9, %v2801_v36, %v10632_v32  ;;  %v4007_v39 = vrot.slane %v4006_v47, 4  ;;  %v4649_v40 = vunpack.c.l.b16 %v4002_v20 }
 0x334   : > { %v8753_v31 = vrot.slane %v3498_v6, 7  ;;  %v3343_v48 = vadd.f32 %v8695_v9, %v3261_v35 }
 0x336   : > { %v3503_v4 = vor.u32 %v3501_v63, %v8753_v31  ;;  %v3375_v0 = vmax.f32 %v3343_v48, 0.0  ;;  %v3504_v7 = vrot.slane %v8753_v31, 4  ;;  %v4426_v63 = vrot.slane %v3937_v37, 5  ;;  %v8818_v48 = vpop.f32.mrf.mxu1 }
 0x337   : > { %v4011_v31 = vrot.slane %v4009_v53, 5  ;;  %v6044_v53 = vld [vmem:[%s6137_s29 + $0xa8] sm:$0xff] }
 0x338   : > { %v3822_v34 = vsel %vm8760_vm8, %v3503_v4, %v3821_v56  ;;  %v3463_v10 = vpack.c.bf16 %v3375_v0, %v3375_v0  ;;  %v2704_v13 = vpop.permute.xlu0 %2703  ;;  %v4427_v47 = vsel %vm6462_vm5, %v4425_v42, %v4426_v63  ;;  %v6043_v42 = vld [vmem:[%s7065_s17 + $0x6c] sm:$0xff] }
 0x339   : > { %3823 = vst [vmem:[#allocation2 + $0xc] sm:$0xf] %v3822_v34  ;;  %v2982_v18 = vsel %vm10281_vm4, %v2949_v54, %v2704_v13  ;;  %v3122_v17 = vpop.f32.mrf.mxu0  ;;  %vm8800_vm4 = vmor %vm3494_vm10, %vm3495_vm6  ;;  %v4012_v13 = vsel %vm6175_vm2, %v4007_v39, %v4011_v31  ;;  %vm10640_vm6 = vcmask 31744  }
 0x33a   : > { %v3506_v25 = vshrl.u32 %v3463_v10, 16  ;;  %v3264_v1 = vadd.f32 %v8380_v45, %v3122_v17  ;;  %v3015_v62 = vsel %vm2997_vm0, %v2982_v18, %v2739_v55  ;;  %v3509_v35 = vshll.u32 %v3463_v10, 16  ;;  %v10635_v55 = vld [vmem:[#allocation72_spill] sm:$0xff] }
 0x33b   : > { %5783 = vmatmul.msk.bf16.gmra.mxu0 %vm10282_vm13, %v3015_v62  ;;  %v2683_v15 = vpop.permute.xlu1 %2682  ;;  %v2865_v12 = vsel %vm1571_vm11, %v2833_v58, %v10635_v55  ;;  %vm8812_vm13 = vmand %vm3409_vm12, %vm3494_vm10  ;;  %v4650_v36 = vunpack.c.l.b16 %v4012_v13  ;;  %v2718_v58 = vpop.permute.xlu2 %2717  ;;  %v10639_v55 = vld [vmem:[#allocation20_spill] sm:$0xff]  ;;  %vm10647_vm12 = vcmask 588800  }
 0x33c   : > { %v3508_v6 = vrot.slane %v3506_v25, 7  ;;  %v3344_v44 = vadd.f32 %v8695_v9, %v3264_v1  ;;  %v2897_v0 = vsel %vm1637_vm14, %v2865_v12, %v2613_v59  ;;  %v4730_v59 = vunpack.c.l.b16 %v4427_v47  ;;  %vm10643_vm10 = vmmov %vm10640_vm6 }
 0x33d   : > { %v4681_v62 = vpack.c.b16 %v4650_v36, %v4649_v40  ;;  %v8856_v12 = vsel %vm10640_vm6, %v6044_v53, %v10639_v55  ;;  %vm10645_vm6 = vcmask 457728  }
 0x33e   : > { %v3511_v56 = vor.u32 %v3509_v35, %v3508_v6  ;;  %v3513_v5 = vrot.slane %v3508_v6, 4  ;;  %v3376_v4 = vmax.f32 %v3344_v44, 0.0  ;;  %v4761_v37 = vpack.c.b16 %v4730_v59, %v4729_v49  ;;  %v10638_v6 = vld [vmem:[#allocation22_spill] sm:$0xff] }
 0x33f   : > { %v2783_v35 = vsel %vm1439_vm7, %v6043_v42, %v10638_v6  ;;  %4697 = vrot.lane.b32.xlu1 %v4681_v62, %s6068_s30 }
 0x340   : > { %v3512_v19 = vsel %vm8800_vm4, %v3504_v7, %v3511_v56  ;;  %v3828_v34 = vsel %vm8812_vm13, %v3513_v5, %v3827_v24  ;;  %v3464_v10 = vpack.c.bf16 %v3376_v4, %v3376_v4  ;;  %v2648_v54 = vpop.permute.xlu0 %2647  ;;  %v3938_v18 = vld [vmem:[#allocation2 + $0xc] sm:$0xf]  ;;  %4777 = vrot.lane.b32.xlu2 %v4761_v37, %s6069_s8  ;;  %v10641_v7 = vld [vmem:[#allocation54_spill] sm:$0xff]  ;;  %v6045_v5 = vld [vmem:[%s6137_s29 + $0x9c] sm:$0xff] }
 0x341   : > { %3824 = vst.msk [vmem:[#allocation2 + $0x10] sm:$0xf] %vm3406_vm15, %v3512_v19  ;;  %v2930_v16 = vsel %vm2898_vm1, %v2897_v0, %v2648_v54  ;;  %v3124_v2 = vpop.f32.mrf.mxu0  ;;  %v4014_v11 = vshrl.u32 %v3938_v18, 16  ;;  %v2821_v24 = vsel %vm1505_vm9, %v2783_v35, %v10641_v7  ;;  %v10642_v4 = vld [vmem:[#allocation3_spill] sm:$0xff]  ;;  %v5816_v49 = vrot.slane %v3938_v18, 9  ;;  %v8871_v19 = vpop.f32.mrf.mxu1 }
 0x342   : > { %3829 = vst [vmem:[#allocation2 + $0x14] sm:$0x1] %v3828_v34  ;;  %v3515_v17 = vshrl.u32 %v3464_v10, 16  ;;  %v3266_v32 = vadd.f32 %v8421_v30, %v3124_v2  ;;  %v3518_v25 = vshll.u32 %v3464_v10, 16  ;;  %v2963_v1 = vsel %vm2931_vm3, %v2930_v16, %v2683_v15  ;;  %v3830_v15 = vld [vmem:[#allocation2 + $0x18] sm:$0xf] }
 0x343   : > { %v4017_v30 = vshll.u32 %v3938_v18, 16  ;;  %v2636_v44 = vpop.permute.xlu1 %2635  ;;  %v1432_v31 = vsel %vm10643_vm10, %v6045_v5, %v10642_v4  ;;  %v10644_v0 = vld [vmem:[#allocation27_spill] sm:$0xff]  ;;  %v2996_v47 = vsel %vm10645_vm6, %v2963_v1, %v2718_v58  ;;  %v4016_v2 = vrot.slane %v4014_v11, 4  ;;  %v2671_v55 = vpop.permute.xlu2 %2670 }
 0x344   : > { %v8843_v20 = vrot.slane %v3515_v17, 7  ;;  %v3345_v39 = vadd.f32 %v8695_v9, %v3266_v32  ;;  %v2853_v40 = vsel %vm1571_vm11, %v2821_v24, %v10644_v0  ;;  %vm10649_vm10 = vcmask 97280  }
 0x345   : > { %v4019_v36 = vrot.slane %v4017_v30, 5  ;;  %v2885_v59 = vsel %vm1637_vm14, %v2853_v40, %v8400_v52 }
 0x346   : > { %v3520_v63 = vor.u32 %v3518_v25, %v8843_v20  ;;  %v3377_v56 = vmax.f32 %v3345_v39, 0.0  ;;  %v10646_v25 = vld [vmem:[#allocation13_spill] sm:$0xff]  ;;  %v2918_v37 = vsel %vm2898_vm1, %v2885_v59, %v2636_v44  ;;  %v3521_v52 = vrot.slane %v8843_v20, 4  ;;  %v3834_v44 = vld [vmem:[#allocation2 + $0x20] sm:$0x1] }
 0x347   : > { %v1467_v1 = vsel %vm1439_vm7, %v1432_v31, %v10646_v25  ;;  %v4020_v24 = vor.u32 %v4019_v36, %v4016_v2  ;;  %v10648_v31 = vld [vmem:[#allocation51_spill] sm:$0xff]  ;;  %v2951_v40 = vsel %vm2931_vm3, %v2918_v37, %v2671_v55  ;;  %v10651_v25 = vld [vmem:[#allocation66_spill] sm:$0xff] }
 0x348   : > { %v3831_v34 = vsel %vm8760_vm8, %v3520_v63, %v3830_v15  ;;  %v3465_v10 = vpack.c.bf16 %v3377_v56, %v3377_v56  ;;  %v2753_v54 = vpop.permute.xlu0 %2752  ;;  %v5975_v13 = vld [vmem:[#allocation2 + $0xc] sm:$0xff]  ;;  %v1500_v0 = vsel %vm10649_vm10, %v1467_v1, %v10648_v31  ;;  %v10650_v36 = vld [vmem:[#allocation63_spill] sm:$0xff]  ;;  %vm10654_vm10 = vcmask 588800  }
 0x349   : > { %v3939_v16 = vld [vmem:[#allocation2 + $0x10] sm:$0xf]  ;;  %3832 = vst [vmem:[#allocation2 + $0x18] sm:$0xf] %v3831_v34  ;;  %v3127_v17 = vpop.f32.mrf.mxu0  ;;  %v3029_v8 = vsel %vm2997_vm0, %v2996_v47, %v2753_v54  ;;  %v3940_v32 = vld [vmem:[#allocation2 + $0x14] sm:$0x1]  ;;  %4812 = vrot.lane.b32.xlu0 %v5975_v13, %s6070_s9  ;;  %v1533_v59 = vsel %vm1505_vm9, %v1500_v0, %v10650_v36 }
 0x34a   : > { %v4430_v18 = vrot.slane %v3939_v16, 5  ;;  %v4023_v58 = vshll.u32 %v3939_v16, 16  ;;  %v3523_v62 = vshrl.u32 %v3465_v10, 16  ;;  %v3269_v39 = vadd.f32 %v8448_v60, %v3127_v17  ;;  %5790 = vmatmul.msk.bf16.gmra.mxu3 %vm10647_vm12, %v3029_v8 }
 0x34b   : > { %v4433_v42 = vrot.slane %v3940_v32, 5  ;;  %v3526_v35 = vshll.u32 %v3465_v10, 16  ;;  %v4027_v53 = vshrl.u32 %v3939_v16, 16  ;;  %v2741_v47 = vpop.permute.xlu1 %2740  ;;  %v4033_v34 = vshll.u32 %v3940_v32, 16 }
 0x34c   : > { %v4431_v11 = vsel %vm6462_vm5, %v5816_v49, %v4430_v18  ;;  %v4432_v30 = vrot.slane %v4430_v18, 4  ;;  %v3525_v6 = vrot.slane %v3523_v62, 7  ;;  %v3346_v15 = vadd.f32 %v8695_v9, %v3269_v39  ;;  %v8905_v62 = vpop.f32.mrf.mxu1 }
 0x34d   : > { %v4731_v7 = vunpack.c.l.b16 %v4431_v11  ;;  %v4025_v63 = vrot.slane %v4023_v58, 5  ;;  %v4029_v49 = vrot.slane %v4027_v53, 4  ;;  %v4021_v32 = vrot.slane %v4020_v24, 4  ;;  %v6046_v11 = vld [vmem:[%s7065_s17 + $0x78] sm:$0xff]  ;;  %v10656_v24 = vld [vmem:[#allocation42_spill] sm:$0xff] }
 0x34e   : > { %v4434_v60 = vsel %vm6462_vm5, %v4432_v30, %v4433_v42  ;;  %v3528_v56 = vor.u32 %v3526_v35, %v3525_v6  ;;  %v3530_v20 = vrot.slane %v3525_v6, 4  ;;  %v3378_v5 = vmax.f32 %v3346_v15, 0.0  ;;  %v10653_v30 = vld [vmem:[#allocation23_spill] sm:$0xff] }
 0x34f   : > { %v4732_v4 = vunpack.c.l.b16 %v4434_v60  ;;  %v4030_v18 = vor.u32 %v4029_v49, %v4025_v63  ;;  %vm10652_vm12 = vcmask 162816   ;;  %v2786_v42 = vsel %vm1439_vm7, %v6046_v11, %v10653_v30  ;;  %v10655_v60 = vld [vmem:[#allocation110_spill] sm:$0xff] }
 0x350   : > { %v3529_v10 = vsel %vm8800_vm4, %v3521_v52, %v3528_v56  ;;  %v3835_v54 = vsel %vm8812_vm13, %v3530_v20, %v3834_v44  ;;  %v3466_v13 = vpack.c.bf16 %v3378_v5, %v3378_v5  ;;  %v2706_v16 = vpop.permute.xlu0 %2705  ;;  %v3941_v58 = vld [vmem:[#allocation2 + $0x18] sm:$0xf]  ;;  %v1566_v1 = vsel %vm10652_vm12, %v1533_v59, %v10651_v25  ;;  %v3837_v20 = vld [vmem:[#allocation2 + $0x24] sm:$0xf] }
 0x351   : > { %v8897_v2 = vpack.c.b16 %v4732_v4, %v4731_v7  ;;  %3833 = vst.msk [vmem:[#allocation2 + $0x1c] sm:$0xf] %vm3406_vm15, %v3529_v10  ;;  %v2984_v17 = vsel %vm10645_vm6, %v2951_v40, %v2706_v16  ;;  %v3129_v8 = vpop.f32.mrf.mxu0  ;;  %v4026_v6 = vsel %vm6175_vm2, %v4021_v32, %v4025_v63  ;;  %v4031_v35 = vrot.slane %v4030_v18, 4  ;;  %v2638_v16 = vpop.permute.xlu2 %2637 }
 0x352   : > { %3836 = vst [vmem:[#allocation2 + $0x20] sm:$0x1] %v3835_v54  ;;  %v3532_v37 = vshrl.u32 %v3466_v13, 16  ;;  %v3271_v39 = vadd.f32 %v8475_v14, %v3129_v8  ;;  %v3017_v52 = vsel %vm2997_vm0, %v2984_v17, %v2741_v47  ;;  %v4035_v15 = vrot.slane %v4033_v34, 5  ;;  %v10657_v47 = vld [vmem:[#allocation36_spill] sm:$0xff]  ;;  %v10660_v54 = vld [vmem:[#allocation102_spill] sm:$0xff] }
 0x353   : > { %4882 = vrot.lane.b32.xlu2 %v8897_v2, %s6072_s11  ;;  %5784 = vmatmul.msk.bf16.gmra.mxu0 %vm10654_vm10, %v3017_v52  ;;  %v3535_v55 = vshll.u32 %v3466_v13, 16  ;;  %v4038_v44 = vshrl.u32 %v3941_v58, 16  ;;  %v1599_v7 = vsel %vm1571_vm11, %v1566_v1, %v10655_v60  ;;  %v2823_v56 = vsel %vm1505_vm9, %v2786_v42, %v10656_v24  ;;  %v10658_v34 = vld [vmem:[#allocation124_spill] sm:$0xff]  ;;  %v2708_v24 = vpop.permute.xlu1 %2707 }
 0x354   : > { %v8917_v53 = vrot.slane %v3532_v37, 7  ;;  %v3347_v14 = vadd.f32 %v8695_v9, %v3271_v39  ;;  %v4036_v5 = vsel %vm6175_vm2, %v4031_v35, %v4035_v15  ;;  %v4041_v4 = vshll.u32 %v3941_v58, 16  ;;  %v10661_v37 = vld [vmem:[#allocation119_spill] sm:$0xff]  ;;  %v8952_v60 = vpop.f32.mrf.mxu1 }
 0x355   : > { %v4651_v0 = vunpack.c.l.b16 %v4026_v6  ;;  %v4652_v40 = vunpack.c.l.b16 %v4036_v5  ;;  %v1469_v49 = vsel %vm1439_vm7, %v8856_v12, %v10657_v47  ;;  %vm10659_vm6 = vcmask 228352  }
 0x356   : > { %v3537_v63 = vor.u32 %v3535_v55, %v8917_v53  ;;  %v3379_v31 = vmax.f32 %v3347_v14, 0.0  ;;  %v1632_v10 = vsel %vm10659_vm6, %v1599_v7, %v10658_v34  ;;  %v2855_v13 = vsel %vm1571_vm11, %v2823_v56, %v10660_v54 }
 0x357   : > { %v5817_v36 = vrot.slane %v3941_v58, 9  ;;  %v4682_v8 = vpack.c.b16 %v4652_v40, %v4651_v0  ;;  %v4040_v1 = vrot.slane %v4038_v44, 4  ;;  %v1665_v12 = vsel %vm1637_vm14, %v1632_v10, %v10661_v37 }
 0x358   : > { %v3838_v59 = vsel %vm8760_vm8, %v3537_v63, %v3837_v20  ;;  %v3467_v17 = vpack.c.bf16 %v3379_v31, %v3379_v31  ;;  %v2673_v32 = vpop.permute.xlu0 %2672  ;;  %v8936_v18 = vld [vmem:[#allocation2 + $0x18] sm:$0xff]  ;;  %v2887_v39 = vsel %vm1637_vm14, %v2855_v13, %v8508_v57  ;;  %v4043_v30 = vrot.slane %v4041_v4, 5  ;;  %v3841_v20 = vld [vmem:[#allocation2 + $0x2c] sm:$0x1] }
 0x359   : > { %v3942_v25 = vld [vmem:[#allocation2 + $0x1c] sm:$0xf]  ;;  %3839 = vst [vmem:[#allocation2 + $0x24] sm:$0xf] %v3838_v59  ;;  %v3132_v52 = vpop.f32.mrf.mxu0  ;;  %v3943_v11 = vld [vmem:[#allocation2 + $0x20] sm:$0x1]  ;;  %v2920_v42 = vsel %vm2898_vm1, %v2887_v39, %v2638_v16  ;;  %4847 = vrot.lane.b32.xlu1 %v4682_v8, %s6071_s10  ;;  %4917 = vrot.lane.b32.xlu0 %v8936_v18, %s6073_s12  ;;  %v2743_v54 = vpop.permute.xlu2 %2742 }
 0x35a   : > { %v4437_v58 = vrot.slane %v3942_v25, 5  ;;  %v3538_v6 = vrot.slane %v8917_v53, 4  ;;  %v3540_v35 = vshrl.u32 %v3467_v17, 16  ;;  %v3274_v15 = vadd.f32 %v8498_v23, %v3132_v52 }
 0x35b   : > { %vm10662_vm12 = vcmask 293888   ;;  %v2953_v55 = vsel %vm2931_vm3, %v2920_v42, %v2673_v32  ;;  %v4440_v44 = vrot.slane %v3943_v11, 5  ;;  %v3543_v7 = vshll.u32 %v3467_v17, 16 }
 0x35c   : > { %5812 = vmatmul.msk.bf16.vlgmr.msrb.gmra.mxu3 %vm10662_vm12, %v1665_v12  ;;  %v4438_v57 = vsel %vm6462_vm5, %v5817_v36, %v4437_v58  ;;  %v4439_v14 = vrot.slane %v4437_v58, 4  ;;  %v3542_v53 = vrot.slane %v3540_v35, 7  ;;  %v3348_v56 = vadd.f32 %v8695_v9, %v3274_v15  ;;  %v10667_v15 = vld [vmem:[#allocation81_spill] sm:$0xff] }
 0x35d   : > { %v4047_v23 = vshll.u32 %v3942_v25, 16  ;;  %v4733_v4 = vunpack.c.l.b16 %v4438_v57  ;;  %v4044_v63 = vor.u32 %v4043_v30, %v4040_v1  ;;  %v4051_v31 = vshrl.u32 %v3942_v25, 16  ;;  %v10664_v1 = vld [vmem:[#allocation49_spill] sm:$0xff] }
 0x35e   : > { %v4441_v5 = vsel %vm6462_vm5, %v4439_v14, %v4440_v44  ;;  %v3545_v0 = vor.u32 %v3543_v7, %v3542_v53  ;;  %v3547_v40 = vrot.slane %v3542_v53, 4  ;;  %v3380_v47 = vmax.f32 %v3348_v56, 0.0  ;;  %v10666_v30 = vld [vmem:[#allocation53_spill] sm:$0xff] }
 0x35f   : > { %v4734_v34 = vunpack.c.l.b16 %v4441_v5  ;;  %vm10663_vm10 = vcmask 457728   ;;  %v4049_v13 = vrot.slane %v4047_v23, 5  ;;  %v4053_v16 = vrot.slane %v4051_v31, 4  ;;  %v10670_v23 = vld [vmem:[#allocation106_spill] sm:$0xff]  ;;  %v6047_v5 = vld [vmem:[%s7065_s17 + $0x84] sm:$0xff] }
 0x360   : > { %v2986_v10 = vsel %vm10663_vm10, %v2953_v55, %v2708_v24  ;;  %v4057_v36 = vshll.u32 %v3943_v11, 16  ;;  %v3546_v59 = vsel %vm8800_vm4, %v3538_v6, %v3545_v0  ;;  %v3842_v17 = vsel %vm8812_vm13, %v3547_v40, %v3841_v20  ;;  %v8964_v25 = vld [vmem:[#allocation2 + $0x24] sm:$0xf]  ;;  %v2640_v7 = vpop.permute.xlu0 %2639  ;;  %v8993_v40 = vpop.f32.mrf.mxu1 }
 0x361   : > { %v3468_v32 = vpack.c.bf16 %v3380_v47, %v3380_v47  ;;  %v8962_v37 = vpack.c.b16 %v4734_v34, %v4733_v4  ;;  %vm10665_vm6 = vcmask 97280   ;;  %3840 = vst.msk [vmem:[#allocation2 + $0x28] sm:$0xf] %vm3406_vm15, %v3546_v59  ;;  %v3134_v39 = vpop.f32.mrf.mxu0  ;;  %v4045_v52 = vrot.slane %v4044_v63, 4  ;;  %4699 = vrot.lane.b32.xlu0 %v4682_v8, %s6068_s30  ;;  %v10671_v8 = vld [vmem:[#allocation19_spill] sm:$0xff] }
 0x362   : > { %v1502_v12 = vsel %vm10665_vm6, %v1469_v49, %v10664_v1  ;;  %v4054_v58 = vor.u32 %v4053_v16, %v4049_v13  ;;  %v4062_v11 = vshrl.u32 %v8964_v25, 16  ;;  %3843 = vst [vmem:[#allocation2 + $0x2c] sm:$0x1] %v3842_v17  ;;  %v3276_v35 = vadd.f32 %v8517_v33, %v3134_v39  ;;  %v3844_v63 = vld [vmem:[#allocation2 + $0x30] sm:$0xf] }
 0x363   : > { %v1535_v42 = vsel %vm1505_vm9, %v1502_v12, %v10666_v30  ;;  %v3549_v6 = vshrl.u32 %v3468_v32, 16  ;;  %4987 = vrot.lane.b32.xlu2 %v8962_v37, %s6075_s14  ;;  %v3019_v49 = vsel %vm2997_vm0, %v2986_v10, %v2743_v54  ;;  %vm10668_vm12 = vcmask 162816  }
 0x364   : > { %v1568_v55 = vsel %vm10668_vm12, %v1535_v42, %v10667_v15  ;;  %vm10669_vm10 = vcmask 588800   ;;  %v4050_v57 = vsel %vm6175_vm2, %v4045_v52, %v4049_v13  ;;  %v4055_v14 = vrot.slane %v4054_v58, 4  ;;  %v10672_v13 = vld [vmem:[#allocation118_spill] sm:$0xff] }
 0x365   : > { %5785 = vmatmul.msk.bf16.gmra.mxu0 %vm10669_vm10, %v3019_v49  ;;  %v4059_v44 = vrot.slane %v4057_v36, 5  ;;  %v8982_v53 = vrot.slane %v3549_v6, 7  ;;  %v3552_v33 = vshll.u32 %v3468_v32, 16  ;;  %v3349_v24 = vadd.f32 %v8695_v9, %v3276_v35  ;;  %v10674_v36 = vld [vmem:[#allocation71_spill] sm:$0xff]  ;;  %v10675_v32 = vld [vmem:[#allocation44_spill] sm:$0xff] }
 0x366   : > { %v4065_v56 = vshll.u32 %v8964_v25, 16  ;;  %v1601_v20 = vsel %vm1571_vm11, %v1568_v55, %v10670_v23  ;;  %v2789_v4 = vsel %vm1439_vm7, %v6047_v5, %v10671_v8  ;;  %v4064_v0 = vrot.slane %v4062_v11, 4  ;;  %v2675_v55 = vpop.permute.xlu1 %2674  ;;  %v2710_v5 = vpop.permute.xlu2 %2709 }
 0x367   : > { %v4060_v31 = vsel %vm6175_vm2, %v4055_v14, %v4059_v44  ;;  %v3554_v47 = vor.u32 %v3552_v33, %v8982_v53  ;;  %v3381_v34 = vmax.f32 %v3349_v24, 0.0  ;;  %v4653_v10 = vunpack.c.l.b16 %v4050_v57 }
 0x368   : > { %v4654_v54 = vunpack.c.l.b16 %v4060_v31  ;;  %vm10673_vm6 = vcmask 228352   ;;  %v2825_v59 = vsel %vm1505_vm9, %v2789_v4, %v10674_v36  ;;  %v4067_v17 = vrot.slane %v4065_v56, 5  ;;  %v9006_v58 = vld [vmem:[#allocation2 + $0x28] sm:$0xf] }
 0x369   : > { %v1634_v16 = vsel %vm10673_vm6, %v1601_v20, %v10672_v13  ;;  %v2857_v1 = vsel %vm1571_vm11, %v2825_v59, %v10675_v32  ;;  %v3845_v12 = vsel %vm8760_vm8, %v3554_v47, %v3844_v63  ;;  %v3469_v39 = vpack.c.bf16 %v3381_v34, %v3381_v34  ;;  %v3137_v30 = vpop.f32.mrf.mxu0  ;;  %v9010_v42 = vld [vmem:[#allocation2 + $0x2c] sm:$0x1]  ;;  %v2745_v47 = vpop.permute.xlu0 %2744 }
 0x36a   : > { %v9004_v52 = vpack.c.b16 %v4654_v54, %v4653_v10  ;;  %v2889_v11 = vsel %vm1637_vm14, %v2857_v1, %v8462_v61  ;;  %3846 = vst [vmem:[#allocation2 + $0x30] sm:$0xf] %v3845_v12  ;;  %v4068_v6 = vor.u32 %v4067_v17, %v4064_v0  ;;  %v4071_v35 = vshll.u32 %v9006_v58, 16  ;;  %v10676_v61 = vld [vmem:[#allocation39_spill] sm:$0xff]  ;;  %v10678_v54 = vld [vmem:[#allocation16_spill] sm:$0xff]  ;;  %v9034_v17 = vpop.f32.mrf.mxu1 }
 0x36b   : > { %v4075_v49 = vshrl.u32 %v9006_v58, 16  ;;  %v2922_v15 = vsel %vm2898_vm1, %v2889_v11, %v2640_v7  ;;  %v3557_v57 = vshrl.u32 %v3469_v39, 16  ;;  %v3279_v14 = vadd.f32 %v8538_v51, %v3137_v30  ;;  %4814 = vrot.lane.b32.xlu2 %v8936_v18, %s6070_s9  ;;  %v3848_v18 = vld [vmem:[#allocation2 + $0x38] sm:$0x1]  ;;  %v10681_v30 = vld [vmem:[#allocation34_spill] sm:$0xff] }
 0x36c   : > { %4952 = vrot.lane.b32.xlu1 %v9004_v52, %s6074_s13  ;;  %v1667_v44 = vsel %vm1637_vm14, %v1634_v16, %v10676_v61  ;;  %vm10677_vm12 = vcmask 293888   ;;  %4849 = vrot.lane.b32.xlu0 %v9004_v52, %s6071_s10  ;;  %v4073_v33 = vrot.slane %v4071_v35, 5  ;;  %v4081_v24 = vshll.u32 %v9010_v42, 16  ;;  %v6048_v10 = vld [vmem:[%s6137_s29 + $0xb4] sm:$0xff] }
 0x36d   : > { %5813 = vmatmul.msk.bf16.gmra.mxu3 %vm10677_vm12, %v1667_v44  ;;  %v4077_v7 = vrot.slane %v4075_v49, 4  ;;  %v3559_v56 = vrot.slane %v3557_v57, 7  ;;  %v3560_v23 = vshll.u32 %v3469_v39, 16  ;;  %v3350_v51 = vadd.f32 %v8695_v9, %v3279_v14  ;;  %v9041_v39 = vld [vmem:[#allocation2 + $0x24] sm:$0xff] }
 0x36e   : > { %v2955_v20 = vsel %vm2931_vm3, %v2922_v15, %v2675_v55  ;;  %v4069_v8 = vrot.slane %v4068_v6, 4  ;;  %v3555_v63 = vrot.slane %v8982_v53, 4  ;;  %vm10679_vm1 = vcmask 31744  }
 0x36f   : > { %v4078_v4 = vor.u32 %v4077_v7, %v4073_v33  ;;  %v3562_v31 = vor.u32 %v3560_v23, %v3559_v56  ;;  %v3564_v0 = vrot.slane %v3559_v56, 4  ;;  %v3382_v34 = vmax.f32 %v3350_v51, 0.0 }
 0x370   : > { %v1438_v13 = vsel %vm10679_vm1, %v6048_v10, %v10678_v54  ;;  %v4074_v16 = vsel %vm6175_vm2, %v4069_v8, %v4073_v33  ;;  %v4083_v59 = vrot.slane %v4081_v24, 5  ;;  %vm10680_vm3 = vcmask 457728   ;;  %v10682_v33 = vld [vmem:[#allocation38_spill] sm:$0xff]  ;;  %v10686_v8 = vld [vmem:[#allocation79_spill] sm:$0xff] }
 0x371   : > { %v4079_v36 = vrot.slane %v4078_v4, 4  ;;  %v3563_v32 = vsel %vm8800_vm4, %v3555_v63, %v3562_v31  ;;  %v3849_v53 = vsel %vm8812_vm13, %v3564_v0, %v3848_v18  ;;  %v2988_v1 = vsel %vm10680_vm3, %v2955_v20, %v2710_v5  ;;  %v9043_v11 = vld [vmem:[#allocation2 + $0x30] sm:$0xf]  ;;  %v3139_v35 = vpop.f32.mrf.mxu0  ;;  %v3851_v18 = vld [vmem:[#allocation2 + $0x3c] sm:$0xf] }
 0x372   : > { %v3470_v12 = vpack.c.bf16 %v3382_v34, %v3382_v34  ;;  %v1471_v6 = vsel %vm1439_vm7, %v1438_v13, %v10681_v30  ;;  %3847 = vst.msk [vmem:[#allocation2 + $0x34] sm:$0xf] %vm3406_vm15, %v3563_v32  ;;  %v3021_v49 = vsel %vm2997_vm0, %v2988_v1, %v2745_v47  ;;  %v4444_v55 = vrot.slane %v9006_v58, 5  ;;  %v10688_v0 = vld [vmem:[#allocation83_spill] sm:$0xff]  ;;  %v10689_v32 = vld [vmem:[#allocation84_spill] sm:$0xff] }
 0x373   : > { %v4084_v15 = vsel %vm6175_vm2, %v4079_v36, %v4083_v59  ;;  %3850 = vst [vmem:[#allocation2 + $0x38] sm:$0x1] %v3849_v53  ;;  %v3281_v14 = vadd.f32 %v8551_v3, %v3139_v35  ;;  %4919 = vrot.lane.b32.xlu2 %v9041_v39, %s6073_s12  ;;  %v4655_v61 = vunpack.c.l.b16 %v4074_v16  ;;  %vm10683_vm10 = vcmask 97280   ;;  %v10685_v3 = vld [vmem:[#allocation67_spill] sm:$0xff] }
 0x374   : > { %v3566_v57 = vshrl.u32 %v3470_v12, 16  ;;  %4779 = vrot.lane.b32.xlu1 %v8897_v2, %s6069_s8  ;;  %v4656_v44 = vunpack.c.l.b16 %v4084_v15  ;;  %v1504_v7 = vsel %vm10683_vm10, %v1471_v6, %v10682_v33  ;;  %vm10684_vm0 = vcmask 588800   ;;  %v9085_v6 = vpop.f32.mrf.mxu1  ;;  %v10691_v15 = vld [vmem:[#allocation114_spill] sm:$0xff] }
 0x375   : > { %5786 = vmatmul.msk.bf16.gmra.mxu0 %vm10684_vm0, %v3021_v49  ;;  %v4086_v24 = vshrl.u32 %v9043_v11, 16  ;;  %v4089_v58 = vshll.u32 %v9043_v11, 16  ;;  %v3569_v23 = vshll.u32 %v3470_v12, 16  ;;  %v3351_v2 = vadd.f32 %v8695_v9, %v3281_v14 }
 0x376   : > { %v3568_v56 = vrot.slane %v3566_v57, 7  ;;  %v9063_v51 = vpack.c.b16 %v4656_v44, %v4655_v61  ;;  %v1537_v20 = vsel %vm1505_vm9, %v1504_v7, %v10685_v3  ;;  %v4446_v5 = vrot.slane %v4444_v55, 4 }
 0x377   : > { %vm10687_vm6 = vcmask 162816   ;;  %v3383_v31 = vmax.f32 %v3351_v2, 0.0  ;;  %v5818_v34 = vrot.slane %v8964_v25, 9  ;;  %v4447_v10 = vrot.slane %v9010_v42, 5  ;;  %v3855_v2 = vld [vmem:[#allocation2 + $0x44] sm:$0x1] }
 0x378   : > { %v1570_v4 = vsel %vm10687_vm6, %v1537_v20, %v10686_v8  ;;  %v3571_v63 = vor.u32 %v3569_v23, %v3568_v56  ;;  %4954 = vrot.lane.b32.xlu0 %v9063_v51, %s6074_s13  ;;  %v4088_v36 = vrot.slane %v4086_v24, 4  ;;  %v4091_v59 = vrot.slane %v4089_v58, 5 }
 0x379   : > { %v1603_v47 = vsel %vm1571_vm11, %v1570_v4, %v10688_v0  ;;  %v3471_v13 = vpack.c.bf16 %v3383_v31, %v3383_v31  ;;  %v9077_v16 = vld [vmem:[#allocation2 + $0x34] sm:$0xf]  ;;  %vm10690_vm12 = vcmask 228352   ;;  %v3142_v1 = vpop.f32.mrf.mxu0  ;;  %v4448_v12 = vsel %vm6462_vm5, %v4446_v5, %v4447_v10 }
 0x37a   : > { %v3852_v54 = vsel %vm8760_vm8, %v3571_v63, %v3851_v18  ;;  %v1636_v53 = vsel %vm10690_vm12, %v1603_v47, %v10689_v32  ;;  %v3949_v30 = vld [vmem:[#allocation2 + $0x38] sm:$0x1]  ;;  %v4095_v25 = vshll.u32 %v9077_v16, 16  ;;  %v4099_v42 = vshrl.u32 %v9077_v16, 16 }
 0x37b   : > { %3853 = vst [vmem:[#allocation2 + $0x3c] sm:$0xf] %v3852_v54  ;;  %v3574_v35 = vshrl.u32 %v3471_v13, 16  ;;  %v3284_v49 = vadd.f32 %v8575_v46, %v3142_v1  ;;  %4701 = vrot.lane.b32.xlu2 %v9004_v52, %s6068_s30  ;;  %v1669_v57 = vsel %vm1637_vm14, %v1636_v53, %v10691_v15  ;;  %v4445_v14 = vsel %vm6462_vm5, %v5818_v34, %v4444_v55 }
 0x37c   : > { %4884 = vrot.lane.b32.xlu1 %v8962_v37, %s6072_s11  ;;  %vm10692_vm1 = vcmask 293888   ;;  %v4097_v61 = vrot.slane %v4095_v25, 5  ;;  %v4101_v44 = vrot.slane %v4099_v42, 4  ;;  %v4105_v33 = vshll.u32 %v3949_v30, 16  ;;  %v3318_v1 = vpop.f32.mrf.mxu1 }
 0x37d   : > { %5814 = vmatmul.msk.bf16.gmra.mxu3 %vm10692_vm1, %v1669_v57  ;;  %v4451_v7 = vrot.slane %v9077_v16, 5  ;;  %v3576_v24 = vrot.slane %v3574_v35, 7  ;;  %v3577_v58 = vshll.u32 %v3471_v13, 16  ;;  %v3352_v46 = vadd.f32 %v8695_v9, %v3284_v49  ;;  %v3858_v35 = vld [vmem:[#allocation2 + $0x48] sm:$0xf] }
 0x37e   : > { %v4736_v23 = vunpack.c.l.b16 %v4448_v12  ;;  %v4735_v52 = vunpack.c.l.b16 %v4445_v14  ;;  %v4092_v3 = vor.u32 %v4091_v59, %v4088_v36  ;;  %v4102_v20 = vor.u32 %v4101_v44, %v4097_v61 }
 0x37f   : > { %v3572_v18 = vrot.slane %v3568_v56, 4  ;;  %v3579_v5 = vor.u32 %v3577_v58, %v3576_v24  ;;  %v3581_v8 = vrot.slane %v3576_v24, 4  ;;  %v3384_v55 = vmax.f32 %v3352_v46, 0.0 }
 0x380   : > { %4781 = vrot.lane.b32.xlu0 %v8962_v37, %s6069_s8  ;;  %v4103_v4 = vrot.slane %v4102_v20, 4  ;;  %v4107_v63 = vrot.slane %v4105_v33, 5  ;;  %v4453_v31 = vrot.slane %v4451_v7, 4  ;;  %v9105_v10 = vpack.c.b16 %v4736_v23, %v4735_v52 }
 0x381   : > { %v3580_v0 = vsel %vm8800_vm4, %v3572_v18, %v3579_v5  ;;  %v3856_v47 = vsel %vm8812_vm13, %v3581_v8, %v3855_v2  ;;  %v3472_v34 = vpack.c.bf16 %v3384_v55, %v3384_v55  ;;  %v3144_v56 = vpop.f32.mrf.mxu0  ;;  %v4093_v54 = vrot.slane %v4092_v3, 4 }
 0x382   : > { %3854 = vst.msk [vmem:[#allocation2 + $0x40] sm:$0xf] %vm3406_vm15, %v3580_v0  ;;  %v4108_v13 = vsel %vm6175_vm2, %v4103_v4, %v4107_v63  ;;  %v4454_v37 = vrot.slane %v3949_v30, 5  ;;  %v3286_v36 = vadd.f32 %v8590_v43, %v3144_v56  ;;  %v5819_v32 = vrot.slane %v9043_v11, 9  ;;  %v3862_v63 = vld [vmem:[#allocation2 + $0x50] sm:$0x1] }
 0x383   : > { %3857 = vst [vmem:[#allocation2 + $0x44] sm:$0x1] %v3856_v47  ;;  %v3583_v16 = vshrl.u32 %v3472_v34, 16  ;;  %4851 = vrot.lane.b32.xlu2 %v9063_v51, %s6071_s10  ;;  %v4098_v59 = vsel %vm6175_vm2, %v4093_v54, %v4097_v61  ;;  %v3586_v30 = vshll.u32 %v3472_v34, 16  ;;  %v4658_v42 = vunpack.c.l.b16 %v4108_v13  ;;  %v3950_v13 = vld [vmem:[#allocation2 + $0x3c] sm:$0xf] }
 0x384   : > { %4989 = vrot.lane.b32.xlu1 %v9105_v10, %s6075_s14  ;;  %v4455_v53 = vsel %vm6462_vm5, %v4453_v31, %v4454_v37  ;;  %v3353_v25 = vadd.f32 %v8695_v9, %v3286_v36  ;;  %v4452_v43 = vsel %vm6462_vm5, %v5819_v32, %v4451_v7  ;;  %v4657_v11 = vunpack.c.l.b16 %v4098_v59  ;;  %v3320_v0 = vpop.f32.mrf.mxu1 }
 0x385   : > { %v3585_v12 = vrot.slane %v3583_v16, 7  ;;  %v3177_v49 = vpop.f32.mrf.mxu3  ;;  %v4738_v61 = vunpack.c.l.b16 %v4455_v53  ;;  %v4737_v23 = vunpack.c.l.b16 %v4452_v43  ;;  %v5978_v53 = vld [vmem:[#allocation2 + $0x30] sm:$0xff]  ;;  %v4110_v43 = vshrl.u32 %v3950_v13, 16 }
 0x386   : > { %v3385_v57 = vmax.f32 %v3353_v25, 0.0  ;;  %v3319_v14 = vadd.f32 %v3318_v1, %v3177_v49  ;;  %v9128_v58 = vpack.c.b16 %v4658_v42, %v4657_v11  ;;  %v3907_v1 = vld [vmem:[#allocation2 + $0x9c] sm:$0xf]  ;;  %vm10693_vm3 = vcmask 1041408  }
 0x387   : > { %v3588_v15 = vor.u32 %v3586_v30, %v3585_v12  ;;  %v9135_v3 = vpack.c.b16 %v4738_v61, %v4737_v23  ;;  %v3589_v4 = vrot.slane %v3585_v12, 4  ;;  %v9155_v30 = vld [vmem:[%s10197_s4] ss:$0 sm:$0xff]  ;;  %vm10694_vm10 = vcmask 31744  }
 0x388   : > { %4886 = vrot.lane.b32.xlu0 %v9105_v10, %s6072_s11  ;;  %v3473_v33 = vpack.c.bf16 %v3385_v57, %v3385_v57  ;;  %v3366_v24 = vadd.f32 %v8695_v9, %v3319_v14  ;;  %vm10695_vm0 = vcmask 97280  }
 0x389   : > { %v3859_v44 = vsel %vm8760_vm8, %v3588_v15, %v3858_v35  ;;  %v3147_v46 = vpop.f32.mrf.mxu0  ;;  %v9137_v20 = vld [vmem:[#allocation2 + $0x40] sm:$0xf]  ;;  %v4113_v15 = vshll.u32 %v3950_v13, 16 }
 0x38a   : > { %3860 = vst [vmem:[#allocation2 + $0x48] sm:$0xf] %v3859_v44  ;;  %v3591_v7 = vshrl.u32 %v3473_v33, 16  ;;  %v3398_v2 = vmax.f32 %v3366_v24, 0.0  ;;  %v3289_v52 = vadd.f32 %v8601_v38, %v3147_v46  ;;  %v3594_v5 = vshll.u32 %v3473_v33, 16 }
 0x38b   : > { %4956 = vrot.lane.b32.xlu2 %v9128_v58, %s6074_s13  ;;  %v4458_v38 = vrot.slane %v9137_v20, 5  ;;  %v4119_v37 = vshll.u32 %v9137_v20, 16  ;;  %v4123_v16 = vshrl.u32 %v9137_v20, 16  ;;  %v3952_v11 = vld [vmem:[#allocation2 + $0x44] sm:$0x1]  ;;  %v4112_v20 = vrot.slane %v4110_v43, 4 }
 0x38c   : > { %4816 = vrot.lane.b32.xlu1 %v9041_v39, %s6070_s9  ;;  %v3593_v18 = vrot.slane %v3591_v7, 7  ;;  %v3486_v8 = vpack.c.bf16 %v3398_v2, %v3398_v2  ;;  %v3354_v55 = vadd.f32 %v8695_v9, %v3289_v52  ;;  %v3865_v2 = vld [vmem:[#allocation2 + $0x54] sm:$0xf]  ;;  %v4461_v52 = vrot.slane %v3952_v11, 5 }
 0x38d   : > { %v3179_v31 = vpop.f32.mrf.mxu3  ;;  %v4460_v61 = vrot.slane %v4458_v38, 4  ;;  %v9166_v24 = vrot.slane %v4119_v37, 5  ;;  %v4125_v46 = vrot.slane %v4123_v16, 4  ;;  %v4129_v37 = vshll.u32 %v3952_v11, 16 }
 0x38e   : > { %v3596_v47 = vor.u32 %v3594_v5, %v3593_v18  ;;  %v3598_v39 = vrot.slane %v3593_v18, 4  ;;  %v3702_v34 = vshrl.u32 %v3486_v8, 16  ;;  %v3386_v56 = vmax.f32 %v3354_v55, 0.0 }
 0x38f   : > { %v3321_v54 = vadd.f32 %v3320_v0, %v3179_v31  ;;  %v3705_v32 = vshll.u32 %v3486_v8, 16  ;;  %v4115_v18 = vrot.slane %v4113_v15, 5  ;;  %v5820_v55 = vrot.slane %v3950_v13, 9 }
 0x390   : > { %4991 = vrot.lane.b32.xlu0 %v9135_v3, %s6075_s14  ;;  %v3597_v9 = vsel %vm8800_vm4, %v3589_v4, %v3596_v47  ;;  %v3863_v36 = vsel %vm8812_vm13, %v3598_v39, %v3862_v63  ;;  %v9149_v59 = vrot.slane %v3702_v34, 7  ;;  %v3474_v12 = vpack.c.bf16 %v3386_v56, %v3386_v56  ;;  %v3911_v34 = vld [vmem:[#allocation2 + $0xa4] sm:$0x1] }
 0x391   : > { %3861 = vst.msk [vmem:[#allocation2 + $0x4c] sm:$0xf] %vm3406_vm15, %v3597_v9  ;;  %v3367_v25 = vadd.f32 %v9155_v30, %v3321_v54  ;;  %v3149_v42 = vpop.f32.mrf.mxu0  ;;  %v4462_v63 = vsel %vm6462_vm5, %v4460_v61, %v4461_v52  ;;  %v4126_v31 = vor.u32 %v4125_v46, %v9166_v24  ;;  %v4459_v56 = vsel %vm6462_vm5, %v5820_v55, %v4458_v38  ;;  %v5979_v38 = vld [vmem:[#allocation2 + $0x3c] sm:$0xff]  ;;  %v9187_v43 = vld [vmem:[#allocation2 + $0x48] sm:$0xf] }
 0x392   : > { %3864 = vst [vmem:[#allocation2 + $0x50] sm:$0x1] %v3863_v36  ;;  %v3707_v35 = vor.u32 %v3705_v32, %v9149_v59  ;;  %v3291_v49 = vadd.f32 %v8628_v22, %v3149_v42  ;;  %v3600_v57 = vshrl.u32 %v3474_v12, 16  ;;  %v3603_v22 = vshll.u32 %v3474_v12, 16 }
 0x393   : > { %4783 = vrot.lane.b32.xlu2 %v9105_v10, %s6069_s8  ;;  %v3399_v14 = vmax.f32 %v3367_v25, 0.0  ;;  %v4116_v13 = vor.u32 %v4115_v18, %v4112_v20  ;;  %v3708_v9 = vrot.slane %v9149_v59, 4  ;;  %v4739_v25 = vunpack.c.l.b16 %v4459_v56 }
 0x394   : > { %4921 = vrot.lane.b32.xlu1 %v5978_v53, %s6073_s12  ;;  %v3908_v44 = vsel %vm8760_vm8, %v3707_v35, %v3907_v1  ;;  %v3355_v33 = vadd.f32 %v9155_v30, %v3291_v49  ;;  %v3602_v23 = vrot.slane %v3600_v57, 7  ;;  %v4127_v42 = vrot.slane %v4126_v31, 4  ;;  %v3869_v49 = vld [vmem:[#allocation2 + $0x5c] sm:$0x1] }
 0x395   : > { %3909 = vst [vmem:[#allocation2 + $0x9c] sm:$0xf] %v3908_v44  ;;  %v3487_v7 = vpack.c.bf16 %v3399_v14, %v3399_v14  ;;  %v4117_v44 = vrot.slane %v4116_v13, 4 }
 0x396   : > { %v3387_v10 = vmax.f32 %v3355_v33, 0.0  ;;  %v3605_v5 = vor.u32 %v3603_v22, %v3602_v23  ;;  %v3606_v57 = vrot.slane %v3602_v23, 4  ;;  %v4131_v33 = vrot.slane %v4129_v37, 5 }
 0x397   : > { %v3710_v8 = vshrl.u32 %v3487_v7, 16  ;;  %v3713_v39 = vshll.u32 %v3487_v7, 16  ;;  %v4134_v23 = vshrl.u32 %v9187_v43, 16 }
 0x398   : > { %4818 = vrot.lane.b32.xlu0 %v5978_v53, %s6070_s9  ;;  %v3475_v4 = vpack.c.bf16 %v3387_v10, %v3387_v10  ;;  %v3866_v0 = vsel %vm8760_vm8, %v3605_v5, %v3865_v2  ;;  %v9180_v16 = vld [vmem:[#allocation2 + $0x4c] sm:$0xf]  ;;  %v4740_v53 = vunpack.c.l.b16 %v4462_v63  ;;  %v4137_v2 = vshll.u32 %v9187_v43, 16 }
 0x399   : > { %v3712_v47 = vrot.slane %v3710_v8, 7  ;;  %3867 = vst [vmem:[#allocation2 + $0x54] sm:$0xf] %v3866_v0  ;;  %v4143_v15 = vshll.u32 %v9180_v16, 16  ;;  %v4147_v59 = vshrl.u32 %v9180_v16, 16  ;;  %v4132_v52 = vsel %vm6175_vm2, %v4127_v42, %v4131_v33 }
 0x39a   : > { %v3608_v54 = vshrl.u32 %v3475_v4, 16  ;;  %v3611_v12 = vshll.u32 %v3475_v4, 16  ;;  %v9193_v61 = vpack.c.b16 %v4740_v53, %v4739_v25  ;;  %v4122_v8 = vsel %vm6175_vm2, %v4117_v44, %v9166_v24  ;;  %v3872_v25 = vld [vmem:[#allocation2 + $0x60] sm:$0xf] }
 0x39b   : > { %4888 = vrot.lane.b32.xlu2 %v9135_v3, %s6072_s11  ;;  %v3715_v36 = vor.u32 %v3713_v39, %v3712_v47  ;;  %v3717_v32 = vrot.slane %v3712_v47, 4  ;;  %v4145_v20 = vrot.slane %v4143_v15, 5  ;;  %v4149_v18 = vrot.slane %v4147_v59, 4 }
 0x39c   : > { %4703 = vrot.lane.b32.xlu1 %v9063_v51, %s6068_s30  ;;  %v3610_v1 = vrot.slane %v3608_v54, 7  ;;  %v4660_v55 = vunpack.c.l.b16 %v4132_v52  ;;  %v4136_v63 = vrot.slane %v4134_v23, 4  ;;  %v4139_v31 = vrot.slane %v4137_v2, 5  ;;  %v3876_v52 = vld [vmem:[#allocation2 + $0x68] sm:$0x1] }
 0x39d   : > { %v3716_v51 = vsel %vm8800_vm4, %v3708_v9, %v3715_v36  ;;  %v3912_v35 = vsel %vm8812_vm13, %v3717_v32, %v3911_v34  ;;  %v4150_v0 = vor.u32 %v4149_v18, %v4145_v20  ;;  %v4659_v47 = vunpack.c.l.b16 %v4122_v8  ;;  %v9220_v13 = vpop.f32.mrf.mxu3  ;;  %v9223_v32 = vpop.permute.xlu2 %4777 }
 0x39e   : > { %3910 = vst.msk [vmem:[#allocation2 + $0xa0] sm:$0xf] %vm3406_vm15, %v3716_v51  ;;  %v3613_v14 = vor.u32 %v3611_v12, %v3610_v1  ;;  %v3615_v11 = vrot.slane %v3610_v1, 4  ;;  %v4140_v9 = vor.u32 %v4139_v31, %v4136_v63 }
 0x39f   : > { %3913 = vst [vmem:[#allocation2 + $0xa4] sm:$0x1] %v3912_v35  ;;  %v9218_v56 = vpack.c.b16 %v4660_v55, %v4659_v47  ;;  %v4151_v36 = vrot.slane %v4150_v0, 4 }
 0x3a0   : > { %4923 = vrot.lane.b32.xlu0 %v5979_v38, %s6073_s12  ;;  %v3614_v46 = vsel %vm8800_vm4, %v3606_v57, %v3613_v14  ;;  %v3870_v22 = vsel %vm8812_vm13, %v3615_v11, %v3869_v49  ;;  %v3152_v7 = vpop.f32.mrf.mxu0  ;;  %v4141_v35 = vrot.slane %v4140_v9, 4  ;;  %v4465_v57 = vrot.slane %v9180_v16, 5  ;;  %v9240_v14 = vld [vmem:[#allocation2 + $0x48] sm:$0xff] }
 0x3a1   : > { %3868 = vst.msk [vmem:[#allocation2 + $0x58] sm:$0xf] %vm3406_vm15, %v3614_v46  ;;  %v3294_v10 = vadd.f32 %v8663_v41, %v3152_v7  ;;  %v9213_v41 = vld [vmem:[#allocation2 + $0x50] sm:$0x1]  ;;  %v9243_v46 = vld [vmem:[#allocation2 + $0x54] sm:$0xf] }
 0x3a2   : > { %3871 = vst [vmem:[#allocation2 + $0x5c] sm:$0x1] %v3870_v22  ;;  %v4153_v34 = vshll.u32 %v9213_v41, 16  ;;  %v4146_v59 = vsel %vm6175_vm2, %v4141_v35, %v4145_v20  ;;  %v4161_v8 = vshll.u32 %v9243_v46, 16 }
 0x3a3   : > { %4993 = vrot.lane.b32.xlu2 %v9193_v61, %s6075_s14  ;;  %v3356_v5 = vadd.f32 %v9155_v30, %v3294_v10  ;;  %v4661_v7 = vunpack.c.l.b16 %v4146_v59  ;;  %v4467_v10 = vrot.slane %v4465_v57, 4 }
 0x3a4   : > { %4853 = vrot.lane.b32.xlu1 %v9128_v58, %s6071_s10  ;;  %v4155_v12 = vrot.slane %v4153_v34, 5 }
 0x3a5   : > { %v3388_v4 = vmax.f32 %v3356_v5, 0.0  ;;  %v9250_v23 = vpop.f32.mrf.mxu3  ;;  %v4158_v5 = vshrl.u32 %v9243_v46, 16 }
 0x3a7   : > { %v3476_v39 = vpack.c.bf16 %v3388_v4, %v3388_v4 }
 0x3a8   : > { %4705 = vrot.lane.b32.xlu0 %v9128_v58, %s6068_s30  ;;  %v3154_v54 = vpop.f32.mrf.mxu0  ;;  %v9231_v49 = vld [vmem:[#allocation2 + $0x58] sm:$0xf] }
 0x3a9   : > { %v3617_v24 = vshrl.u32 %v3476_v39, 16  ;;  %v3296_v37 = vadd.f32 %v8702_v27, %v3154_v54  ;;  %v3620_v53 = vshll.u32 %v3476_v39, 16  ;;  %v4156_v27 = vsel %vm6175_vm2, %v4151_v36, %v4155_v12  ;;  %v3958_v54 = vld [vmem:[#allocation2 + $0x5c] sm:$0x1] }
 0x3aa   : > { %v4662_v11 = vunpack.c.l.b16 %v4156_v27  ;;  %v4167_v44 = vshll.u32 %v9231_v49, 16  ;;  %v4171_v22 = vshrl.u32 %v9231_v49, 16  ;;  %v4468_v39 = vrot.slane %v9213_v41, 5  ;;  %v5295_v41 = vld [vmem:[%s10198_s5 + $0x10] sm:$0x3] }
 0x3ab   : > { %4820 = vrot.lane.b32.xlu2 %v5979_v38, %s6070_s9  ;;  %v3619_v58 = vrot.slane %v3617_v24, 7  ;;  %v3357_v1 = vadd.f32 %v9155_v30, %v3296_v37  ;;  %v4160_v24 = vrot.slane %v4158_v5, 4  ;;  %v4163_v37 = vrot.slane %v4161_v8, 5 }
 0x3ac   : > { %4958 = vrot.lane.b32.xlu1 %v9218_v56, %s6074_s13  ;;  %v9254_v18 = vpack.c.b16 %v4662_v11, %v4661_v7  ;;  %v9258_v55 = vrot.slane %v4167_v44, 5  ;;  %v4173_v31 = vrot.slane %v4171_v22, 4  ;;  %v5821_v36 = vrot.slane %v9187_v43, 9 }
 0x3ad   : > { %v3622_v42 = vor.u32 %v3620_v53, %v3619_v58  ;;  %v3389_v51 = vmax.f32 %v3357_v1, 0.0  ;;  %v9252_v20 = vpop.permute.xlu2 %4882  ;;  %v4177_v12 = vshll.u32 %v3958_v54, 16  ;;  %v4164_v35 = vor.u32 %v4163_v37, %v4160_v24 }
 0x3ae   : > { %v4174_v53 = vor.u32 %v4173_v31, %v9258_v55  ;;  %v4466_v43 = vsel %vm6462_vm5, %v5821_v36, %v4465_v57  ;;  %v5822_v24 = vrot.slane %v9243_v46, 9 }
 0x3af   : > { %v3873_v38 = vsel %vm8760_vm8, %v3622_v42, %v3872_v25  ;;  %v3477_v15 = vpack.c.bf16 %v3389_v51, %v3389_v51  ;;  %v5309_v25 = vunpack.c.l.b16 %v5295_v41  ;;  %v4741_v59 = vunpack.c.l.b16 %v4466_v43 }
 0x3b0   : > { %4855 = vrot.lane.b32.xlu0 %v9218_v56, %s6071_s10  ;;  %3874 = vst [vmem:[#allocation2 + $0x60] sm:$0xf] %v3873_v38  ;;  %v4175_v38 = vrot.slane %v4174_v53, 4  ;;  %v4179_v44 = vrot.slane %v4177_v12, 5  ;;  %v4165_v7 = vrot.slane %v4164_v35, 4 }
 0x3b1   : > { %v3625_v33 = vshrl.u32 %v3477_v15, 16  ;;  %v3628_v2 = vshll.u32 %v3477_v15, 16  ;;  %v5312_v15 = vpack.c.b16 %v5309_v25, %v5309_v25 }
 0x3b3   : > { %4925 = vrot.lane.b32.xlu2 %v9240_v14, %s6073_s12  ;;  %v3627_v16 = vrot.slane %v3625_v33, 7  ;;  %v5348_v33 = vsel %vm10693_vm3, %v5312_v15, 0  ;;  %v5974_v15 = vld [vmem:[#allocation2] sm:$0xff]  ;;  %vm10696_vm3 = vmmov %vm10694_vm10 }
 0x3b4   : > { %4785 = vrot.lane.b32.xlu1 %v9135_v3, %s6069_s8  ;;  %v3623_v3 = vrot.slane %v3619_v58, 4  ;;  %v4469_v58 = vsel %vm6462_vm5, %v4467_v10, %v4468_v39  ;;  %5355 = vmatpush.bf16.msra.mxu2 %v5348_v33 }
 0x3b5   : > { %v3630_v4 = vor.u32 %v3628_v2, %v3627_v16  ;;  %v3632_v63 = vrot.slane %v3627_v16, 4  ;;  %v9280_v1 = vpop.f32.mrf.mxu3  ;;  %v4742_v51 = vunpack.c.l.b16 %v4469_v58  ;;  %v5993_v16 = vld [vmem:[%s10198_s5 + $0x8] sm:$0xff]  ;;  %6002 = vmatpush.bf16.msra.mxu3 %v5348_v33 }
 0x3b7   : > { %v3631_v0 = vsel %vm8800_vm4, %v3623_v3, %v3630_v4  ;;  %v3877_v47 = vsel %vm8812_vm13, %v3632_v63, %v3876_v52  ;;  %v9291_v57 = vpack.c.b16 %v4742_v51, %v4741_v59  ;;  %v4475_v52 = vrot.slane %v3958_v54, 5  ;;  %v4698_v59 = vpop.permute.xlu1 %4697 }
 0x3b8   : > { %4960 = vrot.lane.b32.xlu0 %v9254_v18, %s6074_s13  ;;  %3875 = vst.msk [vmem:[#allocation2 + $0x64] sm:$0xf] %vm3406_vm15, %v3631_v0  ;;  %v3157_v34 = vpop.f32.mrf.mxu0  ;;  %v4170_v4 = vsel %vm6175_vm2, %v4165_v7, %v9258_v55  ;;  %5356 = vmatpush.bf16.msra.mxu2 %v5993_v16  ;;  %v5992_v0 = vld [vmem:[%s10198_s5] sm:$0xff] }
 0x3b9   : > { %3878 = vst [vmem:[#allocation2 + $0x68] sm:$0x1] %v3877_v47  ;;  %v3299_v9 = vadd.f32 %v8751_v29, %v3157_v34  ;;  %6003 = vmatpush.bf16.msra.mxu3 %v5993_v16 }
 0x3bb   : > { %4707 = vrot.lane.b32.xlu2 %v9218_v56, %s6068_s30  ;;  %v3358_v29 = vadd.f32 %v9155_v30, %v3299_v9  ;;  %v4472_v56 = vrot.slane %v9231_v49, 5  ;;  %v9314_v34 = vpop.permute.xlu0 %4812  ;;  %v4663_v9 = vunpack.c.l.b16 %v4170_v4  ;;  %v5021_v4 = vsel %vm10694_vm10, %v5974_v15, %v4698_v59  ;;  %vm10697_vm10 = vmmov %vm10695_vm0 }
 0x3bc   : > { %4890 = vrot.lane.b32.xlu1 %v9193_v61, %s6072_s11  ;;  %5357 = vmatpush.bf16.msra.mxu2 %v5992_v0 }
 0x3bd   : > { %v9285_v42 = vpop.permute.xlu2 %4987  ;;  %v3390_v27 = vmax.f32 %v3358_v29, 0.0  ;;  %v4474_v10 = vrot.slane %v4472_v56, 4  ;;  %v9312_v39 = vpop.f32.mrf.mxu3  ;;  %v4473_v53 = vsel %vm6462_vm5, %v5822_v24, %v4472_v56  ;;  %v3959_v29 = vld [vmem:[#allocation2 + $0x60] sm:$0xf]  ;;  %6004 = vmatpush.bf16.msra.mxu3 %v5992_v0  ;;  %v5068_v24 = vsel %vm1439_vm7, %v5021_v4, %v9223_v32 }
 0x3be   : > { %v4743_v51 = vunpack.c.l.b16 %v4473_v53  ;;  %v4185_v56 = vshll.u32 %v3959_v29, 16 }
 0x3bf   : > { %v3478_v11 = vpack.c.bf16 %v3390_v27, %v3390_v27  ;;  %v4476_v55 = vsel %vm6462_vm5, %v4474_v10, %v4475_v52  ;;  %v9319_v37 = vld [vmem:[#allocation2 + $0x64] sm:$0xf] }
 0x3c0   : > { %4787 = vrot.lane.b32.xlu0 %v9193_v61, %s6069_s8  ;;  %v3159_v22 = vpop.f32.mrf.mxu0  ;;  %v4180_v61 = vsel %vm6175_vm2, %v4175_v38, %v4179_v44  ;;  %v4744_v46 = vunpack.c.l.b16 %v4476_v55  ;;  %v4191_v43 = vshll.u32 %v9319_v37, 16  ;;  %v4195_v25 = vshrl.u32 %v9319_v37, 16 }
 0x3c1   : > { %v3634_v49 = vshrl.u32 %v3478_v11, 16  ;;  %v3301_v2 = vadd.f32 %v8818_v48, %v3159_v22  ;;  %v3637_v8 = vshll.u32 %v3478_v11, 16  ;;  %v3879_v48 = vld [vmem:[#allocation2 + $0x6c] sm:$0xf]  ;;  %v4664_v31 = vunpack.c.l.b16 %v4180_v61  ;;  %v3883_v11 = vld [vmem:[#allocation2 + $0x74] sm:$0x1] }
 0x3c2   : > { %v4182_v38 = vshrl.u32 %v3959_v29, 16  ;;  %v9337_v33 = vpack.c.b16 %v4744_v46, %v4743_v51  ;;  %v9339_v22 = vrot.slane %v4191_v43, 5  ;;  %v4197_v61 = vrot.slane %v4195_v25, 4 }
 0x3c3   : > { %4857 = vrot.lane.b32.xlu2 %v9254_v18, %s6071_s10  ;;  %v3636_v5 = vrot.slane %v3634_v49, 7  ;;  %v3359_v3 = vadd.f32 %v9155_v30, %v3301_v2  ;;  %v9327_v41 = vpack.c.b16 %v4664_v31, %v4663_v9  ;;  %v3961_v31 = vld [vmem:[#allocation2 + $0x68] sm:$0x1]  ;;  %v4479_v0 = vrot.slane %v9319_v37, 5 }
 0x3c4   : > { %4995 = vrot.lane.b32.xlu1 %v9291_v57, %s6075_s14  ;;  %v5823_v43 = vrot.slane %v3959_v29, 9  ;;  %v5100_v25 = vsel %vm10695_vm0, %v5068_v24, %v9314_v34  ;;  %v4482_v32 = vrot.slane %v3961_v31, 5  ;;  %v9399_v24 = vld [vmem:[#allocation2 + $0x60] sm:$0xff]  ;;  %vm10698_vm0 = vmmov %vm10687_vm6 }
 0x3c5   : > { %v9307_v63 = vpop.permute.xlu2 %4814  ;;  %v3639_v47 = vor.u32 %v3637_v8, %v3636_v5  ;;  %v3391_v54 = vmax.f32 %v3359_v3, 0.0  ;;  %v3640_v7 = vrot.slane %v3636_v5, 4  ;;  %v4184_v8 = vrot.slane %v4182_v38, 4  ;;  %v5981_v5 = vld [vmem:[#allocation2 + $0x54] sm:$0xff] }
 0x3c6   : > { %v4187_v3 = vrot.slane %v4185_v56, 5  ;;  %v4481_v37 = vrot.slane %v4479_v0, 4 }
 0x3c7   : > { %v3880_v36 = vsel %vm8760_vm8, %v3639_v47, %v3879_v48  ;;  %v3479_v58 = vpack.c.bf16 %v3391_v54, %v3391_v54  ;;  %v4198_v54 = vor.u32 %v4197_v61, %v9339_v22 }
 0x3c8   : > { %4892 = vrot.lane.b32.xlu0 %v9291_v57, %s6072_s11  ;;  %3881 = vst [vmem:[#allocation2 + $0x6c] sm:$0xf] %v3880_v36  ;;  %v4188_v9 = vor.u32 %v4187_v3, %v4184_v8  ;;  %v4201_v36 = vshll.u32 %v3961_v31, 16  ;;  %v4483_v34 = vsel %vm6462_vm5, %v4481_v37, %v4482_v32 }
 0x3c9   : > { %v3642_v12 = vshrl.u32 %v3479_v58, 16  ;;  %v3645_v27 = vshll.u32 %v3479_v58, 16 }
 0x3ca   : > { %v4189_v38 = vrot.slane %v4188_v9, 4  ;;  %v4203_v56 = vrot.slane %v4201_v36, 5 }
 0x3cb   : > { %4962 = vrot.lane.b32.xlu2 %v9327_v41, %s6074_s13  ;;  %v3644_v35 = vrot.slane %v3642_v12, 7  ;;  %v4918_v2 = vpop.permute.xlu0 %4917  ;;  %v4848_v58 = vpop.permute.xlu1 %4847  ;;  %v4199_v12 = vrot.slane %v4198_v54, 4 }
 0x3cc   : > { %4822 = vrot.lane.b32.xlu1 %v9240_v14, %s6070_s9  ;;  %v5132_v29 = vsel %vm1505_vm9, %v5100_v25, %v4848_v58  ;;  %v4194_v9 = vsel %vm6175_vm2, %v4189_v38, %v9339_v22 }
 0x3cd   : > { %v9335_v44 = vpop.permute.xlu2 %4919  ;;  %v3647_v16 = vor.u32 %v3645_v27, %v3644_v35  ;;  %v3649_v14 = vrot.slane %v3644_v35, 4  ;;  %v9341_v49 = vpop.f32.mrf.mxu3  ;;  %v4480_v27 = vsel %vm6462_vm5, %v5823_v43, %v4479_v0  ;;  %v4204_v61 = vsel %vm6175_vm2, %v4199_v12, %v4203_v56 }
 0x3ce   : > { %v4666_v36 = vunpack.c.l.b16 %v4204_v61 }
 0x3cf   : > { %v3648_v10 = vsel %vm8800_vm4, %v3640_v7, %v3647_v16  ;;  %v3884_v52 = vsel %vm8812_vm13, %v3649_v14, %v3883_v11  ;;  %v9369_v51 = vld [vmem:[#allocation2 + $0x6c] sm:$0xf] }
 0x3d0   : > { %4997 = vrot.lane.b32.xlu0 %v9337_v33, %s6075_s14  ;;  %3882 = vst.msk [vmem:[#allocation2 + $0x70] sm:$0xf] %vm3406_vm15, %v3648_v10  ;;  %v3162_v48 = vpop.f32.mrf.mxu0  ;;  %v4206_v10 = vshrl.u32 %v9369_v51, 16  ;;  %v4209_v8 = vshll.u32 %v9369_v51, 16 }
 0x3d1   : > { %3885 = vst [vmem:[#allocation2 + $0x74] sm:$0x1] %v3884_v52  ;;  %v3304_v47 = vadd.f32 %v8871_v19, %v3162_v48  ;;  %v4745_v52 = vunpack.c.l.b16 %v4480_v27 }
 0x3d2   : > { %v4211_v32 = vrot.slane %v4209_v8, 5 }
 0x3d3   : > { %4789 = vrot.lane.b32.xlu2 %v9291_v57, %s6069_s8  ;;  %v3360_v55 = vadd.f32 %v9155_v30, %v3304_v47  ;;  %v9366_v57 = vpop.permute.xlu0 %4699 }
 0x3d4   : > { %4927 = vrot.lane.b32.xlu1 %v5981_v5, %s6073_s12 }
 0x3d5   : > { %v9360_v53 = vpop.permute.xlu2 %4701  ;;  %v3392_v46 = vmax.f32 %v3360_v55, 0.0  ;;  %v9362_v19 = vpop.f32.mrf.mxu3  ;;  %v4746_v55 = vunpack.c.l.b16 %v4483_v34 }
 0x3d7   : > { %v3480_v35 = vpack.c.bf16 %v3392_v46, %v3392_v46  ;;  %v9373_v15 = vld [vmem:[#allocation2 + $0x70] sm:$0xf] }
 0x3d8   : > { %4824 = vrot.lane.b32.xlu0 %v5981_v5, %s6070_s9  ;;  %v3164_v59 = vpop.f32.mrf.mxu0  ;;  %v4215_v11 = vshll.u32 %v9373_v15, 16  ;;  %v4219_v7 = vshrl.u32 %v9373_v15, 16  ;;  %v9406_v43 = vld [vmem:[#allocation2 + $0x74] sm:$0x1] }
 0x3d9   : > { %v3651_v16 = vshrl.u32 %v3480_v35, 16  ;;  %v3306_v14 = vadd.f32 %v8905_v62, %v3164_v59  ;;  %v5164_v62 = vsel %vm10687_vm6, %v5132_v29, %v9252_v20  ;;  %v3654_v48 = vshll.u32 %v3480_v35, 16  ;;  %vm10699_vm6 = vmmov %vm10690_vm12 }
 0x3da   : > { %v9389_v3 = vrot.slane %v4215_v11, 5  ;;  %v4221_v4 = vrot.slane %v4219_v7, 4  ;;  %v5196_v0 = vsel %vm1571_vm11, %v5164_v62, %v4918_v2  ;;  %v4208_v2 = vrot.slane %v4206_v10, 4  ;;  %v6050_v62 = vld [vmem:[#allocation2 + $0xc] sm:$0xff] }
 0x3db   : > { %4894 = vrot.lane.b32.xlu2 %v9337_v33, %s6072_s11  ;;  %v9393_v5 = vrot.slane %v3651_v16, 7  ;;  %v3361_v31 = vadd.f32 %v9155_v30, %v3306_v14  ;;  %v9420_v29 = vpack.c.b16 %v4746_v55, %v4745_v52  ;;  %v4225_v59 = vshll.u32 %v9406_v43, 16 }
 0x3dc   : > { %4709 = vrot.lane.b32.xlu1 %v9254_v18, %s6068_s30  ;;  %v3886_v18 = vld [vmem:[#allocation2 + $0x78] sm:$0xf]  ;;  %v4222_v22 = vor.u32 %v4221_v4, %v9389_v3  ;;  %v4212_v14 = vor.u32 %v4211_v32, %v4208_v2  ;;  %v5824_v4 = vrot.slane %v9369_v51, 9  ;;  %v4486_v55 = vrot.slane %v9373_v15, 5 }
 0x3dd   : > { %v9397_v54 = vpop.permute.xlu2 %4851  ;;  %v3656_v20 = vor.u32 %v3654_v48, %v9393_v5  ;;  %v3393_v37 = vmax.f32 %v3361_v31, 0.0  ;;  %v3890_v48 = vld [vmem:[#allocation2 + $0x80] sm:$0x1] }
 0x3de   : > { %v4953_v47 = vpop.permute.xlu1 %4952  ;;  %v9418_v56 = vpop.permute.xlu0 %4849  ;;  %v4223_v61 = vrot.slane %v4222_v22, 4 }
 0x3df   : > { %v5228_v58 = vsel %vm10690_vm12, %v5196_v0, %v4953_v47  ;;  %v3323_v46 = vpop.f32.mrf.mxu3  ;;  %v3887_v35 = vsel %vm8760_vm8, %v3656_v20, %v3886_v18  ;;  %v3481_v27 = vpack.c.bf16 %v3393_v37, %v3393_v37  ;;  %v4227_v47 = vrot.slane %v4225_v59, 5  ;;  %vm10700_vm12 = vmmov %vm10692_vm1 }
 0x3e0   : > { %v5260_v12 = vsel %vm1637_vm14, %v5228_v58, %v9285_v42  ;;  %v3324_v25 = vadd.f32 %v3323_v46, %v9220_v13  ;;  %4929 = vrot.lane.b32.xlu0 %v9399_v24, %s6073_s12  ;;  %3888 = vst [vmem:[#allocation2 + $0x78] sm:$0xf] %v3887_v35  ;;  %v4665_v13 = vunpack.c.l.b16 %v4194_v9  ;;  %v3657_v9 = vrot.slane %v9393_v5, 4  ;;  %v3914_v5 = vld [vmem:[#allocation2 + $0xa8] sm:$0xf] }
 0x3e1   : > { %5913 = vmatmul.msk.bf16.vlgmr.msra.gmra.mxu2 %vm10692_vm1, %v5260_v12  ;;  %v3659_v34 = vshrl.u32 %v3481_v27, 16  ;;  %v3662_v52 = vshll.u32 %v3481_v27, 16  ;;  %v4228_v2 = vsel %vm6175_vm2, %v4223_v61, %v4227_v47  ;;  %vm10701_vm1 = vmmov %vm10696_vm3 }
 0x3e2   : > { %v3368_v38 = vadd.f32 %v9155_v30, %v3324_v25  ;;  %v3167_v42 = vpop.f32.mrf.mxu0  ;;  %v9428_v16 = vpack.c.b16 %v4666_v36, %v4665_v13 }
 0x3e3   : > { %v3309_v11 = vadd.f32 %v8952_v60, %v3167_v42  ;;  %4999 = vrot.lane.b32.xlu2 %v9420_v29, %s6075_s14  ;;  %v3661_v10 = vrot.slane %v3659_v34, 7  ;;  %v5024_v60 = vsel %vm10696_vm3, %v6050_v62, %v9366_v57  ;;  %v4213_v57 = vrot.slane %v4212_v14, 4  ;;  %vm10702_vm3 = vmmov %vm10697_vm10 }
 0x3e4   : > { %v3400_v7 = vmax.f32 %v3368_v38, 0.0  ;;  %4859 = vrot.lane.b32.xlu1 %v9327_v41, %s6071_s10  ;;  %v4489_v38 = vrot.slane %v9406_v43, 5  ;;  %v4488_v34 = vrot.slane %v4486_v55, 4 }
 0x3e5   : > { %v3362_v8 = vadd.f32 %v9155_v30, %v3309_v11  ;;  %v9434_v18 = vpop.permute.xlu2 %4956  ;;  %v3664_v36 = vor.u32 %v3662_v52, %v3661_v10  ;;  %v3666_v20 = vrot.slane %v3661_v10, 4  ;;  %v4218_v59 = vsel %vm6175_vm2, %v4213_v57, %v9389_v3 }
 0x3e6   : > { %v3488_v31 = vpack.c.bf16 %v3400_v7, %v3400_v7  ;;  %v4780_v0 = vpop.permute.xlu1 %4779  ;;  %v9473_v52 = vsel %vm6462_vm5, %v5824_v4, %v4486_v55  ;;  %v9485_v4 = vsel %vm6462_vm5, %v4488_v34, %v4489_v38 }
 0x3e7   : > { %v3394_v58 = vmax.f32 %v3362_v8, 0.0  ;;  %v3325_v37 = vpop.f32.mrf.mxu3  ;;  %v3665_v12 = vsel %vm8800_vm4, %v3657_v9, %v3664_v36  ;;  %v3891_v15 = vsel %vm8812_vm13, %v3666_v20, %v3890_v48  ;;  %v5070_v25 = vsel %vm1439_vm7, %v5024_v60, %v4780_v0  ;;  %v9459_v11 = vld [vmem:[#allocation2 + $0x78] sm:$0xf]  ;;  %v3893_v8 = vld [vmem:[#allocation2 + $0x84] sm:$0xf] }
 0x3e8   : > { %v3719_v46 = vshrl.u32 %v3488_v31, 16  ;;  %v3326_v51 = vadd.f32 %v3325_v37, %v9250_v23  ;;  %4711 = vrot.lane.b32.xlu0 %v9327_v41, %s6068_s30  ;;  %3889 = vst.msk [vmem:[#allocation2 + $0x7c] sm:$0xf] %vm3406_vm15, %v3665_v12  ;;  %v3722_v22 = vshll.u32 %v3488_v31, 16  ;;  %v5102_v14 = vsel %vm10697_vm10, %v5070_v25, %v9307_v63  ;;  %vm10703_vm10 = vmmov %vm10698_vm0 }
 0x3e9   : > { %v3482_v32 = vpack.c.bf16 %v3394_v58, %v3394_v58  ;;  %3892 = vst [vmem:[#allocation2 + $0x80] sm:$0x1] %v3891_v15  ;;  %v4667_v31 = vunpack.c.l.b16 %v4218_v59  ;;  %v5134_v47 = vsel %vm1505_vm9, %v5102_v14, %v9418_v56  ;;  %v4233_v37 = vshll.u32 %v9459_v11, 16 }
 0x3ea   : > { %v9449_v23 = vrot.slane %v3719_v46, 7  ;;  %v3369_v41 = vadd.f32 %v9155_v30, %v3326_v51  ;;  %v3169_v35 = vpop.f32.mrf.mxu0  ;;  %v9452_v27 = vpop.permute.xlu0 %4954 }
 0x3eb   : > { %v3668_v42 = vshrl.u32 %v3482_v32, 16  ;;  %v3311_v13 = vadd.f32 %v8993_v40, %v3169_v35  ;;  %4826 = vrot.lane.b32.xlu2 %v9399_v24, %s6070_s9  ;;  %v4668_v40 = vunpack.c.l.b16 %v4228_v2  ;;  %v3671_v10 = vshll.u32 %v3482_v32, 16  ;;  %v9497_v2 = vld [vmem:[#allocation2 + $0x6c] sm:$0xff] }
 0x3ec   : > { %v3724_v7 = vor.u32 %v3722_v22, %v9449_v23  ;;  %v3401_v61 = vmax.f32 %v3369_v41, 0.0  ;;  %4964 = vrot.lane.b32.xlu1 %v9428_v16, %s6074_s13  ;;  %v4230_v24 = vshrl.u32 %v9459_v11, 16  ;;  %v3725_v46 = vrot.slane %v9449_v23, 4  ;;  %v3918_v23 = vld [vmem:[#allocation2 + $0xb0] sm:$0x1] }
 0x3ed   : > { %v9468_v43 = vrot.slane %v3668_v42, 7  ;;  %v3363_v3 = vadd.f32 %v9155_v30, %v3311_v13  ;;  %v9477_v48 = vpop.permute.xlu2 %4783  ;;  %v9490_v58 = vpack.c.b16 %v4668_v40, %v4667_v31 }
 0x3ee   : > { %v3915_v63 = vsel %vm8760_vm8, %v3724_v7, %v3914_v5  ;;  %v3489_v62 = vpack.c.bf16 %v3401_v61, %v3401_v61  ;;  %v4885_v60 = vpop.permute.xlu1 %4884  ;;  %v9504_v41 = vrot.slane %v4230_v24, 4 }
 0x3ef   : > { %3916 = vst [vmem:[#allocation2 + $0xa8] sm:$0xf] %v3915_v63  ;;  %v3673_v0 = vor.u32 %v3671_v10, %v9468_v43  ;;  %v3395_v9 = vmax.f32 %v3363_v3, 0.0  ;;  %v5166_v36 = vsel %vm10698_vm0, %v5134_v47, %v4885_v60  ;;  %v9499_v12 = vld [vmem:[#allocation2 + $0x7c] sm:$0xf]  ;;  %v3674_v15 = vrot.slane %v9468_v43, 4  ;;  %vm10704_vm0 = vmmov %vm10699_vm6 }
 0x3f0   : > { %v3727_v55 = vshrl.u32 %v3489_v62, 16  ;;  %v3328_v20 = vpop.f32.mrf.mxu3  ;;  %4861 = vrot.lane.b32.xlu0 %v9428_v16, %s6071_s10  ;;  %v3730_v25 = vshll.u32 %v3489_v62, 16  ;;  %v5198_v38 = vsel %vm1571_vm11, %v5166_v36, %v9335_v44  ;;  %v4239_v7 = vshll.u32 %v9499_v12, 16  ;;  %v3897_v10 = vld [vmem:[#allocation2 + $0x8c] sm:$0x1] }
 0x3f1   : > { %v3894_v56 = vsel %vm8760_vm8, %v3673_v0, %v3893_v8  ;;  %v3483_v51 = vpack.c.bf16 %v3395_v9, %v3395_v9  ;;  %v3329_v57 = vadd.f32 %v3328_v20, %v9280_v1  ;;  %v4243_v44 = vshrl.u32 %v9499_v12, 16  ;;  %v9531_v9 = vld [vmem:[#allocation2 + $0x80] sm:$0x1] }
 0x3f2   : > { %3895 = vst [vmem:[#allocation2 + $0x84] sm:$0xf] %v3894_v56  ;;  %v3729_v5 = vrot.slane %v3727_v55, 7  ;;  %v3172_v32 = vpop.f32.mrf.mxu0  ;;  %v9502_v22 = vpop.permute.xlu0 %4781  ;;  %v9525_v8 = vrot.slane %v4239_v7, 5  ;;  %v4748_v56 = vunpack.c.l.b16 %v9485_v4  ;;  %v4249_v4 = vshll.u32 %v9531_v9, 16 }
 0x3f3   : > { %v3676_v35 = vshrl.u32 %v3483_v51, 16  ;;  %v3370_v1 = vadd.f32 %v9155_v30, %v3329_v57  ;;  %v3314_v42 = vadd.f32 %v9034_v17, %v3172_v32  ;;  %v3679_v34 = vshll.u32 %v3483_v51, 16  ;;  %4931 = vrot.lane.b32.xlu2 %v9497_v2, %s6073_s12 }
 0x3f4   : > { %v3732_v13 = vor.u32 %v3730_v25, %v3729_v5  ;;  %v3734_v59 = vrot.slane %v3729_v5, 4  ;;  %4791 = vrot.lane.b32.xlu1 %v9337_v33, %s6069_s8  ;;  %v5230_v33 = vsel %vm10699_vm6, %v5198_v38, %v9452_v27  ;;  %v4235_v27 = vrot.slane %v4233_v37, 5  ;;  %v6051_v38 = vld [vmem:[#allocation2 + $0x18] sm:$0xff]  ;;  %vm10705_vm6 = vmmov %vm10700_vm12 }
 0x3f5   : > { %v3678_v14 = vrot.slane %v3676_v35, 7  ;;  %v3402_v61 = vmax.f32 %v3370_v1, 0.0  ;;  %v3364_v40 = vadd.f32 %v9155_v30, %v3314_v42  ;;  %v9523_v63 = vpop.permute.xlu2 %4888  ;;  %v4245_v55 = vrot.slane %v4243_v44, 4 }
 0x3f6   : > { %v3733_v17 = vsel %vm8800_vm4, %v3725_v46, %v3732_v13  ;;  %v3919_v43 = vsel %vm8812_vm13, %v3734_v59, %v3918_v23  ;;  %v4990_v3 = vpop.permute.xlu1 %4989  ;;  %v4747_v37 = vunpack.c.l.b16 %v9473_v52  ;;  %v5027_v1 = vsel %vm10701_vm1, %v6051_v38, %v9360_v53 }
 0x3f7   : > { %3917 = vst.msk [vmem:[#allocation2 + $0xac] sm:$0xf] %vm3406_vm15, %v3733_v17  ;;  %v3681_v62 = vor.u32 %v3679_v34, %v3678_v14  ;;  %v3683_v60 = vrot.slane %v3678_v14, 4  ;;  %v3490_v31 = vpack.c.bf16 %v3402_v61, %v3402_v61  ;;  %v3396_v24 = vmax.f32 %v3364_v40, 0.0 }
 0x3f8   : > { %3920 = vst [vmem:[#allocation2 + $0xb0] sm:$0x1] %v3919_v43  ;;  %v5262_v0 = vsel %vm1637_vm14, %v5230_v33, %v4990_v3  ;;  %v3330_v47 = vpop.f32.mrf.mxu3  ;;  %4966 = vrot.lane.b32.xlu0 %v9490_v58, %s6074_s13  ;;  %v4236_v52 = vor.u32 %v4235_v27, %v9504_v41  ;;  %v9559_v34 = vpack.c.b16 %v4748_v56, %v4747_v37  ;;  %v4493_v17 = vrot.slane %v9499_v12, 5  ;;  %v3900_v41 = vld [vmem:[#allocation2 + $0x90] sm:$0xf] }
 0x3f9   : > { %v3682_v36 = vsel %vm8800_vm4, %v3674_v15, %v3681_v62  ;;  %v3898_v20 = vsel %vm8812_vm13, %v3683_v60, %v3897_v10  ;;  %v3736_v46 = vshrl.u32 %v3490_v31, 16  ;;  %5914 = vmatmul.msk.bf16.gmra.mxu2 %vm10700_vm12, %v5262_v0  ;;  %v3484_v51 = vpack.c.bf16 %v3396_v24, %v3396_v24  ;;  %vm10706_vm12 = vmmov %vm10701_vm1 }
 0x3fa   : > { %3896 = vst.msk [vmem:[#allocation2 + $0x88] sm:$0xf] %vm3406_vm15, %v3682_v36  ;;  %v3331_v57 = vadd.f32 %v3330_v47, %v9312_v39  ;;  %v3174_v5 = vpop.f32.mrf.mxu0  ;;  %v9541_v25 = vpop.permute.xlu0 %4886  ;;  %v4246_v15 = vor.u32 %v4245_v55, %v9525_v8  ;;  %v3739_v23 = vshll.u32 %v3490_v31, 16  ;;  %v3921_v39 = vld [vmem:[#allocation2 + $0xb4] sm:$0xf]  ;;  %v5072_v43 = vsel %vm1439_vm7, %v5027_v1, %v9502_v22 }
 0x3fb   : > { %3899 = vst [vmem:[#allocation2 + $0x8c] sm:$0x1] %v3898_v20  ;;  %v9545_v32 = vrot.slane %v3736_v46, 7  ;;  %v3316_v35 = vadd.f32 %v9085_v6, %v3174_v5  ;;  %v3685_v42 = vshrl.u32 %v3484_v51, 16  ;;  %4713 = vrot.lane.b32.xlu2 %v9428_v16, %s6068_s30  ;;  %v3688_v14 = vshll.u32 %v3484_v51, 16 }
 0x3fc   : > { %v3371_v13 = vadd.f32 %v9155_v30, %v3331_v57  ;;  %4896 = vrot.lane.b32.xlu1 %v9420_v29, %s6072_s11  ;;  %v4247_v7 = vrot.slane %v4246_v15, 4  ;;  %v4251_v33 = vrot.slane %v4249_v4, 5  ;;  %v4237_v12 = vrot.slane %v4236_v52, 4  ;;  %v3925_v15 = vld [vmem:[#allocation2 + $0xbc] sm:$0x1] }
 0x3fd   : > { %v3741_v6 = vor.u32 %v3739_v23, %v9545_v32  ;;  %v3365_v59 = vadd.f32 %v9155_v30, %v3316_v35  ;;  %v9561_v53 = vrot.slane %v3685_v42, 7  ;;  %v9563_v44 = vpop.permute.xlu2 %4993  ;;  %v5825_v22 = vrot.slane %v9459_v11, 9 }
 0x3fe   : > { %v3403_v61 = vmax.f32 %v3371_v13, 0.0  ;;  %v4817_v40 = vpop.permute.xlu1 %4816  ;;  %v4252_v47 = vsel %vm6175_vm2, %v4247_v7, %v4251_v33  ;;  %v4242_v20 = vsel %vm6175_vm2, %v4237_v12, %v9525_v8  ;;  %v4495_v46 = vrot.slane %v4493_v17, 4 }
 0x3ff   : > { %v3922_v16 = vsel %vm8760_vm8, %v3741_v6, %v3921_v39  ;;  %v3397_v10 = vmax.f32 %v3365_v59, 0.0  ;;  %v3690_v3 = vor.u32 %v3688_v14, %v9561_v53  ;;  %v5104_v60 = vsel %vm10702_vm3, %v5072_v43, %v4817_v40 }
 0x400   : > { %3923 = vst [vmem:[#allocation2 + $0xb4] sm:$0xf] %v3922_v16  ;;  %v3491_v62 = vpack.c.bf16 %v3403_v61, %v3403_v61  ;;  %v3333_v31 = vpop.f32.mrf.mxu3  ;;  %4793 = vrot.lane.b32.xlu0 %v9420_v29, %s6069_s8  ;;  %v4496_v51 = vrot.slane %v9531_v9, 5  ;;  %v3742_v11 = vrot.slane %v9545_v32, 4  ;;  %v4670_v8 = vunpack.c.l.b16 %v4252_v47  ;;  %v3904_v9 = vld [vmem:[#allocation2 + $0x98] sm:$0x1] }
 0x401   : > { %v3485_v24 = vpack.c.bf16 %v3397_v10, %v3397_v10  ;;  %v3334_v0 = vadd.f32 %v3333_v31, %v9341_v49  ;;  %v3901_v27 = vsel %vm8760_vm8, %v3690_v3, %v3900_v41  ;;  %v5136_v49 = vsel %vm1505_vm9, %v5104_v60, %v9397_v54  ;;  %v3928_v31 = vld [vmem:[#allocation2 + $0xc0] sm:$0xf] }
 0x402   : > { %v3744_v55 = vshrl.u32 %v3491_v62, 16  ;;  %v4992_v36 = vpop.permute.xlu0 %4991  ;;  %3902 = vst [vmem:[#allocation2 + $0x90] sm:$0xf] %v3901_v27  ;;  %v3747_v5 = vshll.u32 %v3491_v62, 16  ;;  %v3691_v37 = vrot.slane %v9561_v53, 4  ;;  %v5168_v32 = vsel %vm10703_vm10, %v5136_v49, %v9541_v25  ;;  %v9637_v49 = vld [vmem:[#allocation2 + $0x78] sm:$0xff] }
 0x403   : > { %v3693_v29 = vshrl.u32 %v3485_v24, 16  ;;  %v3372_v56 = vadd.f32 %v9155_v30, %v3334_v0  ;;  %4863 = vrot.lane.b32.xlu2 %v9490_v58, %s6071_s10  ;;  %v3696_v54 = vshll.u32 %v3485_v24, 16  ;;  %v4497_v39 = vsel %vm6462_vm5, %v4495_v46, %v4496_v51  ;;  %v3968_v51 = vld [vmem:[#allocation2 + $0x84] sm:$0xf] }
 0x404   : > { %v3746_v57 = vrot.slane %v3744_v55, 7  ;;  %5001 = vrot.lane.b32.xlu1 %v9559_v34, %s6075_s14  ;;  %v4669_v14 = vunpack.c.l.b16 %v4242_v20  ;;  %v4494_v41 = vsel %vm6462_vm5, %v5825_v22, %v4493_v17  ;;  %v4750_v3 = vunpack.c.l.b16 %v4497_v39  ;;  %v6052_v17 = vld [vmem:[%s10197_s4] ss:$0 sm:$0xff] }
 0x405   : > { %v3695_v23 = vrot.slane %v3693_v29, 7  ;;  %v3404_v35 = vmax.f32 %v3372_v56, 0.0  ;;  %v9595_v1 = vpop.permute.xlu2 %4820 }
 0x406   : > { %v3749_v30 = vor.u32 %v3747_v5, %v3746_v57  ;;  %v3751_v4 = vrot.slane %v3746_v57, 4  ;;  %v4922_v38 = vpop.permute.xlu1 %4921  ;;  %v9617_v33 = vpack.c.b16 %v4670_v8, %v4669_v14  ;;  %v5826_v14 = vrot.slane %v3968_v51, 9 }
 0x407   : > { %v3698_v42 = vor.u32 %v3696_v54, %v3695_v23  ;;  %v3700_v13 = vrot.slane %v3695_v23, 4  ;;  %v3492_v52 = vpack.c.bf16 %v3404_v35, %v3404_v35  ;;  %v5200_v6 = vsel %vm1571_vm11, %v5168_v32, %v4922_v38  ;;  %v3970_v23 = vld [vmem:[#allocation2 + $0x8c] sm:$0x1] }
 0x408   : > { %v3750_v59 = vsel %vm8800_vm4, %v3742_v11, %v3749_v30  ;;  %v3926_v7 = vsel %vm8812_vm13, %v3751_v4, %v3925_v15  ;;  %v5232_v25 = vsel %vm10704_vm0, %v5200_v6, %v9434_v18  ;;  %v3335_v53 = vpop.f32.mrf.mxu3  ;;  %4898 = vrot.lane.b32.xlu0 %v9559_v34, %s6072_s11  ;;  %v3932_v15 = vld [vmem:[#allocation2 + $0xc8] sm:$0x1]  ;;  %v4254_v54 = vshrl.u32 %v3968_v51, 16 }
 0x409   : > { %3924 = vst.msk [vmem:[#allocation2 + $0xb8] sm:$0xf] %vm3406_vm15, %v3750_v59  ;;  %v3699_v61 = vsel %vm8800_vm4, %v3691_v37, %v3698_v42  ;;  %v3905_v40 = vsel %vm8812_vm13, %v3700_v13, %v3904_v9  ;;  %v3753_v16 = vshrl.u32 %v3492_v52, 16  ;;  %v5264_v18 = vsel %vm1637_vm14, %v5232_v25, %v4992_v36  ;;  %v3969_v36 = vld [vmem:[#allocation2 + $0x88] sm:$0xf] }
 0x40a   : > { %3927 = vst [vmem:[#allocation2 + $0xbc] sm:$0x1] %v3926_v7  ;;  %v3336_v43 = vadd.f32 %v3335_v53, %v9362_v19  ;;  %v4819_v10 = vpop.permute.xlu0 %4818  ;;  %v3756_v60 = vshll.u32 %v3492_v52, 16  ;;  %5915 = vmatmul.msk.bf16.gmra.mxu2 %vm10705_vm6, %v5264_v18  ;;  %v4749_v19 = vunpack.c.l.b16 %v4494_v41  ;;  %v4500_v11 = vrot.slane %v3969_v36, 5  ;;  %v9650_v52 = vld [vmem:[#allocation2 + $0xa0] sm:$0xf] }
 0x40b   : > { %3903 = vst.msk [vmem:[#allocation2 + $0x94] sm:$0xf] %vm3406_vm15, %v3699_v61  ;;  %v3755_v62 = vrot.slane %v3753_v16, 7  ;;  %4968 = vrot.lane.b32.xlu2 %v9617_v33, %s6074_s13  ;;  %v4263_v57 = vshll.u32 %v3969_v36, 16  ;;  %v4267_v5 = vshrl.u32 %v3969_v36, 16  ;;  %v4257_v42 = vshll.u32 %v3968_v51, 16 }
 0x40c   : > { %3906 = vst [vmem:[#allocation2 + $0x98] sm:$0x1] %v3905_v40  ;;  %v3373_v12 = vadd.f32 %v6052_v17, %v3336_v43  ;;  %4828 = vrot.lane.b32.xlu1 %v9497_v2, %s6070_s9  ;;  %v9630_v27 = vpack.c.b16 %v4750_v3, %v4749_v19  ;;  %v6053_v2 = vld [vmem:[#allocation2 + $0x24] sm:$0xff]  ;;  %v4502_v38 = vrot.slane %v4500_v11, 4  ;;  %v4503_v7 = vrot.slane %v3970_v23, 5 }
 0x40d   : > { %v3758_v24 = vor.u32 %v3756_v60, %v3755_v62  ;;  %v9628_v22 = vpop.permute.xlu2 %4925  ;;  %v3759_v35 = vrot.slane %v3755_v62, 4  ;;  %v4269_v13 = vrot.slane %v4267_v5, 4  ;;  %v3974_v25 = vld [vmem:[#allocation2 + $0x9c] sm:$0xf]  ;;  %v4311_v45 = vshll.u32 %v9650_v52, 16 }
 0x40e   : > { %v3405_v0 = vmax.f32 %v3373_v12, 0.0  ;;  %v4704_v47 = vpop.permute.xlu1 %4703  ;;  %v4504_v61 = vsel %vm6462_vm5, %v4502_v38, %v4503_v7  ;;  %v4315_v28 = vshrl.u32 %v9650_v52, 16  ;;  %v4256_v16 = vrot.slane %v4254_v54, 4  ;;  %v9677_v12 = vld [vmem:[#allocation2 + $0x84] sm:$0xff] }
 0x40f   : > { %v3929_v55 = vsel %vm8760_vm8, %v3758_v24, %v3928_v31  ;;  %v5030_v46 = vsel %vm10706_vm12, %v6053_v2, %v4704_v47  ;;  %vm10707_vm8 = vmmov %vm10702_vm3  ;;  %v4259_v41 = vrot.slane %v4257_v42, 5  ;;  %v4302_v43 = vshrl.u32 %v3974_v25, 16  ;;  %v6054_v42 = vld [vmem:[#allocation2 + $0x30] sm:$0xff] }
 0x410   : > { %3930 = vst [vmem:[#allocation2 + $0xc0] sm:$0xf] %v3929_v55  ;;  %v3493_v20 = vpack.c.bf16 %v3405_v0, %v3405_v0  ;;  %5003 = vrot.lane.b32.xlu0 %v9630_v27, %s6075_s14  ;;  %v5074_v37 = vsel %vm1439_vm7, %v5030_v46, %v9477_v48  ;;  %v9648_v48 = vrot.slane %v4263_v57, 5  ;;  %v4273_v3 = vshll.u32 %v3970_v23, 16  ;;  %v3976_v46 = vld [vmem:[#allocation2 + $0xa4] sm:$0x1]  ;;  %vm10712_vm12 = vmmov %vm10701_vm1 }
 0x411   : > { %v5106_v39 = vsel %vm10707_vm8, %v5074_v37, %v4819_v10  ;;  %v4501_v10 = vsel %vm6462_vm5, %v5826_v14, %v4500_v11  ;;  %v4514_v62 = vrot.slane %v9650_v52, 5  ;;  %v4305_v60 = vshll.u32 %v3974_v25, 16  ;;  %vm10713_vm8 = vmmov %vm10702_vm3 }
 0x412   : > { %v3761_v29 = vshrl.u32 %v3493_v20, 16  ;;  %v4924_v56 = vpop.permute.xlu0 %4923  ;;  %v3764_v21 = vshll.u32 %v3493_v20, 16  ;;  %v4270_v18 = vor.u32 %v4269_v13, %v9648_v48  ;;  %v4752_v19 = vunpack.c.l.b16 %v4504_v61 }
 0x413   : > { %4795 = vrot.lane.b32.xlu2 %v9559_v34, %s6069_s8  ;;  %v4317_v24 = vrot.slane %v4315_v28, 4  ;;  %v4260_v47 = vor.u32 %v4259_v41, %v4256_v16  ;;  %v4751_v20 = vunpack.c.l.b16 %v4501_v10  ;;  %v4275_v2 = vrot.slane %v4273_v3, 5  ;;  %v9717_v28 = vld [vmem:[#allocation2 + $0x94] sm:$0xf]  ;;  %v3977_v41 = vld [vmem:[#allocation2 + $0xa8] sm:$0xf] }
 0x414   : > { %v3763_v8 = vrot.slane %v3761_v29, 7  ;;  %4933 = vrot.lane.b32.xlu1 %v9637_v49, %s6073_s12  ;;  %v4271_v55 = vrot.slane %v4270_v18, 4  ;;  %v4304_v29 = vrot.slane %v4302_v43, 4  ;;  %v4516_v57 = vrot.slane %v4514_v62, 4 }
 0x415   : > { %v9645_v32 = vpop.permute.xlu2 %4707  ;;  %v9687_v11 = vpack.c.b16 %v4752_v19, %v4751_v20  ;;  %v4321_v37 = vshll.u32 %v3976_v46, 16 }
 0x416   : > { %v3766_v30 = vor.u32 %v3764_v21, %v3763_v8  ;;  %v3768_v4 = vrot.slane %v3763_v8, 4  ;;  %v4854_v9 = vpop.permute.xlu1 %4853  ;;  %v4261_v8 = vrot.slane %v4260_v47, 4  ;;  %v4517_v21 = vrot.slane %v3976_v46, 5 }
 0x417   : > { %v5138_v59 = vsel %vm1505_vm9, %v5106_v39, %v4854_v9  ;;  %v9703_v39 = vld [vmem:[#allocation2 + $0xac] sm:$0xf] }
 0x418   : > { %v3767_v34 = vsel %vm8800_vm4, %v3759_v35, %v3766_v30  ;;  %v3933_v6 = vsel %vm8812_vm13, %v3768_v4, %v3932_v15  ;;  %4830 = vrot.lane.b32.xlu0 %v9637_v49, %s6070_s9  ;;  %vm10708_vm13 = vmmov %vm10703_vm10  ;;  %v4266_v15 = vsel %vm6175_vm2, %v4261_v8, %v9648_v48  ;;  %v5828_v4 = vrot.slane %v3974_v25, 9 }
 0x419   : > { %3931 = vst.msk [vmem:[#allocation2 + $0xc4] sm:$0xf] %vm3406_vm15, %v3767_v34  ;;  %v5170_v40 = vsel %vm10708_vm13, %v5138_v59, %v9523_v63  ;;  %vm10709_vm15 = vmmov %vm10704_vm0  ;;  %v4518_v9 = vsel %vm6462_vm5, %v4516_v57, %v4517_v21  ;;  %v4671_v52 = vunpack.c.l.b16 %v4266_v15  ;;  %v4323_v34 = vrot.slane %v4321_v37, 5 }
 0x41a   : > { %3934 = vst [vmem:[#allocation2 + $0xc8] sm:$0x1] %v3933_v6  ;;  %v4706_v53 = vpop.permute.xlu0 %4705  ;;  %v5202_v63 = vsel %vm1571_vm11, %v5170_v40, %v4924_v56  ;;  %vm10710_vm4 = vmmov %vm10705_vm6  ;;  %v4307_v56 = vrot.slane %v4305_v60, 5  ;;  %v4515_v48 = vsel %vm6462_vm5, %v5828_v4, %v4514_v62  ;;  %v4756_v59 = vunpack.c.l.b16 %v4518_v9 }
 0x41b   : > { %4900 = vrot.lane.b32.xlu2 %v9630_v27, %s6072_s11  ;;  %v5033_v13 = vsel %vm10701_vm1, %v6054_v42, %v4706_v53  ;;  %v4335_v53 = vshll.u32 %v9703_v39, 16  ;;  %v4521_v10 = vrot.slane %v9703_v39, 5  ;;  %vm10711_vm6 = vmmov %vm10710_vm4 }
 0x41c   : > { %4715 = vrot.lane.b32.xlu1 %v9490_v58, %s6068_s30  ;;  %v9679_v58 = vrot.slane %v4311_v45, 5  ;;  %v4308_v23 = vor.u32 %v4307_v56, %v4304_v29  ;;  %v4339_v45 = vshrl.u32 %v9703_v39, 16  ;;  %v9747_v29 = vld [vmem:[#allocation2 + $0xa8] sm:$0xff]  ;;  %vm10714_vm13 = vmmov %vm10703_vm10 }
 0x41d   : > { %v9675_v17 = vpop.permute.xlu2 %4857  ;;  %v4523_v56 = vrot.slane %v4521_v10, 4 }
 0x41e   : > { %v4959_v31 = vpop.permute.xlu1 %4958  ;;  %v4318_v5 = vor.u32 %v4317_v24, %v9679_v58  ;;  %v4309_v7 = vrot.slane %v4308_v23, 4  ;;  %v4341_v60 = vrot.slane %v4339_v45, 4  ;;  %v4326_v24 = vshrl.u32 %v3977_v41, 16 }
 0x41f   : > { %v5234_v0 = vsel %vm10709_vm15, %v5202_v63, %v4959_v31  ;;  %v9735_v63 = vld [vmem:[#allocation2 + $0x90] sm:$0xf]  ;;  %v4291_v31 = vshrl.u32 %v9717_v28, 16  ;;  %v5829_v23 = vrot.slane %v3977_v41, 9  ;;  %vm10715_vm15 = vmmov %vm10704_vm0 }
 0x420   : > { %v5266_v36 = vsel %vm1637_vm14, %v5234_v0, %v9563_v44  ;;  %4935 = vrot.lane.b32.xlu0 %v9677_v12, %s6073_s12  ;;  %v4276_v44 = vsel %vm6175_vm2, %v4271_v55, %v4275_v2  ;;  %v4319_v38 = vrot.slane %v4318_v5, 4  ;;  %v4314_v16 = vsel %vm6175_vm2, %v4309_v7, %v9679_v58  ;;  %v9770_v7 = vld [vmem:[#allocation2 + $0xb8] sm:$0xf] }
 0x421   : > { %5916 = vmatmul.msk.bf16.gmra.mxu2 %vm10710_vm4, %v5266_v36  ;;  %v4672_v30 = vunpack.c.l.b16 %v4276_v44  ;;  %v4675_v58 = vunpack.c.l.b16 %v4314_v16  ;;  %v4329_v0 = vshll.u32 %v3977_v41, 16  ;;  %v3979_v36 = vld [vmem:[#allocation2 + $0xb0] sm:$0x1]  ;;  %v4278_v20 = vshrl.u32 %v9735_v63, 16 }
 0x422   : > { %v4856_v51 = vpop.permute.xlu0 %4855  ;;  %v4324_v61 = vsel %vm6175_vm2, %v4319_v38, %v4323_v34  ;;  %v4281_v2 = vshll.u32 %v9735_v63, 16  ;;  %v4293_v5 = vrot.slane %v4291_v31, 4  ;;  %v4328_v44 = vrot.slane %v4326_v24, 4 }
 0x423   : > { %5005 = vrot.lane.b32.xlu2 %v9687_v11, %s6075_s14  ;;  %v9711_v25 = vpack.c.b16 %v4672_v30, %v4671_v52  ;;  %v4676_v43 = vunpack.c.l.b16 %v4324_v61  ;;  %v4331_v21 = vrot.slane %v4329_v0, 5  ;;  %v4524_v37 = vrot.slane %v3979_v36, 5 }
 0x424   : > { %4865 = vrot.lane.b32.xlu1 %v9617_v33, %s6071_s10  ;;  %v4345_v15 = vshll.u32 %v3979_v36, 16  ;;  %v4280_v30 = vrot.slane %v4278_v20, 4  ;;  %v4283_v4 = vrot.slane %v4281_v2, 5  ;;  %v4522_v34 = vsel %vm6462_vm5, %v5829_v23, %v4521_v10 }
 0x425   : > { %v9699_v35 = vpop.permute.xlu2 %4962  ;;  %v9743_v55 = vpack.c.b16 %v4676_v43, %v4675_v58  ;;  %v4757_v16 = vunpack.c.l.b16 %v4522_v34  ;;  %v3980_v43 = vld [vmem:[#allocation2 + $0xb4] sm:$0xf]  ;;  %v4363_v10 = vshrl.u32 %v9770_v7, 16 }
 0x426   : > { %v4786_v54 = vpop.permute.xlu1 %4785  ;;  %v4284_v61 = vor.u32 %v4283_v4, %v4280_v30  ;;  %v4350_v20 = vshrl.u32 %v3980_v43, 16  ;;  %v4353_v2 = vshll.u32 %v3980_v43, 16  ;;  %v9803_v30 = vld [vmem:[#allocation2 + $0xb4] sm:$0xff] }
 0x427   : > { %v5076_v6 = vsel %vm1439_vm7, %v5033_v13, %v4786_v54  ;;  %v3973_v54 = vld [vmem:[#allocation2 + $0x98] sm:$0x1] }
 0x428   : > { %4717 = vrot.lane.b32.xlu0 %v9617_v33, %s6068_s30  ;;  %v4755_v33 = vunpack.c.l.b16 %v4515_v48  ;;  %v5108_v40 = vsel %vm10702_vm3, %v5076_v6, %v9595_v1  ;;  %v9733_v1 = vrot.slane %v4335_v53, 5  ;;  %v4332_v48 = vor.u32 %v4331_v21, %v4328_v44 }
 0x429   : > { %v5140_v19 = vsel %vm1505_vm9, %v5108_v40, %v4856_v51  ;;  %v4347_v6 = vrot.slane %v4345_v15, 5  ;;  %v4507_v40 = vrot.slane %v9717_v28, 5  ;;  %v4285_v24 = vrot.slane %v4284_v61, 4 }
 0x42a   : > { %v4961_v14 = vpop.permute.xlu0 %4960  ;;  %v9728_v18 = vpack.c.b16 %v4756_v59, %v4755_v33  ;;  %v4342_v51 = vor.u32 %v4341_v60, %v9733_v1  ;;  %v4297_v59 = vshll.u32 %v3973_v54, 16  ;;  %v4333_v41 = vrot.slane %v4332_v48, 4  ;;  %v6055_v60 = vld [vmem:[#allocation2 + $0x3c] sm:$0xff] }
 0x42b   : > { %4797 = vrot.lane.b32.xlu2 %v9630_v27, %s6069_s8  ;;  %v4287_v27 = vshll.u32 %v9717_v28, 16  ;;  %v4509_v36 = vrot.slane %v4507_v40, 4  ;;  %v4510_v21 = vrot.slane %v3973_v54, 5  ;;  %v5827_v15 = vrot.slane %v9735_v63, 9 }
 0x42c   : > { %4970 = vrot.lane.b32.xlu1 %v9711_v25, %s6074_s13  ;;  %v4343_v42 = vrot.slane %v4342_v51, 4  ;;  %v4299_v31 = vrot.slane %v4297_v59, 5  ;;  %v4338_v28 = vsel %vm6175_vm2, %v4333_v41, %v9733_v1  ;;  %v5830_v61 = vrot.slane %v3980_v43, 9 }
 0x42d   : > { %v9731_v62 = vpop.permute.xlu2 %4789  ;;  %v9750_v57 = vrot.slane %v4287_v27, 5  ;;  %v5036_v27 = vsel %vm10712_vm12, %v6055_v60, %v9645_v32  ;;  %v4677_v1 = vunpack.c.l.b16 %v4338_v28  ;;  %v9831_v60 = vld [vmem:[#allocation2 + $0x90] sm:$0xff]  ;;  %vm10717_vm12 = vmmov %vm10701_vm1 }
 0x42e   : > { %v4891_v3 = vpop.permute.xlu1 %4890  ;;  %v4348_v45 = vsel %vm6175_vm2, %v4343_v42, %v4347_v6  ;;  %v4355_v42 = vrot.slane %v4353_v2, 5 }
 0x42f   : > { %v5172_v47 = vsel %vm10703_vm10, %v5140_v19, %v4891_v3  ;;  %v4294_v13 = vor.u32 %v4293_v5, %v9750_v57  ;;  %v4359_v3 = vshll.u32 %v9770_v7, 16  ;;  %v4678_v58 = vunpack.c.l.b16 %v4348_v45 }
 0x430   : > { %4803 = vrot.lane.b32.xlu0 %v9728_v18, %s6069_s8  ;;  %v5204_v8 = vsel %vm1571_vm11, %v5172_v47, %v9628_v22  ;;  %v4525_v22 = vsel %vm6462_vm5, %v4523_v56, %v4524_v37  ;;  %v4365_v5 = vrot.slane %v4363_v10, 4  ;;  %v4290_v37 = vsel %vm6175_vm2, %v4285_v24, %v9750_v57 }
 0x431   : > { %v5236_v9 = vsel %vm10704_vm0, %v5204_v8, %v4961_v14  ;;  %v4758_v14 = vunpack.c.l.b16 %v4525_v22  ;;  %v4295_v33 = vrot.slane %v4294_v13, 4  ;;  %v4361_v51 = vrot.slane %v4359_v3, 5 }
 0x432   : > { %v4788_v46 = vpop.permute.xlu0 %4787  ;;  %v4528_v8 = vrot.slane %v9770_v7, 5  ;;  %v9801_v23 = vpack.c.b16 %v4678_v58, %v4677_v1  ;;  %v4352_v22 = vrot.slane %v4350_v20, 4  ;;  %v4673_v63 = vunpack.c.l.b16 %v4290_v37 }
 0x433   : > { %4838 = vrot.lane.b32.xlu2 %v9747_v29, %s6070_s9  ;;  %v9783_v19 = vpack.c.b16 %v4758_v14, %v4757_v16  ;;  %v4300_v32 = vsel %vm6175_vm2, %v4295_v33, %v4299_v31  ;;  %v5078_v56 = vsel %vm1439_vm7, %v5036_v27, %v4788_v46  ;;  %v4366_v13 = vor.u32 %v4365_v5, %v4361_v51  ;;  %v6056_v5 = vld [vmem:[#allocation2 + $0x48] sm:$0xff] }
 0x434   : > { %4723 = vrot.lane.b32.xlu1 %v9743_v55, %s6068_s30  ;;  %v4674_v4 = vunpack.c.l.b16 %v4300_v32  ;;  %v4508_v57 = vsel %vm6462_vm5, %v5827_v15, %v4507_v40  ;;  %v4356_v33 = vor.u32 %v4355_v42, %v4352_v22  ;;  %v4529_v43 = vsel %vm6462_vm5, %v5830_v61, %v4528_v8 }
 0x435   : > { %v9759_v39 = vpop.permute.xlu2 %4894  ;;  %v4367_v16 = vrot.slane %v4366_v13, 4  ;;  %v4759_v24 = vunpack.c.l.b16 %v4529_v43  ;;  %v6057_v43 = vld [vmem:[#allocation2 + $0x54] sm:$0xff] }
 0x436   : > { %v4996_v38 = vpop.permute.xlu1 %4995  ;;  %v4357_v58 = vrot.slane %v4356_v33, 4 }
 0x437   : > { %v5268_v52 = vsel %vm1637_vm14, %v5236_v9, %v4996_v38  ;;  %v4511_v9 = vsel %vm6462_vm5, %v4509_v36, %v4510_v21  ;;  %v3982_v38 = vld [vmem:[#allocation2 + $0xbc] sm:$0x1] }
 0x438   : > { %5917 = vmatmul.msk.bf16.gmra.mxu2 %vm10711_vm6, %v5268_v52  ;;  %4867 = vrot.lane.b32.xlu0 %v9711_v25, %s6071_s10  ;;  %v4530_v52 = vrot.slane %v4528_v8, 4  ;;  %v4369_v48 = vshll.u32 %v3982_v38, 16  ;;  %v4531_v34 = vrot.slane %v3982_v38, 5  ;;  %v4754_v14 = vunpack.c.l.b16 %v4511_v9  ;;  %v9868_v38 = vld [vmem:[#allocation2 + $0xc0] sm:$0xf]  ;;  %vm10716_vm6 = vmmov %vm10710_vm4 }
 0x43a   : > { %v4893_v53 = vpop.permute.xlu0 %4892  ;;  %v4532_v41 = vsel %vm6462_vm5, %v4530_v52, %v4531_v34  ;;  %v4371_v10 = vrot.slane %v4369_v48, 5  ;;  %v9890_v34 = vld [vmem:[%s10199_s6] ss:$0 sm:$0xff] }
 0x43b   : > { %4902 = vrot.lane.b32.xlu2 %v9687_v11, %s6072_s11  ;;  %v4760_v28 = vunpack.c.l.b16 %v4532_v41 }
 0x43c   : > { %4832 = vrot.lane.b32.xlu1 %v9677_v12, %s6070_s9 }
 0x43d   : > { %v9788_v47 = vpop.permute.xlu2 %4999  ;;  %v9845_v2 = vpack.c.b16 %v4760_v28, %v4759_v24  ;;  %v9911_v24 = vld [vmem:[#allocation2 + $0x9c] sm:$0xff] }
 0x43e   : > { %v4823_v0 = vpop.permute.xlu1 %4822 }
 0x43f   : > { %v5110_v44 = vsel %vm10713_vm8, %v5078_v56, %v4823_v0  ;;  %v4362_v0 = vsel %vm6175_vm2, %v4357_v58, %v4361_v51  ;;  %vm10718_vm8 = vmmov %vm10701_vm1 }
 0x440   : > { %4908 = vrot.lane.b32.xlu0 %v9783_v19, %s6072_s11  ;;  %v5142_v54 = vsel %vm1505_vm9, %v5110_v44, %v9675_v17  ;;  %v9818_v17 = vpack.c.b16 %v4674_v4, %v4673_v63  ;;  %v4679_v56 = vunpack.c.l.b16 %v4362_v0  ;;  %v9864_v4 = vld [vmem:[#allocation2 + $0xc4] sm:$0xf]  ;;  %v4537_v63 = vshll.u32 %v9868_v38, 16 }
 0x441   : > { %v5174_v6 = vsel %vm10714_vm13, %v5142_v54, %v4893_v53  ;;  %v4753_v53 = vunpack.c.l.b16 %v4508_v57  ;;  %v4543_v22 = vshll.u32 %v9864_v4, 16  ;;  %v4547_v54 = vshrl.u32 %v9864_v4, 16  ;;  %vm10719_vm13 = vmmov %vm10702_vm3 }
 0x442   : > { %v4998_v46 = vpop.permute.xlu0 %4997  ;;  %v4539_v61 = vrot.slane %v4537_v63, 5 }
 0x443   : > { %4943 = vrot.lane.b32.xlu2 %v9803_v30, %s6073_s12  ;;  %v9833_v31 = vpack.c.b16 %v4754_v14, %v4753_v53  ;;  %v4545_v57 = vrot.slane %v4543_v22, 5  ;;  %v4549_v48 = vrot.slane %v4547_v54, 4 }
 0x444   : > { %4873 = vrot.lane.b32.xlu1 %v9801_v23, %s6071_s10 }
 0x445   : > { %v9816_v7 = vpop.permute.xlu2 %4826 }
 0x446   : > { %v4928_v59 = vpop.permute.xlu1 %4927 }
 0x447   : > { %v5206_v45 = vsel %vm1571_vm11, %v5174_v6, %v4928_v59  ;;  %v3985_v59 = vld [vmem:[#allocation2 + $0xc8] sm:$0x1] }
 0x448   : > { %v5238_v40 = vsel %vm10715_vm15, %v5206_v45, %v9699_v35  ;;  %4972 = vrot.lane.b32.xlu0 %v9818_v17, %s6074_s13  ;;  %v4372_v35 = vsel %vm6175_vm2, %v4367_v16, %v4371_v10  ;;  %v4550_v45 = vor.u32 %v4549_v48, %v4545_v57  ;;  %v4553_v16 = vshll.u32 %v3985_v59, 16  ;;  %vm10720_vm15 = vmmov %vm10703_vm10 }
 0x449   : > { %v5270_v3 = vsel %vm1637_vm14, %v5238_v40, %v4998_v46  ;;  %v4680_v20 = vunpack.c.l.b16 %v4372_v35 }
 0x44a   : > { %5918 = vmatmul.msk.bf16.gmra.mxu2 %vm10710_vm4, %v5270_v3  ;;  %v4825_v27 = vpop.permute.xlu0 %4824  ;;  %v4551_v10 = vrot.slane %v4550_v45, 4  ;;  %v4555_v58 = vrot.slane %v4553_v16, 5  ;;  %vm10721_vm4 = vmmov %vm10701_vm1 }
 0x44b   : > { %5007 = vrot.lane.b32.xlu2 %v9833_v31, %s6075_s14  ;;  %v9850_v44 = vpack.c.b16 %v4680_v20, %v4679_v56 }
 0x44c   : > { %4937 = vrot.lane.b32.xlu1 %v9831_v60, %s6073_s12 }
 0x44d   : > { %v9843_v36 = vpop.permute.xlu2 %4931 }
 0x44e   : > { %v4710_v32 = vpop.permute.xlu1 %4709 }
 0x44f   : > { %v5039_v8 = vsel %vm10701_vm1, %v6056_v5, %v4710_v32  ;;  %v4556_v32 = vsel %vm6175_vm2, %v4551_v10, %v4555_v58  ;;  %vm10722_vm1 = vmmov %vm10704_vm0 }
 0x450   : > { %5013 = vrot.lane.b32.xlu0 %v9845_v2, %s6075_s14  ;;  %v5080_v21 = vsel %vm1439_vm7, %v5039_v8, %v9731_v62 }
 0x451   : > { %v5112_v15 = vsel %vm10702_vm3, %v5080_v21, %v4825_v27  ;;  %vm10723_vm3 = vmmov %vm10716_vm6 }
 0x452   : > { %v4930_v1 = vpop.permute.xlu0 %4929 }
 0x453   : > { %4725 = vrot.lane.b32.xlu2 %v9801_v23, %s6068_s30 }
 0x454   : > { %4978 = vrot.lane.b32.xlu1 %v9850_v44, %s6074_s13 }
 0x455   : > { %v9858_v37 = vpop.permute.xlu2 %4713 }
 0x456   : > { %v4860_v51 = vpop.permute.xlu1 %4859 }
 0x457   : > { %v5144_v46 = vsel %vm1505_vm9, %v5112_v15, %v4860_v51  ;;  %v9926_v51 = vld [vmem:[#allocation2 + $0xc0] sm:$0xff]  ;;  %v4845_v15 = vunpack.c.l.b16 %v4556_v32 }
 0x458   : > { %4799 = vrot.lane.b32.xlu0 %v9687_v11, %s6069_s8  ;;  %v5176_v62 = vsel %vm10703_vm10, %v5144_v46, %v9759_v39  ;;  %v4534_v39 = vshrl.u32 %v9868_v38, 16  ;;  %vm10724_vm10 = vmmov %vm10721_vm4 }
 0x459   : > { %v5208_v11 = vsel %vm1571_vm11, %v5176_v62, %v4930_v1 }
 0x45a   : > { %v4712_v9 = vpop.permute.xlu0 %4711  ;;  %v4536_v14 = vrot.slane %v4534_v39, 4 }
 0x45b   : > { %4834 = vrot.lane.b32.xlu2 %v9831_v60, %s6070_s9  ;;  %v5042_v27 = vsel %vm10717_vm12, %v6057_v43, %v4712_v9  ;;  %vm10727_vm12 = vmmov %vm10720_vm15 }
 0x45c   : > { %4719 = vrot.lane.b32.xlu1 %v9711_v25, %s6068_s30  ;;  %v4540_v3 = vor.u32 %v4539_v61, %v4536_v14 }
 0x45d   : > { %v9877_v13 = vpop.permute.xlu2 %4863 }
 0x45e   : > { %v4965_v42 = vpop.permute.xlu1 %4964  ;;  %v4541_v0 = vrot.slane %v4540_v3, 4 }
 0x45f   : > { %v5240_v52 = vsel %vm10704_vm0, %v5208_v11, %v4965_v42  ;;  %v4562_v42 = vrot.slane %v9864_v4, 5  ;;  %vm10725_vm0 = vmmov %vm10719_vm13 }
 0x460   : > { %v5272_v25 = vsel %vm1637_vm14, %v5240_v52, %v9788_v47  ;;  %4840 = vrot.lane.b32.xlu0 %v9803_v30, %s6070_s9  ;;  %v4546_v8 = vsel %vm6175_vm2, %v4541_v0, %v4545_v57 }
 0x461   : > { %5919 = vmatmul.msk.bf16.gmra.mxu2 %vm10716_vm6, %v5272_v25  ;;  %v4844_v62 = vunpack.c.l.b16 %v4546_v8  ;;  %v4564_v48 = vrot.slane %v4562_v42, 4  ;;  %v5831_v25 = vrot.slane %v9868_v38, 9  ;;  %vm10726_vm6 = vmmov %vm10721_vm4  ;;  %v9992_v8 = vld [vmem:[#allocation2 + $0xd4] sm:$0x1] }
 0x462   : > { %v4862_v6 = vpop.permute.xlu0 %4861 }
 0x463   : > { %4875 = vrot.lane.b32.xlu2 %v9850_v44, %s6071_s10  ;;  %v9934_v54 = vpack.c.b16 %v4845_v15, %v4844_v62  ;;  %v4563_v45 = vsel %vm6462_vm5, %v5831_v25, %v4562_v42  ;;  %v6059_v25 = vld [vmem:[#allocation2 + $0x6c] sm:$0xff] }
 0x464   : > { %4805 = vrot.lane.b32.xlu1 %v9783_v19, %s6069_s8  ;;  %v5359_v47 = vpop.f32.mrf.mxu2  ;;  %v4879_v10 = vunpack.c.l.b16 %v4563_v45 }
 0x465   : > { %v5360_v33 = vadd.f32 %v9890_v34, %v5359_v47  ;;  %v9903_v40 = vpop.permute.xlu2 %4968 }
 0x466   : > { %v4792_v41 = vpop.permute.xlu1 %4791 }
 0x467   : > { %v5439_v53 = vmax.f32 %v5360_v33, 0.0  ;;  %v5082_v28 = vsel %vm1439_vm7, %v5042_v27, %v4792_v41 }
 0x468   : > { %4904 = vrot.lane.b32.xlu0 %v9833_v31, %s6072_s11  ;;  %v5114_v20 = vsel %vm10719_vm13, %v5082_v28, %v9816_v7  ;;  %vm10729_vm13 = vmmov %vm10721_vm4 }
 0x469   : > { %5471 = vst.msk [vmem:[%s9901_s28] sm:$0xff] %vm10718_vm8, %v5439_v53  ;;  %v5146_v7 = vsel %vm1505_vm9, %v5114_v20, %v4862_v6  ;;  %vm10728_vm8 = vmmov %vm10722_vm1 }
 0x46a   : > { %v4967_v35 = vpop.permute.xlu0 %4966 }
 0x46b   : > { %4939 = vrot.lane.b32.xlu2 %v9911_v24, %s6073_s12 }
 0x46c   : > { %4869 = vrot.lane.b32.xlu1 %v9818_v17, %s6071_s10  ;;  %v5361_v56 = vpop.f32.mrf.mxu2 }
 0x46d   : > { %v5362_v5 = vadd.f32 %v9890_v34, %v5361_v56  ;;  %v9924_v21 = vpop.permute.xlu2 %4795  ;;  %v9989_v56 = vld [vmem:[#allocation2 + $0xd0] sm:$0xf] }
 0x46e   : > { %v4897_v1 = vpop.permute.xlu1 %4896  ;;  %v4577_v15 = vshll.u32 %v9989_v56, 16 }
 0x46f   : > { %v5440_v46 = vmax.f32 %v5362_v5, 0.0  ;;  %v5178_v9 = vsel %vm10720_vm15, %v5146_v7, %v4897_v1  ;;  %vm10730_vm15 = vmmov %vm10723_vm3  ;;  %v4581_v7 = vshrl.u32 %v9989_v56, 16 }
 0x470   : > { %4945 = vrot.lane.b32.xlu0 %v9926_v51, %s6073_s12  ;;  %v5210_v11 = vsel %vm1571_vm11, %v5178_v9, %v9843_v36  ;;  %v4565_v36 = vrot.slane %v3985_v59, 5  ;;  %v6058_v59 = vld [vmem:[#allocation2 + $0x60] sm:$0xff] }
 0x471   : > { %5472 = vst.msk [vmem:[%s9901_s28 + $0x8] sm:$0xff] %vm10721_vm4, %v5440_v46  ;;  %v5242_v39 = vsel %vm10722_vm1, %v5210_v11, %v4967_v35  ;;  %v5045_v38 = vsel %vm10724_vm10, %v6058_v59, %v9858_v37  ;;  %v4587_v46 = vshll.u32 %v9992_v8, 16  ;;  %v4583_v11 = vrot.slane %v4581_v7, 4  ;;  %vm10731_vm1 = vmmov %vm10721_vm4 }
 0x472   : > { %v4794_v22 = vpop.permute.xlu0 %4793  ;;  %v4566_v6 = vsel %vm6462_vm5, %v4564_v48, %v4565_v36  ;;  %vm10733_vm10 = vmmov %vm10731_vm1 }
 0x473   : > { %4980 = vrot.lane.b32.xlu2 %v9934_v54, %s6074_s13  ;;  %v4880_v16 = vunpack.c.l.b16 %v4566_v6  ;;  %v5084_v41 = vsel %vm1439_vm7, %v5045_v38, %v4794_v22  ;;  %v4579_v22 = vrot.slane %v4577_v15, 5 }
 0x474   : > { %4910 = vrot.lane.b32.xlu1 %v9845_v2, %s6072_s11 }
 0x475   : > { %v9944_v63 = vpop.permute.xlu2 %4900 }
 0x476   : > { %v5002_v52 = vpop.permute.xlu1 %5001 }
 0x477   : > { %v5274_v57 = vsel %vm1637_vm14, %v5242_v39, %v5002_v52 }
 0x478   : > { %5920 = vmatmul.msk.bf16.gmra.mxu2 %vm10723_vm3, %v5274_v57  ;;  %5009 = vrot.lane.b32.xlu0 %v9728_v18, %s6075_s14  ;;  %v4584_v57 = vor.u32 %v4583_v11, %v4579_v22  ;;  %vm10732_vm3 = vmmov %vm10725_vm0 }
 0x47a   : > { %v4899_v4 = vpop.permute.xlu0 %4898 }
 0x47b   : > { %4721 = vrot.lane.b32.xlu2 %v9818_v17, %s6068_s30  ;;  %v4881_v17 = vpack.c.b16 %v4880_v16, %v4879_v10 }
 0x47c   : > { %v5364_v14 = vpop.f32.mrf.mxu2  ;;  %4974 = vrot.lane.b32.xlu1 %v9743_v55, %s6074_s13 }
 0x47d   : > { %v5365_v61 = vadd.f32 %v9890_v34, %v5364_v14  ;;  %v9962_v33 = vpop.permute.xlu2 %5005  ;;  %v4585_v14 = vrot.slane %v4584_v57, 4 }
 0x47e   : > { %v4829_v47 = vpop.permute.xlu1 %4828 }
 0x47f   : > { %v5441_v53 = vmax.f32 %v5365_v61, 0.0  ;;  %v5116_v3 = vsel %vm10725_vm0, %v5084_v41, %v4829_v47  ;;  %vm10735_vm0 = vmmov %vm10728_vm8 }
 0x480   : > { %4727 = vrot.lane.b32.xlu0 %v9850_v44, %s6068_s30  ;;  %v5148_v37 = vsel %vm1505_vm9, %v5116_v3, %v9877_v13  ;;  %v9987_v13 = vld [vmem:[#allocation2 + $0xcc] sm:$0xf] }
 0x481   : > { %5473 = vst.msk [vmem:[%s9901_s28 + $0x10] sm:$0xff] %vm10726_vm6, %v5441_v53  ;;  %v5180_v58 = vsel %vm10727_vm12, %v5148_v37, %v4899_v4  ;;  %v4568_v1 = vshrl.u32 %v9987_v13, 16  ;;  %vm10736_vm6 = vmmov %vm10730_vm15 }
 0x482   : > { %v5004_v43 = vpop.permute.xlu0 %5003 }
 0x483   : > { %4807 = vrot.lane.b32.xlu2 %v9845_v2, %s6069_s8  ;;  %v4570_v9 = vrot.slane %v4568_v1, 4 }
 0x484   : > { %v5366_v27 = vpop.f32.mrf.mxu2  ;;  %5015 = vrot.lane.b32.xlu1 %v4881_v17, %s6075_s14 }
 0x485   : > { %v5367_v28 = vadd.f32 %v9890_v34, %v5366_v27  ;;  %v9977_v44 = vpop.permute.xlu2 %4797 }
 0x486   : > { %v4934_v35 = vpop.permute.xlu1 %4933 }
 0x487   : > { %v5442_v0 = vmax.f32 %v5367_v28, 0.0  ;;  %v5212_v32 = vsel %vm1571_vm11, %v5180_v58, %v4934_v35 }
 0x488   : > { %v5244_v20 = vsel %vm10728_vm8, %v5212_v32, %v9903_v40  ;;  %4836 = vrot.lane.b32.xlu0 %v9911_v24, %s6070_s9  ;;  %v4571_v40 = vshll.u32 %v9987_v13, 16  ;;  %vm10739_vm8 = vmmov %vm10731_vm1 }
 0x489   : > { %5474 = vst.msk [vmem:[%s9901_s28 + $0x18] sm:$0xff] %vm10729_vm13, %v5442_v0  ;;  %v5276_v2 = vsel %vm1637_vm14, %v5244_v20, %v5004_v43  ;;  %v5991_v0 = vld [vmem:[#allocation2 + $0xcc] sm:$0xff]  ;;  %vm10740_vm13 = vmmov %vm10732_vm3 }
 0x48a   : > { %5921 = vmatmul.msk.bf16.gmra.mxu2 %vm10730_vm15, %v5276_v2  ;;  %v4831_v5 = vpop.permute.xlu0 %4830  ;;  %v4573_v62 = vrot.slane %v4571_v40, 5  ;;  %vm10741_vm15 = vmmov %vm10731_vm1 }
 0x48b   : > { %4871 = vrot.lane.b32.xlu2 %v9743_v55, %s6071_s10 }
 0x48c   : > { %4801 = vrot.lane.b32.xlu1 %v9833_v31, %s6069_s8  ;;  %v4574_v52 = vor.u32 %v4573_v62, %v4570_v9  ;;  %v4589_v31 = vrot.slane %v4587_v46, 5 }
 0x48d   : > { %v5369_v42 = vpop.f32.mrf.mxu2  ;;  %v10004_v36 = vpop.permute.xlu2 %4838 }
 0x48e   : > { %v4716_v39 = vpop.permute.xlu1 %4715  ;;  %v5370_v48 = vadd.f32 %v9890_v34, %v5369_v42  ;;  %v4575_v6 = vrot.slane %v4574_v52, 4  ;;  %v4590_v59 = vsel %vm6175_vm2, %v4585_v14, %v4589_v31 }
 0x48f   : > { %v5048_v55 = vsel %vm10721_vm4, %v6059_v25, %v4716_v39  ;;  %v4950_v3 = vunpack.c.l.b16 %v4590_v59 }
 0x490   : > { %4877 = vrot.lane.b32.xlu0 %v9934_v54, %s6071_s10  ;;  %v5443_v4 = vmax.f32 %v5370_v48, 0.0  ;;  %v5086_v45 = vsel %vm1439_vm7, %v5048_v55, %v9924_v21  ;;  %v4580_v54 = vsel %vm6175_vm2, %v4575_v6, %v4579_v22  ;;  %vm10734_vm2 = vmmov %vm10727_vm12 }
 0x491   : > { %v5118_v16 = vsel %vm10732_vm3, %v5086_v45, %v4831_v5  ;;  %vm10737_vm12 = vmmov %vm10731_vm1 }
 0x492   : > { %v4936_v61 = vpop.permute.xlu0 %4935  ;;  %5475 = vst.msk [vmem:[%s9901_s28 + $0x20] sm:$0xff] %vm10731_vm1, %v5443_v4  ;;  %vm10742_vm4 = vmmov %vm10734_vm2 }
 0x493   : > { %4912 = vrot.lane.b32.xlu2 %v4881_v17, %s6072_s11 }
 0x494   : > { %4842 = vrot.lane.b32.xlu1 %v9926_v51, %s6070_s9  ;;  %v4949_v51 = vunpack.c.l.b16 %v4580_v54 }
 0x495   : > { %v5371_v38 = vpop.f32.mrf.mxu2  ;;  %v4903_v53 = vpop.permute.xlu2 %4902 }
 0x496   : > { %v4866_v47 = vpop.permute.xlu1 %4865  ;;  %v5372_v41 = vadd.f32 %v9890_v34, %v5371_v38  ;;  %v4951_v43 = vpack.c.b16 %v4950_v3, %v4949_v51 }
 0x497   : > { %v5150_v21 = vsel %vm1505_vm9, %v5118_v16, %v4866_v47 }
 0x498   : > { %4941 = vrot.lane.b32.xlu0 %v9747_v29, %s6073_s12  ;;  %v5444_v10 = vmax.f32 %v5372_v41, 0.0  ;;  %v5182_v26 = vsel %vm10734_vm2, %v5150_v21, %v9944_v63  ;;  %v5832_v63 = vrot.slane %v9987_v13, 9  ;;  %vm10746_vm2 = vmmov %vm10736_vm6 }
 0x499   : > { %v5214_v37 = vsel %vm1571_vm11, %v5182_v26, %v4936_v61 }
 0x49a   : > { %v4718_v17 = vpop.permute.xlu0 %4717  ;;  %5476 = vst.msk [vmem:[%s9901_s28 + $0x28] sm:$0xff] %vm10733_vm10, %v5444_v10  ;;  %vm10745_vm10 = vmmov %vm10735_vm0 }
 0x49b   : > { %4976 = vrot.lane.b32.xlu2 %v9801_v23, %s6074_s13  ;;  %v4599_v23 = vrot.slane %v9992_v8, 5  ;;  %v5051_v42 = vsel %vm10739_vm8, %v9637_v49, %v4718_v17 }
 0x49c   : > { %4906 = vrot.lane.b32.xlu1 %v9728_v18, %s6072_s11  ;;  %v4596_v18 = vrot.slane %v9989_v56, 5  ;;  %v5088_v57 = vsel %vm1439_vm7, %v5051_v42, %v9977_v44 }
 0x49d   : > { %v4944_v35 = vpop.permute.xlu2 %4943 }
 0x49e   : > { %v4971_v27 = vpop.permute.xlu1 %4970  ;;  %v4597_v20 = vsel %vm6462_vm5, %v5832_v63, %v4596_v18  ;;  %v4598_v2 = vrot.slane %v4596_v18, 4 }
 0x49f   : > { %v5246_v28 = vsel %vm10735_vm0, %v5214_v37, %v4971_v27  ;;  %v4984_v5 = vunpack.c.l.b16 %v4597_v20  ;;  %vm10747_vm0 = vmmov %vm10742_vm4 }
 0x4a0   : > { %v5278_v58 = vsel %vm1637_vm14, %v5246_v28, %v9962_v33  ;;  %4982 = vrot.lane.b32.xlu0 %v4951_v43, %s6074_s13  ;;  %v4600_v13 = vsel %vm6462_vm5, %v4598_v2, %v4599_v23  ;;  %vm10738_vm5 = vmmov %vm10731_vm1 }
 0x4a1   : > { %5922 = vmatmul.msk.bf16.gmra.mxu2 %vm10736_vm6, %v5278_v58  ;;  %v4985_v56 = vunpack.c.l.b16 %v4600_v13  ;;  %vm10743_vm1 = vmmov %vm10732_vm3 }
 0x4a2   : > { %v4804_v32 = vpop.permute.xlu0 %4803  ;;  %vm10744_vm3 = vmmov %vm10738_vm5 }
 0x4a3   : > { %v4986_v15 = vpack.c.b16 %v4985_v56, %v4984_v5  ;;  %vm10748_vm6 = vmmov %vm10745_vm10 }
 0x4a4   : > { %4947 = vrot.lane.b32.xlu1 %v5991_v0, %s6073_s12  ;;  %v5374_v33 = vpop.f32.mrf.mxu2  ;;  %vm10751_vm8 = vmmov %vm10744_vm3 }
 0x4a5   : > { %v5375_v1 = vadd.f32 %v9890_v34, %v5374_v33  ;;  %5017 = vrot.lane.b32.xlu2 %v4986_v15, %s6075_s14  ;;  %v5008_v7 = vpop.permute.xlu2 %5007 }
 0x4a6   : > { %v4724_v40 = vpop.permute.xlu1 %4723 }
 0x4a7   : > { %v5445_v8 = vmax.f32 %v5375_v1, 0.0 }
 0x4a9   : > { %5477 = vst.msk [vmem:[%s9901_s28 + $0x30] sm:$0xff] %vm10737_vm12, %v5445_v8  ;;  %vm10749_vm12 = vmmov %vm10744_vm3 }
 0x4aa   : > { %v4868_v46 = vpop.permute.xlu0 %4867 }
 0x4ac   : > { %5011 = vrot.lane.b32.xlu1 %v9783_v19, %s6075_s14  ;;  %v5376_v9 = vpop.f32.mrf.mxu2  ;;  %v5060_v19 = vsel %vm10741_vm15, %v9911_v24, %v4724_v40  ;;  %vm10753_vm15 = vmmov %vm10744_vm3 }
 0x4ad   : > { %v5377_v50 = vadd.f32 %v9890_v34, %v5376_v9  ;;  %v4726_v39 = vpop.permute.xlu2 %4725  ;;  %v5094_v55 = vsel %vm1439_vm7, %v5060_v19, %v4804_v32 }
 0x4ae   : > { %v4833_v62 = vpop.permute.xlu1 %4832  ;;  %v5126_v44 = vsel %vm10743_vm1, %v5094_v55, %v10004_v36 }
 0x4af   : > { %v5446_v22 = vmax.f32 %v5377_v50, 0.0  ;;  %v5120_v48 = vsel %vm10740_vm13, %v5088_v57, %v4833_v62  ;;  %vm10752_vm13 = vmmov %vm10744_vm3 }
 0x4b0   : > { %v5152_v4 = vsel %vm1505_vm9, %v5120_v48, %v4868_v46 }
 0x4b1   : > { %5478 = vst.msk [vmem:[%s9901_s28 + $0x38] sm:$0xff] %vm10738_vm5, %v5446_v22  ;;  %v5184_v45 = vsel %vm10742_vm4, %v5152_v4, %v4903_v53  ;;  %vm10750_vm5 = vmmov %vm10746_vm2 }
 0x4b2   : > { %v4909_v11 = vpop.permute.xlu0 %4908  ;;  %vm10754_vm4 = vmmov %vm10743_vm1 }
 0x4b3   : > { %vm10755_vm1 = vmmov %vm10744_vm3 }
 0x4b4   : > { %v5063_v46 = vsel %vm10755_vm1, %v9747_v29, %v4726_v39 }
 0x4b5   : > { %v4835_v49 = vpop.permute.xlu2 %4834 }
 0x4b6   : > { %v4874_v52 = vpop.permute.xlu1 %4873 }
 0x4b7   : > { %v5158_v24 = vsel %vm1505_vm9, %v5126_v44, %v4874_v52 }
 0x4b8   : > { %v5190_v16 = vsel %vm10747_vm0, %v5158_v24, %v4909_v11 }
 0x4b9   : > { %v5222_v51 = vsel %vm1571_vm11, %v5190_v16, %v4944_v35 }
 0x4ba   : > { %v4973_v31 = vpop.permute.xlu0 %4972 }
 0x4bb   : > { %v5379_v25 = vpop.f32.mrf.mxu2 }
 0x4bc   : > { %v5380_v6 = vadd.f32 %v9890_v34, %v5379_v25 }
 0x4bd   : > { %v4876_v10 = vpop.permute.xlu2 %4875 }
 0x4be   : > { %v5447_v14 = vmax.f32 %v5380_v6, 0.0  ;;  %v4938_v61 = vpop.permute.xlu1 %4937 }
 0x4bf   : > { %v5216_v54 = vsel %vm1571_vm11, %v5184_v45, %v4938_v61 }
 0x4c0   : > { %5479 = vst.msk [vmem:[%s9901_s28 + $0x40] sm:$0xff] %vm10744_vm3, %v5447_v14  ;;  %v5248_v59 = vsel %vm10745_vm10, %v5216_v54, %v4973_v31  ;;  %vm10756_vm3 = vmmov %vm10755_vm1 }
 0x4c1   : > { %v5280_v38 = vsel %vm1637_vm14, %v5248_v59, %v5008_v7  ;;  %vm10757_vm10 = vmmov %vm10747_vm0 }
 0x4c2   : > { %5923 = vmatmul.msk.bf16.gmra.mxu2 %vm10746_vm2, %v5280_v38  ;;  %v5014_v47 = vpop.permute.xlu0 %5013  ;;  %vm10758_vm2 = vmmov %vm10754_vm4 }
 0x4c3   : > { %v5381_v41 = vpop.f32.mrf.mxu2  ;;  %vm10759_vm0 = vmmov %vm10748_vm6 }
 0x4c4   : > { %v5382_v36 = vadd.f32 %v9890_v34, %v5381_v41 }
 0x4c5   : > { %v4940_v58 = vpop.permute.xlu2 %4939 }
 0x4c6   : > { %v5448_v53 = vmax.f32 %v5382_v36, 0.0  ;;  %v4979_v21 = vpop.permute.xlu1 %4978 }
 0x4c7   : > { %v5254_v3 = vsel %vm10748_vm6, %v5222_v51, %v4979_v21  ;;  %vm10760_vm6 = vmmov %vm10757_vm10 }
 0x4c8   : > { %5480 = vst.msk [vmem:[%s9901_s28 + $0x48] sm:$0xff] %vm10749_vm12, %v5448_v53  ;;  %v5286_v17 = vsel %vm1637_vm14, %v5254_v3, %v5014_v47  ;;  %vm10761_vm12 = vmmov %vm10755_vm1 }
 0x4c9   : > { %5926 = vmatmul.msk.bf16.vlgmr.msra.gmra.mxu3 %vm10750_vm5, %v5286_v17 }
 0x4ca   : > { %v4800_v26 = vpop.permute.xlu0 %4799 }
 0x4cd   : > { %v5384_v43 = vpop.f32.mrf.mxu2  ;;  %v4981_v20 = vpop.permute.xlu2 %4980 }
 0x4ce   : > { %v5385_v37 = vadd.f32 %v9890_v34, %v5384_v43  ;;  %v4720_v27 = vpop.permute.xlu1 %4719 }
 0x4cf   : > { %v5054_v5 = vsel %vm10753_vm15, %v9677_v12, %v4720_v27  ;;  %vm10764_vm15 = vmmov %vm10755_vm1 }
 0x4d0   : > { %v5449_v28 = vmax.f32 %v5385_v37, 0.0  ;;  %v5090_v13 = vsel %vm1439_vm7, %v5054_v5, %v4800_v26 }
 0x4d1   : > { %v5122_v15 = vsel %vm10754_vm4, %v5090_v13, %v4835_v49  ;;  %vm10765_vm4 = vmmov %vm10755_vm1 }
 0x4d2   : > { %5481 = vst.msk [vmem:[%s9901_s28 + $0x50] sm:$0xff] %vm10751_vm8, %v5449_v28  ;;  %v4841_v35 = vpop.permute.xlu0 %4840  ;;  %vm10762_vm8 = vmmov %vm10759_vm0 }
 0x4d5   : > { %v5386_v0 = vpop.f32.mrf.mxu2  ;;  %v4722_v40 = vpop.permute.xlu2 %4721 }
 0x4d6   : > { %v5387_v63 = vadd.f32 %v9890_v34, %v5386_v0  ;;  %v4806_v18 = vpop.permute.xlu1 %4805 }
 0x4d7   : > { %v5096_v50 = vsel %vm1439_vm7, %v5063_v46, %v4806_v18 }
 0x4d8   : > { %v5450_v23 = vmax.f32 %v5387_v63, 0.0  ;;  %v5128_v22 = vsel %vm10758_vm2, %v5096_v50, %v4841_v35 }
 0x4d9   : > { %v5160_v29 = vsel %vm1505_vm9, %v5128_v22, %v4876_v10 }
 0x4da   : > { %5482 = vst.msk [vmem:[%s9901_s28 + $0x58] sm:$0xff] %vm10752_vm13, %v5450_v23  ;;  %v4905_v32 = vpop.permute.xlu0 %4904  ;;  %vm10763_vm13 = vmmov %vm10750_vm5 }
 0x4dd   : > { %v4808_v19 = vpop.permute.xlu2 %4807 }
 0x4de   : > { %v4870_v2 = vpop.permute.xlu1 %4869 }
 0x4df   : > { %v5154_v9 = vsel %vm1505_vm9, %v5122_v15, %v4870_v2 }
 0x4e0   : > { %v5186_v62 = vsel %vm10757_vm10, %v5154_v9, %v4905_v32  ;;  %vm10767_vm10 = vmmov %vm10758_vm2 }
 0x4e1   : > { %v5218_v57 = vsel %vm1571_vm11, %v5186_v62, %v4940_v58  ;;  %vm10768_vm2 = vmmov %vm10755_vm1 }
 0x4e2   : > { %v4946_v33 = vpop.permute.xlu0 %4945 }
 0x4e4   : > { %v5389_v1 = vpop.f32.mrf.mxu2 }
 0x4e5   : > { %v5390_v56 = vadd.f32 %v9890_v34, %v5389_v1  ;;  %v4872_v61 = vpop.permute.xlu2 %4871 }
 0x4e6   : > { %v4911_v8 = vpop.permute.xlu1 %4910 }
 0x4e7   : > { %v5451_v7 = vmax.f32 %v5390_v56, 0.0  ;;  %v5192_v31 = vsel %vm10760_vm6, %v5160_v29, %v4911_v8 }
 0x4e8   : > { %v5224_v55 = vsel %vm1571_vm11, %v5192_v31, %v4946_v33 }
 0x4e9   : > { %5483 = vst.msk [vmem:[%s9901_s28 + $0x60] sm:$0xff] %vm10756_vm3, %v5451_v7  ;;  %v5256_v49 = vsel %vm10762_vm8, %v5224_v55, %v4981_v20  ;;  %vm10766_vm3 = vmmov %vm10755_vm1 }
 0x4ea   : > { %v5010_v12 = vpop.permute.xlu0 %5009  ;;  %v5057_v37 = vsel %vm10766_vm3, %v9831_v60, %v4722_v40  ;;  %vm10780_vm3 = vmmov %vm10755_vm1 }
 0x4ec   : > { %v5391_v11 = vpop.f32.mrf.mxu2 }
 0x4ed   : > { %v5392_v42 = vadd.f32 %v9890_v34, %v5391_v11  ;;  %v4913_v16 = vpop.permute.xlu2 %4912 }
 0x4ee   : > { %v4975_v52 = vpop.permute.xlu1 %4974 }
 0x4ef   : > { %v5452_v39 = vmax.f32 %v5392_v42, 0.0  ;;  %v5250_v48 = vsel %vm10759_vm0, %v5218_v57, %v4975_v52  ;;  %vm10769_vm0 = vmmov %vm10767_vm10 }
 0x4f0   : > { %v5282_v4 = vsel %vm1637_vm14, %v5250_v48, %v5010_v12 }
 0x4f1   : > { %5484 = vst.msk [vmem:[%s9901_s28 + $0x68] sm:$0xff] %vm10761_vm12, %v5452_v39  ;;  %5924 = vmatmul.msk.bf16.gmra.mxu2 %vm10750_vm5, %v5282_v4  ;;  %vm10771_vm12 = vmmov %vm10762_vm8 }
 0x4f2   : > { %v4728_v25 = vpop.permute.xlu0 %4727  ;;  %vm10772_vm5 = vmmov %vm10755_vm1 }
 0x4f3   : > { %v5066_v51 = vsel %vm10755_vm1, %v9803_v30, %v4728_v25  ;;  %vm10773_vm8 = vmmov %vm10763_vm13 }
 0x4f4   : > { %v5098_v43 = vsel %vm1439_vm7, %v5066_v51, %v4808_v19 }
 0x4f5   : > { %v4977_v10 = vpop.permute.xlu2 %4976 }
 0x4f6   : > { %v5016_v6 = vpop.permute.xlu1 %5015 }
 0x4f7   : > { %v5288_v14 = vsel %vm1637_vm14, %v5256_v49, %v5016_v6 }
 0x4f8   : > { %5927 = vmatmul.msk.bf16.gmra.mxu3 %vm10763_vm13, %v5288_v14  ;;  %vm10775_vm13 = vmmov %vm10773_vm8 }
 0x4fa   : > { %v4837_v45 = vpop.permute.xlu0 %4836 }
 0x4fb   : > { %v5394_v44 = vpop.f32.mrf.mxu2 }
 0x4fc   : > { %v5395_v54 = vadd.f32 %v9890_v34, %v5394_v44 }
 0x4fe   : > { %v5453_v24 = vmax.f32 %v5395_v54, 0.0  ;;  %v4802_v59 = vpop.permute.xlu1 %4801 }
 0x4ff   : > { %v5092_v58 = vsel %vm1439_vm7, %v5057_v37, %v4802_v59  ;;  %v5018_v60 = vpop.permute.xlu2 %5017  ;;  %vm10770_vm7 = vmmov %vm10760_vm6 }
 0x500   : > { %5485 = vst.msk [vmem:[%s9901_s28 + $0x70] sm:$0xff] %vm10764_vm15, %v5453_v24  ;;  %v5124_v35 = vsel %vm10769_vm0, %v5092_v58, %v4837_v45  ;;  %vm10776_vm15 = vmmov %vm10755_vm1 }
 0x501   : > { %v5156_v20 = vsel %vm1505_vm9, %v5124_v35, %v4872_v61  ;;  %vm10783_vm0 = vmmov %vm10755_vm1 }
 0x502   : > { %v4878_v38 = vpop.permute.xlu0 %4877 }
 0x503   : > { %v5396_v47 = vpop.f32.mrf.mxu2 }
 0x504   : > { %v5397_v41 = vadd.f32 %v9890_v34, %v5396_v47 }
 0x506   : > { %v5454_v36 = vmax.f32 %v5397_v41, 0.0  ;;  %v4843_v53 = vpop.permute.xlu1 %4842 }
 0x507   : > { %v5130_v27 = vsel %vm10767_vm10, %v5098_v43, %v4843_v53  ;;  %vm10781_vm10 = vmmov %vm10755_vm1 }
 0x508   : > { %5486 = vst.msk [vmem:[%s9901_s28 + $0x78] sm:$0xff] %vm10765_vm4, %v5454_v36  ;;  %v5162_v30 = vsel %vm1505_vm9, %v5130_v27, %v4878_v38  ;;  %vm10774_vm9 = vmmov %vm10771_vm12 }
 0x509   : > { %v5194_v32 = vsel %vm10760_vm6, %v5162_v30, %v4913_v16  ;;  %vm10779_vm4 = vmmov %vm10755_vm1 }
 0x50a   : > { %v4942_v21 = vpop.permute.xlu0 %4941  ;;  %vm10784_vm6 = vmmov %vm10783_vm0 }
 0x50d   : > { %v5399_v3 = vpop.f32.mrf.mxu2 }
 0x50e   : > { %v5400_v17 = vadd.f32 %v9890_v34, %v5399_v3  ;;  %v4907_v26 = vpop.permute.xlu1 %4906 }
 0x50f   : > { %v5188_v5 = vsel %vm10770_vm7, %v5156_v20, %v4907_v26  ;;  %vm10785_vm7 = vmmov %vm10783_vm0 }
 0x510   : > { %v5455_v28 = vmax.f32 %v5400_v17, 0.0  ;;  %v5220_v56 = vsel %vm1571_vm11, %v5188_v5, %v4942_v21 }
 0x511   : > { %v5252_v8 = vsel %vm10774_vm9, %v5220_v56, %v4977_v10 }
 0x512   : > { %5487 = vst.msk [vmem:[%s9901_s28 + $0x80] sm:$0xff] %vm10768_vm2, %v5455_v28  ;;  %v4983_v63 = vpop.permute.xlu0 %4982  ;;  %vm10782_vm2 = vmmov %vm10755_vm1 }
 0x515   : > { %v5401_v0 = vpop.f32.mrf.mxu2 }
 0x516   : > { %v5402_v18 = vadd.f32 %v9890_v34, %v5401_v0  ;;  %v4948_v23 = vpop.permute.xlu1 %4947 }
 0x517   : > { %v5226_v2 = vsel %vm1571_vm11, %v5194_v32, %v4948_v23  ;;  %vm10777_vm11 = vmmov %vm10755_vm1 }
 0x518   : > { %v5456_v33 = vmax.f32 %v5402_v18, 0.0  ;;  %v5258_v13 = vsel %vm10771_vm12, %v5226_v2, %v4983_v63  ;;  %vm10786_vm12 = vmmov %vm10783_vm0 }
 0x519   : > { %v5290_v1 = vsel %vm1637_vm14, %v5258_v13, %v5018_v60 }
 0x51a   : > { %5488 = vst.msk [vmem:[%s9901_s28 + $0x88] sm:$0xff] %vm10772_vm5, %v5456_v33  ;;  %5928 = vmatmul.msk.bf16.gmra.mxu3 %vm10773_vm8, %v5290_v1  ;;  %vm10787_vm5 = vmmov %vm10783_vm0 }
 0x51b   : > { %vm10788_vm8 = vmmov %vm10783_vm0 }
 0x51e   : > { %v5012_v40 = vpop.permute.xlu1 %5011 }
 0x51f   : > { %v5284_v15 = vsel %vm1637_vm14, %v5252_v8, %v5012_v40  ;;  %vm10778_vm14 = vmmov %vm10755_vm1 }
 0x520   : > { %5925 = vmatmul.msk.bf16.gmra.mxu2 %vm10775_vm13, %v5284_v15 }
 0x524   : > { %v5404_v7 = vpop.f32.mrf.mxu2 }
 0x525   : > { %v5405_v46 = vadd.f32 %v9890_v34, %v5404_v7 }
 0x527   : > { %v5457_v9 = vmax.f32 %v5405_v46, 0.0 }
 0x529   : > { %5489 = vst.msk [vmem:[%s9901_s28 + $0x90] sm:$0xff] %vm10776_vm15, %v5457_v9 }
 0x52c   : > { %v5406_v50 = vpop.f32.mrf.mxu2 }
 0x52d   : > { %v5407_v12 = vadd.f32 %v9890_v34, %v5406_v50 }
 0x52f   : > { %v5458_v62 = vmax.f32 %v5407_v12, 0.0 }
 0x531   : > { %5490 = vst.msk [vmem:[%s9901_s28 + $0x98] sm:$0xff] %vm10777_vm11, %v5458_v62 }
 0x545   : > { %v5409_v22 = vpop.f32.mrf.mxu2 }
 0x546   : > { %v5410_v11 = vadd.f32 %v9890_v34, %v5409_v22 }
 0x548   : > { %v5459_v42 = vmax.f32 %v5410_v11, 0.0 }
 0x54a   : > { %5491 = vst.msk [vmem:[%s9901_s28 + $0xa0] sm:$0xff] %vm10778_vm14, %v5459_v42 }
 0x54c   : > { %v5424_v52 = vpop.f32.mrf.mxu3 }
 0x54d   : > { %v5425_v57 = vadd.f32 %v9890_v34, %v5424_v52  ;;  %v5411_v29 = vpop.f32.mrf.mxu2 }
 0x54e   : > { %v5412_v39 = vadd.f32 %v9890_v34, %v5411_v29 }
 0x54f   : > { %v5465_v48 = vmax.f32 %v5425_v57, 0.0 }
 0x550   : > { %v5460_v19 = vmax.f32 %v5412_v39, 0.0 }
 0x551   : > { %5497 = vst.msk [vmem:[%s9901_s28 + $0xd0] sm:$0xff] %vm10779_vm4, %v5465_v48 }
 0x552   : > { %5492 = vst.msk [vmem:[%s9901_s28 + $0xa8] sm:$0xff] %vm10755_vm1, %v5460_v19 }
 0x554   : > { %v5426_v31 = vpop.f32.mrf.mxu3 }
 0x555   : > { %v5427_v4 = vadd.f32 %v9890_v34, %v5426_v31 }
 0x557   : > { %v5466_v25 = vmax.f32 %v5427_v4, 0.0 }
 0x559   : > { %5498 = vst.msk [vmem:[%s9901_s28 + $0xd8] sm:$0xff] %vm10780_vm3, %v5466_v25 }
 0x574   : > { %v5414_v55 = vpop.f32.mrf.mxu2 }
 0x575   : > { %v5415_v6 = vadd.f32 %v9890_v34, %v5414_v55 }
 0x577   : > { %v5461_v49 = vmax.f32 %v5415_v6, 0.0 }
 0x579   : > { %5493 = vst.msk [vmem:[%s9901_s28 + $0xb0] sm:$0xff] %vm10781_vm10, %v5461_v49 }
 0x57b   : > { %v5429_v14 = vpop.f32.mrf.mxu3 }
 0x57c   : > { %v5430_v61 = vadd.f32 %v9890_v34, %v5429_v14  ;;  %v5416_v45 = vpop.f32.mrf.mxu2 }
 0x57d   : > { %v5417_v44 = vadd.f32 %v9890_v34, %v5416_v45 }
 0x57e   : > { %v5467_v54 = vmax.f32 %v5430_v61, 0.0 }
 0x57f   : > { %v5462_v24 = vmax.f32 %v5417_v44, 0.0 }
 0x580   : > { %5499 = vst.msk [vmem:[%s9901_s28 + $0xe0] sm:$0xff] %vm10782_vm2, %v5467_v54 }
 0x581   : > { %5494 = vst.msk [vmem:[%s9901_s28 + $0xb8] sm:$0xff] %vm10783_vm0, %v5462_v24 }
 0x583   : > { %v5431_v59 = vpop.f32.mrf.mxu3 }
 0x584   : > { %v5432_v38 = vadd.f32 %v9890_v34, %v5431_v59 }
 0x586   : > { %v5468_v47 = vmax.f32 %v5432_v38, 0.0 }
 0x588   : > { %5500 = vst.msk [vmem:[%s9901_s28 + $0xe8] sm:$0xff] %vm10784_vm6, %v5468_v47 }
 0x59d   : > { %v5434_v16 = vpop.f32.mrf.mxu3 }
 0x59e   : > { %v5435_v41 = vadd.f32 %v9890_v34, %v5434_v16 }
 0x5a0   : > { %v5469_v36 = vmax.f32 %v5435_v41, 0.0 }
 0x5a2   : > { %5501 = vst.msk [vmem:[%s9901_s28 + $0xf0] sm:$0xff] %vm10785_vm7, %v5469_v36 }
 0x5a3   : > { %v5419_v53 = vpop.f32.mrf.mxu2 }
 0x5a4   : > { %v5420_v21 = vadd.f32 %v9890_v34, %v5419_v53 }
 0x5a5   : > { %v5436_v51 = vpop.f32.mrf.mxu3 }
 0x5a6   : > { %v5463_v3 = vmax.f32 %v5420_v21, 0.0  ;;  %v5437_v10 = vadd.f32 %v9890_v34, %v5436_v51 }
 0x5a8   : > { %5495 = vst.msk [vmem:[%s9901_s28 + $0xc0] sm:$0xff] %vm10786_vm12, %v5463_v3  ;;  %v5470_v17 = vmax.f32 %v5437_v10, 0.0 }
 0x5aa   : > { %5502 = vst.msk [vmem:[%s9901_s28 + $0xf8] sm:$0xff] %vm10787_vm5, %v5470_v17 }
 0x5ab   : > { %v5421_v26 = vpop.f32.mrf.mxu2 }
 0x5ac   : > { %v5422_v43 = vadd.f32 %v9890_v34, %v5421_v26 }
 0x5ae   : > { %v5464_v37 = vmax.f32 %v5422_v43, 0.0 }
 0x5b0   : > { %5496 = vst.msk [vmem:[%s9901_s28 + $0xc8] sm:$0xff] %vm10788_vm8, %v5464_v37 }
 0x5b1 PF: > { %s17_s24 = sadd.s32 1, %s6066_s24  }
 0x5b2   : > { %p14_p4 = scmp.ge.s32.totalorder %s17_s24, 4  }
 0x5b4   :  { %16 = sbr.rel (!%p14_p4) target bundleno = 1 (0x1), region = 82 }

</bundles_post_ra>
